<compile_context>
chip_gen: v7x
topology: tpu7x:2x2x1
jax: 0.10.0
libtpu: 0.0.40
codegen_flags: <defaults>
</compile_context>

<pallas_src>
import functools

import numpy as np
import jax
import jax.numpy as jnp
from jax import lax
from jax.experimental import pallas as pl
from jax.experimental.pallas import tpu as pltpu


# ---------------------------------------------------------------------------
# Fused conv 5x5 (stride 1, pad 2) + bias + ReLU + maxpool 2x2 (stride 2).
# The H- and W-padded image is flattened to a (rows, Cin) slab so every conv tap is a
# contiguous sublane slice (no masks); the pool epilogue decimates with stride-2 reads.
# ---------------------------------------------------------------------------
def _conv_relu_pool_kernel(x_ref, w_ref, b_ref, o_ref, y_ref, *, H, W, Wp, Cout):
    HWp = H * Wp                       # pseudo-outputs: H rows x padded width Wp = W + 4
    acc = jnp.zeros((HWp, Cout), jnp.float32)
    for kh in range(5):
        for kw in range(5):
            # Contiguous slice of the flat slab; cast to bf16 so the MXU runs at 2x.
            patch = x_ref[0, pl.ds(kh * Wp + kw, HWp), :].astype(jnp.bfloat16)
            acc = acc + jnp.dot(patch, w_ref[kh * 5 + kw],
                                preferred_element_type=jnp.float32)
    # Bias + ReLU in f32, stash in VMEM scratch so the pool can re-read it strided.
    y_ref[...] = jnp.maximum(acc + b_ref[...], 0.0)

    # 2x2 / stride-2 max pool.  Real conv output (h, w) lives at flat index h*Wp + w + 2;
    # padding-column entries of y_ref are garbage but are never read here.
    Ho, Wo = H // 2, W // 2
    for h2 in range(Ho):
        r0 = (2 * h2) * Wp + 2
        r1 = r0 + Wp
        p = jnp.maximum(
            jnp.maximum(y_ref[pl.ds(r0, Wo, 2), :], y_ref[pl.ds(r0 + 1, Wo, 2), :]),
            jnp.maximum(y_ref[pl.ds(r1, Wo, 2), :], y_ref[pl.ds(r1 + 1, Wo, 2), :]))
        o_ref[0, h2] = p


def conv_relu_pool(x, w, b):
    """x: (N, H, W, Cin) f32; w: (5,5,Cin,Cout); b: (Cout,) -> (N, H//2, W//2, Cout) f32."""
    N, H, W, Cin = x.shape
    Cout = w.shape[-1]
    Wp = W + 4
    Ho, Wo = H // 2, W // 2

    # Pad channels up to 8 so the MXU contraction dim is never 1 (layer 1 has Cin=1).
    Cin_p = max(Cin, 8)
    if Cin_p != Cin:
        x = jnp.pad(x, ((0, 0), (0, 0), (0, 0), (0, Cin_p - Cin)))
        w = jnp.pad(w, ((0, 0), (0, 0), (0, Cin_p - Cin), (0, 0)))

    # Zero-pad H and W by 2 (the conv's 'same' padding), flatten (H+4, W+4) into one axis
    # and add 2 guard rows so every tap slice stays in bounds.  No masks needed.
    xp = jnp.pad(x, ((0, 0), (2, 2), (2, 2), (0, 0)))      # (N, H+4, Wp, Cin_p)
    xf = xp.reshape(N, (H + 4) * Wp, Cin_p)
    xf = jnp.pad(xf, ((0, 0), (2, 2), (0, 0)))
    P = (H + 4) * Wp + 4

    wf = w.reshape(25, Cin_p, Cout).astype(jnp.bfloat16)   # bf16 MXU weights
    bf = b.reshape(1, Cout).astype(jnp.float32)

    kern = functools.partial(_conv_relu_pool_kernel, H=H, W=W, Wp=Wp, Cout=Cout)
    return pl.pallas_call(
        kern,
        out_shape=jax.ShapeDtypeStruct((N, Ho, Wo, Cout), jnp.float32),
        grid=(N,),
        in_specs=[
            pl.BlockSpec((1, P, Cin_p), lambda n: (n, 0, 0)),
            pl.BlockSpec((25, Cin_p, Cout), lambda n: (0, 0, 0)),
            pl.BlockSpec((1, Cout), lambda n: (0, 0)),
        ],
        out_specs=pl.BlockSpec((1, Ho, Wo, Cout), lambda n: (n, 0, 0, 0)),
        scratch_shapes=[pltpu.VMEM((H * Wp, Cout), jnp.float32)],
        compiler_params=pltpu.CompilerParams(
            dimension_semantics=("parallel",),          # batch-parallel (megacore on v7x)
            vmem_limit_bytes=32 * 1024 * 1024),
    )(xf, wf, bf)


# ---------------------------------------------------------------------------
# Dense layer: K-tiled accumulating matmul, output dim padded to 128 lanes.
# ---------------------------------------------------------------------------
def _dense_kernel(x_ref, w_ref, b_ref, o_ref):
    k = pl.program_id(0)

    @pl.when(k == 0)
    def _():
        o_ref[...] = jnp.zeros_like(o_ref)

    o_ref[...] += jnp.dot(x_ref[...].astype(jnp.bfloat16), w_ref[...],
                          preferred_element_type=jnp.float32)

    @pl.when(k == pl.num_programs(0) - 1)
    def _():
        o_ref[...] += b_ref[...]


def dense(x, w, b, t):
    """x: (N, F) f32; w: (F, t); b: (t,) -> (N, t)."""
    N, F = x.shape
    Tp = 128                                        # lane-dense weight/output
    wp = jnp.zeros((F, Tp), jnp.bfloat16).at[:, :t].set(w.astype(jnp.bfloat16))
    bp = jnp.zeros((1, Tp), jnp.float32).at[0, :t].set(b.astype(jnp.float32))
    TK = 128 if F % 128 == 0 else F                 # K-tile over the feature dim
    nk = F // TK
    out = pl.pallas_call(
        _dense_kernel,
        out_shape=jax.ShapeDtypeStruct((N, Tp), jnp.float32),
        grid=(nk,),
        in_specs=[pl.BlockSpec((N, TK), lambda k: (0, k)),
                  pl.BlockSpec((TK, Tp), lambda k: (k, 0)),
                  pl.BlockSpec((1, Tp), lambda k: (0, 0))],
        out_specs=pl.BlockSpec((N, Tp), lambda k: (0, 0)),
        compiler_params=pltpu.CompilerParams(
            dimension_semantics=("arbitrary",),
            vmem_limit_bytes=32 * 1024 * 1024),
    )(x, wp, bp)
    return out[:, :t]


# ---------------------------------------------------------------------------
# Parameters + full forward pass (mirrors BasicConvnet.forward).
# ---------------------------------------------------------------------------
def init_params(key, target_size, in_hw):
    H, W = in_hw
    ks = jax.random.split(key, 5)

    def conv_p(k, cin, cout):
        kw_, kb_ = jax.random.split(k)
        std = 1.0 / np.sqrt(25 * cin)
        w = jax.random.normal(kw_, (5, 5, cin, cout), jnp.float32) * std
        b = jax.random.normal(kb_, (cout,), jnp.float32) * std
        return w, b

    w1, b1 = conv_p(ks[0], 1, 16)
    w2, b2 = conv_p(ks[1], 16, 32)
    w3, b3 = conv_p(ks[2], 32, 64)

    # Dense weights in torch's NCHW-flatten row order (like nn.Linear after .view(N, -1)).
    Ho, Wo, C = H // 8, W // 8, 64
    F = C * Ho * Wo
    std = 1.0 / np.sqrt(F)
    wd = jax.random.normal(ks[3], (F, target_size), jnp.float32) * std
    bd = jax.random.normal(ks[4], (target_size,), jnp.float32) * std
    # One-time permutation of the dense weight rows to NHWC-flatten order so the forward
    # pass never transposes the feature map (zero runtime cost, done at init).
    wd_nhwc = wd.reshape(C, Ho, Wo, target_size).transpose(1, 2, 0, 3).reshape(F, target_size)
    return dict(w1=w1, b1=b1, w2=w2, b2=b2, w3=w3, b3=b3,
                wd=wd, bd=bd, wd_nhwc=wd_nhwc)


def basic_convnet_forward(params, dmap_nchw, target_size):
    """dmap_nchw: (N, 1, H, W) f32 -> (N,) if target_size == 1 else (N, target_size)."""
    x = jnp.transpose(dmap_nchw, (0, 2, 3, 1))          # NCHW -> NHWC (one-time glue)
    x = conv_relu_pool(x, params["w1"], params["b1"])   # fused conv+ReLU+pool
    x = conv_relu_pool(x, params["w2"], params["b2"])
    x = conv_relu_pool(x, params["w3"], params["b3"])
    feat = x.reshape(x.shape[0], -1)                    # NHWC flatten (no transpose needed)
    out = dense(feat, params["wd_nhwc"], params["bd"], target_size)
    return out[:, 0] if target_size == 1 else out       # mimics torch .squeeze(1)


# ---------------------------------------------------------------------------
# Pure-JAX reference (NCHW, f32, same weights) for a numerical sanity check.
# ---------------------------------------------------------------------------
def reference_forward(params, dmap_nchw, target_size):
    x = dmap_nchw
    for w, b in ((params["w1"], params["b1"]),
                 (params["w2"], params["b2"]),
                 (params["w3"], params["b3"])):
        y = lax.conv_general_dilated(
            x, w, window_strides=(1, 1), padding=((2, 2), (2, 2)),
            dimension_numbers=("NCHW", "HWIO", "NCHW"))
        y = jnp.maximum(y + b[None, :, None, None], 0.0)
        x = lax.reduce_window(y, -jnp.inf, lax.max,
                              window_dimensions=(1, 1, 2, 2),
                              window_strides=(1, 1, 2, 2), padding="VALID")
    feat = x.reshape(x.shape[0], -1)
    out = feat @ params["wd"] + params["bd"]
    return out[:, 0] if target_size == 1 else out


if __name__ == "__main__":
    key = jax.random.PRNGKey(0)
    pkey, xkey = jax.random.split(key)
    target_size = 1
    N, H, W = 2, 16, 16

    params = init_params(pkey, target_size, (H, W))
    dmap = jax.random.normal(xkey, (N, 1, H, W), jnp.float32)

    fwd = jax.jit(basic_convnet_forward, static_argnums=2)
    out = jax.block_until_ready(fwd(params, dmap, target_size))
    ref = jax.block_until_ready(reference_forward(params, dmap, target_size))

    assert out.shape == (N,), out.shape
    # bf16 MXU inputs (f32 accumulation) vs f32 reference -> slightly looser tolerance.
    np.testing.assert_allclose(np.asarray(out), np.asarray(ref), rtol=5e-2, atol=5e-2)
    print("KERNEL_OK")
</pallas_src>

<mosaic_0001>
module attributes {stable_mosaic.version = 11 : i64} {
  func.func @_conv_relu_pool_kernel(%arg0: i32, %arg1: memref<1x404x8xf32, #tpu.memory_space<vmem>>, %arg2: memref<25x8x16xbf16, #tpu.memory_space<vmem>>, %arg3: memref<1x16xf32, #tpu.memory_space<vmem>>, %arg4: memref<1x8x8x16xf32, #tpu.memory_space<vmem>>, %arg5: memref<320x16xf32, #tpu.memory_space<vmem>>) attributes {dimension_semantics = [#tpu.dimension_semantics<parallel>], iteration_bounds = array<i64: 2>, scalar_prefetch = 0 : i64, scratch_operands = 1 : i64, tpu.core_type = #tpu.core_type<tc>, window_params = [{transform_indices = @transform_0, window_bounds = array<i64: 1, 404, 8>}, {pipeline_mode = #tpu.pipeline_mode<synchronous>, transform_indices = @transform_1, window_bounds = array<i64: 25, 8, 16>}, {pipeline_mode = #tpu.pipeline_mode<synchronous>, transform_indices = @transform_2, window_bounds = array<i64: 1, 16>}, {transform_indices = @transform_3, window_bounds = array<i64: 1, 8, 8, 16>}]} {
    %cst = arith.constant 0.000000e+00 : f32
    %0 = vector.broadcast %cst : f32 to vector<320x16xf32>
    %c0 = arith.constant 0 : index
    %c0_0 = arith.constant 0 : index
    %c0_1 = arith.constant 0 : index
    %1 = vector.load %arg1[%c0, %c0_0, %c0_1] : memref<1x404x8xf32, #tpu.memory_space<vmem>>, vector<1x320x8xf32>
    %2 = vector.shape_cast %1 : vector<1x320x8xf32> to vector<320x8xf32>
    %3 = arith.truncf %2 : vector<320x8xf32> to vector<320x8xbf16>
    %c0_2 = arith.constant 0 : index
    %c0_3 = arith.constant 0 : index
    %c0_4 = arith.constant 0 : index
    %4 = vector.load %arg2[%c0_2, %c0_3, %c0_4] : memref<25x8x16xbf16, #tpu.memory_space<vmem>>, vector<1x8x16xbf16>
    %5 = vector.shape_cast %4 : vector<1x8x16xbf16> to vector<8x16xbf16>
    %cst_5 = arith.constant dense<0.000000e+00> : vector<320x16xf32>
    %6 = tpu.matmul %3, %5, %cst_5 {dimension_numbers = #tpu.dot_dimension_numbers<[1], [0], [0], [1], [0, 0, 1, 1], [], []>} : vector<320x8xbf16>, vector<8x16xbf16>, vector<320x16xf32> -> vector<320x16xf32>
    %7 = arith.addf %0, %6 : vector<320x16xf32>
    %c0_6 = arith.constant 0 : index
    %c1 = arith.constant 1 : index
    %c0_7 = arith.constant 0 : index
    %8 = vector.load %arg1[%c0_6, %c1, %c0_7] : memref<1x404x8xf32, #tpu.memory_space<vmem>>, vector<1x320x8xf32>
    %9 = vector.shape_cast %8 : vector<1x320x8xf32> to vector<320x8xf32>
    %10 = arith.truncf %9 : vector<320x8xf32> to vector<320x8xbf16>
    %c1_8 = arith.constant 1 : index
    %c0_9 = arith.constant 0 : index
    %c0_10 = arith.constant 0 : index
    %11 = vector.load %arg2[%c1_8, %c0_9, %c0_10] : memref<25x8x16xbf16, #tpu.memory_space<vmem>>, vector<1x8x16xbf16>
    %12 = vector.shape_cast %11 : vector<1x8x16xbf16> to vector<8x16xbf16>
    %cst_11 = arith.constant dense<0.000000e+00> : vector<320x16xf32>
    %13 = tpu.matmul %10, %12, %cst_11 {dimension_numbers = #tpu.dot_dimension_numbers<[1], [0], [0], [1], [0, 0, 1, 1], [], []>} : vector<320x8xbf16>, vector<8x16xbf16>, vector<320x16xf32> -> vector<320x16xf32>
    %14 = arith.addf %7, %13 : vector<320x16xf32>
    %c0_12 = arith.constant 0 : index
    %c2 = arith.constant 2 : index
    %c0_13 = arith.constant 0 : index
    %15 = vector.load %arg1[%c0_12, %c2, %c0_13] : memref<1x404x8xf32, #tpu.memory_space<vmem>>, vector<1x320x8xf32>
    %16 = vector.shape_cast %15 : vector<1x320x8xf32> to vector<320x8xf32>
    %17 = arith.truncf %16 : vector<320x8xf32> to vector<320x8xbf16>
    %c2_14 = arith.constant 2 : index
    %c0_15 = arith.constant 0 : index
    %c0_16 = arith.constant 0 : index
    %18 = vector.load %arg2[%c2_14, %c0_15, %c0_16] : memref<25x8x16xbf16, #tpu.memory_space<vmem>>, vector<1x8x16xbf16>
    %19 = vector.shape_cast %18 : vector<1x8x16xbf16> to vector<8x16xbf16>
    %cst_17 = arith.constant dense<0.000000e+00> : vector<320x16xf32>
    %20 = tpu.matmul %17, %19, %cst_17 {dimension_numbers = #tpu.dot_dimension_numbers<[1], [0], [0], [1], [0, 0, 1, 1], [], []>} : vector<320x8xbf16>, vector<8x16xbf16>, vector<320x16xf32> -> vector<320x16xf32>
    %21 = arith.addf %14, %20 : vector<320x16xf32>
    %c0_18 = arith.constant 0 : index
    %c3 = arith.constant 3 : index
    %c0_19 = arith.constant 0 : index
    %22 = vector.load %arg1[%c0_18, %c3, %c0_19] : memref<1x404x8xf32, #tpu.memory_space<vmem>>, vector<1x320x8xf32>
    %23 = vector.shape_cast %22 : vector<1x320x8xf32> to vector<320x8xf32>
    %24 = arith.truncf %23 : vector<320x8xf32> to vector<320x8xbf16>
    %c3_20 = arith.constant 3 : index
    %c0_21 = arith.constant 0 : index
    %c0_22 = arith.constant 0 : index
    %25 = vector.load %arg2[%c3_20, %c0_21, %c0_22] : memref<25x8x16xbf16, #tpu.memory_space<vmem>>, vector<1x8x16xbf16>
    %26 = vector.shape_cast %25 : vector<1x8x16xbf16> to vector<8x16xbf16>
    %cst_23 = arith.constant dense<0.000000e+00> : vector<320x16xf32>
    %27 = tpu.matmul %24, %26, %cst_23 {dimension_numbers = #tpu.dot_dimension_numbers<[1], [0], [0], [1], [0, 0, 1, 1], [], []>} : vector<320x8xbf16>, vector<8x16xbf16>, vector<320x16xf32> -> vector<320x16xf32>
    %28 = arith.addf %21, %27 : vector<320x16xf32>
    %c0_24 = arith.constant 0 : index
    %c4 = arith.constant 4 : index
    %c0_25 = arith.constant 0 : index
    %29 = vector.load %arg1[%c0_24, %c4, %c0_25] : memref<1x404x8xf32, #tpu.memory_space<vmem>>, vector<1x320x8xf32>
    %30 = vector.shape_cast %29 : vector<1x320x8xf32> to vector<320x8xf32>
    %31 = arith.truncf %30 : vector<320x8xf32> to vector<320x8xbf16>
    %c4_26 = arith.constant 4 : index
    %c0_27 = arith.constant 0 : index
    %c0_28 = arith.constant 0 : index
    %32 = vector.load %arg2[%c4_26, %c0_27, %c0_28] : memref<25x8x16xbf16, #tpu.memory_space<vmem>>, vector<1x8x16xbf16>
    %33 = vector.shape_cast %32 : vector<1x8x16xbf16> to vector<8x16xbf16>
    %cst_29 = arith.constant dense<0.000000e+00> : vector<320x16xf32>
    %34 = tpu.matmul %31, %33, %cst_29 {dimension_numbers = #tpu.dot_dimension_numbers<[1], [0], [0], [1], [0, 0, 1, 1], [], []>} : vector<320x8xbf16>, vector<8x16xbf16>, vector<320x16xf32> -> vector<320x16xf32>
    %35 = arith.addf %28, %34 : vector<320x16xf32>
    %c0_30 = arith.constant 0 : index
    %c20 = arith.constant 20 : index
    %c0_31 = arith.constant 0 : index
    %36 = vector.load %arg1[%c0_30, %c20, %c0_31] : memref<1x404x8xf32, #tpu.memory_space<vmem>>, vector<1x320x8xf32>
    %37 = vector.shape_cast %36 : vector<1x320x8xf32> to vector<320x8xf32>
    %38 = arith.truncf %37 : vector<320x8xf32> to vector<320x8xbf16>
    %c5 = arith.constant 5 : index
    %c0_32 = arith.constant 0 : index
    %c0_33 = arith.constant 0 : index
    %39 = vector.load %arg2[%c5, %c0_32, %c0_33] : memref<25x8x16xbf16, #tpu.memory_space<vmem>>, vector<1x8x16xbf16>
    %40 = vector.shape_cast %39 : vector<1x8x16xbf16> to vector<8x16xbf16>
    %cst_34 = arith.constant dense<0.000000e+00> : vector<320x16xf32>
    %41 = tpu.matmul %38, %40, %cst_34 {dimension_numbers = #tpu.dot_dimension_numbers<[1], [0], [0], [1], [0, 0, 1, 1], [], []>} : vector<320x8xbf16>, vector<8x16xbf16>, vector<320x16xf32> -> vector<320x16xf32>
    %42 = arith.addf %35, %41 : vector<320x16xf32>
    %c0_35 = arith.constant 0 : index
    %c21 = arith.constant 21 : index
    %c0_36 = arith.constant 0 : index
    %43 = vector.load %arg1[%c0_35, %c21, %c0_36] : memref<1x404x8xf32, #tpu.memory_space<vmem>>, vector<1x320x8xf32>
    %44 = vector.shape_cast %43 : vector<1x320x8xf32> to vector<320x8xf32>
    %45 = arith.truncf %44 : vector<320x8xf32> to vector<320x8xbf16>
    %c6 = arith.constant 6 : index
    %c0_37 = arith.constant 0 : index
    %c0_38 = arith.constant 0 : index
    %46 = vector.load %arg2[%c6, %c0_37, %c0_38] : memref<25x8x16xbf16, #tpu.memory_space<vmem>>, vector<1x8x16xbf16>
    %47 = vector.shape_cast %46 : vector<1x8x16xbf16> to vector<8x16xbf16>
    %cst_39 = arith.constant dense<0.000000e+00> : vector<320x16xf32>
    %48 = tpu.matmul %45, %47, %cst_39 {dimension_numbers = #tpu.dot_dimension_numbers<[1], [0], [0], [1], [0, 0, 1, 1], [], []>} : vector<320x8xbf16>, vector<8x16xbf16>, vector<320x16xf32> -> vector<320x16xf32>
    %49 = arith.addf %42, %48 : vector<320x16xf32>
    %c0_40 = arith.constant 0 : index
    %c22 = arith.constant 22 : index
    %c0_41 = arith.constant 0 : index
    %50 = vector.load %arg1[%c0_40, %c22, %c0_41] : memref<1x404x8xf32, #tpu.memory_space<vmem>>, vector<1x320x8xf32>
    %51 = vector.shape_cast %50 : vector<1x320x8xf32> to vector<320x8xf32>
    %52 = arith.truncf %51 : vector<320x8xf32> to vector<320x8xbf16>
    %c7 = arith.constant 7 : index
    %c0_42 = arith.constant 0 : index
    %c0_43 = arith.constant 0 : index
    %53 = vector.load %arg2[%c7, %c0_42, %c0_43] : memref<25x8x16xbf16, #tpu.memory_space<vmem>>, vector<1x8x16xbf16>
    %54 = vector.shape_cast %53 : vector<1x8x16xbf16> to vector<8x16xbf16>
    %cst_44 = arith.constant dense<0.000000e+00> : vector<320x16xf32>
    %55 = tpu.matmul %52, %54, %cst_44 {dimension_numbers = #tpu.dot_dimension_numbers<[1], [0], [0], [1], [0, 0, 1, 1], [], []>} : vector<320x8xbf16>, vector<8x16xbf16>, vector<320x16xf32> -> vector<320x16xf32>
    %56 = arith.addf %49, %55 : vector<320x16xf32>
    %c0_45 = arith.constant 0 : index
    %c23 = arith.constant 23 : index
    %c0_46 = arith.constant 0 : index
    %57 = vector.load %arg1[%c0_45, %c23, %c0_46] : memref<1x404x8xf32, #tpu.memory_space<vmem>>, vector<1x320x8xf32>
    %58 = vector.shape_cast %57 : vector<1x320x8xf32> to vector<320x8xf32>
    %59 = arith.truncf %58 : vector<320x8xf32> to vector<320x8xbf16>
    %c8 = arith.constant 8 : index
    %c0_47 = arith.constant 0 : index
    %c0_48 = arith.constant 0 : index
    %60 = vector.load %arg2[%c8, %c0_47, %c0_48] : memref<25x8x16xbf16, #tpu.memory_space<vmem>>, vector<1x8x16xbf16>
    %61 = vector.shape_cast %60 : vector<1x8x16xbf16> to vector<8x16xbf16>
    %cst_49 = arith.constant dense<0.000000e+00> : vector<320x16xf32>
    %62 = tpu.matmul %59, %61, %cst_49 {dimension_numbers = #tpu.dot_dimension_numbers<[1], [0], [0], [1], [0, 0, 1, 1], [], []>} : vector<320x8xbf16>, vector<8x16xbf16>, vector<320x16xf32> -> vector<320x16xf32>
    %63 = arith.addf %56, %62 : vector<320x16xf32>
    %c0_50 = arith.constant 0 : index
    %c24 = arith.constant 24 : index
    %c0_51 = arith.constant 0 : index
    %64 = vector.load %arg1[%c0_50, %c24, %c0_51] : memref<1x404x8xf32, #tpu.memory_space<vmem>>, vector<1x320x8xf32>
    %65 = vector.shape_cast %64 : vector<1x320x8xf32> to vector<320x8xf32>
    %66 = arith.truncf %65 : vector<320x8xf32> to vector<320x8xbf16>
    %c9 = arith.constant 9 : index
    %c0_52 = arith.constant 0 : index
    %c0_53 = arith.constant 0 : index
    %67 = vector.load %arg2[%c9, %c0_52, %c0_53] : memref<25x8x16xbf16, #tpu.memory_space<vmem>>, vector<1x8x16xbf16>
    %68 = vector.shape_cast %67 : vector<1x8x16xbf16> to vector<8x16xbf16>
    %cst_54 = arith.constant dense<0.000000e+00> : vector<320x16xf32>
    %69 = tpu.matmul %66, %68, %cst_54 {dimension_numbers = #tpu.dot_dimension_numbers<[1], [0], [0], [1], [0, 0, 1, 1], [], []>} : vector<320x8xbf16>, vector<8x16xbf16>, vector<320x16xf32> -> vector<320x16xf32>
    %70 = arith.addf %63, %69 : vector<320x16xf32>
    %c0_55 = arith.constant 0 : index
    %c40 = arith.constant 40 : index
    %c0_56 = arith.constant 0 : index
    %71 = vector.load %arg1[%c0_55, %c40, %c0_56] : memref<1x404x8xf32, #tpu.memory_space<vmem>>, vector<1x320x8xf32>
    %72 = vector.shape_cast %71 : vector<1x320x8xf32> to vector<320x8xf32>
    %73 = arith.truncf %72 : vector<320x8xf32> to vector<320x8xbf16>
    %c10 = arith.constant 10 : index
    %c0_57 = arith.constant 0 : index
    %c0_58 = arith.constant 0 : index
    %74 = vector.load %arg2[%c10, %c0_57, %c0_58] : memref<25x8x16xbf16, #tpu.memory_space<vmem>>, vector<1x8x16xbf16>
    %75 = vector.shape_cast %74 : vector<1x8x16xbf16> to vector<8x16xbf16>
    %cst_59 = arith.constant dense<0.000000e+00> : vector<320x16xf32>
    %76 = tpu.matmul %73, %75, %cst_59 {dimension_numbers = #tpu.dot_dimension_numbers<[1], [0], [0], [1], [0, 0, 1, 1], [], []>} : vector<320x8xbf16>, vector<8x16xbf16>, vector<320x16xf32> -> vector<320x16xf32>
    %77 = arith.addf %70, %76 : vector<320x16xf32>
    %c0_60 = arith.constant 0 : index
    %c41 = arith.constant 41 : index
    %c0_61 = arith.constant 0 : index
    %78 = vector.load %arg1[%c0_60, %c41, %c0_61] : memref<1x404x8xf32, #tpu.memory_space<vmem>>, vector<1x320x8xf32>
    %79 = vector.shape_cast %78 : vector<1x320x8xf32> to vector<320x8xf32>
    %80 = arith.truncf %79 : vector<320x8xf32> to vector<320x8xbf16>
    %c11 = arith.constant 11 : index
    %c0_62 = arith.constant 0 : index
    %c0_63 = arith.constant 0 : index
    %81 = vector.load %arg2[%c11, %c0_62, %c0_63] : memref<25x8x16xbf16, #tpu.memory_space<vmem>>, vector<1x8x16xbf16>
    %82 = vector.shape_cast %81 : vector<1x8x16xbf16> to vector<8x16xbf16>
    %cst_64 = arith.constant dense<0.000000e+00> : vector<320x16xf32>
    %83 = tpu.matmul %80, %82, %cst_64 {dimension_numbers = #tpu.dot_dimension_numbers<[1], [0], [0], [1], [0, 0, 1, 1], [], []>} : vector<320x8xbf16>, vector<8x16xbf16>, vector<320x16xf32> -> vector<320x16xf32>
    %84 = arith.addf %77, %83 : vector<320x16xf32>
    %c0_65 = arith.constant 0 : index
    %c42 = arith.constant 42 : index
    %c0_66 = arith.constant 0 : index
    %85 = vector.load %arg1[%c0_65, %c42, %c0_66] : memref<1x404x8xf32, #tpu.memory_space<vmem>>, vector<1x320x8xf32>
    %86 = vector.shape_cast %85 : vector<1x320x8xf32> to vector<320x8xf32>
    %87 = arith.truncf %86 : vector<320x8xf32> to vector<320x8xbf16>
    %c12 = arith.constant 12 : index
    %c0_67 = arith.constant 0 : index
    %c0_68 = arith.constant 0 : index
    %88 = vector.load %arg2[%c12, %c0_67, %c0_68] : memref<25x8x16xbf16, #tpu.memory_space<vmem>>, vector<1x8x16xbf16>
    %89 = vector.shape_cast %88 : vector<1x8x16xbf16> to vector<8x16xbf16>
    %cst_69 = arith.constant dense<0.000000e+00> : vector<320x16xf32>
    %90 = tpu.matmul %87, %89, %cst_69 {dimension_numbers = #tpu.dot_dimension_numbers<[1], [0], [0], [1], [0, 0, 1, 1], [], []>} : vector<320x8xbf16>, vector<8x16xbf16>, vector<320x16xf32> -> vector<320x16xf32>
    %91 = arith.addf %84, %90 : vector<320x16xf32>
    %c0_70 = arith.constant 0 : index
    %c43 = arith.constant 43 : index
    %c0_71 = arith.constant 0 : index
    %92 = vector.load %arg1[%c0_70, %c43, %c0_71] : memref<1x404x8xf32, #tpu.memory_space<vmem>>, vector<1x320x8xf32>
    %93 = vector.shape_cast %92 : vector<1x320x8xf32> to vector<320x8xf32>
    %94 = arith.truncf %93 : vector<320x8xf32> to vector<320x8xbf16>
    %c13 = arith.constant 13 : index
    %c0_72 = arith.constant 0 : index
    %c0_73 = arith.constant 0 : index
    %95 = vector.load %arg2[%c13, %c0_72, %c0_73] : memref<25x8x16xbf16, #tpu.memory_space<vmem>>, vector<1x8x16xbf16>
    %96 = vector.shape_cast %95 : vector<1x8x16xbf16> to vector<8x16xbf16>
    %cst_74 = arith.constant dense<0.000000e+00> : vector<320x16xf32>
    %97 = tpu.matmul %94, %96, %cst_74 {dimension_numbers = #tpu.dot_dimension_numbers<[1], [0], [0], [1], [0, 0, 1, 1], [], []>} : vector<320x8xbf16>, vector<8x16xbf16>, vector<320x16xf32> -> vector<320x16xf32>
    %98 = arith.addf %91, %97 : vector<320x16xf32>
    %c0_75 = arith.constant 0 : index
    %c44 = arith.constant 44 : index
    %c0_76 = arith.constant 0 : index
    %99 = vector.load %arg1[%c0_75, %c44, %c0_76] : memref<1x404x8xf32, #tpu.memory_space<vmem>>, vector<1x320x8xf32>
    %100 = vector.shape_cast %99 : vector<1x320x8xf32> to vector<320x8xf32>
    %101 = arith.truncf %100 : vector<320x8xf32> to vector<320x8xbf16>
    %c14 = arith.constant 14 : index
    %c0_77 = arith.constant 0 : index
    %c0_78 = arith.constant 0 : index
    %102 = vector.load %arg2[%c14, %c0_77, %c0_78] : memref<25x8x16xbf16, #tpu.memory_space<vmem>>, vector<1x8x16xbf16>
    %103 = vector.shape_cast %102 : vector<1x8x16xbf16> to vector<8x16xbf16>
    %cst_79 = arith.constant dense<0.000000e+00> : vector<320x16xf32>
    %104 = tpu.matmul %101, %103, %cst_79 {dimension_numbers = #tpu.dot_dimension_numbers<[1], [0], [0], [1], [0, 0, 1, 1], [], []>} : vector<320x8xbf16>, vector<8x16xbf16>, vector<320x16xf32> -> vector<320x16xf32>
    %105 = arith.addf %98, %104 : vector<320x16xf32>
    %c0_80 = arith.constant 0 : index
    %c60 = arith.constant 60 : index
    %c0_81 = arith.constant 0 : index
    %106 = vector.load %arg1[%c0_80, %c60, %c0_81] : memref<1x404x8xf32, #tpu.memory_space<vmem>>, vector<1x320x8xf32>
    %107 = vector.shape_cast %106 : vector<1x320x8xf32> to vector<320x8xf32>
    %108 = arith.truncf %107 : vector<320x8xf32> to vector<320x8xbf16>
    %c15 = arith.constant 15 : index
    %c0_82 = arith.constant 0 : index
    %c0_83 = arith.constant 0 : index
    %109 = vector.load %arg2[%c15, %c0_82, %c0_83] : memref<25x8x16xbf16, #tpu.memory_space<vmem>>, vector<1x8x16xbf16>
    %110 = vector.shape_cast %109 : vector<1x8x16xbf16> to vector<8x16xbf16>
    %cst_84 = arith.constant dense<0.000000e+00> : vector<320x16xf32>
    %111 = tpu.matmul %108, %110, %cst_84 {dimension_numbers = #tpu.dot_dimension_numbers<[1], [0], [0], [1], [0, 0, 1, 1], [], []>} : vector<320x8xbf16>, vector<8x16xbf16>, vector<320x16xf32> -> vector<320x16xf32>
    %112 = arith.addf %105, %111 : vector<320x16xf32>
    %c0_85 = arith.constant 0 : index
    %c61 = arith.constant 61 : index
    %c0_86 = arith.constant 0 : index
    %113 = vector.load %arg1[%c0_85, %c61, %c0_86] : memref<1x404x8xf32, #tpu.memory_space<vmem>>, vector<1x320x8xf32>
    %114 = vector.shape_cast %113 : vector<1x320x8xf32> to vector<320x8xf32>
    %115 = arith.truncf %114 : vector<320x8xf32> to vector<320x8xbf16>
    %c16 = arith.constant 16 : index
    %c0_87 = arith.constant 0 : index
    %c0_88 = arith.constant 0 : index
    %116 = vector.load %arg2[%c16, %c0_87, %c0_88] : memref<25x8x16xbf16, #tpu.memory_space<vmem>>, vector<1x8x16xbf16>
    %117 = vector.shape_cast %116 : vector<1x8x16xbf16> to vector<8x16xbf16>
    %cst_89 = arith.constant dense<0.000000e+00> : vector<320x16xf32>
    %118 = tpu.matmul %115, %117, %cst_89 {dimension_numbers = #tpu.dot_dimension_numbers<[1], [0], [0], [1], [0, 0, 1, 1], [], []>} : vector<320x8xbf16>, vector<8x16xbf16>, vector<320x16xf32> -> vector<320x16xf32>
    %119 = arith.addf %112, %118 : vector<320x16xf32>
    %c0_90 = arith.constant 0 : index
    %c62 = arith.constant 62 : index
    %c0_91 = arith.constant 0 : index
    %120 = vector.load %arg1[%c0_90, %c62, %c0_91] : memref<1x404x8xf32, #tpu.memory_space<vmem>>, vector<1x320x8xf32>
    %121 = vector.shape_cast %120 : vector<1x320x8xf32> to vector<320x8xf32>
    %122 = arith.truncf %121 : vector<320x8xf32> to vector<320x8xbf16>
    %c17 = arith.constant 17 : index
    %c0_92 = arith.constant 0 : index
    %c0_93 = arith.constant 0 : index
    %123 = vector.load %arg2[%c17, %c0_92, %c0_93] : memref<25x8x16xbf16, #tpu.memory_space<vmem>>, vector<1x8x16xbf16>
    %124 = vector.shape_cast %123 : vector<1x8x16xbf16> to vector<8x16xbf16>
    %cst_94 = arith.constant dense<0.000000e+00> : vector<320x16xf32>
    %125 = tpu.matmul %122, %124, %cst_94 {dimension_numbers = #tpu.dot_dimension_numbers<[1], [0], [0], [1], [0, 0, 1, 1], [], []>} : vector<320x8xbf16>, vector<8x16xbf16>, vector<320x16xf32> -> vector<320x16xf32>
    %126 = arith.addf %119, %125 : vector<320x16xf32>
    %c0_95 = arith.constant 0 : index
    %c63 = arith.constant 63 : index
    %c0_96 = arith.constant 0 : index
    %127 = vector.load %arg1[%c0_95, %c63, %c0_96] : memref<1x404x8xf32, #tpu.memory_space<vmem>>, vector<1x320x8xf32>
    %128 = vector.shape_cast %127 : vector<1x320x8xf32> to vector<320x8xf32>
    %129 = arith.truncf %128 : vector<320x8xf32> to vector<320x8xbf16>
    %c18 = arith.constant 18 : index
    %c0_97 = arith.constant 0 : index
    %c0_98 = arith.constant 0 : index
    %130 = vector.load %arg2[%c18, %c0_97, %c0_98] : memref<25x8x16xbf16, #tpu.memory_space<vmem>>, vector<1x8x16xbf16>
    %131 = vector.shape_cast %130 : vector<1x8x16xbf16> to vector<8x16xbf16>
    %cst_99 = arith.constant dense<0.000000e+00> : vector<320x16xf32>
    %132 = tpu.matmul %129, %131, %cst_99 {dimension_numbers = #tpu.dot_dimension_numbers<[1], [0], [0], [1], [0, 0, 1, 1], [], []>} : vector<320x8xbf16>, vector<8x16xbf16>, vector<320x16xf32> -> vector<320x16xf32>
    %133 = arith.addf %126, %132 : vector<320x16xf32>
    %c0_100 = arith.constant 0 : index
    %c64 = arith.constant 64 : index
    %c0_101 = arith.constant 0 : index
    %134 = vector.load %arg1[%c0_100, %c64, %c0_101] : memref<1x404x8xf32, #tpu.memory_space<vmem>>, vector<1x320x8xf32>
    %135 = vector.shape_cast %134 : vector<1x320x8xf32> to vector<320x8xf32>
    %136 = arith.truncf %135 : vector<320x8xf32> to vector<320x8xbf16>
    %c19 = arith.constant 19 : index
    %c0_102 = arith.constant 0 : index
    %c0_103 = arith.constant 0 : index
    %137 = vector.load %arg2[%c19, %c0_102, %c0_103] : memref<25x8x16xbf16, #tpu.memory_space<vmem>>, vector<1x8x16xbf16>
    %138 = vector.shape_cast %137 : vector<1x8x16xbf16> to vector<8x16xbf16>
    %cst_104 = arith.constant dense<0.000000e+00> : vector<320x16xf32>
    %139 = tpu.matmul %136, %138, %cst_104 {dimension_numbers = #tpu.dot_dimension_numbers<[1], [0], [0], [1], [0, 0, 1, 1], [], []>} : vector<320x8xbf16>, vector<8x16xbf16>, vector<320x16xf32> -> vector<320x16xf32>
    %140 = arith.addf %133, %139 : vector<320x16xf32>
    %c0_105 = arith.constant 0 : index
    %c80 = arith.constant 80 : index
    %c0_106 = arith.constant 0 : index
    %141 = vector.load %arg1[%c0_105, %c80, %c0_106] : memref<1x404x8xf32, #tpu.memory_space<vmem>>, vector<1x320x8xf32>
    %142 = vector.shape_cast %141 : vector<1x320x8xf32> to vector<320x8xf32>
    %143 = arith.truncf %142 : vector<320x8xf32> to vector<320x8xbf16>
    %c20_107 = arith.constant 20 : index
    %c0_108 = arith.constant 0 : index
    %c0_109 = arith.constant 0 : index
    %144 = vector.load %arg2[%c20_107, %c0_108, %c0_109] : memref<25x8x16xbf16, #tpu.memory_space<vmem>>, vector<1x8x16xbf16>
    %145 = vector.shape_cast %144 : vector<1x8x16xbf16> to vector<8x16xbf16>
    %cst_110 = arith.constant dense<0.000000e+00> : vector<320x16xf32>
    %146 = tpu.matmul %143, %145, %cst_110 {dimension_numbers = #tpu.dot_dimension_numbers<[1], [0], [0], [1], [0, 0, 1, 1], [], []>} : vector<320x8xbf16>, vector<8x16xbf16>, vector<320x16xf32> -> vector<320x16xf32>
    %147 = arith.addf %140, %146 : vector<320x16xf32>
    %c0_111 = arith.constant 0 : index
    %c81 = arith.constant 81 : index
    %c0_112 = arith.constant 0 : index
    %148 = vector.load %arg1[%c0_111, %c81, %c0_112] : memref<1x404x8xf32, #tpu.memory_space<vmem>>, vector<1x320x8xf32>
    %149 = vector.shape_cast %148 : vector<1x320x8xf32> to vector<320x8xf32>
    %150 = arith.truncf %149 : vector<320x8xf32> to vector<320x8xbf16>
    %c21_113 = arith.constant 21 : index
    %c0_114 = arith.constant 0 : index
    %c0_115 = arith.constant 0 : index
    %151 = vector.load %arg2[%c21_113, %c0_114, %c0_115] : memref<25x8x16xbf16, #tpu.memory_space<vmem>>, vector<1x8x16xbf16>
    %152 = vector.shape_cast %151 : vector<1x8x16xbf16> to vector<8x16xbf16>
    %cst_116 = arith.constant dense<0.000000e+00> : vector<320x16xf32>
    %153 = tpu.matmul %150, %152, %cst_116 {dimension_numbers = #tpu.dot_dimension_numbers<[1], [0], [0], [1], [0, 0, 1, 1], [], []>} : vector<320x8xbf16>, vector<8x16xbf16>, vector<320x16xf32> -> vector<320x16xf32>
    %154 = arith.addf %147, %153 : vector<320x16xf32>
    %c0_117 = arith.constant 0 : index
    %c82 = arith.constant 82 : index
    %c0_118 = arith.constant 0 : index
    %155 = vector.load %arg1[%c0_117, %c82, %c0_118] : memref<1x404x8xf32, #tpu.memory_space<vmem>>, vector<1x320x8xf32>
    %156 = vector.shape_cast %155 : vector<1x320x8xf32> to vector<320x8xf32>
    %157 = arith.truncf %156 : vector<320x8xf32> to vector<320x8xbf16>
    %c22_119 = arith.constant 22 : index
    %c0_120 = arith.constant 0 : index
    %c0_121 = arith.constant 0 : index
    %158 = vector.load %arg2[%c22_119, %c0_120, %c0_121] : memref<25x8x16xbf16, #tpu.memory_space<vmem>>, vector<1x8x16xbf16>
    %159 = vector.shape_cast %158 : vector<1x8x16xbf16> to vector<8x16xbf16>
    %cst_122 = arith.constant dense<0.000000e+00> : vector<320x16xf32>
    %160 = tpu.matmul %157, %159, %cst_122 {dimension_numbers = #tpu.dot_dimension_numbers<[1], [0], [0], [1], [0, 0, 1, 1], [], []>} : vector<320x8xbf16>, vector<8x16xbf16>, vector<320x16xf32> -> vector<320x16xf32>
    %161 = arith.addf %154, %160 : vector<320x16xf32>
    %c0_123 = arith.constant 0 : index
    %c83 = arith.constant 83 : index
    %c0_124 = arith.constant 0 : index
    %162 = vector.load %arg1[%c0_123, %c83, %c0_124] : memref<1x404x8xf32, #tpu.memory_space<vmem>>, vector<1x320x8xf32>
    %163 = vector.shape_cast %162 : vector<1x320x8xf32> to vector<320x8xf32>
    %164 = arith.truncf %163 : vector<320x8xf32> to vector<320x8xbf16>
    %c23_125 = arith.constant 23 : index
    %c0_126 = arith.constant 0 : index
    %c0_127 = arith.constant 0 : index
    %165 = vector.load %arg2[%c23_125, %c0_126, %c0_127] : memref<25x8x16xbf16, #tpu.memory_space<vmem>>, vector<1x8x16xbf16>
    %166 = vector.shape_cast %165 : vector<1x8x16xbf16> to vector<8x16xbf16>
    %cst_128 = arith.constant dense<0.000000e+00> : vector<320x16xf32>
    %167 = tpu.matmul %164, %166, %cst_128 {dimension_numbers = #tpu.dot_dimension_numbers<[1], [0], [0], [1], [0, 0, 1, 1], [], []>} : vector<320x8xbf16>, vector<8x16xbf16>, vector<320x16xf32> -> vector<320x16xf32>
    %168 = arith.addf %161, %167 : vector<320x16xf32>
    %c0_129 = arith.constant 0 : index
    %c84 = arith.constant 84 : index
    %c0_130 = arith.constant 0 : index
    %169 = vector.load %arg1[%c0_129, %c84, %c0_130] : memref<1x404x8xf32, #tpu.memory_space<vmem>>, vector<1x320x8xf32>
    %170 = vector.shape_cast %169 : vector<1x320x8xf32> to vector<320x8xf32>
    %171 = arith.truncf %170 : vector<320x8xf32> to vector<320x8xbf16>
    %c24_131 = arith.constant 24 : index
    %c0_132 = arith.constant 0 : index
    %c0_133 = arith.constant 0 : index
    %172 = vector.load %arg2[%c24_131, %c0_132, %c0_133] : memref<25x8x16xbf16, #tpu.memory_space<vmem>>, vector<1x8x16xbf16>
    %173 = vector.shape_cast %172 : vector<1x8x16xbf16> to vector<8x16xbf16>
    %cst_134 = arith.constant dense<0.000000e+00> : vector<320x16xf32>
    %174 = tpu.matmul %171, %173, %cst_134 {dimension_numbers = #tpu.dot_dimension_numbers<[1], [0], [0], [1], [0, 0, 1, 1], [], []>} : vector<320x8xbf16>, vector<8x16xbf16>, vector<320x16xf32> -> vector<320x16xf32>
    %175 = arith.addf %168, %174 : vector<320x16xf32>
    %c0_135 = arith.constant 0 : index
    %c0_136 = arith.constant 0 : index
    %176 = vector.load %arg3[%c0_135, %c0_136] : memref<1x16xf32, #tpu.memory_space<vmem>>, vector<1x16xf32>
    %177 = vector.broadcast %176 : vector<1x16xf32> to vector<320x16xf32>
    %178 = arith.addf %175, %177 : vector<320x16xf32>
    %cst_137 = arith.constant 0.000000e+00 : f32
    %179 = vector.broadcast %cst_137 : f32 to vector<320x16xf32>
    %180 = arith.maximumf %178, %179 : vector<320x16xf32>
    %c0_138 = arith.constant 0 : index
    %c0_139 = arith.constant 0 : index
    %181 = vector.load %arg5[%c0_138, %c0_139] : memref<320x16xf32, #tpu.memory_space<vmem>>, vector<320x16xf32>
    tpu.vector_store %arg5[%c0_138, %c0_139], %180 {strides = array<i32>} : memref<320x16xf32, #tpu.memory_space<vmem>>, vector<320x16xf32>,
    %c2_140 = arith.constant 2 : index
    %c0_141 = arith.constant 0 : index
    %182 = tpu.strided_load %arg5[%c2_140, %c0_141] {strides = array<i32: 2, 1>} : memref<320x16xf32, #tpu.memory_space<vmem>>, vector<8x16xf32>
    %c3_142 = arith.constant 3 : index
    %c0_143 = arith.constant 0 : index
    %183 = tpu.strided_load %arg5[%c3_142, %c0_143] {strides = array<i32: 2, 1>} : memref<320x16xf32, #tpu.memory_space<vmem>>, vector<8x16xf32>
    %184 = arith.maximumf %182, %183 : vector<8x16xf32>
    %c22_144 = arith.constant 22 : index
    %c0_145 = arith.constant 0 : index
    %185 = tpu.strided_load %arg5[%c22_144, %c0_145] {strides = array<i32: 2, 1>} : memref<320x16xf32, #tpu.memory_space<vmem>>, vector<8x16xf32>
    %c23_146 = arith.constant 23 : index
    %c0_147 = arith.constant 0 : index
    %186 = tpu.strided_load %arg5[%c23_146, %c0_147] {strides = array<i32: 2, 1>} : memref<320x16xf32, #tpu.memory_space<vmem>>, vector<8x16xf32>
    %187 = arith.maximumf %185, %186 : vector<8x16xf32>
    %188 = arith.maximumf %184, %187 : vector<8x16xf32>
    %c0_148 = arith.constant 0 : index
    %c0_149 = arith.constant 0 : index
    %c0_150 = arith.constant 0 : index
    %c0_151 = arith.constant 0 : index
    %189 = vector.load %arg4[%c0_148, %c0_149, %c0_150, %c0_151] : memref<1x8x8x16xf32, #tpu.memory_space<vmem>>, vector<1x1x8x16xf32>
    %190 = vector.shape_cast %189 : vector<1x1x8x16xf32> to vector<8x16xf32>
    %191 = vector.shape_cast %188 : vector<8x16xf32> to vector<1x1x8x16xf32>
    tpu.vector_store %arg4[%c0_148, %c0_149, %c0_150, %c0_151], %191 {strides = array<i32>} : memref<1x8x8x16xf32, #tpu.memory_space<vmem>>, vector<1x1x8x16xf32>,
    %c42_152 = arith.constant 42 : index
    %c0_153 = arith.constant 0 : index
    %192 = tpu.strided_load %arg5[%c42_152, %c0_153] {strides = array<i32: 2, 1>} : memref<320x16xf32, #tpu.memory_space<vmem>>, vector<8x16xf32>
    %c43_154 = arith.constant 43 : index
    %c0_155 = arith.constant 0 : index
    %193 = tpu.strided_load %arg5[%c43_154, %c0_155] {strides = array<i32: 2, 1>} : memref<320x16xf32, #tpu.memory_space<vmem>>, vector<8x16xf32>
    %194 = arith.maximumf %192, %193 : vector<8x16xf32>
    %c62_156 = arith.constant 62 : index
    %c0_157 = arith.constant 0 : index
    %195 = tpu.strided_load %arg5[%c62_156, %c0_157] {strides = array<i32: 2, 1>} : memref<320x16xf32, #tpu.memory_space<vmem>>, vector<8x16xf32>
    %c63_158 = arith.constant 63 : index
    %c0_159 = arith.constant 0 : index
    %196 = tpu.strided_load %arg5[%c63_158, %c0_159] {strides = array<i32: 2, 1>} : memref<320x16xf32, #tpu.memory_space<vmem>>, vector<8x16xf32>
    %197 = arith.maximumf %195, %196 : vector<8x16xf32>
    %198 = arith.maximumf %194, %197 : vector<8x16xf32>
    %c0_160 = arith.constant 0 : index
    %c1_161 = arith.constant 1 : index
    %c0_162 = arith.constant 0 : index
    %c0_163 = arith.constant 0 : index
    %199 = vector.load %arg4[%c0_160, %c1_161, %c0_162, %c0_163] : memref<1x8x8x16xf32, #tpu.memory_space<vmem>>, vector<1x1x8x16xf32>
    %200 = vector.shape_cast %199 : vector<1x1x8x16xf32> to vector<8x16xf32>
    %201 = vector.shape_cast %198 : vector<8x16xf32> to vector<1x1x8x16xf32>
    tpu.vector_store %arg4[%c0_160, %c1_161, %c0_162, %c0_163], %201 {strides = array<i32>} : memref<1x8x8x16xf32, #tpu.memory_space<vmem>>, vector<1x1x8x16xf32>,
    %c82_164 = arith.constant 82 : index
    %c0_165 = arith.constant 0 : index
    %202 = tpu.strided_load %arg5[%c82_164, %c0_165] {strides = array<i32: 2, 1>} : memref<320x16xf32, #tpu.memory_space<vmem>>, vector<8x16xf32>
    %c83_166 = arith.constant 83 : index
    %c0_167 = arith.constant 0 : index
    %203 = tpu.strided_load %arg5[%c83_166, %c0_167] {strides = array<i32: 2, 1>} : memref<320x16xf32, #tpu.memory_space<vmem>>, vector<8x16xf32>
    %204 = arith.maximumf %202, %203 : vector<8x16xf32>
    %c102 = arith.constant 102 : index
    %c0_168 = arith.constant 0 : index
    %205 = tpu.strided_load %arg5[%c102, %c0_168] {strides = array<i32: 2, 1>} : memref<320x16xf32, #tpu.memory_space<vmem>>, vector<8x16xf32>
    %c103 = arith.constant 103 : index
    %c0_169 = arith.constant 0 : index
    %206 = tpu.strided_load %arg5[%c103, %c0_169] {strides = array<i32: 2, 1>} : memref<320x16xf32, #tpu.memory_space<vmem>>, vector<8x16xf32>
    %207 = arith.maximumf %205, %206 : vector<8x16xf32>
    %208 = arith.maximumf %204, %207 : vector<8x16xf32>
    %c0_170 = arith.constant 0 : index
    %c2_171 = arith.constant 2 : index
    %c0_172 = arith.constant 0 : index
    %c0_173 = arith.constant 0 : index
    %209 = vector.load %arg4[%c0_170, %c2_171, %c0_172, %c0_173] : memref<1x8x8x16xf32, #tpu.memory_space<vmem>>, vector<1x1x8x16xf32>
    %210 = vector.shape_cast %209 : vector<1x1x8x16xf32> to vector<8x16xf32>
    %211 = vector.shape_cast %208 : vector<8x16xf32> to vector<1x1x8x16xf32>
    tpu.vector_store %arg4[%c0_170, %c2_171, %c0_172, %c0_173], %211 {strides = array<i32>} : memref<1x8x8x16xf32, #tpu.memory_space<vmem>>, vector<1x1x8x16xf32>,
    %c122 = arith.constant 122 : index
    %c0_174 = arith.constant 0 : index
    %212 = tpu.strided_load %arg5[%c122, %c0_174] {strides = array<i32: 2, 1>} : memref<320x16xf32, #tpu.memory_space<vmem>>, vector<8x16xf32>
    %c123 = arith.constant 123 : index
    %c0_175 = arith.constant 0 : index
    %213 = tpu.strided_load %arg5[%c123, %c0_175] {strides = array<i32: 2, 1>} : memref<320x16xf32, #tpu.memory_space<vmem>>, vector<8x16xf32>
    %214 = arith.maximumf %212, %213 : vector<8x16xf32>
    %c142 = arith.constant 142 : index
    %c0_176 = arith.constant 0 : index
    %215 = tpu.strided_load %arg5[%c142, %c0_176] {strides = array<i32: 2, 1>} : memref<320x16xf32, #tpu.memory_space<vmem>>, vector<8x16xf32>
    %c143 = arith.constant 143 : index
    %c0_177 = arith.constant 0 : index
    %216 = tpu.strided_load %arg5[%c143, %c0_177] {strides = array<i32: 2, 1>} : memref<320x16xf32, #tpu.memory_space<vmem>>, vector<8x16xf32>
    %217 = arith.maximumf %215, %216 : vector<8x16xf32>
    %218 = arith.maximumf %214, %217 : vector<8x16xf32>
    %c0_178 = arith.constant 0 : index
    %c3_179 = arith.constant 3 : index
    %c0_180 = arith.constant 0 : index
    %c0_181 = arith.constant 0 : index
    %219 = vector.load %arg4[%c0_178, %c3_179, %c0_180, %c0_181] : memref<1x8x8x16xf32, #tpu.memory_space<vmem>>, vector<1x1x8x16xf32>
    %220 = vector.shape_cast %219 : vector<1x1x8x16xf32> to vector<8x16xf32>
    %221 = vector.shape_cast %218 : vector<8x16xf32> to vector<1x1x8x16xf32>
    tpu.vector_store %arg4[%c0_178, %c3_179, %c0_180, %c0_181], %221 {strides = array<i32>} : memref<1x8x8x16xf32, #tpu.memory_space<vmem>>, vector<1x1x8x16xf32>,
    %c162 = arith.constant 162 : index
    %c0_182 = arith.constant 0 : index
    %222 = tpu.strided_load %arg5[%c162, %c0_182] {strides = array<i32: 2, 1>} : memref<320x16xf32, #tpu.memory_space<vmem>>, vector<8x16xf32>
    %c163 = arith.constant 163 : index
    %c0_183 = arith.constant 0 : index
    %223 = tpu.strided_load %arg5[%c163, %c0_183] {strides = array<i32: 2, 1>} : memref<320x16xf32, #tpu.memory_space<vmem>>, vector<8x16xf32>
    %224 = arith.maximumf %222, %223 : vector<8x16xf32>
    %c182 = arith.constant 182 : index
    %c0_184 = arith.constant 0 : index
    %225 = tpu.strided_load %arg5[%c182, %c0_184] {strides = array<i32: 2, 1>} : memref<320x16xf32, #tpu.memory_space<vmem>>, vector<8x16xf32>
    %c183 = arith.constant 183 : index
    %c0_185 = arith.constant 0 : index
    %226 = tpu.strided_load %arg5[%c183, %c0_185] {strides = array<i32: 2, 1>} : memref<320x16xf32, #tpu.memory_space<vmem>>, vector<8x16xf32>
    %227 = arith.maximumf %225, %226 : vector<8x16xf32>
    %228 = arith.maximumf %224, %227 : vector<8x16xf32>
    %c0_186 = arith.constant 0 : index
    %c4_187 = arith.constant 4 : index
    %c0_188 = arith.constant 0 : index
    %c0_189 = arith.constant 0 : index
    %229 = vector.load %arg4[%c0_186, %c4_187, %c0_188, %c0_189] : memref<1x8x8x16xf32, #tpu.memory_space<vmem>>, vector<1x1x8x16xf32>
    %230 = vector.shape_cast %229 : vector<1x1x8x16xf32> to vector<8x16xf32>
    %231 = vector.shape_cast %228 : vector<8x16xf32> to vector<1x1x8x16xf32>
    tpu.vector_store %arg4[%c0_186, %c4_187, %c0_188, %c0_189], %231 {strides = array<i32>} : memref<1x8x8x16xf32, #tpu.memory_space<vmem>>, vector<1x1x8x16xf32>,
    %c202 = arith.constant 202 : index
    %c0_190 = arith.constant 0 : index
    %232 = tpu.strided_load %arg5[%c202, %c0_190] {strides = array<i32: 2, 1>} : memref<320x16xf32, #tpu.memory_space<vmem>>, vector<8x16xf32>
    %c203 = arith.constant 203 : index
    %c0_191 = arith.constant 0 : index
    %233 = tpu.strided_load %arg5[%c203, %c0_191] {strides = array<i32: 2, 1>} : memref<320x16xf32, #tpu.memory_space<vmem>>, vector<8x16xf32>
    %234 = arith.maximumf %232, %233 : vector<8x16xf32>
    %c222 = arith.constant 222 : index
    %c0_192 = arith.constant 0 : index
    %235 = tpu.strided_load %arg5[%c222, %c0_192] {strides = array<i32: 2, 1>} : memref<320x16xf32, #tpu.memory_space<vmem>>, vector<8x16xf32>
    %c223 = arith.constant 223 : index
    %c0_193 = arith.constant 0 : index
    %236 = tpu.strided_load %arg5[%c223, %c0_193] {strides = array<i32: 2, 1>} : memref<320x16xf32, #tpu.memory_space<vmem>>, vector<8x16xf32>
    %237 = arith.maximumf %235, %236 : vector<8x16xf32>
    %238 = arith.maximumf %234, %237 : vector<8x16xf32>
    %c0_194 = arith.constant 0 : index
    %c5_195 = arith.constant 5 : index
    %c0_196 = arith.constant 0 : index
    %c0_197 = arith.constant 0 : index
    %239 = vector.load %arg4[%c0_194, %c5_195, %c0_196, %c0_197] : memref<1x8x8x16xf32, #tpu.memory_space<vmem>>, vector<1x1x8x16xf32>
    %240 = vector.shape_cast %239 : vector<1x1x8x16xf32> to vector<8x16xf32>
    %241 = vector.shape_cast %238 : vector<8x16xf32> to vector<1x1x8x16xf32>
    tpu.vector_store %arg4[%c0_194, %c5_195, %c0_196, %c0_197], %241 {strides = array<i32>} : memref<1x8x8x16xf32, #tpu.memory_space<vmem>>, vector<1x1x8x16xf32>,
    %c242 = arith.constant 242 : index
    %c0_198 = arith.constant 0 : index
    %242 = tpu.strided_load %arg5[%c242, %c0_198] {strides = array<i32: 2, 1>} : memref<320x16xf32, #tpu.memory_space<vmem>>, vector<8x16xf32>
    %c243 = arith.constant 243 : index
    %c0_199 = arith.constant 0 : index
    %243 = tpu.strided_load %arg5[%c243, %c0_199] {strides = array<i32: 2, 1>} : memref<320x16xf32, #tpu.memory_space<vmem>>, vector<8x16xf32>
    %244 = arith.maximumf %242, %243 : vector<8x16xf32>
    %c262 = arith.constant 262 : index
    %c0_200 = arith.constant 0 : index
    %245 = tpu.strided_load %arg5[%c262, %c0_200] {strides = array<i32: 2, 1>} : memref<320x16xf32, #tpu.memory_space<vmem>>, vector<8x16xf32>
    %c263 = arith.constant 263 : index
    %c0_201 = arith.constant 0 : index
    %246 = tpu.strided_load %arg5[%c263, %c0_201] {strides = array<i32: 2, 1>} : memref<320x16xf32, #tpu.memory_space<vmem>>, vector<8x16xf32>
    %247 = arith.maximumf %245, %246 : vector<8x16xf32>
    %248 = arith.maximumf %244, %247 : vector<8x16xf32>
    %c0_202 = arith.constant 0 : index
    %c6_203 = arith.constant 6 : index
    %c0_204 = arith.constant 0 : index
    %c0_205 = arith.constant 0 : index
    %249 = vector.load %arg4[%c0_202, %c6_203, %c0_204, %c0_205] : memref<1x8x8x16xf32, #tpu.memory_space<vmem>>, vector<1x1x8x16xf32>
    %250 = vector.shape_cast %249 : vector<1x1x8x16xf32> to vector<8x16xf32>
    %251 = vector.shape_cast %248 : vector<8x16xf32> to vector<1x1x8x16xf32>
    tpu.vector_store %arg4[%c0_202, %c6_203, %c0_204, %c0_205], %251 {strides = array<i32>} : memref<1x8x8x16xf32, #tpu.memory_space<vmem>>, vector<1x1x8x16xf32>,
    %c282 = arith.constant 282 : index
    %c0_206 = arith.constant 0 : index
    %252 = tpu.strided_load %arg5[%c282, %c0_206] {strides = array<i32: 2, 1>} : memref<320x16xf32, #tpu.memory_space<vmem>>, vector<8x16xf32>
    %c283 = arith.constant 283 : index
    %c0_207 = arith.constant 0 : index
    %253 = tpu.strided_load %arg5[%c283, %c0_207] {strides = array<i32: 2, 1>} : memref<320x16xf32, #tpu.memory_space<vmem>>, vector<8x16xf32>
    %254 = arith.maximumf %252, %253 : vector<8x16xf32>
    %c302 = arith.constant 302 : index
    %c0_208 = arith.constant 0 : index
    %255 = tpu.strided_load %arg5[%c302, %c0_208] {strides = array<i32: 2, 1>} : memref<320x16xf32, #tpu.memory_space<vmem>>, vector<8x16xf32>
    %c303 = arith.constant 303 : index
    %c0_209 = arith.constant 0 : index
    %256 = tpu.strided_load %arg5[%c303, %c0_209] {strides = array<i32: 2, 1>} : memref<320x16xf32, #tpu.memory_space<vmem>>, vector<8x16xf32>
    %257 = arith.maximumf %255, %256 : vector<8x16xf32>
    %258 = arith.maximumf %254, %257 : vector<8x16xf32>
    %c0_210 = arith.constant 0 : index
    %c7_211 = arith.constant 7 : index
    %c0_212 = arith.constant 0 : index
    %c0_213 = arith.constant 0 : index
    %259 = vector.load %arg4[%c0_210, %c7_211, %c0_212, %c0_213] : memref<1x8x8x16xf32, #tpu.memory_space<vmem>>, vector<1x1x8x16xf32>
    %260 = vector.shape_cast %259 : vector<1x1x8x16xf32> to vector<8x16xf32>
    %261 = vector.shape_cast %258 : vector<8x16xf32> to vector<1x1x8x16xf32>
    tpu.vector_store %arg4[%c0_210, %c7_211, %c0_212, %c0_213], %261 {strides = array<i32>} : memref<1x8x8x16xf32, #tpu.memory_space<vmem>>, vector<1x1x8x16xf32>,
    return
  }
  func.func @transform_0(%arg0: i32) -> (i32, i32, i32) {
    %c0_i32 = arith.constant 0 : i32
    %c0_i32_0 = arith.constant 0 : i32
    %c0_i32_1 = arith.constant 0 : i32
    return %arg0, %c0_i32, %c0_i32_0 : i32, i32, i32
  }
  func.func @transform_1(%arg0: i32) -> (i32, i32, i32) {
    %c0_i32 = arith.constant 0 : i32
    %c0_i32_0 = arith.constant 0 : i32
    %c0_i32_1 = arith.constant 0 : i32
    %c0_i32_2 = arith.constant 0 : i32
    return %c0_i32, %c0_i32_0, %c0_i32_1 : i32, i32, i32
  }
  func.func @transform_2(%arg0: i32) -> (i32, i32) {
    %c0_i32 = arith.constant 0 : i32
    %c0_i32_0 = arith.constant 0 : i32
    %c0_i32_1 = arith.constant 0 : i32
    return %c0_i32, %c0_i32_0 : i32, i32
  }
  func.func @transform_3(%arg0: i32) -> (i32, i32, i32, i32) {
    %c0_i32 = arith.constant 0 : i32
    %c0_i32_0 = arith.constant 0 : i32
    %c0_i32_1 = arith.constant 0 : i32
    %c0_i32_2 = arith.constant 0 : i32
    return %arg0, %c0_i32, %c0_i32_0, %c0_i32_1 : i32, i32, i32, i32
  }
}

module attributes {stable_mosaic.version = 11 : i64} {
  func.func @_conv_relu_pool_kernel(%arg0: i32, %arg1: memref<1x68x32xf32, #tpu.memory_space<vmem>>, %arg2: memref<25x32x64xbf16, #tpu.memory_space<vmem>>, %arg3: memref<1x64xf32, #tpu.memory_space<vmem>>, %arg4: memref<1x2x2x64xf32, #tpu.memory_space<vmem>>, %arg5: memref<32x64xf32, #tpu.memory_space<vmem>>) attributes {dimension_semantics = [#tpu.dimension_semantics<parallel>], iteration_bounds = array<i64: 2>, scalar_prefetch = 0 : i64, scratch_operands = 1 : i64, tpu.core_type = #tpu.core_type<tc>, window_params = [{transform_indices = @transform_0, window_bounds = array<i64: 1, 68, 32>}, {pipeline_mode = #tpu.pipeline_mode<synchronous>, transform_indices = @transform_1, window_bounds = array<i64: 25, 32, 64>}, {pipeline_mode = #tpu.pipeline_mode<synchronous>, transform_indices = @transform_2, window_bounds = array<i64: 1, 64>}, {transform_indices = @transform_3, window_bounds = array<i64: 1, 2, 2, 64>}]} {
    %cst = arith.constant 0.000000e+00 : f32
    %0 = vector.broadcast %cst : f32 to vector<32x64xf32>
    %c0 = arith.constant 0 : index
    %c0_0 = arith.constant 0 : index
    %c0_1 = arith.constant 0 : index
    %1 = vector.load %arg1[%c0, %c0_0, %c0_1] : memref<1x68x32xf32, #tpu.memory_space<vmem>>, vector<1x32x32xf32>
    %2 = vector.shape_cast %1 : vector<1x32x32xf32> to vector<32x32xf32>
    %3 = arith.truncf %2 : vector<32x32xf32> to vector<32x32xbf16>
    %c0_2 = arith.constant 0 : index
    %c0_3 = arith.constant 0 : index
    %c0_4 = arith.constant 0 : index
    %4 = vector.load %arg2[%c0_2, %c0_3, %c0_4] : memref<25x32x64xbf16, #tpu.memory_space<vmem>>, vector<1x32x64xbf16>
    %5 = vector.shape_cast %4 : vector<1x32x64xbf16> to vector<32x64xbf16>
    %cst_5 = arith.constant dense<0.000000e+00> : vector<32x64xf32>
    %6 = tpu.matmul %3, %5, %cst_5 {dimension_numbers = #tpu.dot_dimension_numbers<[1], [0], [0], [1], [0, 0, 1, 1], [], []>} : vector<32x32xbf16>, vector<32x64xbf16>, vector<32x64xf32> -> vector<32x64xf32>
    %7 = arith.addf %0, %6 : vector<32x64xf32>
    %c0_6 = arith.constant 0 : index
    %c1 = arith.constant 1 : index
    %c0_7 = arith.constant 0 : index
    %8 = vector.load %arg1[%c0_6, %c1, %c0_7] : memref<1x68x32xf32, #tpu.memory_space<vmem>>, vector<1x32x32xf32>
    %9 = vector.shape_cast %8 : vector<1x32x32xf32> to vector<32x32xf32>
    %10 = arith.truncf %9 : vector<32x32xf32> to vector<32x32xbf16>
    %c1_8 = arith.constant 1 : index
    %c0_9 = arith.constant 0 : index
    %c0_10 = arith.constant 0 : index
    %11 = vector.load %arg2[%c1_8, %c0_9, %c0_10] : memref<25x32x64xbf16, #tpu.memory_space<vmem>>, vector<1x32x64xbf16>
    %12 = vector.shape_cast %11 : vector<1x32x64xbf16> to vector<32x64xbf16>
    %cst_11 = arith.constant dense<0.000000e+00> : vector<32x64xf32>
    %13 = tpu.matmul %10, %12, %cst_11 {dimension_numbers = #tpu.dot_dimension_numbers<[1], [0], [0], [1], [0, 0, 1, 1], [], []>} : vector<32x32xbf16>, vector<32x64xbf16>, vector<32x64xf32> -> vector<32x64xf32>
    %14 = arith.addf %7, %13 : vector<32x64xf32>
    %c0_12 = arith.constant 0 : index
    %c2 = arith.constant 2 : index
    %c0_13 = arith.constant 0 : index
    %15 = vector.load %arg1[%c0_12, %c2, %c0_13] : memref<1x68x32xf32, #tpu.memory_space<vmem>>, vector<1x32x32xf32>
    %16 = vector.shape_cast %15 : vector<1x32x32xf32> to vector<32x32xf32>
    %17 = arith.truncf %16 : vector<32x32xf32> to vector<32x32xbf16>
    %c2_14 = arith.constant 2 : index
    %c0_15 = arith.constant 0 : index
    %c0_16 = arith.constant 0 : index
    %18 = vector.load %arg2[%c2_14, %c0_15, %c0_16] : memref<25x32x64xbf16, #tpu.memory_space<vmem>>, vector<1x32x64xbf16>
    %19 = vector.shape_cast %18 : vector<1x32x64xbf16> to vector<32x64xbf16>
    %cst_17 = arith.constant dense<0.000000e+00> : vector<32x64xf32>
    %20 = tpu.matmul %17, %19, %cst_17 {dimension_numbers = #tpu.dot_dimension_numbers<[1], [0], [0], [1], [0, 0, 1, 1], [], []>} : vector<32x32xbf16>, vector<32x64xbf16>, vector<32x64xf32> -> vector<32x64xf32>
    %21 = arith.addf %14, %20 : vector<32x64xf32>
    %c0_18 = arith.constant 0 : index
    %c3 = arith.constant 3 : index
    %c0_19 = arith.constant 0 : index
    %22 = vector.load %arg1[%c0_18, %c3, %c0_19] : memref<1x68x32xf32, #tpu.memory_space<vmem>>, vector<1x32x32xf32>
    %23 = vector.shape_cast %22 : vector<1x32x32xf32> to vector<32x32xf32>
    %24 = arith.truncf %23 : vector<32x32xf32> to vector<32x32xbf16>
    %c3_20 = arith.constant 3 : index
    %c0_21 = arith.constant 0 : index
    %c0_22 = arith.constant 0 : index
    %25 = vector.load %arg2[%c3_20, %c0_21, %c0_22] : memref<25x32x64xbf16, #tpu.memory_space<vmem>>, vector<1x32x64xbf16>
    %26 = vector.shape_cast %25 : vector<1x32x64xbf16> to vector<32x64xbf16>
    %cst_23 = arith.constant dense<0.000000e+00> : vector<32x64xf32>
    %27 = tpu.matmul %24, %26, %cst_23 {dimension_numbers = #tpu.dot_dimension_numbers<[1], [0], [0], [1], [0, 0, 1, 1], [], []>} : vector<32x32xbf16>, vector<32x64xbf16>, vector<32x64xf32> -> vector<32x64xf32>
    %28 = arith.addf %21, %27 : vector<32x64xf32>
    %c0_24 = arith.constant 0 : index
    %c4 = arith.constant 4 : index
    %c0_25 = arith.constant 0 : index
    %29 = vector.load %arg1[%c0_24, %c4, %c0_25] : memref<1x68x32xf32, #tpu.memory_space<vmem>>, vector<1x32x32xf32>
    %30 = vector.shape_cast %29 : vector<1x32x32xf32> to vector<32x32xf32>
    %31 = arith.truncf %30 : vector<32x32xf32> to vector<32x32xbf16>
    %c4_26 = arith.constant 4 : index
    %c0_27 = arith.constant 0 : index
    %c0_28 = arith.constant 0 : index
    %32 = vector.load %arg2[%c4_26, %c0_27, %c0_28] : memref<25x32x64xbf16, #tpu.memory_space<vmem>>, vector<1x32x64xbf16>
    %33 = vector.shape_cast %32 : vector<1x32x64xbf16> to vector<32x64xbf16>
    %cst_29 = arith.constant dense<0.000000e+00> : vector<32x64xf32>
    %34 = tpu.matmul %31, %33, %cst_29 {dimension_numbers = #tpu.dot_dimension_numbers<[1], [0], [0], [1], [0, 0, 1, 1], [], []>} : vector<32x32xbf16>, vector<32x64xbf16>, vector<32x64xf32> -> vector<32x64xf32>
    %35 = arith.addf %28, %34 : vector<32x64xf32>
    %c0_30 = arith.constant 0 : index
    %c8 = arith.constant 8 : index
    %c0_31 = arith.constant 0 : index
    %36 = vector.load %arg1[%c0_30, %c8, %c0_31] : memref<1x68x32xf32, #tpu.memory_space<vmem>>, vector<1x32x32xf32>
    %37 = vector.shape_cast %36 : vector<1x32x32xf32> to vector<32x32xf32>
    %38 = arith.truncf %37 : vector<32x32xf32> to vector<32x32xbf16>
    %c5 = arith.constant 5 : index
    %c0_32 = arith.constant 0 : index
    %c0_33 = arith.constant 0 : index
    %39 = vector.load %arg2[%c5, %c0_32, %c0_33] : memref<25x32x64xbf16, #tpu.memory_space<vmem>>, vector<1x32x64xbf16>
    %40 = vector.shape_cast %39 : vector<1x32x64xbf16> to vector<32x64xbf16>
    %cst_34 = arith.constant dense<0.000000e+00> : vector<32x64xf32>
    %41 = tpu.matmul %38, %40, %cst_34 {dimension_numbers = #tpu.dot_dimension_numbers<[1], [0], [0], [1], [0, 0, 1, 1], [], []>} : vector<32x32xbf16>, vector<32x64xbf16>, vector<32x64xf32> -> vector<32x64xf32>
    %42 = arith.addf %35, %41 : vector<32x64xf32>
    %c0_35 = arith.constant 0 : index
    %c9 = arith.constant 9 : index
    %c0_36 = arith.constant 0 : index
    %43 = vector.load %arg1[%c0_35, %c9, %c0_36] : memref<1x68x32xf32, #tpu.memory_space<vmem>>, vector<1x32x32xf32>
    %44 = vector.shape_cast %43 : vector<1x32x32xf32> to vector<32x32xf32>
    %45 = arith.truncf %44 : vector<32x32xf32> to vector<32x32xbf16>
    %c6 = arith.constant 6 : index
    %c0_37 = arith.constant 0 : index
    %c0_38 = arith.constant 0 : index
    %46 = vector.load %arg2[%c6, %c0_37, %c0_38] : memref<25x32x64xbf16, #tpu.memory_space<vmem>>, vector<1x32x64xbf16>
    %47 = vector.shape_cast %46 : vector<1x32x64xbf16> to vector<32x64xbf16>
    %cst_39 = arith.constant dense<0.000000e+00> : vector<32x64xf32>
    %48 = tpu.matmul %45, %47, %cst_39 {dimension_numbers = #tpu.dot_dimension_numbers<[1], [0], [0], [1], [0, 0, 1, 1], [], []>} : vector<32x32xbf16>, vector<32x64xbf16>, vector<32x64xf32> -> vector<32x64xf32>
    %49 = arith.addf %42, %48 : vector<32x64xf32>
    %c0_40 = arith.constant 0 : index
    %c10 = arith.constant 10 : index
    %c0_41 = arith.constant 0 : index
    %50 = vector.load %arg1[%c0_40, %c10, %c0_41] : memref<1x68x32xf32, #tpu.memory_space<vmem>>, vector<1x32x32xf32>
    %51 = vector.shape_cast %50 : vector<1x32x32xf32> to vector<32x32xf32>
    %52 = arith.truncf %51 : vector<32x32xf32> to vector<32x32xbf16>
    %c7 = arith.constant 7 : index
    %c0_42 = arith.constant 0 : index
    %c0_43 = arith.constant 0 : index
    %53 = vector.load %arg2[%c7, %c0_42, %c0_43] : memref<25x32x64xbf16, #tpu.memory_space<vmem>>, vector<1x32x64xbf16>
    %54 = vector.shape_cast %53 : vector<1x32x64xbf16> to vector<32x64xbf16>
    %cst_44 = arith.constant dense<0.000000e+00> : vector<32x64xf32>
    %55 = tpu.matmul %52, %54, %cst_44 {dimension_numbers = #tpu.dot_dimension_numbers<[1], [0], [0], [1], [0, 0, 1, 1], [], []>} : vector<32x32xbf16>, vector<32x64xbf16>, vector<32x64xf32> -> vector<32x64xf32>
    %56 = arith.addf %49, %55 : vector<32x64xf32>
    %c0_45 = arith.constant 0 : index
    %c11 = arith.constant 11 : index
    %c0_46 = arith.constant 0 : index
    %57 = vector.load %arg1[%c0_45, %c11, %c0_46] : memref<1x68x32xf32, #tpu.memory_space<vmem>>, vector<1x32x32xf32>
    %58 = vector.shape_cast %57 : vector<1x32x32xf32> to vector<32x32xf32>
    %59 = arith.truncf %58 : vector<32x32xf32> to vector<32x32xbf16>
    %c8_47 = arith.constant 8 : index
    %c0_48 = arith.constant 0 : index
    %c0_49 = arith.constant 0 : index
    %60 = vector.load %arg2[%c8_47, %c0_48, %c0_49] : memref<25x32x64xbf16, #tpu.memory_space<vmem>>, vector<1x32x64xbf16>
    %61 = vector.shape_cast %60 : vector<1x32x64xbf16> to vector<32x64xbf16>
    %cst_50 = arith.constant dense<0.000000e+00> : vector<32x64xf32>
    %62 = tpu.matmul %59, %61, %cst_50 {dimension_numbers = #tpu.dot_dimension_numbers<[1], [0], [0], [1], [0, 0, 1, 1], [], []>} : vector<32x32xbf16>, vector<32x64xbf16>, vector<32x64xf32> -> vector<32x64xf32>
    %63 = arith.addf %56, %62 : vector<32x64xf32>
    %c0_51 = arith.constant 0 : index
    %c12 = arith.constant 12 : index
    %c0_52 = arith.constant 0 : index
    %64 = vector.load %arg1[%c0_51, %c12, %c0_52] : memref<1x68x32xf32, #tpu.memory_space<vmem>>, vector<1x32x32xf32>
    %65 = vector.shape_cast %64 : vector<1x32x32xf32> to vector<32x32xf32>
    %66 = arith.truncf %65 : vector<32x32xf32> to vector<32x32xbf16>
    %c9_53 = arith.constant 9 : index
    %c0_54 = arith.constant 0 : index
    %c0_55 = arith.constant 0 : index
    %67 = vector.load %arg2[%c9_53, %c0_54, %c0_55] : memref<25x32x64xbf16, #tpu.memory_space<vmem>>, vector<1x32x64xbf16>
    %68 = vector.shape_cast %67 : vector<1x32x64xbf16> to vector<32x64xbf16>
    %cst_56 = arith.constant dense<0.000000e+00> : vector<32x64xf32>
    %69 = tpu.matmul %66, %68, %cst_56 {dimension_numbers = #tpu.dot_dimension_numbers<[1], [0], [0], [1], [0, 0, 1, 1], [], []>} : vector<32x32xbf16>, vector<32x64xbf16>, vector<32x64xf32> -> vector<32x64xf32>
    %70 = arith.addf %63, %69 : vector<32x64xf32>
    %c0_57 = arith.constant 0 : index
    %c16 = arith.constant 16 : index
    %c0_58 = arith.constant 0 : index
    %71 = vector.load %arg1[%c0_57, %c16, %c0_58] : memref<1x68x32xf32, #tpu.memory_space<vmem>>, vector<1x32x32xf32>
    %72 = vector.shape_cast %71 : vector<1x32x32xf32> to vector<32x32xf32>
    %73 = arith.truncf %72 : vector<32x32xf32> to vector<32x32xbf16>
    %c10_59 = arith.constant 10 : index
    %c0_60 = arith.constant 0 : index
    %c0_61 = arith.constant 0 : index
    %74 = vector.load %arg2[%c10_59, %c0_60, %c0_61] : memref<25x32x64xbf16, #tpu.memory_space<vmem>>, vector<1x32x64xbf16>
    %75 = vector.shape_cast %74 : vector<1x32x64xbf16> to vector<32x64xbf16>
    %cst_62 = arith.constant dense<0.000000e+00> : vector<32x64xf32>
    %76 = tpu.matmul %73, %75, %cst_62 {dimension_numbers = #tpu.dot_dimension_numbers<[1], [0], [0], [1], [0, 0, 1, 1], [], []>} : vector<32x32xbf16>, vector<32x64xbf16>, vector<32x64xf32> -> vector<32x64xf32>
    %77 = arith.addf %70, %76 : vector<32x64xf32>
    %c0_63 = arith.constant 0 : index
    %c17 = arith.constant 17 : index
    %c0_64 = arith.constant 0 : index
    %78 = vector.load %arg1[%c0_63, %c17, %c0_64] : memref<1x68x32xf32, #tpu.memory_space<vmem>>, vector<1x32x32xf32>
    %79 = vector.shape_cast %78 : vector<1x32x32xf32> to vector<32x32xf32>
    %80 = arith.truncf %79 : vector<32x32xf32> to vector<32x32xbf16>
    %c11_65 = arith.constant 11 : index
    %c0_66 = arith.constant 0 : index
    %c0_67 = arith.constant 0 : index
    %81 = vector.load %arg2[%c11_65, %c0_66, %c0_67] : memref<25x32x64xbf16, #tpu.memory_space<vmem>>, vector<1x32x64xbf16>
    %82 = vector.shape_cast %81 : vector<1x32x64xbf16> to vector<32x64xbf16>
    %cst_68 = arith.constant dense<0.000000e+00> : vector<32x64xf32>
    %83 = tpu.matmul %80, %82, %cst_68 {dimension_numbers = #tpu.dot_dimension_numbers<[1], [0], [0], [1], [0, 0, 1, 1], [], []>} : vector<32x32xbf16>, vector<32x64xbf16>, vector<32x64xf32> -> vector<32x64xf32>
    %84 = arith.addf %77, %83 : vector<32x64xf32>
    %c0_69 = arith.constant 0 : index
    %c18 = arith.constant 18 : index
    %c0_70 = arith.constant 0 : index
    %85 = vector.load %arg1[%c0_69, %c18, %c0_70] : memref<1x68x32xf32, #tpu.memory_space<vmem>>, vector<1x32x32xf32>
    %86 = vector.shape_cast %85 : vector<1x32x32xf32> to vector<32x32xf32>
    %87 = arith.truncf %86 : vector<32x32xf32> to vector<32x32xbf16>
    %c12_71 = arith.constant 12 : index
    %c0_72 = arith.constant 0 : index
    %c0_73 = arith.constant 0 : index
    %88 = vector.load %arg2[%c12_71, %c0_72, %c0_73] : memref<25x32x64xbf16, #tpu.memory_space<vmem>>, vector<1x32x64xbf16>
    %89 = vector.shape_cast %88 : vector<1x32x64xbf16> to vector<32x64xbf16>
    %cst_74 = arith.constant dense<0.000000e+00> : vector<32x64xf32>
    %90 = tpu.matmul %87, %89, %cst_74 {dimension_numbers = #tpu.dot_dimension_numbers<[1], [0], [0], [1], [0, 0, 1, 1], [], []>} : vector<32x32xbf16>, vector<32x64xbf16>, vector<32x64xf32> -> vector<32x64xf32>
    %91 = arith.addf %84, %90 : vector<32x64xf32>
    %c0_75 = arith.constant 0 : index
    %c19 = arith.constant 19 : index
    %c0_76 = arith.constant 0 : index
    %92 = vector.load %arg1[%c0_75, %c19, %c0_76] : memref<1x68x32xf32, #tpu.memory_space<vmem>>, vector<1x32x32xf32>
    %93 = vector.shape_cast %92 : vector<1x32x32xf32> to vector<32x32xf32>
    %94 = arith.truncf %93 : vector<32x32xf32> to vector<32x32xbf16>
    %c13 = arith.constant 13 : index
    %c0_77 = arith.constant 0 : index
    %c0_78 = arith.constant 0 : index
    %95 = vector.load %arg2[%c13, %c0_77, %c0_78] : memref<25x32x64xbf16, #tpu.memory_space<vmem>>, vector<1x32x64xbf16>
    %96 = vector.shape_cast %95 : vector<1x32x64xbf16> to vector<32x64xbf16>
    %cst_79 = arith.constant dense<0.000000e+00> : vector<32x64xf32>
    %97 = tpu.matmul %94, %96, %cst_79 {dimension_numbers = #tpu.dot_dimension_numbers<[1], [0], [0], [1], [0, 0, 1, 1], [], []>} : vector<32x32xbf16>, vector<32x64xbf16>, vector<32x64xf32> -> vector<32x64xf32>
    %98 = arith.addf %91, %97 : vector<32x64xf32>
    %c0_80 = arith.constant 0 : index
    %c20 = arith.constant 20 : index
    %c0_81 = arith.constant 0 : index
    %99 = vector.load %arg1[%c0_80, %c20, %c0_81] : memref<1x68x32xf32, #tpu.memory_space<vmem>>, vector<1x32x32xf32>
    %100 = vector.shape_cast %99 : vector<1x32x32xf32> to vector<32x32xf32>
    %101 = arith.truncf %100 : vector<32x32xf32> to vector<32x32xbf16>
    %c14 = arith.constant 14 : index
    %c0_82 = arith.constant 0 : index
    %c0_83 = arith.constant 0 : index
    %102 = vector.load %arg2[%c14, %c0_82, %c0_83] : memref<25x32x64xbf16, #tpu.memory_space<vmem>>, vector<1x32x64xbf16>
    %103 = vector.shape_cast %102 : vector<1x32x64xbf16> to vector<32x64xbf16>
    %cst_84 = arith.constant dense<0.000000e+00> : vector<32x64xf32>
    %104 = tpu.matmul %101, %103, %cst_84 {dimension_numbers = #tpu.dot_dimension_numbers<[1], [0], [0], [1], [0, 0, 1, 1], [], []>} : vector<32x32xbf16>, vector<32x64xbf16>, vector<32x64xf32> -> vector<32x64xf32>
    %105 = arith.addf %98, %104 : vector<32x64xf32>
    %c0_85 = arith.constant 0 : index
    %c24 = arith.constant 24 : index
    %c0_86 = arith.constant 0 : index
    %106 = vector.load %arg1[%c0_85, %c24, %c0_86] : memref<1x68x32xf32, #tpu.memory_space<vmem>>, vector<1x32x32xf32>
    %107 = vector.shape_cast %106 : vector<1x32x32xf32> to vector<32x32xf32>
    %108 = arith.truncf %107 : vector<32x32xf32> to vector<32x32xbf16>
    %c15 = arith.constant 15 : index
    %c0_87 = arith.constant 0 : index
    %c0_88 = arith.constant 0 : index
    %109 = vector.load %arg2[%c15, %c0_87, %c0_88] : memref<25x32x64xbf16, #tpu.memory_space<vmem>>, vector<1x32x64xbf16>
    %110 = vector.shape_cast %109 : vector<1x32x64xbf16> to vector<32x64xbf16>
    %cst_89 = arith.constant dense<0.000000e+00> : vector<32x64xf32>
    %111 = tpu.matmul %108, %110, %cst_89 {dimension_numbers = #tpu.dot_dimension_numbers<[1], [0], [0], [1], [0, 0, 1, 1], [], []>} : vector<32x32xbf16>, vector<32x64xbf16>, vector<32x64xf32> -> vector<32x64xf32>
    %112 = arith.addf %105, %111 : vector<32x64xf32>
    %c0_90 = arith.constant 0 : index
    %c25 = arith.constant 25 : index
    %c0_91 = arith.constant 0 : index
    %113 = vector.load %arg1[%c0_90, %c25, %c0_91] : memref<1x68x32xf32, #tpu.memory_space<vmem>>, vector<1x32x32xf32>
    %114 = vector.shape_cast %113 : vector<1x32x32xf32> to vector<32x32xf32>
    %115 = arith.truncf %114 : vector<32x32xf32> to vector<32x32xbf16>
    %c16_92 = arith.constant 16 : index
    %c0_93 = arith.constant 0 : index
    %c0_94 = arith.constant 0 : index
    %116 = vector.load %arg2[%c16_92, %c0_93, %c0_94] : memref<25x32x64xbf16, #tpu.memory_space<vmem>>, vector<1x32x64xbf16>
    %117 = vector.shape_cast %116 : vector<1x32x64xbf16> to vector<32x64xbf16>
    %cst_95 = arith.constant dense<0.000000e+00> : vector<32x64xf32>
    %118 = tpu.matmul %115, %117, %cst_95 {dimension_numbers = #tpu.dot_dimension_numbers<[1], [0], [0], [1], [0, 0, 1, 1], [], []>} : vector<32x32xbf16>, vector<32x64xbf16>, vector<32x64xf32> -> vector<32x64xf32>
    %119 = arith.addf %112, %118 : vector<32x64xf32>
    %c0_96 = arith.constant 0 : index
    %c26 = arith.constant 26 : index
    %c0_97 = arith.constant 0 : index
    %120 = vector.load %arg1[%c0_96, %c26, %c0_97] : memref<1x68x32xf32, #tpu.memory_space<vmem>>, vector<1x32x32xf32>
    %121 = vector.shape_cast %120 : vector<1x32x32xf32> to vector<32x32xf32>
    %122 = arith.truncf %121 : vector<32x32xf32> to vector<32x32xbf16>
    %c17_98 = arith.constant 17 : index
    %c0_99 = arith.constant 0 : index
    %c0_100 = arith.constant 0 : index
    %123 = vector.load %arg2[%c17_98, %c0_99, %c0_100] : memref<25x32x64xbf16, #tpu.memory_space<vmem>>, vector<1x32x64xbf16>
    %124 = vector.shape_cast %123 : vector<1x32x64xbf16> to vector<32x64xbf16>
    %cst_101 = arith.constant dense<0.000000e+00> : vector<32x64xf32>
    %125 = tpu.matmul %122, %124, %cst_101 {dimension_numbers = #tpu.dot_dimension_numbers<[1], [0], [0], [1], [0, 0, 1, 1], [], []>} : vector<32x32xbf16>, vector<32x64xbf16>, vector<32x64xf32> -> vector<32x64xf32>
    %126 = arith.addf %119, %125 : vector<32x64xf32>
    %c0_102 = arith.constant 0 : index
    %c27 = arith.constant 27 : index
    %c0_103 = arith.constant 0 : index
    %127 = vector.load %arg1[%c0_102, %c27, %c0_103] : memref<1x68x32xf32, #tpu.memory_space<vmem>>, vector<1x32x32xf32>
    %128 = vector.shape_cast %127 : vector<1x32x32xf32> to vector<32x32xf32>
    %129 = arith.truncf %128 : vector<32x32xf32> to vector<32x32xbf16>
    %c18_104 = arith.constant 18 : index
    %c0_105 = arith.constant 0 : index
    %c0_106 = arith.constant 0 : index
    %130 = vector.load %arg2[%c18_104, %c0_105, %c0_106] : memref<25x32x64xbf16, #tpu.memory_space<vmem>>, vector<1x32x64xbf16>
    %131 = vector.shape_cast %130 : vector<1x32x64xbf16> to vector<32x64xbf16>
    %cst_107 = arith.constant dense<0.000000e+00> : vector<32x64xf32>
    %132 = tpu.matmul %129, %131, %cst_107 {dimension_numbers = #tpu.dot_dimension_numbers<[1], [0], [0], [1], [0, 0, 1, 1], [], []>} : vector<32x32xbf16>, vector<32x64xbf16>, vector<32x64xf32> -> vector<32x64xf32>
    %133 = arith.addf %126, %132 : vector<32x64xf32>
    %c0_108 = arith.constant 0 : index
    %c28 = arith.constant 28 : index
    %c0_109 = arith.constant 0 : index
    %134 = vector.load %arg1[%c0_108, %c28, %c0_109] : memref<1x68x32xf32, #tpu.memory_space<vmem>>, vector<1x32x32xf32>
    %135 = vector.shape_cast %134 : vector<1x32x32xf32> to vector<32x32xf32>
    %136 = arith.truncf %135 : vector<32x32xf32> to vector<32x32xbf16>
    %c19_110 = arith.constant 19 : index
    %c0_111 = arith.constant 0 : index
    %c0_112 = arith.constant 0 : index
    %137 = vector.load %arg2[%c19_110, %c0_111, %c0_112] : memref<25x32x64xbf16, #tpu.memory_space<vmem>>, vector<1x32x64xbf16>
    %138 = vector.shape_cast %137 : vector<1x32x64xbf16> to vector<32x64xbf16>
    %cst_113 = arith.constant dense<0.000000e+00> : vector<32x64xf32>
    %139 = tpu.matmul %136, %138, %cst_113 {dimension_numbers = #tpu.dot_dimension_numbers<[1], [0], [0], [1], [0, 0, 1, 1], [], []>} : vector<32x32xbf16>, vector<32x64xbf16>, vector<32x64xf32> -> vector<32x64xf32>
    %140 = arith.addf %133, %139 : vector<32x64xf32>
    %c0_114 = arith.constant 0 : index
    %c32 = arith.constant 32 : index
    %c0_115 = arith.constant 0 : index
    %141 = vector.load %arg1[%c0_114, %c32, %c0_115] : memref<1x68x32xf32, #tpu.memory_space<vmem>>, vector<1x32x32xf32>
    %142 = vector.shape_cast %141 : vector<1x32x32xf32> to vector<32x32xf32>
    %143 = arith.truncf %142 : vector<32x32xf32> to vector<32x32xbf16>
    %c20_116 = arith.constant 20 : index
    %c0_117 = arith.constant 0 : index
    %c0_118 = arith.constant 0 : index
    %144 = vector.load %arg2[%c20_116, %c0_117, %c0_118] : memref<25x32x64xbf16, #tpu.memory_space<vmem>>, vector<1x32x64xbf16>
    %145 = vector.shape_cast %144 : vector<1x32x64xbf16> to vector<32x64xbf16>
    %cst_119 = arith.constant dense<0.000000e+00> : vector<32x64xf32>
    %146 = tpu.matmul %143, %145, %cst_119 {dimension_numbers = #tpu.dot_dimension_numbers<[1], [0], [0], [1], [0, 0, 1, 1], [], []>} : vector<32x32xbf16>, vector<32x64xbf16>, vector<32x64xf32> -> vector<32x64xf32>
    %147 = arith.addf %140, %146 : vector<32x64xf32>
    %c0_120 = arith.constant 0 : index
    %c33 = arith.constant 33 : index
    %c0_121 = arith.constant 0 : index
    %148 = vector.load %arg1[%c0_120, %c33, %c0_121] : memref<1x68x32xf32, #tpu.memory_space<vmem>>, vector<1x32x32xf32>
    %149 = vector.shape_cast %148 : vector<1x32x32xf32> to vector<32x32xf32>
    %150 = arith.truncf %149 : vector<32x32xf32> to vector<32x32xbf16>
    %c21 = arith.constant 21 : index
    %c0_122 = arith.constant 0 : index
    %c0_123 = arith.constant 0 : index
    %151 = vector.load %arg2[%c21, %c0_122, %c0_123] : memref<25x32x64xbf16, #tpu.memory_space<vmem>>, vector<1x32x64xbf16>
    %152 = vector.shape_cast %151 : vector<1x32x64xbf16> to vector<32x64xbf16>
    %cst_124 = arith.constant dense<0.000000e+00> : vector<32x64xf32>
    %153 = tpu.matmul %150, %152, %cst_124 {dimension_numbers = #tpu.dot_dimension_numbers<[1], [0], [0], [1], [0, 0, 1, 1], [], []>} : vector<32x32xbf16>, vector<32x64xbf16>, vector<32x64xf32> -> vector<32x64xf32>
    %154 = arith.addf %147, %153 : vector<32x64xf32>
    %c0_125 = arith.constant 0 : index
    %c34 = arith.constant 34 : index
    %c0_126 = arith.constant 0 : index
    %155 = vector.load %arg1[%c0_125, %c34, %c0_126] : memref<1x68x32xf32, #tpu.memory_space<vmem>>, vector<1x32x32xf32>
    %156 = vector.shape_cast %155 : vector<1x32x32xf32> to vector<32x32xf32>
    %157 = arith.truncf %156 : vector<32x32xf32> to vector<32x32xbf16>
    %c22 = arith.constant 22 : index
    %c0_127 = arith.constant 0 : index
    %c0_128 = arith.constant 0 : index
    %158 = vector.load %arg2[%c22, %c0_127, %c0_128] : memref<25x32x64xbf16, #tpu.memory_space<vmem>>, vector<1x32x64xbf16>
    %159 = vector.shape_cast %158 : vector<1x32x64xbf16> to vector<32x64xbf16>
    %cst_129 = arith.constant dense<0.000000e+00> : vector<32x64xf32>
    %160 = tpu.matmul %157, %159, %cst_129 {dimension_numbers = #tpu.dot_dimension_numbers<[1], [0], [0], [1], [0, 0, 1, 1], [], []>} : vector<32x32xbf16>, vector<32x64xbf16>, vector<32x64xf32> -> vector<32x64xf32>
    %161 = arith.addf %154, %160 : vector<32x64xf32>
    %c0_130 = arith.constant 0 : index
    %c35 = arith.constant 35 : index
    %c0_131 = arith.constant 0 : index
    %162 = vector.load %arg1[%c0_130, %c35, %c0_131] : memref<1x68x32xf32, #tpu.memory_space<vmem>>, vector<1x32x32xf32>
    %163 = vector.shape_cast %162 : vector<1x32x32xf32> to vector<32x32xf32>
    %164 = arith.truncf %163 : vector<32x32xf32> to vector<32x32xbf16>
    %c23 = arith.constant 23 : index
    %c0_132 = arith.constant 0 : index
    %c0_133 = arith.constant 0 : index
    %165 = vector.load %arg2[%c23, %c0_132, %c0_133] : memref<25x32x64xbf16, #tpu.memory_space<vmem>>, vector<1x32x64xbf16>
    %166 = vector.shape_cast %165 : vector<1x32x64xbf16> to vector<32x64xbf16>
    %cst_134 = arith.constant dense<0.000000e+00> : vector<32x64xf32>
    %167 = tpu.matmul %164, %166, %cst_134 {dimension_numbers = #tpu.dot_dimension_numbers<[1], [0], [0], [1], [0, 0, 1, 1], [], []>} : vector<32x32xbf16>, vector<32x64xbf16>, vector<32x64xf32> -> vector<32x64xf32>
    %168 = arith.addf %161, %167 : vector<32x64xf32>
    %c0_135 = arith.constant 0 : index
    %c36 = arith.constant 36 : index
    %c0_136 = arith.constant 0 : index
    %169 = vector.load %arg1[%c0_135, %c36, %c0_136] : memref<1x68x32xf32, #tpu.memory_space<vmem>>, vector<1x32x32xf32>
    %170 = vector.shape_cast %169 : vector<1x32x32xf32> to vector<32x32xf32>
    %171 = arith.truncf %170 : vector<32x32xf32> to vector<32x32xbf16>
    %c24_137 = arith.constant 24 : index
    %c0_138 = arith.constant 0 : index
    %c0_139 = arith.constant 0 : index
    %172 = vector.load %arg2[%c24_137, %c0_138, %c0_139] : memref<25x32x64xbf16, #tpu.memory_space<vmem>>, vector<1x32x64xbf16>
    %173 = vector.shape_cast %172 : vector<1x32x64xbf16> to vector<32x64xbf16>
    %cst_140 = arith.constant dense<0.000000e+00> : vector<32x64xf32>
    %174 = tpu.matmul %171, %173, %cst_140 {dimension_numbers = #tpu.dot_dimension_numbers<[1], [0], [0], [1], [0, 0, 1, 1], [], []>} : vector<32x32xbf16>, vector<32x64xbf16>, vector<32x64xf32> -> vector<32x64xf32>
    %175 = arith.addf %168, %174 : vector<32x64xf32>
    %c0_141 = arith.constant 0 : index
    %c0_142 = arith.constant 0 : index
    %176 = vector.load %arg3[%c0_141, %c0_142] : memref<1x64xf32, #tpu.memory_space<vmem>>, vector<1x64xf32>
    %177 = vector.broadcast %176 : vector<1x64xf32> to vector<32x64xf32>
    %178 = arith.addf %175, %177 : vector<32x64xf32>
    %cst_143 = arith.constant 0.000000e+00 : f32
    %179 = vector.broadcast %cst_143 : f32 to vector<32x64xf32>
    %180 = arith.maximumf %178, %179 : vector<32x64xf32>
    %c0_144 = arith.constant 0 : index
    %c0_145 = arith.constant 0 : index
    %181 = vector.load %arg5[%c0_144, %c0_145] : memref<32x64xf32, #tpu.memory_space<vmem>>, vector<32x64xf32>
    tpu.vector_store %arg5[%c0_144, %c0_145], %180 {strides = array<i32>} : memref<32x64xf32, #tpu.memory_space<vmem>>, vector<32x64xf32>,
    %c2_146 = arith.constant 2 : index
    %c0_147 = arith.constant 0 : index
    %182 = tpu.strided_load %arg5[%c2_146, %c0_147] {strides = array<i32: 2, 1>} : memref<32x64xf32, #tpu.memory_space<vmem>>, vector<2x64xf32>
    %c3_148 = arith.constant 3 : index
    %c0_149 = arith.constant 0 : index
    %183 = tpu.strided_load %arg5[%c3_148, %c0_149] {strides = array<i32: 2, 1>} : memref<32x64xf32, #tpu.memory_space<vmem>>, vector<2x64xf32>
    %184 = arith.maximumf %182, %183 : vector<2x64xf32>
    %c10_150 = arith.constant 10 : index
    %c0_151 = arith.constant 0 : index
    %185 = tpu.strided_load %arg5[%c10_150, %c0_151] {strides = array<i32: 2, 1>} : memref<32x64xf32, #tpu.memory_space<vmem>>, vector<2x64xf32>
    %c11_152 = arith.constant 11 : index
    %c0_153 = arith.constant 0 : index
    %186 = tpu.strided_load %arg5[%c11_152, %c0_153] {strides = array<i32: 2, 1>} : memref<32x64xf32, #tpu.memory_space<vmem>>, vector<2x64xf32>
    %187 = arith.maximumf %185, %186 : vector<2x64xf32>
    %188 = arith.maximumf %184, %187 : vector<2x64xf32>
    %c0_154 = arith.constant 0 : index
    %c0_155 = arith.constant 0 : index
    %c0_156 = arith.constant 0 : index
    %c0_157 = arith.constant 0 : index
    %189 = vector.load %arg4[%c0_154, %c0_155, %c0_156, %c0_157] : memref<1x2x2x64xf32, #tpu.memory_space<vmem>>, vector<1x1x2x64xf32>
    %190 = vector.shape_cast %189 : vector<1x1x2x64xf32> to vector<2x64xf32>
    %191 = vector.shape_cast %188 : vector<2x64xf32> to vector<1x1x2x64xf32>
    tpu.vector_store %arg4[%c0_154, %c0_155, %c0_156, %c0_157], %191 {strides = array<i32>} : memref<1x2x2x64xf32, #tpu.memory_space<vmem>>, vector<1x1x2x64xf32>,
    %c18_158 = arith.constant 18 : index
    %c0_159 = arith.constant 0 : index
    %192 = tpu.strided_load %arg5[%c18_158, %c0_159] {strides = array<i32: 2, 1>} : memref<32x64xf32, #tpu.memory_space<vmem>>, vector<2x64xf32>
    %c19_160 = arith.constant 19 : index
    %c0_161 = arith.constant 0 : index
    %193 = tpu.strided_load %arg5[%c19_160, %c0_161] {strides = array<i32: 2, 1>} : memref<32x64xf32, #tpu.memory_space<vmem>>, vector<2x64xf32>
    %194 = arith.maximumf %192, %193 : vector<2x64xf32>
    %c26_162 = arith.constant 26 : index
    %c0_163 = arith.constant 0 : index
    %195 = tpu.strided_load %arg5[%c26_162, %c0_163] {strides = array<i32: 2, 1>} : memref<32x64xf32, #tpu.memory_space<vmem>>, vector<2x64xf32>
    %c27_164 = arith.constant 27 : index
    %c0_165 = arith.constant 0 : index
    %196 = tpu.strided_load %arg5[%c27_164, %c0_165] {strides = array<i32: 2, 1>} : memref<32x64xf32, #tpu.memory_space<vmem>>, vector<2x64xf32>
    %197 = arith.maximumf %195, %196 : vector<2x64xf32>
    %198 = arith.maximumf %194, %197 : vector<2x64xf32>
    %c0_166 = arith.constant 0 : index
    %c1_167 = arith.constant 1 : index
    %c0_168 = arith.constant 0 : index
    %c0_169 = arith.constant 0 : index
    %199 = vector.load %arg4[%c0_166, %c1_167, %c0_168, %c0_169] : memref<1x2x2x64xf32, #tpu.memory_space<vmem>>, vector<1x1x2x64xf32>
    %200 = vector.shape_cast %199 : vector<1x1x2x64xf32> to vector<2x64xf32>
    %201 = vector.shape_cast %198 : vector<2x64xf32> to vector<1x1x2x64xf32>
    tpu.vector_store %arg4[%c0_166, %c1_167, %c0_168, %c0_169], %201 {strides = array<i32>} : memref<1x2x2x64xf32, #tpu.memory_space<vmem>>, vector<1x1x2x64xf32>,
    return
  }
  func.func @transform_0(%arg0: i32) -> (i32, i32, i32) {
    %c0_i32 = arith.constant 0 : i32
    %c0_i32_0 = arith.constant 0 : i32
    %c0_i32_1 = arith.constant 0 : i32
    return %arg0, %c0_i32, %c0_i32_0 : i32, i32, i32
  }
  func.func @transform_1(%arg0: i32) -> (i32, i32, i32) {
    %c0_i32 = arith.constant 0 : i32
    %c0_i32_0 = arith.constant 0 : i32
    %c0_i32_1 = arith.constant 0 : i32
    %c0_i32_2 = arith.constant 0 : i32
    return %c0_i32, %c0_i32_0, %c0_i32_1 : i32, i32, i32
  }
  func.func @transform_2(%arg0: i32) -> (i32, i32) {
    %c0_i32 = arith.constant 0 : i32
    %c0_i32_0 = arith.constant 0 : i32
    %c0_i32_1 = arith.constant 0 : i32
    return %c0_i32, %c0_i32_0 : i32, i32
  }
  func.func @transform_3(%arg0: i32) -> (i32, i32, i32, i32) {
    %c0_i32 = arith.constant 0 : i32
    %c0_i32_0 = arith.constant 0 : i32
    %c0_i32_1 = arith.constant 0 : i32
    %c0_i32_2 = arith.constant 0 : i32
    return %arg0, %c0_i32, %c0_i32_0, %c0_i32_1 : i32, i32, i32, i32
  }
}

module attributes {stable_mosaic.version = 11 : i64} {
  func.func @_conv_relu_pool_kernel(%arg0: i32, %arg1: memref<1x148x16xf32, #tpu.memory_space<vmem>>, %arg2: memref<25x16x32xbf16, #tpu.memory_space<vmem>>, %arg3: memref<1x32xf32, #tpu.memory_space<vmem>>, %arg4: memref<1x4x4x32xf32, #tpu.memory_space<vmem>>, %arg5: memref<96x32xf32, #tpu.memory_space<vmem>>) attributes {dimension_semantics = [#tpu.dimension_semantics<parallel>], iteration_bounds = array<i64: 2>, scalar_prefetch = 0 : i64, scratch_operands = 1 : i64, tpu.core_type = #tpu.core_type<tc>, window_params = [{transform_indices = @transform_0, window_bounds = array<i64: 1, 148, 16>}, {pipeline_mode = #tpu.pipeline_mode<synchronous>, transform_indices = @transform_1, window_bounds = array<i64: 25, 16, 32>}, {pipeline_mode = #tpu.pipeline_mode<synchronous>, transform_indices = @transform_2, window_bounds = array<i64: 1, 32>}, {transform_indices = @transform_3, window_bounds = array<i64: 1, 4, 4, 32>}]} {
    %cst = arith.constant 0.000000e+00 : f32
    %0 = vector.broadcast %cst : f32 to vector<96x32xf32>
    %c0 = arith.constant 0 : index
    %c0_0 = arith.constant 0 : index
    %c0_1 = arith.constant 0 : index
    %1 = vector.load %arg1[%c0, %c0_0, %c0_1] : memref<1x148x16xf32, #tpu.memory_space<vmem>>, vector<1x96x16xf32>
    %2 = vector.shape_cast %1 : vector<1x96x16xf32> to vector<96x16xf32>
    %3 = arith.truncf %2 : vector<96x16xf32> to vector<96x16xbf16>
    %c0_2 = arith.constant 0 : index
    %c0_3 = arith.constant 0 : index
    %c0_4 = arith.constant 0 : index
    %4 = vector.load %arg2[%c0_2, %c0_3, %c0_4] : memref<25x16x32xbf16, #tpu.memory_space<vmem>>, vector<1x16x32xbf16>
    %5 = vector.shape_cast %4 : vector<1x16x32xbf16> to vector<16x32xbf16>
    %cst_5 = arith.constant dense<0.000000e+00> : vector<96x32xf32>
    %6 = tpu.matmul %3, %5, %cst_5 {dimension_numbers = #tpu.dot_dimension_numbers<[1], [0], [0], [1], [0, 0, 1, 1], [], []>} : vector<96x16xbf16>, vector<16x32xbf16>, vector<96x32xf32> -> vector<96x32xf32>
    %7 = arith.addf %0, %6 : vector<96x32xf32>
    %c0_6 = arith.constant 0 : index
    %c1 = arith.constant 1 : index
    %c0_7 = arith.constant 0 : index
    %8 = vector.load %arg1[%c0_6, %c1, %c0_7] : memref<1x148x16xf32, #tpu.memory_space<vmem>>, vector<1x96x16xf32>
    %9 = vector.shape_cast %8 : vector<1x96x16xf32> to vector<96x16xf32>
    %10 = arith.truncf %9 : vector<96x16xf32> to vector<96x16xbf16>
    %c1_8 = arith.constant 1 : index
    %c0_9 = arith.constant 0 : index
    %c0_10 = arith.constant 0 : index
    %11 = vector.load %arg2[%c1_8, %c0_9, %c0_10] : memref<25x16x32xbf16, #tpu.memory_space<vmem>>, vector<1x16x32xbf16>
    %12 = vector.shape_cast %11 : vector<1x16x32xbf16> to vector<16x32xbf16>
    %cst_11 = arith.constant dense<0.000000e+00> : vector<96x32xf32>
    %13 = tpu.matmul %10, %12, %cst_11 {dimension_numbers = #tpu.dot_dimension_numbers<[1], [0], [0], [1], [0, 0, 1, 1], [], []>} : vector<96x16xbf16>, vector<16x32xbf16>, vector<96x32xf32> -> vector<96x32xf32>
    %14 = arith.addf %7, %13 : vector<96x32xf32>
    %c0_12 = arith.constant 0 : index
    %c2 = arith.constant 2 : index
    %c0_13 = arith.constant 0 : index
    %15 = vector.load %arg1[%c0_12, %c2, %c0_13] : memref<1x148x16xf32, #tpu.memory_space<vmem>>, vector<1x96x16xf32>
    %16 = vector.shape_cast %15 : vector<1x96x16xf32> to vector<96x16xf32>
    %17 = arith.truncf %16 : vector<96x16xf32> to vector<96x16xbf16>
    %c2_14 = arith.constant 2 : index
    %c0_15 = arith.constant 0 : index
    %c0_16 = arith.constant 0 : index
    %18 = vector.load %arg2[%c2_14, %c0_15, %c0_16] : memref<25x16x32xbf16, #tpu.memory_space<vmem>>, vector<1x16x32xbf16>
    %19 = vector.shape_cast %18 : vector<1x16x32xbf16> to vector<16x32xbf16>
    %cst_17 = arith.constant dense<0.000000e+00> : vector<96x32xf32>
    %20 = tpu.matmul %17, %19, %cst_17 {dimension_numbers = #tpu.dot_dimension_numbers<[1], [0], [0], [1], [0, 0, 1, 1], [], []>} : vector<96x16xbf16>, vector<16x32xbf16>, vector<96x32xf32> -> vector<96x32xf32>
    %21 = arith.addf %14, %20 : vector<96x32xf32>
    %c0_18 = arith.constant 0 : index
    %c3 = arith.constant 3 : index
    %c0_19 = arith.constant 0 : index
    %22 = vector.load %arg1[%c0_18, %c3, %c0_19] : memref<1x148x16xf32, #tpu.memory_space<vmem>>, vector<1x96x16xf32>
    %23 = vector.shape_cast %22 : vector<1x96x16xf32> to vector<96x16xf32>
    %24 = arith.truncf %23 : vector<96x16xf32> to vector<96x16xbf16>
    %c3_20 = arith.constant 3 : index
    %c0_21 = arith.constant 0 : index
    %c0_22 = arith.constant 0 : index
    %25 = vector.load %arg2[%c3_20, %c0_21, %c0_22] : memref<25x16x32xbf16, #tpu.memory_space<vmem>>, vector<1x16x32xbf16>
    %26 = vector.shape_cast %25 : vector<1x16x32xbf16> to vector<16x32xbf16>
    %cst_23 = arith.constant dense<0.000000e+00> : vector<96x32xf32>
    %27 = tpu.matmul %24, %26, %cst_23 {dimension_numbers = #tpu.dot_dimension_numbers<[1], [0], [0], [1], [0, 0, 1, 1], [], []>} : vector<96x16xbf16>, vector<16x32xbf16>, vector<96x32xf32> -> vector<96x32xf32>
    %28 = arith.addf %21, %27 : vector<96x32xf32>
    %c0_24 = arith.constant 0 : index
    %c4 = arith.constant 4 : index
    %c0_25 = arith.constant 0 : index
    %29 = vector.load %arg1[%c0_24, %c4, %c0_25] : memref<1x148x16xf32, #tpu.memory_space<vmem>>, vector<1x96x16xf32>
    %30 = vector.shape_cast %29 : vector<1x96x16xf32> to vector<96x16xf32>
    %31 = arith.truncf %30 : vector<96x16xf32> to vector<96x16xbf16>
    %c4_26 = arith.constant 4 : index
    %c0_27 = arith.constant 0 : index
    %c0_28 = arith.constant 0 : index
    %32 = vector.load %arg2[%c4_26, %c0_27, %c0_28] : memref<25x16x32xbf16, #tpu.memory_space<vmem>>, vector<1x16x32xbf16>
    %33 = vector.shape_cast %32 : vector<1x16x32xbf16> to vector<16x32xbf16>
    %cst_29 = arith.constant dense<0.000000e+00> : vector<96x32xf32>
    %34 = tpu.matmul %31, %33, %cst_29 {dimension_numbers = #tpu.dot_dimension_numbers<[1], [0], [0], [1], [0, 0, 1, 1], [], []>} : vector<96x16xbf16>, vector<16x32xbf16>, vector<96x32xf32> -> vector<96x32xf32>
    %35 = arith.addf %28, %34 : vector<96x32xf32>
    %c0_30 = arith.constant 0 : index
    %c12 = arith.constant 12 : index
    %c0_31 = arith.constant 0 : index
    %36 = vector.load %arg1[%c0_30, %c12, %c0_31] : memref<1x148x16xf32, #tpu.memory_space<vmem>>, vector<1x96x16xf32>
    %37 = vector.shape_cast %36 : vector<1x96x16xf32> to vector<96x16xf32>
    %38 = arith.truncf %37 : vector<96x16xf32> to vector<96x16xbf16>
    %c5 = arith.constant 5 : index
    %c0_32 = arith.constant 0 : index
    %c0_33 = arith.constant 0 : index
    %39 = vector.load %arg2[%c5, %c0_32, %c0_33] : memref<25x16x32xbf16, #tpu.memory_space<vmem>>, vector<1x16x32xbf16>
    %40 = vector.shape_cast %39 : vector<1x16x32xbf16> to vector<16x32xbf16>
    %cst_34 = arith.constant dense<0.000000e+00> : vector<96x32xf32>
    %41 = tpu.matmul %38, %40, %cst_34 {dimension_numbers = #tpu.dot_dimension_numbers<[1], [0], [0], [1], [0, 0, 1, 1], [], []>} : vector<96x16xbf16>, vector<16x32xbf16>, vector<96x32xf32> -> vector<96x32xf32>
    %42 = arith.addf %35, %41 : vector<96x32xf32>
    %c0_35 = arith.constant 0 : index
    %c13 = arith.constant 13 : index
    %c0_36 = arith.constant 0 : index
    %43 = vector.load %arg1[%c0_35, %c13, %c0_36] : memref<1x148x16xf32, #tpu.memory_space<vmem>>, vector<1x96x16xf32>
    %44 = vector.shape_cast %43 : vector<1x96x16xf32> to vector<96x16xf32>
    %45 = arith.truncf %44 : vector<96x16xf32> to vector<96x16xbf16>
    %c6 = arith.constant 6 : index
    %c0_37 = arith.constant 0 : index
    %c0_38 = arith.constant 0 : index
    %46 = vector.load %arg2[%c6, %c0_37, %c0_38] : memref<25x16x32xbf16, #tpu.memory_space<vmem>>, vector<1x16x32xbf16>
    %47 = vector.shape_cast %46 : vector<1x16x32xbf16> to vector<16x32xbf16>
    %cst_39 = arith.constant dense<0.000000e+00> : vector<96x32xf32>
    %48 = tpu.matmul %45, %47, %cst_39 {dimension_numbers = #tpu.dot_dimension_numbers<[1], [0], [0], [1], [0, 0, 1, 1], [], []>} : vector<96x16xbf16>, vector<16x32xbf16>, vector<96x32xf32> -> vector<96x32xf32>
    %49 = arith.addf %42, %48 : vector<96x32xf32>
    %c0_40 = arith.constant 0 : index
    %c14 = arith.constant 14 : index
    %c0_41 = arith.constant 0 : index
    %50 = vector.load %arg1[%c0_40, %c14, %c0_41] : memref<1x148x16xf32, #tpu.memory_space<vmem>>, vector<1x96x16xf32>
    %51 = vector.shape_cast %50 : vector<1x96x16xf32> to vector<96x16xf32>
    %52 = arith.truncf %51 : vector<96x16xf32> to vector<96x16xbf16>
    %c7 = arith.constant 7 : index
    %c0_42 = arith.constant 0 : index
    %c0_43 = arith.constant 0 : index
    %53 = vector.load %arg2[%c7, %c0_42, %c0_43] : memref<25x16x32xbf16, #tpu.memory_space<vmem>>, vector<1x16x32xbf16>
    %54 = vector.shape_cast %53 : vector<1x16x32xbf16> to vector<16x32xbf16>
    %cst_44 = arith.constant dense<0.000000e+00> : vector<96x32xf32>
    %55 = tpu.matmul %52, %54, %cst_44 {dimension_numbers = #tpu.dot_dimension_numbers<[1], [0], [0], [1], [0, 0, 1, 1], [], []>} : vector<96x16xbf16>, vector<16x32xbf16>, vector<96x32xf32> -> vector<96x32xf32>
    %56 = arith.addf %49, %55 : vector<96x32xf32>
    %c0_45 = arith.constant 0 : index
    %c15 = arith.constant 15 : index
    %c0_46 = arith.constant 0 : index
    %57 = vector.load %arg1[%c0_45, %c15, %c0_46] : memref<1x148x16xf32, #tpu.memory_space<vmem>>, vector<1x96x16xf32>
    %58 = vector.shape_cast %57 : vector<1x96x16xf32> to vector<96x16xf32>
    %59 = arith.truncf %58 : vector<96x16xf32> to vector<96x16xbf16>
    %c8 = arith.constant 8 : index
    %c0_47 = arith.constant 0 : index
    %c0_48 = arith.constant 0 : index
    %60 = vector.load %arg2[%c8, %c0_47, %c0_48] : memref<25x16x32xbf16, #tpu.memory_space<vmem>>, vector<1x16x32xbf16>
    %61 = vector.shape_cast %60 : vector<1x16x32xbf16> to vector<16x32xbf16>
    %cst_49 = arith.constant dense<0.000000e+00> : vector<96x32xf32>
    %62 = tpu.matmul %59, %61, %cst_49 {dimension_numbers = #tpu.dot_dimension_numbers<[1], [0], [0], [1], [0, 0, 1, 1], [], []>} : vector<96x16xbf16>, vector<16x32xbf16>, vector<96x32xf32> -> vector<96x32xf32>
    %63 = arith.addf %56, %62 : vector<96x32xf32>
    %c0_50 = arith.constant 0 : index
    %c16 = arith.constant 16 : index
    %c0_51 = arith.constant 0 : index
    %64 = vector.load %arg1[%c0_50, %c16, %c0_51] : memref<1x148x16xf32, #tpu.memory_space<vmem>>, vector<1x96x16xf32>
    %65 = vector.shape_cast %64 : vector<1x96x16xf32> to vector<96x16xf32>
    %66 = arith.truncf %65 : vector<96x16xf32> to vector<96x16xbf16>
    %c9 = arith.constant 9 : index
    %c0_52 = arith.constant 0 : index
    %c0_53 = arith.constant 0 : index
    %67 = vector.load %arg2[%c9, %c0_52, %c0_53] : memref<25x16x32xbf16, #tpu.memory_space<vmem>>, vector<1x16x32xbf16>
    %68 = vector.shape_cast %67 : vector<1x16x32xbf16> to vector<16x32xbf16>
    %cst_54 = arith.constant dense<0.000000e+00> : vector<96x32xf32>
    %69 = tpu.matmul %66, %68, %cst_54 {dimension_numbers = #tpu.dot_dimension_numbers<[1], [0], [0], [1], [0, 0, 1, 1], [], []>} : vector<96x16xbf16>, vector<16x32xbf16>, vector<96x32xf32> -> vector<96x32xf32>
    %70 = arith.addf %63, %69 : vector<96x32xf32>
    %c0_55 = arith.constant 0 : index
    %c24 = arith.constant 24 : index
    %c0_56 = arith.constant 0 : index
    %71 = vector.load %arg1[%c0_55, %c24, %c0_56] : memref<1x148x16xf32, #tpu.memory_space<vmem>>, vector<1x96x16xf32>
    %72 = vector.shape_cast %71 : vector<1x96x16xf32> to vector<96x16xf32>
    %73 = arith.truncf %72 : vector<96x16xf32> to vector<96x16xbf16>
    %c10 = arith.constant 10 : index
    %c0_57 = arith.constant 0 : index
    %c0_58 = arith.constant 0 : index
    %74 = vector.load %arg2[%c10, %c0_57, %c0_58] : memref<25x16x32xbf16, #tpu.memory_space<vmem>>, vector<1x16x32xbf16>
    %75 = vector.shape_cast %74 : vector<1x16x32xbf16> to vector<16x32xbf16>
    %cst_59 = arith.constant dense<0.000000e+00> : vector<96x32xf32>
    %76 = tpu.matmul %73, %75, %cst_59 {dimension_numbers = #tpu.dot_dimension_numbers<[1], [0], [0], [1], [0, 0, 1, 1], [], []>} : vector<96x16xbf16>, vector<16x32xbf16>, vector<96x32xf32> -> vector<96x32xf32>
    %77 = arith.addf %70, %76 : vector<96x32xf32>
    %c0_60 = arith.constant 0 : index
    %c25 = arith.constant 25 : index
    %c0_61 = arith.constant 0 : index
    %78 = vector.load %arg1[%c0_60, %c25, %c0_61] : memref<1x148x16xf32, #tpu.memory_space<vmem>>, vector<1x96x16xf32>
    %79 = vector.shape_cast %78 : vector<1x96x16xf32> to vector<96x16xf32>
    %80 = arith.truncf %79 : vector<96x16xf32> to vector<96x16xbf16>
    %c11 = arith.constant 11 : index
    %c0_62 = arith.constant 0 : index
    %c0_63 = arith.constant 0 : index
    %81 = vector.load %arg2[%c11, %c0_62, %c0_63] : memref<25x16x32xbf16, #tpu.memory_space<vmem>>, vector<1x16x32xbf16>
    %82 = vector.shape_cast %81 : vector<1x16x32xbf16> to vector<16x32xbf16>
    %cst_64 = arith.constant dense<0.000000e+00> : vector<96x32xf32>
    %83 = tpu.matmul %80, %82, %cst_64 {dimension_numbers = #tpu.dot_dimension_numbers<[1], [0], [0], [1], [0, 0, 1, 1], [], []>} : vector<96x16xbf16>, vector<16x32xbf16>, vector<96x32xf32> -> vector<96x32xf32>
    %84 = arith.addf %77, %83 : vector<96x32xf32>
    %c0_65 = arith.constant 0 : index
    %c26 = arith.constant 26 : index
    %c0_66 = arith.constant 0 : index
    %85 = vector.load %arg1[%c0_65, %c26, %c0_66] : memref<1x148x16xf32, #tpu.memory_space<vmem>>, vector<1x96x16xf32>
    %86 = vector.shape_cast %85 : vector<1x96x16xf32> to vector<96x16xf32>
    %87 = arith.truncf %86 : vector<96x16xf32> to vector<96x16xbf16>
    %c12_67 = arith.constant 12 : index
    %c0_68 = arith.constant 0 : index
    %c0_69 = arith.constant 0 : index
    %88 = vector.load %arg2[%c12_67, %c0_68, %c0_69] : memref<25x16x32xbf16, #tpu.memory_space<vmem>>, vector<1x16x32xbf16>
    %89 = vector.shape_cast %88 : vector<1x16x32xbf16> to vector<16x32xbf16>
    %cst_70 = arith.constant dense<0.000000e+00> : vector<96x32xf32>
    %90 = tpu.matmul %87, %89, %cst_70 {dimension_numbers = #tpu.dot_dimension_numbers<[1], [0], [0], [1], [0, 0, 1, 1], [], []>} : vector<96x16xbf16>, vector<16x32xbf16>, vector<96x32xf32> -> vector<96x32xf32>
    %91 = arith.addf %84, %90 : vector<96x32xf32>
    %c0_71 = arith.constant 0 : index
    %c27 = arith.constant 27 : index
    %c0_72 = arith.constant 0 : index
    %92 = vector.load %arg1[%c0_71, %c27, %c0_72] : memref<1x148x16xf32, #tpu.memory_space<vmem>>, vector<1x96x16xf32>
    %93 = vector.shape_cast %92 : vector<1x96x16xf32> to vector<96x16xf32>
    %94 = arith.truncf %93 : vector<96x16xf32> to vector<96x16xbf16>
    %c13_73 = arith.constant 13 : index
    %c0_74 = arith.constant 0 : index
    %c0_75 = arith.constant 0 : index
    %95 = vector.load %arg2[%c13_73, %c0_74, %c0_75] : memref<25x16x32xbf16, #tpu.memory_space<vmem>>, vector<1x16x32xbf16>
    %96 = vector.shape_cast %95 : vector<1x16x32xbf16> to vector<16x32xbf16>
    %cst_76 = arith.constant dense<0.000000e+00> : vector<96x32xf32>
    %97 = tpu.matmul %94, %96, %cst_76 {dimension_numbers = #tpu.dot_dimension_numbers<[1], [0], [0], [1], [0, 0, 1, 1], [], []>} : vector<96x16xbf16>, vector<16x32xbf16>, vector<96x32xf32> -> vector<96x32xf32>
    %98 = arith.addf %91, %97 : vector<96x32xf32>
    %c0_77 = arith.constant 0 : index
    %c28 = arith.constant 28 : index
    %c0_78 = arith.constant 0 : index
    %99 = vector.load %arg1[%c0_77, %c28, %c0_78] : memref<1x148x16xf32, #tpu.memory_space<vmem>>, vector<1x96x16xf32>
    %100 = vector.shape_cast %99 : vector<1x96x16xf32> to vector<96x16xf32>
    %101 = arith.truncf %100 : vector<96x16xf32> to vector<96x16xbf16>
    %c14_79 = arith.constant 14 : index
    %c0_80 = arith.constant 0 : index
    %c0_81 = arith.constant 0 : index
    %102 = vector.load %arg2[%c14_79, %c0_80, %c0_81] : memref<25x16x32xbf16, #tpu.memory_space<vmem>>, vector<1x16x32xbf16>
    %103 = vector.shape_cast %102 : vector<1x16x32xbf16> to vector<16x32xbf16>
    %cst_82 = arith.constant dense<0.000000e+00> : vector<96x32xf32>
    %104 = tpu.matmul %101, %103, %cst_82 {dimension_numbers = #tpu.dot_dimension_numbers<[1], [0], [0], [1], [0, 0, 1, 1], [], []>} : vector<96x16xbf16>, vector<16x32xbf16>, vector<96x32xf32> -> vector<96x32xf32>
    %105 = arith.addf %98, %104 : vector<96x32xf32>
    %c0_83 = arith.constant 0 : index
    %c36 = arith.constant 36 : index
    %c0_84 = arith.constant 0 : index
    %106 = vector.load %arg1[%c0_83, %c36, %c0_84] : memref<1x148x16xf32, #tpu.memory_space<vmem>>, vector<1x96x16xf32>
    %107 = vector.shape_cast %106 : vector<1x96x16xf32> to vector<96x16xf32>
    %108 = arith.truncf %107 : vector<96x16xf32> to vector<96x16xbf16>
    %c15_85 = arith.constant 15 : index
    %c0_86 = arith.constant 0 : index
    %c0_87 = arith.constant 0 : index
    %109 = vector.load %arg2[%c15_85, %c0_86, %c0_87] : memref<25x16x32xbf16, #tpu.memory_space<vmem>>, vector<1x16x32xbf16>
    %110 = vector.shape_cast %109 : vector<1x16x32xbf16> to vector<16x32xbf16>
    %cst_88 = arith.constant dense<0.000000e+00> : vector<96x32xf32>
    %111 = tpu.matmul %108, %110, %cst_88 {dimension_numbers = #tpu.dot_dimension_numbers<[1], [0], [0], [1], [0, 0, 1, 1], [], []>} : vector<96x16xbf16>, vector<16x32xbf16>, vector<96x32xf32> -> vector<96x32xf32>
    %112 = arith.addf %105, %111 : vector<96x32xf32>
    %c0_89 = arith.constant 0 : index
    %c37 = arith.constant 37 : index
    %c0_90 = arith.constant 0 : index
    %113 = vector.load %arg1[%c0_89, %c37, %c0_90] : memref<1x148x16xf32, #tpu.memory_space<vmem>>, vector<1x96x16xf32>
    %114 = vector.shape_cast %113 : vector<1x96x16xf32> to vector<96x16xf32>
    %115 = arith.truncf %114 : vector<96x16xf32> to vector<96x16xbf16>
    %c16_91 = arith.constant 16 : index
    %c0_92 = arith.constant 0 : index
    %c0_93 = arith.constant 0 : index
    %116 = vector.load %arg2[%c16_91, %c0_92, %c0_93] : memref<25x16x32xbf16, #tpu.memory_space<vmem>>, vector<1x16x32xbf16>
    %117 = vector.shape_cast %116 : vector<1x16x32xbf16> to vector<16x32xbf16>
    %cst_94 = arith.constant dense<0.000000e+00> : vector<96x32xf32>
    %118 = tpu.matmul %115, %117, %cst_94 {dimension_numbers = #tpu.dot_dimension_numbers<[1], [0], [0], [1], [0, 0, 1, 1], [], []>} : vector<96x16xbf16>, vector<16x32xbf16>, vector<96x32xf32> -> vector<96x32xf32>
    %119 = arith.addf %112, %118 : vector<96x32xf32>
    %c0_95 = arith.constant 0 : index
    %c38 = arith.constant 38 : index
    %c0_96 = arith.constant 0 : index
    %120 = vector.load %arg1[%c0_95, %c38, %c0_96] : memref<1x148x16xf32, #tpu.memory_space<vmem>>, vector<1x96x16xf32>
    %121 = vector.shape_cast %120 : vector<1x96x16xf32> to vector<96x16xf32>
    %122 = arith.truncf %121 : vector<96x16xf32> to vector<96x16xbf16>
    %c17 = arith.constant 17 : index
    %c0_97 = arith.constant 0 : index
    %c0_98 = arith.constant 0 : index
    %123 = vector.load %arg2[%c17, %c0_97, %c0_98] : memref<25x16x32xbf16, #tpu.memory_space<vmem>>, vector<1x16x32xbf16>
    %124 = vector.shape_cast %123 : vector<1x16x32xbf16> to vector<16x32xbf16>
    %cst_99 = arith.constant dense<0.000000e+00> : vector<96x32xf32>
    %125 = tpu.matmul %122, %124, %cst_99 {dimension_numbers = #tpu.dot_dimension_numbers<[1], [0], [0], [1], [0, 0, 1, 1], [], []>} : vector<96x16xbf16>, vector<16x32xbf16>, vector<96x32xf32> -> vector<96x32xf32>
    %126 = arith.addf %119, %125 : vector<96x32xf32>
    %c0_100 = arith.constant 0 : index
    %c39 = arith.constant 39 : index
    %c0_101 = arith.constant 0 : index
    %127 = vector.load %arg1[%c0_100, %c39, %c0_101] : memref<1x148x16xf32, #tpu.memory_space<vmem>>, vector<1x96x16xf32>
    %128 = vector.shape_cast %127 : vector<1x96x16xf32> to vector<96x16xf32>
    %129 = arith.truncf %128 : vector<96x16xf32> to vector<96x16xbf16>
    %c18 = arith.constant 18 : index
    %c0_102 = arith.constant 0 : index
    %c0_103 = arith.constant 0 : index
    %130 = vector.load %arg2[%c18, %c0_102, %c0_103] : memref<25x16x32xbf16, #tpu.memory_space<vmem>>, vector<1x16x32xbf16>
    %131 = vector.shape_cast %130 : vector<1x16x32xbf16> to vector<16x32xbf16>
    %cst_104 = arith.constant dense<0.000000e+00> : vector<96x32xf32>
    %132 = tpu.matmul %129, %131, %cst_104 {dimension_numbers = #tpu.dot_dimension_numbers<[1], [0], [0], [1], [0, 0, 1, 1], [], []>} : vector<96x16xbf16>, vector<16x32xbf16>, vector<96x32xf32> -> vector<96x32xf32>
    %133 = arith.addf %126, %132 : vector<96x32xf32>
    %c0_105 = arith.constant 0 : index
    %c40 = arith.constant 40 : index
    %c0_106 = arith.constant 0 : index
    %134 = vector.load %arg1[%c0_105, %c40, %c0_106] : memref<1x148x16xf32, #tpu.memory_space<vmem>>, vector<1x96x16xf32>
    %135 = vector.shape_cast %134 : vector<1x96x16xf32> to vector<96x16xf32>
    %136 = arith.truncf %135 : vector<96x16xf32> to vector<96x16xbf16>
    %c19 = arith.constant 19 : index
    %c0_107 = arith.constant 0 : index
    %c0_108 = arith.constant 0 : index
    %137 = vector.load %arg2[%c19, %c0_107, %c0_108] : memref<25x16x32xbf16, #tpu.memory_space<vmem>>, vector<1x16x32xbf16>
    %138 = vector.shape_cast %137 : vector<1x16x32xbf16> to vector<16x32xbf16>
    %cst_109 = arith.constant dense<0.000000e+00> : vector<96x32xf32>
    %139 = tpu.matmul %136, %138, %cst_109 {dimension_numbers = #tpu.dot_dimension_numbers<[1], [0], [0], [1], [0, 0, 1, 1], [], []>} : vector<96x16xbf16>, vector<16x32xbf16>, vector<96x32xf32> -> vector<96x32xf32>
    %140 = arith.addf %133, %139 : vector<96x32xf32>
    %c0_110 = arith.constant 0 : index
    %c48 = arith.constant 48 : index
    %c0_111 = arith.constant 0 : index
    %141 = vector.load %arg1[%c0_110, %c48, %c0_111] : memref<1x148x16xf32, #tpu.memory_space<vmem>>, vector<1x96x16xf32>
    %142 = vector.shape_cast %141 : vector<1x96x16xf32> to vector<96x16xf32>
    %143 = arith.truncf %142 : vector<96x16xf32> to vector<96x16xbf16>
    %c20 = arith.constant 20 : index
    %c0_112 = arith.constant 0 : index
    %c0_113 = arith.constant 0 : index
    %144 = vector.load %arg2[%c20, %c0_112, %c0_113] : memref<25x16x32xbf16, #tpu.memory_space<vmem>>, vector<1x16x32xbf16>
    %145 = vector.shape_cast %144 : vector<1x16x32xbf16> to vector<16x32xbf16>
    %cst_114 = arith.constant dense<0.000000e+00> : vector<96x32xf32>
    %146 = tpu.matmul %143, %145, %cst_114 {dimension_numbers = #tpu.dot_dimension_numbers<[1], [0], [0], [1], [0, 0, 1, 1], [], []>} : vector<96x16xbf16>, vector<16x32xbf16>, vector<96x32xf32> -> vector<96x32xf32>
    %147 = arith.addf %140, %146 : vector<96x32xf32>
    %c0_115 = arith.constant 0 : index
    %c49 = arith.constant 49 : index
    %c0_116 = arith.constant 0 : index
    %148 = vector.load %arg1[%c0_115, %c49, %c0_116] : memref<1x148x16xf32, #tpu.memory_space<vmem>>, vector<1x96x16xf32>
    %149 = vector.shape_cast %148 : vector<1x96x16xf32> to vector<96x16xf32>
    %150 = arith.truncf %149 : vector<96x16xf32> to vector<96x16xbf16>
    %c21 = arith.constant 21 : index
    %c0_117 = arith.constant 0 : index
    %c0_118 = arith.constant 0 : index
    %151 = vector.load %arg2[%c21, %c0_117, %c0_118] : memref<25x16x32xbf16, #tpu.memory_space<vmem>>, vector<1x16x32xbf16>
    %152 = vector.shape_cast %151 : vector<1x16x32xbf16> to vector<16x32xbf16>
    %cst_119 = arith.constant dense<0.000000e+00> : vector<96x32xf32>
    %153 = tpu.matmul %150, %152, %cst_119 {dimension_numbers = #tpu.dot_dimension_numbers<[1], [0], [0], [1], [0, 0, 1, 1], [], []>} : vector<96x16xbf16>, vector<16x32xbf16>, vector<96x32xf32> -> vector<96x32xf32>
    %154 = arith.addf %147, %153 : vector<96x32xf32>
    %c0_120 = arith.constant 0 : index
    %c50 = arith.constant 50 : index
    %c0_121 = arith.constant 0 : index
    %155 = vector.load %arg1[%c0_120, %c50, %c0_121] : memref<1x148x16xf32, #tpu.memory_space<vmem>>, vector<1x96x16xf32>
    %156 = vector.shape_cast %155 : vector<1x96x16xf32> to vector<96x16xf32>
    %157 = arith.truncf %156 : vector<96x16xf32> to vector<96x16xbf16>
    %c22 = arith.constant 22 : index
    %c0_122 = arith.constant 0 : index
    %c0_123 = arith.constant 0 : index
    %158 = vector.load %arg2[%c22, %c0_122, %c0_123] : memref<25x16x32xbf16, #tpu.memory_space<vmem>>, vector<1x16x32xbf16>
    %159 = vector.shape_cast %158 : vector<1x16x32xbf16> to vector<16x32xbf16>
    %cst_124 = arith.constant dense<0.000000e+00> : vector<96x32xf32>
    %160 = tpu.matmul %157, %159, %cst_124 {dimension_numbers = #tpu.dot_dimension_numbers<[1], [0], [0], [1], [0, 0, 1, 1], [], []>} : vector<96x16xbf16>, vector<16x32xbf16>, vector<96x32xf32> -> vector<96x32xf32>
    %161 = arith.addf %154, %160 : vector<96x32xf32>
    %c0_125 = arith.constant 0 : index
    %c51 = arith.constant 51 : index
    %c0_126 = arith.constant 0 : index
    %162 = vector.load %arg1[%c0_125, %c51, %c0_126] : memref<1x148x16xf32, #tpu.memory_space<vmem>>, vector<1x96x16xf32>
    %163 = vector.shape_cast %162 : vector<1x96x16xf32> to vector<96x16xf32>
    %164 = arith.truncf %163 : vector<96x16xf32> to vector<96x16xbf16>
    %c23 = arith.constant 23 : index
    %c0_127 = arith.constant 0 : index
    %c0_128 = arith.constant 0 : index
    %165 = vector.load %arg2[%c23, %c0_127, %c0_128] : memref<25x16x32xbf16, #tpu.memory_space<vmem>>, vector<1x16x32xbf16>
    %166 = vector.shape_cast %165 : vector<1x16x32xbf16> to vector<16x32xbf16>
    %cst_129 = arith.constant dense<0.000000e+00> : vector<96x32xf32>
    %167 = tpu.matmul %164, %166, %cst_129 {dimension_numbers = #tpu.dot_dimension_numbers<[1], [0], [0], [1], [0, 0, 1, 1], [], []>} : vector<96x16xbf16>, vector<16x32xbf16>, vector<96x32xf32> -> vector<96x32xf32>
    %168 = arith.addf %161, %167 : vector<96x32xf32>
    %c0_130 = arith.constant 0 : index
    %c52 = arith.constant 52 : index
    %c0_131 = arith.constant 0 : index
    %169 = vector.load %arg1[%c0_130, %c52, %c0_131] : memref<1x148x16xf32, #tpu.memory_space<vmem>>, vector<1x96x16xf32>
    %170 = vector.shape_cast %169 : vector<1x96x16xf32> to vector<96x16xf32>
    %171 = arith.truncf %170 : vector<96x16xf32> to vector<96x16xbf16>
    %c24_132 = arith.constant 24 : index
    %c0_133 = arith.constant 0 : index
    %c0_134 = arith.constant 0 : index
    %172 = vector.load %arg2[%c24_132, %c0_133, %c0_134] : memref<25x16x32xbf16, #tpu.memory_space<vmem>>, vector<1x16x32xbf16>
    %173 = vector.shape_cast %172 : vector<1x16x32xbf16> to vector<16x32xbf16>
    %cst_135 = arith.constant dense<0.000000e+00> : vector<96x32xf32>
    %174 = tpu.matmul %171, %173, %cst_135 {dimension_numbers = #tpu.dot_dimension_numbers<[1], [0], [0], [1], [0, 0, 1, 1], [], []>} : vector<96x16xbf16>, vector<16x32xbf16>, vector<96x32xf32> -> vector<96x32xf32>
    %175 = arith.addf %168, %174 : vector<96x32xf32>
    %c0_136 = arith.constant 0 : index
    %c0_137 = arith.constant 0 : index
    %176 = vector.load %arg3[%c0_136, %c0_137] : memref<1x32xf32, #tpu.memory_space<vmem>>, vector<1x32xf32>
    %177 = vector.broadcast %176 : vector<1x32xf32> to vector<96x32xf32>
    %178 = arith.addf %175, %177 : vector<96x32xf32>
    %cst_138 = arith.constant 0.000000e+00 : f32
    %179 = vector.broadcast %cst_138 : f32 to vector<96x32xf32>
    %180 = arith.maximumf %178, %179 : vector<96x32xf32>
    %c0_139 = arith.constant 0 : index
    %c0_140 = arith.constant 0 : index
    %181 = vector.load %arg5[%c0_139, %c0_140] : memref<96x32xf32, #tpu.memory_space<vmem>>, vector<96x32xf32>
    tpu.vector_store %arg5[%c0_139, %c0_140], %180 {strides = array<i32>} : memref<96x32xf32, #tpu.memory_space<vmem>>, vector<96x32xf32>,
    %c2_141 = arith.constant 2 : index
    %c0_142 = arith.constant 0 : index
    %182 = tpu.strided_load %arg5[%c2_141, %c0_142] {strides = array<i32: 2, 1>} : memref<96x32xf32, #tpu.memory_space<vmem>>, vector<4x32xf32>
    %c3_143 = arith.constant 3 : index
    %c0_144 = arith.constant 0 : index
    %183 = tpu.strided_load %arg5[%c3_143, %c0_144] {strides = array<i32: 2, 1>} : memref<96x32xf32, #tpu.memory_space<vmem>>, vector<4x32xf32>
    %184 = arith.maximumf %182, %183 : vector<4x32xf32>
    %c14_145 = arith.constant 14 : index
    %c0_146 = arith.constant 0 : index
    %185 = tpu.strided_load %arg5[%c14_145, %c0_146] {strides = array<i32: 2, 1>} : memref<96x32xf32, #tpu.memory_space<vmem>>, vector<4x32xf32>
    %c15_147 = arith.constant 15 : index
    %c0_148 = arith.constant 0 : index
    %186 = tpu.strided_load %arg5[%c15_147, %c0_148] {strides = array<i32: 2, 1>} : memref<96x32xf32, #tpu.memory_space<vmem>>, vector<4x32xf32>
    %187 = arith.maximumf %185, %186 : vector<4x32xf32>
    %188 = arith.maximumf %184, %187 : vector<4x32xf32>
    %c0_149 = arith.constant 0 : index
    %c0_150 = arith.constant 0 : index
    %c0_151 = arith.constant 0 : index
    %c0_152 = arith.constant 0 : index
    %189 = vector.load %arg4[%c0_149, %c0_150, %c0_151, %c0_152] : memref<1x4x4x32xf32, #tpu.memory_space<vmem>>, vector<1x1x4x32xf32>
    %190 = vector.shape_cast %189 : vector<1x1x4x32xf32> to vector<4x32xf32>
    %191 = vector.shape_cast %188 : vector<4x32xf32> to vector<1x1x4x32xf32>
    tpu.vector_store %arg4[%c0_149, %c0_150, %c0_151, %c0_152], %191 {strides = array<i32>} : memref<1x4x4x32xf32, #tpu.memory_space<vmem>>, vector<1x1x4x32xf32>,
    %c26_153 = arith.constant 26 : index
    %c0_154 = arith.constant 0 : index
    %192 = tpu.strided_load %arg5[%c26_153, %c0_154] {strides = array<i32: 2, 1>} : memref<96x32xf32, #tpu.memory_space<vmem>>, vector<4x32xf32>
    %c27_155 = arith.constant 27 : index
    %c0_156 = arith.constant 0 : index
    %193 = tpu.strided_load %arg5[%c27_155, %c0_156] {strides = array<i32: 2, 1>} : memref<96x32xf32, #tpu.memory_space<vmem>>, vector<4x32xf32>
    %194 = arith.maximumf %192, %193 : vector<4x32xf32>
    %c38_157 = arith.constant 38 : index
    %c0_158 = arith.constant 0 : index
    %195 = tpu.strided_load %arg5[%c38_157, %c0_158] {strides = array<i32: 2, 1>} : memref<96x32xf32, #tpu.memory_space<vmem>>, vector<4x32xf32>
    %c39_159 = arith.constant 39 : index
    %c0_160 = arith.constant 0 : index
    %196 = tpu.strided_load %arg5[%c39_159, %c0_160] {strides = array<i32: 2, 1>} : memref<96x32xf32, #tpu.memory_space<vmem>>, vector<4x32xf32>
    %197 = arith.maximumf %195, %196 : vector<4x32xf32>
    %198 = arith.maximumf %194, %197 : vector<4x32xf32>
    %c0_161 = arith.constant 0 : index
    %c1_162 = arith.constant 1 : index
    %c0_163 = arith.constant 0 : index
    %c0_164 = arith.constant 0 : index
    %199 = vector.load %arg4[%c0_161, %c1_162, %c0_163, %c0_164] : memref<1x4x4x32xf32, #tpu.memory_space<vmem>>, vector<1x1x4x32xf32>
    %200 = vector.shape_cast %199 : vector<1x1x4x32xf32> to vector<4x32xf32>
    %201 = vector.shape_cast %198 : vector<4x32xf32> to vector<1x1x4x32xf32>
    tpu.vector_store %arg4[%c0_161, %c1_162, %c0_163, %c0_164], %201 {strides = array<i32>} : memref<1x4x4x32xf32, #tpu.memory_space<vmem>>, vector<1x1x4x32xf32>,
    %c50_165 = arith.constant 50 : index
    %c0_166 = arith.constant 0 : index
    %202 = tpu.strided_load %arg5[%c50_165, %c0_166] {strides = array<i32: 2, 1>} : memref<96x32xf32, #tpu.memory_space<vmem>>, vector<4x32xf32>
    %c51_167 = arith.constant 51 : index
    %c0_168 = arith.constant 0 : index
    %203 = tpu.strided_load %arg5[%c51_167, %c0_168] {strides = array<i32: 2, 1>} : memref<96x32xf32, #tpu.memory_space<vmem>>, vector<4x32xf32>
    %204 = arith.maximumf %202, %203 : vector<4x32xf32>
    %c62 = arith.constant 62 : index
    %c0_169 = arith.constant 0 : index
    %205 = tpu.strided_load %arg5[%c62, %c0_169] {strides = array<i32: 2, 1>} : memref<96x32xf32, #tpu.memory_space<vmem>>, vector<4x32xf32>
    %c63 = arith.constant 63 : index
    %c0_170 = arith.constant 0 : index
    %206 = tpu.strided_load %arg5[%c63, %c0_170] {strides = array<i32: 2, 1>} : memref<96x32xf32, #tpu.memory_space<vmem>>, vector<4x32xf32>
    %207 = arith.maximumf %205, %206 : vector<4x32xf32>
    %208 = arith.maximumf %204, %207 : vector<4x32xf32>
    %c0_171 = arith.constant 0 : index
    %c2_172 = arith.constant 2 : index
    %c0_173 = arith.constant 0 : index
    %c0_174 = arith.constant 0 : index
    %209 = vector.load %arg4[%c0_171, %c2_172, %c0_173, %c0_174] : memref<1x4x4x32xf32, #tpu.memory_space<vmem>>, vector<1x1x4x32xf32>
    %210 = vector.shape_cast %209 : vector<1x1x4x32xf32> to vector<4x32xf32>
    %211 = vector.shape_cast %208 : vector<4x32xf32> to vector<1x1x4x32xf32>
    tpu.vector_store %arg4[%c0_171, %c2_172, %c0_173, %c0_174], %211 {strides = array<i32>} : memref<1x4x4x32xf32, #tpu.memory_space<vmem>>, vector<1x1x4x32xf32>,
    %c74 = arith.constant 74 : index
    %c0_175 = arith.constant 0 : index
    %212 = tpu.strided_load %arg5[%c74, %c0_175] {strides = array<i32: 2, 1>} : memref<96x32xf32, #tpu.memory_space<vmem>>, vector<4x32xf32>
    %c75 = arith.constant 75 : index
    %c0_176 = arith.constant 0 : index
    %213 = tpu.strided_load %arg5[%c75, %c0_176] {strides = array<i32: 2, 1>} : memref<96x32xf32, #tpu.memory_space<vmem>>, vector<4x32xf32>
    %214 = arith.maximumf %212, %213 : vector<4x32xf32>
    %c86 = arith.constant 86 : index
    %c0_177 = arith.constant 0 : index
    %215 = tpu.strided_load %arg5[%c86, %c0_177] {strides = array<i32: 2, 1>} : memref<96x32xf32, #tpu.memory_space<vmem>>, vector<4x32xf32>
    %c87 = arith.constant 87 : index
    %c0_178 = arith.constant 0 : index
    %216 = tpu.strided_load %arg5[%c87, %c0_178] {strides = array<i32: 2, 1>} : memref<96x32xf32, #tpu.memory_space<vmem>>, vector<4x32xf32>
    %217 = arith.maximumf %215, %216 : vector<4x32xf32>
    %218 = arith.maximumf %214, %217 : vector<4x32xf32>
    %c0_179 = arith.constant 0 : index
    %c3_180 = arith.constant 3 : index
    %c0_181 = arith.constant 0 : index
    %c0_182 = arith.constant 0 : index
    %219 = vector.load %arg4[%c0_179, %c3_180, %c0_181, %c0_182] : memref<1x4x4x32xf32, #tpu.memory_space<vmem>>, vector<1x1x4x32xf32>
    %220 = vector.shape_cast %219 : vector<1x1x4x32xf32> to vector<4x32xf32>
    %221 = vector.shape_cast %218 : vector<4x32xf32> to vector<1x1x4x32xf32>
    tpu.vector_store %arg4[%c0_179, %c3_180, %c0_181, %c0_182], %221 {strides = array<i32>} : memref<1x4x4x32xf32, #tpu.memory_space<vmem>>, vector<1x1x4x32xf32>,
    return
  }
  func.func @transform_0(%arg0: i32) -> (i32, i32, i32) {
    %c0_i32 = arith.constant 0 : i32
    %c0_i32_0 = arith.constant 0 : i32
    %c0_i32_1 = arith.constant 0 : i32
    return %arg0, %c0_i32, %c0_i32_0 : i32, i32, i32
  }
  func.func @transform_1(%arg0: i32) -> (i32, i32, i32) {
    %c0_i32 = arith.constant 0 : i32
    %c0_i32_0 = arith.constant 0 : i32
    %c0_i32_1 = arith.constant 0 : i32
    %c0_i32_2 = arith.constant 0 : i32
    return %c0_i32, %c0_i32_0, %c0_i32_1 : i32, i32, i32
  }
  func.func @transform_2(%arg0: i32) -> (i32, i32) {
    %c0_i32 = arith.constant 0 : i32
    %c0_i32_0 = arith.constant 0 : i32
    %c0_i32_1 = arith.constant 0 : i32
    return %c0_i32, %c0_i32_0 : i32, i32
  }
  func.func @transform_3(%arg0: i32) -> (i32, i32, i32, i32) {
    %c0_i32 = arith.constant 0 : i32
    %c0_i32_0 = arith.constant 0 : i32
    %c0_i32_1 = arith.constant 0 : i32
    %c0_i32_2 = arith.constant 0 : i32
    return %arg0, %c0_i32, %c0_i32_0, %c0_i32_1 : i32, i32, i32, i32
  }
}

module attributes {stable_mosaic.version = 11 : i64} {
  func.func @_dense_kernel(%arg0: i32, %arg1: memref<2x128xf32, #tpu.memory_space<vmem>>, %arg2: memref<128x128xbf16, #tpu.memory_space<vmem>>, %arg3: memref<1x128xf32, #tpu.memory_space<vmem>>, %arg4: memref<2x128xf32, #tpu.memory_space<vmem>>) attributes {dimension_semantics = [#tpu.dimension_semantics<arbitrary>], iteration_bounds = array<i64: 2>, scalar_prefetch = 0 : i64, scratch_operands = 0 : i64, tpu.core_type = #tpu.core_type<tc>, window_params = [{transform_indices = @transform_0, window_bounds = array<i64: 2, 128>}, {transform_indices = @transform_1, window_bounds = array<i64: 128, 128>}, {pipeline_mode = #tpu.pipeline_mode<synchronous>, transform_indices = @transform_2, window_bounds = array<i64: 1, 128>}, {pipeline_mode = #tpu.pipeline_mode<synchronous>, transform_indices = @transform_3, window_bounds = array<i64: 2, 128>}]} {
    %c0_i32 = arith.constant 0 : i32
    %0 = arith.cmpi eq, %arg0, %c0_i32 : i32
    %1 = arith.extui %0 : i1 to i32
    %c0_i32_0 = arith.constant 0 : i32
    %2 = arith.cmpi ne, %1, %c0_i32_0 : i32
    scf.if %2 {
      %cst_9 = arith.constant 0.000000e+00 : f32
      %13 = vector.broadcast %cst_9 : f32 to vector<2x128xf32>
      %c0_10 = arith.constant 0 : index
      %c0_11 = arith.constant 0 : index
      %14 = vector.load %arg4[%c0_10, %c0_11] : memref<2x128xf32, #tpu.memory_space<vmem>>, vector<2x128xf32>
      tpu.vector_store %arg4[%c0_10, %c0_11], %13 {strides = array<i32>} : memref<2x128xf32, #tpu.memory_space<vmem>>, vector<2x128xf32>,
    } else {
    }
    %c0 = arith.constant 0 : index
    %c0_1 = arith.constant 0 : index
    %3 = vector.load %arg4[%c0, %c0_1] : memref<2x128xf32, #tpu.memory_space<vmem>>, vector<2x128xf32>
    %c0_2 = arith.constant 0 : index
    %c0_3 = arith.constant 0 : index
    %4 = vector.load %arg1[%c0_2, %c0_3] : memref<2x128xf32, #tpu.memory_space<vmem>>, vector<2x128xf32>
    %5 = arith.truncf %4 : vector<2x128xf32> to vector<2x128xbf16>
    %c0_4 = arith.constant 0 : index
    %c0_5 = arith.constant 0 : index
    %6 = vector.load %arg2[%c0_4, %c0_5] : memref<128x128xbf16, #tpu.memory_space<vmem>>, vector<128x128xbf16>
    %cst = arith.constant dense<0.000000e+00> : vector<2x128xf32>
    %7 = tpu.matmul %5, %6, %cst {dimension_numbers = #tpu.dot_dimension_numbers<[1], [0], [0], [1], [0, 0, 1, 1], [], []>} : vector<2x128xbf16>, vector<128x128xbf16>, vector<2x128xf32> -> vector<2x128xf32>
    %8 = arith.addf %3, %7 : vector<2x128xf32>
    %c0_6 = arith.constant 0 : index
    %c0_7 = arith.constant 0 : index
    %9 = vector.load %arg4[%c0_6, %c0_7] : memref<2x128xf32, #tpu.memory_space<vmem>>, vector<2x128xf32>
    tpu.vector_store %arg4[%c0_6, %c0_7], %8 {strides = array<i32>} : memref<2x128xf32, #tpu.memory_space<vmem>>, vector<2x128xf32>,
    %c1_i32 = arith.constant 1 : i32
    %10 = arith.cmpi eq, %arg0, %c1_i32 : i32
    %11 = arith.extui %10 : i1 to i32
    %c0_i32_8 = arith.constant 0 : i32
    %12 = arith.cmpi ne, %11, %c0_i32_8 : i32
    scf.if %12 {
      %c0_9 = arith.constant 0 : index
      %c0_10 = arith.constant 0 : index
      %13 = vector.load %arg4[%c0_9, %c0_10] : memref<2x128xf32, #tpu.memory_space<vmem>>, vector<2x128xf32>
      %c0_11 = arith.constant 0 : index
      %c0_12 = arith.constant 0 : index
      %14 = vector.load %arg3[%c0_11, %c0_12] : memref<1x128xf32, #tpu.memory_space<vmem>>, vector<1x128xf32>
      %15 = vector.broadcast %14 : vector<1x128xf32> to vector<2x128xf32>
      %16 = arith.addf %13, %15 : vector<2x128xf32>
      %c0_13 = arith.constant 0 : index
      %c0_14 = arith.constant 0 : index
      %17 = vector.load %arg4[%c0_13, %c0_14] : memref<2x128xf32, #tpu.memory_space<vmem>>, vector<2x128xf32>
      tpu.vector_store %arg4[%c0_13, %c0_14], %16 {strides = array<i32>} : memref<2x128xf32, #tpu.memory_space<vmem>>, vector<2x128xf32>,
    } else {
    }
    return
  }
  func.func @transform_0(%arg0: i32) -> (i32, i32) {
    %c0_i32 = arith.constant 0 : i32
    %c0_i32_0 = arith.constant 0 : i32
    return %c0_i32, %arg0 : i32, i32
  }
  func.func @transform_1(%arg0: i32) -> (i32, i32) {
    %c0_i32 = arith.constant 0 : i32
    %c0_i32_0 = arith.constant 0 : i32
    return %arg0, %c0_i32 : i32, i32
  }
  func.func @transform_2(%arg0: i32) -> (i32, i32) {
    %c0_i32 = arith.constant 0 : i32
    %c0_i32_0 = arith.constant 0 : i32
    %c0_i32_1 = arith.constant 0 : i32
    return %c0_i32, %c0_i32_0 : i32, i32
  }
  func.func @transform_3(%arg0: i32) -> (i32, i32) {
    %c0_i32 = arith.constant 0 : i32
    %c0_i32_0 = arith.constant 0 : i32
    %c0_i32_1 = arith.constant 0 : i32
    return %c0_i32, %c0_i32_0 : i32, i32
  }
}

</mosaic_0001>

<bundles_post_ra>
// kernel: basic_convnet_forward.7
= control target key start
LH: loop header
LB: loop body
LE: loop exit
PB: predicated region body
PF: predicated region fallthrough
CT: control target
= control target key end

     0   :  { %s443_s12 = smov 0   ;;  %s488_s0 = inlined_call_operand.vmem [shape: f32[2,256], index: 0, kind: input, shape index: {}]   ;;  %s489_s1 = inlined_call_operand.vmem [shape: bf16[256,128], index: 1, kind: input, shape index: {}]   ;;  %s490_s2 = inlined_call_operand.vmem [shape: f32[1,128], index: 2, kind: input, shape index: {}]   ;;  %s491_s3 = inlined_call_operand.vmem [shape: f32[2,128], index: 3, kind: output, shape index: {}]  }
   0x1 LB: > { %s449_s13 = sadd.s32 4294967295, %s418_s12   ;;  %p347_p0 = scmp.ge.s32.totalorder %s418_s12, 1  ;;  %s418_s12 = sphi %s443_s12, %s13_s12  }
   0x2   : > { %p142_p1 = scmp.lt.s32.totalorder %s418_s12, 3 }
   0x4   : > { %p143_p2 = pnand %p347_p0, %p142_p1 }
   0x5   : > { %p165_p3 = scmp.lt.s32.totalorder (!%p143_p2), %s449_s13, 1  ;;  %s349_s14 = sshll.u32 (!%p143_p2), %s449_s13, 4 }
   0x6   : > { %146 = sbr.rel (%p143_p2) target bundleno = 279 (0x117), region = 32  ;;  %p170_p4 = scmp.lt.s32.totalorder (!%p143_p2), %s349_s14, 31 }
   0x7   : > { %p351_p5 = scmp.ne.s32.totalorder (!%p143_p2), %s449_s13, 0 }
   0xd   : > { %s166_s15 = scalar_select %p165_p3, %s449_s13, 1 }
   0xe   : > { %s493_s14 = smov (!%p170_p4, %s349_s14), 31  ;;  %179 = sbr.rel (%p351_p5) target bundleno = 21 (0x15), region = 36 }
   0xf   : > { %s348_s16 = sshll.u32 %s166_s15, 1  ;;  %s350_s20 = sshll.u32 %s493_s14, 2  ;;  %v420_v0 = vmov (!%p351_p5), 0.0  }
  0x10   : > { %s459_s19 = scalar_lea.vmem %s488_s0, %s348_s16  ;;  %s173_s23 = scalar_lea.vmem %s489_s1, %s350_s20  ;;  %180 = vst [vmem:[%s491_s3] sm:$0x3] (!%p351_p5), %v420_v0 }
  0x15 PF: > { %v404_v1 = vld [vmem:[%s173_s23] sm:$0xff]   ;;  %v421_v2 = vmov 0.0   ;;  %v405_v3 = vld [vmem:[%s173_s23 + $0x8] sm:$0xff]   ;;  %vm422_vm0 = vmmov 0   ;;  %v406_v4 = vld [vmem:[%s173_s23 + $0x10] sm:$0xff]   ;;  %p360_p6 = scmp.ne.s32.totalorder %s449_s13, 1 }
  0x16   : > { %373 = vmatprep.subr.bf16.mxu0 %v421_v2  ;;  %389 = vmatprep.mubr.msk.bf16.mxu0 %vm422_vm0, %v421_v2  ;;  %v407_v5 = vld [vmem:[%s173_s23 + $0x18] sm:$0xff]   ;;  %v408_v6 = vld [vmem:[%s173_s23 + $0x20] sm:$0xff]   ;;  %v409_v7 = vld [vmem:[%s173_s23 + $0x28] sm:$0xff]  }
  0x17   : > { %374 = vmatpush3.bf16.msra.mxu0 %v404_v1  ;;  %v410_v8 = vld [vmem:[%s173_s23 + $0x30] sm:$0xff]   ;;  %v411_v9 = vld [vmem:[%s173_s23 + $0x38] sm:$0xff]   ;;  %v182_v10 = vld [vmem:[%s459_s19] sm:$0x3] }
  0x18   : > { %375 = vmatprep.subr.bf16.mxu0 %v421_v2  ;;  %v183_v11 = vpack.c.bf16 %v182_v10, %v182_v10  ;;  %v181_v12 = vld [vmem:[%s491_s3] sm:$0x3] }
  0x19   : > { %v361_v19 = vld [vmem:[%s490_s2] ss:$0 sm:$0xff] (!%p360_p6) }
  0x1b   : > { %376 = vmatpush3.bf16.msra.mxu0 %v405_v3 }
  0x1c   : > { %377 = vmatprep.subr.bf16.mxu0 %v421_v2 }
  0x1f   : > { %378 = vmatpush3.bf16.msra.mxu0 %v406_v4 }
  0x20   : > { %379 = vmatprep.subr.bf16.mxu0 %v421_v2 }
  0x23   : > { %380 = vmatpush3.bf16.msra.mxu0 %v407_v5 }
  0x24   : > { %381 = vmatprep.subr.bf16.mxu0 %v421_v2 }
  0x27   : > { %382 = vmatpush3.bf16.msra.mxu0 %v408_v6 }
  0x28   : > { %383 = vmatprep.subr.bf16.mxu0 %v421_v2 }
  0x2b   : > { %384 = vmatpush3.bf16.msra.mxu0 %v409_v7 }
  0x2c   : > { %385 = vmatprep.subr.bf16.mxu0 %v421_v2 }
  0x2f   : > { %386 = vmatpush3.bf16.msra.mxu0 %v410_v8 }
  0x30   : > { %387 = vmatprep.subr.bf16.mxu0 %v421_v2 }
  0x33   : > { %388 = vmatpush3.bf16.msra.mxu0 %v411_v9 }
  0x36   : > { %390 = vmatmul.mubr.bf16.vlgmr.msra.gmra.mrb[0].mxu0 %v183_v11 }
 0x106   : > { %293 = sbr.rel (%p360_p6) target bundleno = 279 (0x117), region = 40 }
 0x109   : > { %v282_v13 = vpop.f32.mrb[0].mxu0 }
 0x10a   : > { %v288_v14 = vadd.f32 %v282_v13, %v181_v12  ;;  %v391_v15 = vpop.f32.mrb[1].mxu0 }
 0x10b   : > { %v285_v16 = vpop.f32.mrb[2].mxu0 }
 0x10c   : > { %289 = vst [vmem:[%s491_s3] sm:$0x3] %v288_v14  ;;  %v392_v17 = vpop.f32.mrb[3].mxu0 }
 0x113   : > { %v294_v18 = vld [vmem:[%s491_s3] sm:$0x3] }
 0x114   : > { %v302_v20 = vadd.f32 %v361_v19, %v294_v18 }
 0x116   : > { %303 = vst [vmem:[%s491_s3] sm:$0x3] %v302_v20 }
 0x117 PF: > { %s13_s12 = sadd.s32 1, %s418_s12  }
 0x118   : > { %p10_p7 = scmp.ge.s32.totalorder %s13_s12, 4  }
 0x11a   :  { %12 = sbr.rel (!%p10_p7) target bundleno = 1 (0x1), region = 69 }

// kernel: basic_convnet_forward.6
= control target key start
LH: loop header
LB: loop body
LE: loop exit
PB: predicated region body
PF: predicated region fallthrough
CT: control target
= control target key end

     0   :  { %s3007_s12 = smov 0   ;;  %s3425_s0 = inlined_call_operand.vmem [shape: f32[2,68,32], index: 0, kind: input, shape index: {}]   ;;  %s3426_s1 = inlined_call_operand.vmem [shape: bf16[25,32,64], index: 1, kind: input, shape index: {}]   ;;  %s3427_s2 = inlined_call_operand.vmem [shape: f32[1,64], index: 2, kind: input, shape index: {}]   ;;  %s3428_s3 = inlined_call_operand.vmem [shape: f32[2,2,2,64], index: 3, kind: output, shape index: {}]  }
   0x1 LB: > { %s2315_s13 = sadd.s32 4294967295, %s2985_s12   ;;  %p2319_p0 = scmp.ge.s32.totalorder %s2985_s12, 1  ;;  %s2985_s12 = sphi %s3007_s12, %s13_s12  }
   0x2   : > { %p137_p1 = scmp.lt.s32.totalorder %s2985_s12, 3 }
   0x4   : > { %p138_p2 = pnand %p2319_p0, %p137_p1 }
   0x5   : > { %v2929_v0 = vld [vmem:[%s3426_s1 + $0x10] sm:$0xff] (!%p138_p2)   ;;  %p161_p3 = scmp.lt.s32.totalorder (!%p138_p2), %s2315_s13, 1  ;;  %v2930_v1 = vld [vmem:[%s3426_s1 + $0xc0] sm:$0xff] (!%p138_p2)   ;;  %v2931_v2 = vld [vmem:[%s3426_s1 + $0x18] sm:$0xff] (!%p138_p2)   ;;  %vm205_vm0 = vcmask (!%p138_p2), 261120   ;;  %vm2229_vm1 = vcmask (!%p138_p2), 523264  }
   0x6   : > { %141 = sbr.rel (%p138_p2) target bundleno = 400 (0x190), region = 32  ;;  %2624 = vmatprep.subr.bf16.mxu1 (!%p138_p2), %v2929_v0  ;;  %2720 = vmatprep.subr.bf16.mxu0 (!%p138_p2), %v2930_v1  ;;  %v2932_v3 = vld [vmem:[%s3426_s1 + $0xc8] sm:$0xff] (!%p138_p2)   ;;  %v2933_v4 = vld [vmem:[%s3426_s1 + $0xd0] sm:$0xff] (!%p138_p2)   ;;  %v2934_v5 = vld [vmem:[%s3426_s1] sm:$0xff] (!%p138_p2)   ;;  %vm2245_vm2 = vcmask (!%p138_p2), 517120  }
   0x7   : > { %2625 = vmatpush3.bf16.msra.mxu1 (!%p138_p2), %v2929_v0  ;;  %2721 = vmatpush3.bf16.msra.mxu0 (!%p138_p2), %v2930_v1  ;;  %v2935_v13 = vld [vmem:[%s3426_s1 + $0xd8] sm:$0xff] (!%p138_p2)   ;;  %v2936_v19 = vld [vmem:[%s3426_s1 + $0x8] sm:$0xff] (!%p138_p2)   ;;  %v2937_v27 = vld [vmem:[%s3426_s1 + $0xe0] sm:$0xff] (!%p138_p2)  }
   0x8   : > { %2626 = vmatprep.subr.bf16.mxu1 (!%p138_p2), %v2931_v2  ;;  %2722 = vmatprep.subr.bf16.mxu0 (!%p138_p2), %v2932_v3  ;;  %v2938_v28 = vld [vmem:[%s3426_s1 + $0x20] sm:$0xff] (!%p138_p2)   ;;  %v2940_v38 = vld [vmem:[%s3426_s1 + $0x28] sm:$0xff] (!%p138_p2)   ;;  %v2942_v42 = vld [vmem:[%s3426_s1 + $0x30] sm:$0xff] (!%p138_p2)  }
   0x9   : > { %v2939_v39 = vld [vmem:[%s3426_s1 + $0xe8] sm:$0xff] (!%p138_p2)   ;;  %v2941_v43 = vld [vmem:[%s3426_s1 + $0xf0] sm:$0xff] (!%p138_p2)   ;;  %v2944_v50 = vld [vmem:[%s3426_s1 + $0x38] sm:$0xff] (!%p138_p2)  }
   0xa   : > { %v2943_v51 = vld [vmem:[%s3426_s1 + $0xf8] sm:$0xff] (!%p138_p2)   ;;  %v2946_v54 = vld [vmem:[%s3426_s1 + $0x40] sm:$0xff] (!%p138_p2)   ;;  %v2948_v62 = vld [vmem:[%s3426_s1 + $0x48] sm:$0xff] (!%p138_p2)  }
   0xb   : > { %2627 = vmatpush3.bf16.msra.mxu1 (!%p138_p2), %v2931_v2  ;;  %2723 = vmatpush3.bf16.msra.mxu0 (!%p138_p2), %v2932_v3  ;;  %v2945_v55 = vld [vmem:[%s3426_s1 + $0x100] sm:$0xff] (!%p138_p2)   ;;  %v2947_v63 = vld [vmem:[%s3426_s1 + $0x108] sm:$0xff] (!%p138_p2)   ;;  %v2950_v2 = vld [vmem:[%s3426_s1 + $0x50] sm:$0xff] (!%p138_p2)  }
   0xc   : > { %2632 = vmatprep.subr.bf16.mxu1 (!%p138_p2), %v2934_v5  ;;  %2728 = vmatprep.subr.bf16.mxu0 (!%p138_p2), %v2933_v4  ;;  %v2949_v3 = vld [vmem:[%s3426_s1 + $0x110] sm:$0xff] (!%p138_p2)  }
   0xd   : > { %s3430_s13 = smov (!%p161_p3, %s2315_s13), 1 }
   0xe   : > { %s2920_s22 = smul.u32 72, %s3430_s13 }
  0x10   : > { %s3039_s29 = scalar_lea.vmem %s3425_s0, %s2920_s22 }
  0x11   : > { %v182_v6 = vld [vmem:[%s3039_s29 + $0x1] sm:$0xff]  ;;  %v3043_v7 = vld [vmem:[%s3039_s29 + $0x9] sm:$0xff]  ;;  %v3046_v8 = vld [vmem:[%s3039_s29 + $0x12] sm:$0xff] }
  0x12   : > { %v186_v9 = vpack.c.bf16 %v3043_v7, %v182_v6  ;;  %v3050_v10 = vld [vmem:[%s3039_s29 + $0x1a] sm:$0xff]  ;;  %v3053_v11 = vld [vmem:[%s3039_s29 + $0x11] sm:$0xff]  ;;  %v3070_v16 = vld [vmem:[%s3039_s29 + $0x22] sm:$0xff] }
  0x13   : > { %v3056_v12 = vld [vmem:[%s3039_s29 + $0x19] sm:$0xff]  ;;  %v3063_v14 = vpack.c.bf16 %v3050_v10, %v3046_v8  ;;  %v3073_v17 = vld [vmem:[%s3039_s29 + $0x2a] sm:$0xff]  ;;  %v328_v32 = vld [vmem:[%s3039_s29 + $0x2] sm:$0xff] }
  0x14   : > { %v3067_v15 = vpack.c.bf16 %v3056_v12, %v3053_v11  ;;  %2628 = vmatprep.mubr.msk.bf16.mxu1 %vm205_vm0, %v186_v9  ;;  %v3078_v18 = vpack.c.bf16 %v3073_v17, %v3070_v16  ;;  %v172_v20 = vld [vmem:[%s3039_s29] sm:$0xff]  ;;  %v3089_v21 = vld [vmem:[%s3039_s29 + $0x8] sm:$0xff]  ;;  %v3092_v22 = vld [vmem:[%s3039_s29 + $0x13] sm:$0xff] }
  0x15   : > { %2724 = vmatprep.mubr.msk.bf16.mxu0 %vm205_vm0, %v3063_v14  ;;  %v3095_v23 = vld [vmem:[%s3039_s29 + $0x1b] sm:$0xff]  ;;  %v176_v24 = vpack.c.bf16 %v3089_v21, %v172_v20  ;;  %v3106_v26 = vld [vmem:[%s3039_s29 + $0x10] sm:$0xff]  ;;  %v3118_v30 = vld [vmem:[%s3039_s29 + $0x23] sm:$0xff] }
  0x16   : > { %2629 = vmatmul.mubr.msk.bf16.vlgmr.msra.gmra.mrb[0].mxu1 %vm205_vm0, %v3067_v15  ;;  %2725 = vmatmul.mubr.msk.bf16.vlgmr.msra.gmra.mrb[0].mxu0 %vm205_vm0, %v3078_v18  ;;  %v3102_v25 = vpack.c.bf16 %v3095_v23, %v3092_v22  ;;  %v175_v29 = vld [vmem:[%s3039_s29 + $0x18] sm:$0xff]  ;;  %v3121_v31 = vld [vmem:[%s3039_s29 + $0x2b] sm:$0xff]  ;;  %v410_v46 = vld [vmem:[%s3039_s29 + $0x3] sm:$0xff] }
  0x17   : > { %2633 = vmatpush3.bf16.msra.mxu1 %v2934_v5  ;;  %2729 = vmatpush3.bf16.msra.mxu0 %v2933_v4  ;;  %v3125_v33 = vld [vmem:[%s3039_s29 + $0xa] sm:$0xff]  ;;  %v3128_v34 = vpack.c.bf16 %v175_v29, %v3106_v26  ;;  %v3131_v35 = vld [vmem:[%s3039_s29 + $0x14] sm:$0xff]  ;;  %v3135_v36 = vpack.c.bf16 %v3121_v31, %v3118_v30  ;;  %v3138_v37 = vld [vmem:[%s3039_s29 + $0x1c] sm:$0xff] }
  0x18   : > { %2634 = vmatprep.subr.bf16.mxu1 %v2936_v19  ;;  %2730 = vmatprep.subr.bf16.mxu0 %v2935_v13  ;;  %v332_v40 = vpack.c.bf16 %v3125_v33, %v328_v32  ;;  %v3151_v41 = vpack.c.bf16 %v3138_v37, %v3131_v35  ;;  %v3165_v44 = vld [vmem:[%s3039_s29 + $0x24] sm:$0xff]  ;;  %v3168_v45 = vld [vmem:[%s3039_s29 + $0x2c] sm:$0xff]  ;;  %v2952_v9 = vld [vmem:[%s3426_s1 + $0x58] sm:$0xff]  }
  0x19   : > { %2636 = vmatprep.mubr.msk.bf16.mxu1 %vm205_vm0, %v176_v24  ;;  %2732 = vmatprep.mubr.msk.bf16.mxu0 %vm205_vm0, %v3102_v25  ;;  %v3172_v47 = vld [vmem:[%s3039_s29 + $0xb] sm:$0xff]  ;;  %v3176_v48 = vpack.c.bf16 %v3168_v45, %v3165_v44  ;;  %v3179_v49 = vld [vmem:[%s3039_s29 + $0x20] sm:$0xff]  ;;  %v3320_v32 = vld [vmem:[%s3039_s29 + $0x34] sm:$0xff] }
  0x1a   : > { %v414_v52 = vpack.c.bf16 %v3172_v47, %v410_v46  ;;  %v3191_v53 = vpack.c.bf16 %v3179_v49, %v175_v29  ;;  %v3205_v56 = vld [vmem:[%s3039_s29 + $0x28] sm:$0xff]  ;;  %v3208_v57 = vld [vmem:[%s3039_s29 + $0x30] sm:$0xff]  ;;  %v2953_v20 = vld [vmem:[%s3426_s1 + $0x120] sm:$0xff]   ;;  %v742_v29 = vpack.c.bf16 %v3046_v8, %v3125_v33  ;;  %v1727_v33 = vpack.c.bf16 %v3320_v32, %v3168_v45 }
  0x1b   : > { %2635 = vmatpush3.bf16.msra.mxu1 %v2936_v19  ;;  %2731 = vmatpush3.bf16.msra.mxu0 %v2935_v13  ;;  %v492_v58 = vld [vmem:[%s3039_s29 + $0x4] sm:$0xff]  ;;  %v3212_v59 = vld [vmem:[%s3039_s29 + $0xc] sm:$0xff]  ;;  %v1399_v60 = vpack.c.bf16 %v3208_v57, %v3205_v56  ;;  %v578_v13 = vpack.c.bf16 %v3106_v26, %v3089_v21  ;;  %v1644_v26 = vpack.c.bf16 %v3118_v30, %v3095_v23  ;;  %v2967_v45 = vld [vmem:[%s3426_s1 + $0x158] sm:$0xff]  }
  0x1c   : > { %2640 = vmatprep.subr.bf16.mxu1 %v2938_v28  ;;  %2736 = vmatprep.subr.bf16.mxu0 %v2937_v27  ;;  %v3217_v61 = vld [vmem:[%s3039_s29 + $0x21] sm:$0xff]  ;;  %v496_v0 = vpack.c.bf16 %v3212_v59, %v492_v58  ;;  %v3240_v4 = vld [vmem:[%s3039_s29 + $0x29] sm:$0xff]  ;;  %v3243_v5 = vld [vmem:[%s3039_s29 + $0x31] sm:$0xff]  ;;  %v1726_v30 = vpack.c.bf16 %v3165_v44, %v3138_v37  ;;  %v906_v46 = vpack.c.bf16 %v3131_v35, %v3212_v59 }
  0x1d   : > { %v1480_v1 = vpack.c.bf16 %v3217_v61, %v3056_v12  ;;  %v1481_v6 = vpack.c.bf16 %v3243_v5, %v3240_v4  ;;  %v2951_v12 = vld [vmem:[%s3426_s1 + $0x118] sm:$0xff]   ;;  %v2954_v19 = vld [vmem:[%s3426_s1 + $0x60] sm:$0xff]   ;;  %v2956_v21 = vld [vmem:[%s3426_s1 + $0x68] sm:$0xff]  }
  0x1e   : > { %v2955_v24 = vld [vmem:[%s3426_s1 + $0x128] sm:$0xff]   ;;  %v2961_v8 = vld [vmem:[%s3426_s1 + $0x140] sm:$0xff]   ;;  %v2968_v44 = vld [vmem:[%s3426_s1 + $0x98] sm:$0xff]  }
  0x1f   : > { %v2964_v37 = vld [vmem:[%s3426_s1 + $0x88] sm:$0xff]   ;;  %v2969_v35 = vld [vmem:[%s3426_s1 + $0x160] sm:$0xff]   ;;  %v2976_v58 = vld [vmem:[%s3426_s1 + $0xb8] sm:$0xff]  }
  0x20   : > { %v2053_v59 = vld [vmem:[%s3039_s29 + $0x3b] sm:$0xff] }
  0x22   : > { %2637 = vmatmul.mubr.msk.bf16.vlgmr.msra.gmra.mrb[0].mxu1 %vm205_vm0, %v3128_v34  ;;  %2733 = vmatmul.mubr.msk.bf16.vlgmr.msra.gmra.mrb[0].mxu0 %vm205_vm0, %v3135_v36 }
  0x23   : > { %2641 = vmatpush3.bf16.msra.mxu1 %v2938_v28  ;;  %2737 = vmatpush3.bf16.msra.mxu0 %v2937_v27  ;;  %v2960_v27 = vld [vmem:[%s3426_s1 + $0x78] sm:$0xff]  }
  0x24   : > { %2642 = vmatprep.subr.bf16.mxu1 %v2940_v38  ;;  %2738 = vmatprep.subr.bf16.mxu0 %v2939_v39  ;;  %v2959_v28 = vld [vmem:[%s3426_s1 + $0x138] sm:$0xff]  }
  0x25   : > { %2644 = vmatprep.mubr.msk.bf16.mxu1 %vm205_vm0, %v332_v40  ;;  %2740 = vmatprep.mubr.msk.bf16.mxu0 %vm205_vm0, %v3151_v41  ;;  %v1808_v40 = vpack.c.bf16 %v3205_v56, %v3179_v49  ;;  %v2970_v49 = vld [vmem:[%s3426_s1 + $0xa0] sm:$0xff]  }
  0x26   : > { %v1971_v56 = vld [vmem:[%s3039_s29 + $0x3a] sm:$0xff] }
  0x27   : > { %2643 = vmatpush3.bf16.msra.mxu1 %v2940_v38  ;;  %2739 = vmatpush3.bf16.msra.mxu0 %v2939_v39  ;;  %v2963_v38 = vld [vmem:[%s3426_s1 + $0x148] sm:$0xff]   ;;  %v824_v39 = vpack.c.bf16 %v3092_v22, %v3172_v47  ;;  %v2965_v22 = vld [vmem:[%s3426_s1 + $0x150] sm:$0xff]   ;;  %v1890_v47 = vpack.c.bf16 %v3240_v4, %v3217_v61 }
  0x28   : > { %2648 = vmatprep.subr.bf16.mxu1 %v2942_v42  ;;  %2744 = vmatprep.subr.bf16.mxu0 %v2941_v43  ;;  %v2978_v61 = vld [vmem:[%s3426_s1 + $0x188] sm:$0xff]  }
  0x2e   : > { %2645 = vmatmul.mubr.msk.bf16.vlgmr.msra.gmra.mrb[0].mxu1 %vm205_vm0, %v3063_v14  ;;  %2741 = vmatmul.mubr.msk.bf16.vlgmr.msra.gmra.mrb[0].mxu0 %vm205_vm0, %v3176_v48  ;;  %v1562_v14 = vpack.c.bf16 %v3070_v16, %v3050_v10  ;;  %v3269_v10 = vld [vmem:[%s3039_s29 + $0x32] sm:$0xff] }
  0x2f   : > { %2649 = vmatpush3.bf16.msra.mxu1 %v2942_v42  ;;  %2745 = vmatpush3.bf16.msra.mxu0 %v2941_v43  ;;  %v1563_v16 = vpack.c.bf16 %v3269_v10, %v3073_v17  ;;  %v2958_v17 = vld [vmem:[%s3426_s1 + $0x70] sm:$0xff]   ;;  %v1807_v42 = vld [vmem:[%s3039_s29 + $0x38] sm:$0xff] }
  0x30   : > { %2650 = vmatprep.subr.bf16.mxu1 %v2944_v50  ;;  %2746 = vmatprep.subr.bf16.mxu0 %v2943_v51  ;;  %v1809_v43 = vpack.c.bf16 %v1807_v42, %v3208_v57  ;;  %v1973_v57 = vpack.c.bf16 %v1971_v56, %v3269_v10 }
  0x31   : > { %2652 = vmatprep.mubr.msk.bf16.mxu1 %vm205_vm0, %v414_v52  ;;  %2748 = vmatprep.mubr.msk.bf16.mxu0 %vm205_vm0, %v3191_v53  ;;  %v2972_v52 = vld [vmem:[%s3426_s1 + $0xa8] sm:$0xff]  }
  0x33   : > { %2651 = vmatpush3.bf16.msra.mxu1 %v2944_v50  ;;  %2747 = vmatpush3.bf16.msra.mxu0 %v2943_v51  ;;  %v1889_v50 = vld [vmem:[%s3039_s29 + $0x39] sm:$0xff] }
  0x34   : > { %2656 = vmatprep.subr.bf16.mxu1 %v2946_v54  ;;  %2752 = vmatprep.subr.bf16.mxu0 %v2945_v55  ;;  %v1891_v51 = vpack.c.bf16 %v1889_v50, %v3243_v5 }
  0x3a   : > { %2653 = vmatmul.mubr.msk.bf16.vlgmr.msra.gmra.mrb[0].mxu1 %vm205_vm0, %v3102_v25  ;;  %2749 = vmatmul.mubr.msk.bf16.vlgmr.msra.gmra.mrb[0].mxu0 %vm205_vm0, %v1399_v60  ;;  %v660_v25 = vpack.c.bf16 %v3053_v11, %v3043_v7  ;;  %v2957_v7 = vld [vmem:[%s3426_s1 + $0x130] sm:$0xff]  }
  0x3b   : > { %2657 = vmatpush3.bf16.msra.mxu1 %v2946_v54  ;;  %2753 = vmatpush3.bf16.msra.mxu0 %v2945_v55  ;;  %v3295_v11 = vld [vmem:[%s3039_s29 + $0x33] sm:$0xff] }
  0x3c   : > { %2658 = vmatprep.subr.bf16.mxu1 %v2948_v62  ;;  %2754 = vmatprep.subr.bf16.mxu0 %v2947_v63  ;;  %v1645_v23 = vpack.c.bf16 %v3295_v11, %v3121_v31  ;;  %v2962_v31 = vld [vmem:[%s3426_s1 + $0x80] sm:$0xff]   ;;  %v2974_v54 = vld [vmem:[%s3426_s1 + $0xb0] sm:$0xff]   ;;  %v2055_v60 = vpack.c.bf16 %v2053_v59, %v3295_v11 }
  0x3d   : > { %2660 = vmatprep.mubr.msk.bf16.mxu1 %vm205_vm0, %v496_v0  ;;  %2756 = vmatprep.mubr.msk.bf16.mxu0 %vm205_vm0, %v1480_v1  ;;  %v2973_v55 = vld [vmem:[%s3426_s1 + $0x170] sm:$0xff]  }
  0x3f   : > { %2659 = vmatpush3.bf16.msra.mxu1 %v2948_v62  ;;  %2755 = vmatpush3.bf16.msra.mxu0 %v2947_v63 }
  0x40   : > { %2664 = vmatprep.subr.bf16.mxu1 %v2950_v2  ;;  %2760 = vmatprep.subr.bf16.mxu0 %v2949_v3 }
  0x46   : > { %2661 = vmatmul.mubr.msk.bf16.vlgmr.msra.gmra.mrb[0].mxu1 %vm205_vm0, %v3151_v41  ;;  %2757 = vmatmul.mubr.msk.bf16.vlgmr.msra.gmra.mrb[0].mxu0 %vm205_vm0, %v1481_v6  ;;  %v2966_v41 = vld [vmem:[%s3426_s1 + $0x90] sm:$0xff]  }
  0x47   : > { %2665 = vmatpush3.bf16.msra.mxu1 %v2950_v2  ;;  %2761 = vmatpush3.bf16.msra.mxu0 %v2949_v3  ;;  %v2519_v3 = vld [vmem:[%s3427_s2] ss:$0 sm:$0xff] }
  0x48   : > { %2666 = vmatprep.subr.bf16.mxu1 %v2952_v9  ;;  %2762 = vmatprep.subr.bf16.mxu0 %v2951_v12 }
  0x49   : > { %2668 = vmatprep.mubr.msk.bf16.mxu1 %vm205_vm0, %v578_v13  ;;  %2764 = vmatprep.mubr.msk.bf16.mxu0 %vm205_vm0, %v1562_v14 }
  0x4b   : > { %2667 = vmatpush3.bf16.msra.mxu1 %v2952_v9  ;;  %2763 = vmatpush3.bf16.msra.mxu0 %v2951_v12 }
  0x4c   : > { %2672 = vmatprep.subr.bf16.mxu1 %v2954_v19  ;;  %2768 = vmatprep.subr.bf16.mxu0 %v2953_v20 }
  0x52   : > { %2669 = vmatmul.mubr.msk.bf16.vlgmr.msra.gmra.mrb[0].mxu1 %vm205_vm0, %v3191_v53  ;;  %2765 = vmatmul.mubr.msk.bf16.vlgmr.msra.gmra.mrb[0].mxu0 %vm205_vm0, %v1563_v16  ;;  %v2971_v53 = vld [vmem:[%s3426_s1 + $0x168] sm:$0xff]  }
  0x53   : > { %2673 = vmatpush3.bf16.msra.mxu1 %v2954_v19  ;;  %2769 = vmatpush3.bf16.msra.mxu0 %v2953_v20 }
  0x54   : > { %2674 = vmatprep.subr.bf16.mxu1 %v2956_v21  ;;  %2770 = vmatprep.subr.bf16.mxu0 %v2955_v24 }
  0x55   : > { %2676 = vmatprep.mubr.msk.bf16.mxu1 %vm205_vm0, %v660_v25  ;;  %2772 = vmatprep.mubr.msk.bf16.mxu0 %vm205_vm0, %v1644_v26 }
  0x57   : > { %2675 = vmatpush3.bf16.msra.mxu1 %v2956_v21  ;;  %2771 = vmatpush3.bf16.msra.mxu0 %v2955_v24 }
  0x58   : > { %2680 = vmatprep.subr.bf16.mxu1 %v2958_v17  ;;  %2776 = vmatprep.subr.bf16.mxu0 %v2957_v7 }
  0x5e   : > { %2677 = vmatmul.mubr.msk.bf16.vlgmr.msra.gmra.mrb[0].mxu1 %vm205_vm0, %v1480_v1  ;;  %2773 = vmatmul.mubr.msk.bf16.vlgmr.msra.gmra.mrb[0].mxu0 %vm205_vm0, %v1645_v23 }
  0x5f   : > { %2681 = vmatpush3.bf16.msra.mxu1 %v2958_v17  ;;  %2777 = vmatpush3.bf16.msra.mxu0 %v2957_v7 }
  0x60   : > { %2682 = vmatprep.subr.bf16.mxu1 %v2960_v27  ;;  %2778 = vmatprep.subr.bf16.mxu0 %v2959_v28 }
  0x61   : > { %2684 = vmatprep.mubr.msk.bf16.mxu1 %vm205_vm0, %v742_v29  ;;  %2780 = vmatprep.mubr.msk.bf16.mxu0 %vm205_vm0, %v1726_v30 }
  0x63   : > { %2683 = vmatpush3.bf16.msra.mxu1 %v2960_v27  ;;  %2779 = vmatpush3.bf16.msra.mxu0 %v2959_v28 }
  0x64   : > { %2688 = vmatprep.subr.bf16.mxu1 %v2962_v31  ;;  %2784 = vmatprep.subr.bf16.mxu0 %v2961_v8 }
  0x6a   : > { %2685 = vmatmul.mubr.msk.bf16.vlgmr.msra.gmra.mrb[0].mxu1 %vm205_vm0, %v1562_v14  ;;  %2781 = vmatmul.mubr.msk.bf16.vlgmr.msra.gmra.mrb[0].mxu0 %vm205_vm0, %v1727_v33 }
  0x6b   : > { %2689 = vmatpush3.bf16.msra.mxu1 %v2962_v31  ;;  %2785 = vmatpush3.bf16.msra.mxu0 %v2961_v8 }
  0x6c   : > { %2690 = vmatprep.subr.bf16.mxu1 %v2964_v37  ;;  %2786 = vmatprep.subr.bf16.mxu0 %v2963_v38 }
  0x6d   : > { %2692 = vmatprep.mubr.msk.bf16.mxu1 %vm205_vm0, %v824_v39  ;;  %2788 = vmatprep.mubr.msk.bf16.mxu0 %vm205_vm0, %v1808_v40 }
  0x6f   : > { %2691 = vmatpush3.bf16.msra.mxu1 %v2964_v37  ;;  %2787 = vmatpush3.bf16.msra.mxu0 %v2963_v38 }
  0x70   : > { %2696 = vmatprep.subr.bf16.mxu1 %v2966_v41  ;;  %2792 = vmatprep.subr.bf16.mxu0 %v2965_v22 }
  0x76   : > { %2693 = vmatmul.mubr.msk.bf16.vlgmr.msra.gmra.mrb[0].mxu1 %vm205_vm0, %v1644_v26  ;;  %2789 = vmatmul.mubr.msk.bf16.vlgmr.msra.gmra.mrb[0].mxu0 %vm205_vm0, %v1809_v43 }
  0x77   : > { %2697 = vmatpush3.bf16.msra.mxu1 %v2966_v41  ;;  %2793 = vmatpush3.bf16.msra.mxu0 %v2965_v22 }
  0x78   : > { %2698 = vmatprep.subr.bf16.mxu1 %v2968_v44  ;;  %2794 = vmatprep.subr.bf16.mxu0 %v2967_v45 }
  0x79   : > { %2700 = vmatprep.mubr.msk.bf16.mxu1 %vm205_vm0, %v906_v46  ;;  %2796 = vmatprep.mubr.msk.bf16.mxu0 %vm205_vm0, %v1890_v47 }
  0x7b   : > { %2699 = vmatpush3.bf16.msra.mxu1 %v2968_v44  ;;  %2795 = vmatpush3.bf16.msra.mxu0 %v2967_v45 }
  0x7c   : > { %2704 = vmatprep.subr.bf16.mxu1 %v2970_v49  ;;  %2800 = vmatprep.subr.bf16.mxu0 %v2969_v35 }
  0x82   : > { %2701 = vmatmul.mubr.msk.bf16.vlgmr.msra.gmra.mrb[0].mxu1 %vm205_vm0, %v1726_v30  ;;  %2797 = vmatmul.mubr.msk.bf16.vlgmr.msra.gmra.mrb[0].mxu0 %vm205_vm0, %v1891_v51 }
  0x83   : > { %2705 = vmatpush3.bf16.msra.mxu1 %v2970_v49  ;;  %2801 = vmatpush3.bf16.msra.mxu0 %v2969_v35 }
  0x84   : > { %2706 = vmatprep.subr.bf16.mxu1 %v2972_v52  ;;  %2802 = vmatprep.subr.bf16.mxu0 %v2971_v53 }
  0x85   : > { %2708 = vmatprep.mubr.msk.bf16.mxu1 %vm205_vm0, %v3128_v34  ;;  %2804 = vmatprep.mubr.msk.bf16.mxu0 %vm205_vm0, %v3078_v18  ;;  %v2975_v34 = vld [vmem:[%s3426_s1 + $0x178] sm:$0xff]   ;;  %v2977_v18 = vld [vmem:[%s3426_s1 + $0x180] sm:$0xff]  }
  0x87   : > { %2707 = vmatpush3.bf16.msra.mxu1 %v2972_v52  ;;  %2803 = vmatpush3.bf16.msra.mxu0 %v2971_v53 }
  0x88   : > { %2712 = vmatprep.subr.bf16.mxu1 %v2974_v54  ;;  %2808 = vmatprep.subr.bf16.mxu0 %v2973_v55 }
  0x8e   : > { %2709 = vmatmul.mubr.msk.bf16.vlgmr.msra.gmra.mrb[0].mxu1 %vm205_vm0, %v1808_v40  ;;  %2805 = vmatmul.mubr.msk.bf16.vlgmr.msra.gmra.mrb[0].mxu0 %vm205_vm0, %v1973_v57 }
  0x8f   : > { %2713 = vmatpush3.bf16.msra.mxu1 %v2974_v54  ;;  %2809 = vmatpush3.bf16.msra.mxu0 %v2973_v55 }
  0x90   : > { %2714 = vmatprep.subr.bf16.mxu1 %v2976_v58  ;;  %2810 = vmatprep.subr.bf16.mxu0 %v2975_v34 }
  0x91   : > { %2716 = vmatprep.mubr.msk.bf16.mxu1 %vm205_vm0, %v3067_v15  ;;  %2812 = vmatprep.mubr.msk.bf16.mxu0 %vm205_vm0, %v3135_v36  ;;  %v2135_v15 = vld [vmem:[%s3039_s29 + $0x3c] sm:$0xff]  ;;  %s2523_s29 = sshll.u32 %s3430_s13, 2 }
  0x92   : > { %v2137_v36 = vpack.c.bf16 %v2135_v15, %v3320_v32  ;;  %s170_s25 = scalar_lea.vmem %s3428_s3, %s2523_s29 }
  0x93   : > { %2715 = vmatpush3.bf16.msra.mxu1 %v2976_v58  ;;  %2811 = vmatpush3.bf16.msra.mxu0 %v2975_v34 }
  0x94   : > { %2816 = vmatprep.subr.bf16.mxu0 %v2977_v18 }
  0x9a   : > { %2717 = vmatmul.mubr.msk.bf16.vlgmr.msra.gmra.mrb[0].mxu1 %vm205_vm0, %v1890_v47  ;;  %2813 = vmatmul.mubr.msk.bf16.vlgmr.msra.gmra.mrb[0].mxu0 %vm205_vm0, %v2055_v60 }
  0x9b   : > { %2817 = vmatpush3.bf16.msra.mxu0 %v2977_v18  ;;  %2820 = vmatprep.mubr.msk.bf16.mxu0 %vm205_vm0, %v3176_v48 }
  0x9c   : > { %2818 = vmatprep.subr.bf16.mxu0 %v2978_v61 }
  0x9f   : > { %2819 = vmatpush3.bf16.msra.mxu0 %v2978_v61 }
  0xa6   : > { %2821 = vmatmul.mubr.msk.bf16.vlgmr.msra.gmra.mrb[0].mxu0 %vm205_vm0, %v2137_v36 }
 0x16d   : > { %v2718_v62 = vpop.f32.mrb[0].mxu1 }
 0x16e   : > { %v1129_v63 = vpop.f32.mrb[1].mxu1 }
 0x16f   : > { %v2719_v0 = vpop.f32.mrb[2].mxu1 }
 0x170   : > { %v1132_v1 = vpop.f32.mrb[3].mxu1 }
 0x179   : > { %v2822_v2 = vpop.f32.mrb[0].mxu0 }
 0x17a   : > { %v2824_v4 = vadd.f32 %v2822_v2, %v2718_v62  ;;  %v2195_v5 = vpop.f32.mrb[1].mxu0 }
 0x17b   : > { %v2825_v6 = vadd.f32 %v2195_v5, %v1129_v63  ;;  %v2823_v48 = vpop.f32.mrb[2].mxu0 }
 0x17c   : > { %v2223_v9 = vadd.f32 %v2824_v4, %v2519_v3  ;;  %v2826_v12 = vadd.f32 %v2823_v48, %v2719_v0  ;;  %v2198_v13 = vpop.f32.mrb[3].mxu0 }
 0x17d   : > { %v2221_v14 = vadd.f32 %v2825_v6, %v2519_v3  ;;  %v2827_v19 = vadd.f32 %v2198_v13, %v1132_v1 }
 0x17e   : > { %v2227_v20 = vmax.f32 %v2223_v9, 0.0  ;;  %v2224_v10 = vadd.f32 %v2826_v12, %v2519_v3 }
 0x17f   : > { %v2225_v16 = vmax.f32 %v2221_v14, 0.0  ;;  %v2222_v21 = vadd.f32 %v2827_v19, %v2519_v3 }
 0x180   : > { %2232 = vst.msk [vmem:[#allocation2 + $0x10] sm:$0xff] %vm2229_vm1, %v2227_v20  ;;  %v2228_v24 = vmax.f32 %v2224_v10, 0.0 }
 0x181   : > { %2230 = vst.msk [vmem:[#allocation2] sm:$0xff] %vm2229_vm1, %v2225_v16  ;;  %v2226_v25 = vmax.f32 %v2222_v21, 0.0 }
 0x182   : > { %2233 = vst.msk [vmem:[#allocation2 + $0x18] sm:$0xff] %vm2229_vm1, %v2228_v24 }
 0x183   : > { %2231 = vst.msk [vmem:[#allocation2 + $0x8] sm:$0xff] %vm2229_vm1, %v2226_v25 }
 0x187   : > { %v2248_v26 = vld [vmem:[#allocation2 + $0x12] ss:$2 sm:$0x3]  ;;  %v2250_v17 = vld [vmem:[#allocation2 + $0x13] ss:$2 sm:$0x3] }
 0x188   : > { %v2235_v7 = vld [vmem:[#allocation2 + $0x2] ss:$2 sm:$0x3]  ;;  %v2237_v11 = vld [vmem:[#allocation2 + $0x3] ss:$2 sm:$0x3]  ;;  %v2251_v28 = vmax.f32 %v2248_v26, %v2250_v17 }
 0x189   : > { %v2253_v23 = vld [vmem:[#allocation2 + $0x1a] ss:$2 sm:$0x3]  ;;  %v2255_v27 = vld [vmem:[#allocation2 + $0x1b] ss:$2 sm:$0x3]  ;;  %v2238_v8 = vmax.f32 %v2235_v7, %v2237_v11 }
 0x18a   : > { %v2256_v29 = vmax.f32 %v2253_v23, %v2255_v27  ;;  %v2240_v30 = vld [vmem:[#allocation2 + $0xa] ss:$2 sm:$0x3]  ;;  %v2242_v31 = vld [vmem:[#allocation2 + $0xb] ss:$2 sm:$0x3] }
 0x18b   : > { %v2243_v32 = vmax.f32 %v2240_v30, %v2242_v31 }
 0x18c   : > { %v2257_v33 = vmax.f32 %v2251_v28, %v2256_v29 }
 0x18d   : > { %v2244_v37 = vmax.f32 %v2238_v8, %v2243_v32 }
 0x18e   : > { %2520 = vst.msk [vmem:[%s170_s25 + $0x2] sm:$0x3] %vm2245_vm2, %v2257_v33 }
 0x18f   : > { %2246 = vst.msk [vmem:[%s170_s25] sm:$0x3] %vm2245_vm2, %v2244_v37 }
 0x190 PF: > { %s13_s12 = sadd.s32 1, %s2985_s12  }
 0x191   : > { %p10_p4 = scmp.ge.s32.totalorder %s13_s12, 4  }
 0x193   :  { %12 = sbr.rel (!%p10_p4) target bundleno = 1 (0x1), region = 95 }

// kernel: basic_convnet_forward.5
= control target key start
LH: loop header
LB: loop body
LE: loop exit
PB: predicated region body
PF: predicated region fallthrough
CT: control target
= control target key end

     0   :  { %s4865_s12 = smov 0   ;;  %s5684_s0 = inlined_call_operand.vmem [shape: f32[2,148,16], index: 0, kind: input, shape index: {}]   ;;  %s5685_s1 = inlined_call_operand.vmem [shape: bf16[25,16,32], index: 1, kind: input, shape index: {}]   ;;  %s5686_s2 = inlined_call_operand.vmem [shape: f32[1,32], index: 2, kind: input, shape index: {}]   ;;  %s5687_s3 = inlined_call_operand.vmem [shape: f32[2,4,4,32], index: 3, kind: output, shape index: {}]  }
   0x1 LB: > { %s3749_s13 = sadd.s32 4294967295, %s4843_s12   ;;  %p3753_p0 = scmp.ge.s32.totalorder %s4843_s12, 1  ;;  %s4843_s12 = sphi %s4865_s12, %s13_s12  }
   0x2   : > { %p137_p1 = scmp.lt.s32.totalorder %s4843_s12, 3 }
   0x4   : > { %p138_p2 = pnand %p3753_p0, %p137_p1 }
   0x5   : > { %v4811_v0 = vld [vmem:[%s5685_s1 + $0x8] sm:$0xff] (!%p138_p2)   ;;  %p161_p3 = scmp.lt.s32.totalorder (!%p138_p2), %s3749_s13, 1  ;;  %v4879_v1 = vld [vmem:[%s5685_s1 + $0x60] sm:$0xff] (!%p138_p2)   ;;  %vm219_vm0 = vcmask (!%p138_p2), 130048   ;;  %v4815_v18 = vld [vmem:[%s5685_s1 + $0x70] sm:$0xff] (!%p138_p2)   ;;  %vm3629_vm1 = vcmask (!%p138_p2), 261120  }
   0x6   : > { %141 = sbr.rel (%p138_p2) target bundleno = 553 (0x229), region = 32  ;;  %4162 = vmatprep.subr.bf16.mxu1 (!%p138_p2), %v4811_v0  ;;  %v4813_v2 = vld [vmem:[%s5685_s1] sm:$0xff] (!%p138_p2)   ;;  %4330 = vmatprep.subr.bf16.mxu0 (!%p138_p2), %v4879_v1  ;;  %v4814_v3 = vld [vmem:[%s5685_s1 + $0x68] sm:$0xff] (!%p138_p2)   ;;  %v4934_v22 = vld [vmem:[%s5685_s1 + $0x10] sm:$0xff] (!%p138_p2)   ;;  %vm3653_vm2 = vcmask (!%p138_p2), 257024  }
   0x7   : > { %4163 = vmatpush3.bf16.msra.mxu1 (!%p138_p2), %v4811_v0  ;;  %4331 = vmatpush3.bf16.msra.mxu0 (!%p138_p2), %v4879_v1  ;;  %v4987_v44 = vld [vmem:[%s5685_s1 + $0x78] sm:$0xff] (!%p138_p2)  }
   0x8   : > { %4176 = vmatprep.subr.bf16.mxu1 (!%p138_p2), %v4813_v2  ;;  %4344 = vmatprep.subr.bf16.mxu0 (!%p138_p2), %v4814_v3  ;;  %v5021_v59 = vld [vmem:[%s5685_s1 + $0x18] sm:$0xff] (!%p138_p2)  }
   0xd   : > { %s5692_s13 = smov (!%p161_p3, %s3749_s13), 1 }
   0xe   : > { %s4802_s22 = smul.u32 152, %s5692_s13 }
  0x10   : > { %s4895_s25 = scalar_lea.vmem %s5684_s0, %s4802_s22 }
  0x11   : > { %v192_v4 = vld [vmem:[%s4895_s25 + $0x1] sm:$0xff]  ;;  %v193_v5 = vld [vmem:[%s4895_s25 + $0x9] sm:$0xff]  ;;  %v194_v9 = vld [vmem:[%s4895_s25 + $0x11] sm:$0xff] }
  0x12   : > { %v4900_v6 = vld [vmem:[%s4895_s25 + $0x1a] sm:$0xff]  ;;  %v204_v7 = vpack.c.bf16 %v193_v5, %v192_v4  ;;  %v4903_v8 = vld [vmem:[%s4895_s25 + $0x22] sm:$0xff]  ;;  %v4910_v13 = vld [vmem:[%s4895_s25 + $0x2a] sm:$0xff] }
  0x13   : > { %v195_v10 = vld [vmem:[%s4895_s25 + $0x19] sm:$0xff]  ;;  %v1816_v11 = vpack.c.bf16 %v4903_v8, %v4900_v6  ;;  %v196_v15 = vld [vmem:[%s4895_s25 + $0x21] sm:$0xff]  ;;  %v197_v17 = vld [vmem:[%s4895_s25 + $0x29] sm:$0xff] }
  0x14   : > { %v205_v12 = vpack.c.bf16 %v195_v10, %v194_v9  ;;  %v4913_v14 = vld [vmem:[%s4895_s25 + $0x32] sm:$0xff]  ;;  %4164 = vmatprep.mubr.msk.bf16.mxu1 %vm219_vm0, %v204_v7  ;;  %v206_v19 = vpack.c.bf16 %v197_v17, %v196_v15  ;;  %v4926_v20 = vld [vmem:[%s4895_s25 + $0x1b] sm:$0xff]  ;;  %v4929_v21 = vld [vmem:[%s4895_s25 + $0x23] sm:$0xff] }
  0x15   : > { %v1817_v16 = vpack.c.bf16 %v4913_v14, %v4910_v13  ;;  %4332 = vmatprep.mubr.msk.bf16.mxu0 %vm219_vm0, %v1816_v11  ;;  %v198_v23 = vld [vmem:[%s4895_s25 + $0x31] sm:$0xff]  ;;  %v199_v24 = vld [vmem:[%s4895_s25 + $0x39] sm:$0xff]  ;;  %v1954_v25 = vpack.c.bf16 %v4929_v21, %v4926_v20  ;;  %v200_v27 = vld [vmem:[%s4895_s25 + $0x41] sm:$0xff] }
  0x16   : > { %4165 = vmatmul.mubr.msk.bf16.vlgmr.msra.gmra.mrb[0].mxu1 %vm219_vm0, %v205_v12  ;;  %v4942_v26 = vld [vmem:[%s4895_s25 + $0x33] sm:$0xff]  ;;  %v201_v28 = vld [vmem:[%s4895_s25 + $0x49] sm:$0xff]  ;;  %v4948_v29 = vld [vmem:[%s4895_s25 + $0x3b] sm:$0xff]  ;;  %v4953_v31 = vpack.c.bf16 %v199_v24, %v198_v23 }
  0x17   : > { %4177 = vmatpush3.bf16.msra.mxu1 %v4813_v2  ;;  %4333 = vmatmul.mubr.msk.bf16.vlgmr.msra.gmra.mrb[0].mxu0 %vm219_vm0, %v1817_v16  ;;  %v577_v30 = vpack.c.bf16 %v4948_v29, %v4942_v26  ;;  %v4956_v32 = vpack.c.bf16 %v201_v28, %v200_v27  ;;  %v4959_v33 = vld [vmem:[%s4895_s25 + $0x53] sm:$0xff]  ;;  %v4962_v34 = vld [vmem:[%s4895_s25 + $0x5b] sm:$0xff]  ;;  %v4965_v35 = vld [vmem:[%s4895_s25 + $0x2b] sm:$0xff] }
  0x18   : > { %4345 = vmatpush3.bf16.msra.mxu0 %v4814_v3  ;;  %4168 = vmatprep.mubr.msk.bf16.mxu1 %vm219_vm0, %v206_v19  ;;  %v579_v36 = vpack.c.bf16 %v4962_v34, %v4959_v33  ;;  %v4970_v37 = vld [vmem:[%s4895_s25 + $0x43] sm:$0xff]  ;;  %v1955_v38 = vpack.c.bf16 %v4942_v26, %v4965_v35  ;;  %v202_v39 = vld [vmem:[%s4895_s25 + $0x51] sm:$0xff]  ;;  %v203_v40 = vld [vmem:[%s4895_s25 + $0x59] sm:$0xff] }
  0x19   : > { %4346 = vmatprep.mubr.msk.bf16.mxu0 %vm219_vm0, %v1954_v25  ;;  %4358 = vmatprep.subr.bf16.mxu0 %v4815_v18  ;;  %v1956_v41 = vpack.c.bf16 %v4970_v37, %v4948_v29  ;;  %v172_v42 = vld [vmem:[%s4895_s25] sm:$0xff]  ;;  %v173_v43 = vld [vmem:[%s4895_s25 + $0x8] sm:$0xff]  ;;  %v4989_v45 = vpack.c.bf16 %v203_v40, %v202_v39  ;;  %v174_v50 = vld [vmem:[%s4895_s25 + $0x10] sm:$0xff] }
  0x1a   : > { %4190 = vmatprep.subr.bf16.mxu1 %v4934_v22  ;;  %v184_v46 = vpack.c.bf16 %v173_v43, %v172_v42  ;;  %v4994_v47 = vld [vmem:[%s4895_s25 + $0x4b] sm:$0xff]  ;;  %v1951_v48 = vld [vmem:[%s4895_s25 + $0x63] sm:$0xff]  ;;  %v175_v51 = vld [vmem:[%s4895_s25 + $0x18] sm:$0xff] }
  0x1b   : > { %v1957_v49 = vpack.c.bf16 %v4959_v33, %v4994_v47  ;;  %v1958_v52 = vpack.c.bf16 %v1951_v48, %v4962_v34  ;;  %v5007_v53 = vld [vmem:[%s4895_s25 + $0x20] sm:$0xff]  ;;  %v177_v54 = vld [vmem:[%s4895_s25 + $0x28] sm:$0xff]  ;;  %v5010_v55 = vpack.c.bf16 %v175_v51, %v174_v50  ;;  %v1953_v57 = vld [vmem:[%s4895_s25 + $0x73] sm:$0xff] }
  0x1c   : > { %v1952_v56 = vld [vmem:[%s4895_s25 + $0x6b] sm:$0xff]  ;;  %v5016_v58 = vpack.c.bf16 %v177_v54, %v5007_v53  ;;  %v5025_v60 = vld [vmem:[%s4895_s25 + $0x3d] sm:$0xff]  ;;  %v2083_v19 = vld [vmem:[%s4895_s25 + $0x34] sm:$0xff] }
  0x1d   : > { %v5028_v61 = vld [vmem:[%s4895_s25 + $0x45] sm:$0xff]  ;;  %v178_v62 = vld [vmem:[%s4895_s25 + $0x30] sm:$0xff]  ;;  %v5032_v63 = vld [vmem:[%s4895_s25 + $0x1c] sm:$0xff]  ;;  %v1959_v4 = vpack.c.bf16 %v1953_v57, %v1952_v56 }
  0x1e   : > { %4169 = vmatmul.mubr.msk.bf16.gmra.mrb[4].mxu1 %vm219_vm0, %v4953_v31  ;;  %v5035_v0 = vld [vmem:[%s4895_s25 + $0x24] sm:$0xff]  ;;  %v991_v2 = vpack.c.bf16 %v5028_v61, %v5025_v60  ;;  %v5041_v3 = vpack.c.bf16 %v178_v62, %v177_v54  ;;  %v5047_v5 = vld [vmem:[%s4895_s25 + $0x38] sm:$0xff]  ;;  %v2082_v16 = vld [vmem:[%s4895_s25 + $0x2c] sm:$0xff] }
  0x1f   : > { %4172 = vmatprep.mubr.msk.bf16.mxu1 %vm219_vm0, %v4956_v32  ;;  %v5051_v7 = vpack.c.bf16 %v5035_v0, %v5032_v63  ;;  %v5054_v9 = vld [vmem:[%s4895_s25 + $0x40] sm:$0xff]  ;;  %v181_v10 = vld [vmem:[%s4895_s25 + $0x48] sm:$0xff]  ;;  %v5059_v11 = vpack.c.bf16 %v5047_v5, %v178_v62  ;;  %v5084_v27 = vpack.c.bf16 %v2083_v19, %v2082_v16  ;;  %v5089_v28 = vld [vmem:[%s4895_s25 + $0x58] sm:$0xff] }
  0x20   : > { %v5062_v12 = vld [vmem:[%s4895_s25 + $0x5d] sm:$0xff]  ;;  %v5065_v15 = vld [vmem:[%s4895_s25 + $0x65] sm:$0xff]  ;;  %v5070_v17 = vpack.c.bf16 %v181_v10, %v5054_v9  ;;  %v2087_v48 = vld [vmem:[%s4895_s25 + $0x54] sm:$0xff] }
  0x21   : > { %v2084_v23 = vld [vmem:[%s4895_s25 + $0x3c] sm:$0xff]  ;;  %v2085_v24 = vld [vmem:[%s4895_s25 + $0x44] sm:$0xff]  ;;  %v2090_v56 = vld [vmem:[%s4895_s25 + $0x6c] sm:$0xff] }
  0x22   : > { %v424_v39 = vld [vmem:[%s4895_s25 + $0x2] sm:$0xff]  ;;  %v425_v40 = vld [vmem:[%s4895_s25 + $0xa] sm:$0xff]  ;;  %v5121_v57 = vld [vmem:[%s4895_s25 + $0x74] sm:$0xff] }
  0x23   : > { %4347 = vmatmul.mubr.msk.bf16.vlgmr.msra.gmra.mrb[0].mxu0 %vm219_vm0, %v1955_v38  ;;  %v5091_v38 = vpack.c.bf16 %v2085_v24, %v2084_v23  ;;  %v436_v43 = vpack.c.bf16 %v425_v40, %v424_v39  ;;  %v2089_v50 = vld [vmem:[%s4895_s25 + $0x64] sm:$0xff]  ;;  %v2097_v39 = vpack.c.bf16 %v5121_v57, %v2090_v56  ;;  %v5145_v40 = vld [vmem:[%s4895_s25 + $0x3a] sm:$0xff]  ;;  %v4824_v34 = vld [vmem:[%s5685_s1 + $0x30] sm:$0xff]  }
  0x24   : > { %4359 = vmatpush3.bf16.msra.mxu0 %v4815_v18  ;;  %4350 = vmatprep.mubr.msk.bf16.mxu0 %vm219_vm0, %v1956_v41  ;;  %v4819_v41 = vld [vmem:[%s5685_s1 + $0x80] sm:$0xff]   ;;  %v5260_v29 = vld [vmem:[%s4895_s25 + $0x55] sm:$0xff] }
  0x25   : > { %4372 = vmatprep.subr.bf16.mxu0 %v4987_v44  ;;  %v4820_v62 = vld [vmem:[%s5685_s1 + $0x20] sm:$0xff]  }
  0x26   : > { %4173 = vmatmul.mubr.msk.bf16.gmra.mrb[8].mxu1 %vm219_vm0, %v4989_v45  ;;  %v2367_v33 = vld [vmem:[%s4895_s25 + $0x7d] sm:$0xff] }
  0x27   : > { %4178 = vmatprep.mubr.msk.bf16.mxu1 %vm219_vm0, %v184_v46  ;;  %v2086_v46 = vld [vmem:[%s4895_s25 + $0x4c] sm:$0xff] }
  0x28   : > { %v5112_v51 = vpack.c.bf16 %v2087_v48, %v2086_v46  ;;  %v5174_v18 = vpack.c.bf16 %v2086_v46, %v2085_v24  ;;  %v564_v24 = vld [vmem:[%s4895_s25 + $0x13] sm:$0xff]  ;;  %v2234_v46 = vpack.c.bf16 %v2090_v56, %v2089_v50 }
  0x29   : > { %v5217_v56 = vld [vmem:[%s4895_s25 + $0x2d] sm:$0xff] }
  0x2b   : > { %4351 = vmatmul.mubr.msk.bf16.gmra.mrb[4].mxu0 %vm219_vm0, %v1957_v49  ;;  %v2088_v49 = vld [vmem:[%s4895_s25 + $0x5c] sm:$0xff] }
  0x2c   : > { %4354 = vmatprep.mubr.msk.bf16.mxu0 %vm219_vm0, %v1958_v52  ;;  %v426_v52 = vld [vmem:[%s4895_s25 + $0x12] sm:$0xff] }
  0x2d   : > { %v437_v54 = vpack.c.bf16 %v4900_v6, %v426_v52  ;;  %v438_v6 = vpack.c.bf16 %v4910_v13, %v4903_v8  ;;  %v5148_v8 = vpack.c.bf16 %v2082_v16, %v5035_v0  ;;  %v432_v13 = vld [vmem:[%s4895_s25 + $0x42] sm:$0xff]  ;;  %v439_v52 = vpack.c.bf16 %v5145_v40, %v4913_v14  ;;  %v434_v14 = vld [vmem:[%s4895_s25 + $0x52] sm:$0xff] }
  0x2e   : > { %4179 = vmatmul.mubr.msk.bf16.vlgmr.msra.gmra.mrb[0].mxu1 %vm219_vm0, %v5010_v55  ;;  %v5168_v16 = vpack.c.bf16 %v2084_v23, %v2083_v19  ;;  %v5189_v23 = vpack.c.bf16 %v2088_v49, %v2087_v48 }
  0x2f   : > { %4191 = vmatpush3.bf16.msra.mxu1 %v4934_v22  ;;  %4182 = vmatprep.mubr.msk.bf16.mxu1 %vm219_vm0, %v5016_v58  ;;  %v182_v22 = vld [vmem:[%s4895_s25 + $0x50] sm:$0xff] }
  0x30   : > { %4204 = vmatprep.subr.bf16.mxu1 %v5021_v59  ;;  %v5082_v25 = vpack.c.bf16 %v182_v22, %v181_v10  ;;  %v5099_v42 = vpack.c.bf16 %v5089_v28, %v182_v22  ;;  %v5130_v10 = vld [vmem:[%s4895_s25 + $0x46] sm:$0xff]  ;;  %v435_v22 = vld [vmem:[%s4895_s25 + $0x5a] sm:$0xff] }
  0x31   : > { %v5181_v0 = vpack.c.bf16 %v435_v22, %v434_v14  ;;  %v575_v22 = vpack.c.bf16 %v4926_v20, %v564_v24  ;;  %v576_v14 = vpack.c.bf16 %v4965_v35, %v4929_v21  ;;  %v4822_v20 = vld [vmem:[%s5685_s1 + $0x28] sm:$0xff]  }
  0x32   : > { %v5241_v24 = vld [vmem:[%s4895_s25 + $0x4d] sm:$0xff] }
  0x33   : > { %4355 = vmatmul.mubr.msk.bf16.gmra.mrb[8].mxu0 %vm219_vm0, %v1959_v4  ;;  %v5127_v4 = vld [vmem:[%s4895_s25 + $0x3e] sm:$0xff] }
  0x34   : > { %4360 = vmatprep.mubr.msk.bf16.mxu0 %vm219_vm0, %v5051_v7 }
  0x36   : > { %4183 = vmatmul.mubr.msk.bf16.gmra.mrb[4].mxu1 %vm219_vm0, %v5059_v11 }
  0x37   : > { %4186 = vmatprep.mubr.msk.bf16.mxu1 %vm219_vm0, %v5070_v17 }
  0x3b   : > { %4361 = vmatmul.mubr.msk.bf16.vlgmr.msra.gmra.mrb[0].mxu0 %vm219_vm0, %v5084_v27 }
  0x3c   : > { %4373 = vmatpush3.bf16.msra.mxu0 %v4987_v44  ;;  %4364 = vmatprep.mubr.msk.bf16.mxu0 %vm219_vm0, %v5091_v38  ;;  %v5116_v44 = vpack.c.bf16 %v2089_v50, %v2088_v49  ;;  %v5208_v49 = vld [vmem:[%s4895_s25 + $0x7c] sm:$0xff]  ;;  %v5214_v50 = vld [vmem:[%s4895_s25 + $0x25] sm:$0xff] }
  0x3d   : > { %4386 = vmatprep.subr.bf16.mxu0 %v4819_v41  ;;  %v2235_v21 = vpack.c.bf16 %v5208_v49, %v5121_v57  ;;  %v2368_v35 = vpack.c.bf16 %v5217_v56, %v5214_v50 }
  0x3e   : > { %4187 = vmatmul.mubr.msk.bf16.gmra.mrb[8].mxu1 %vm219_vm0, %v5099_v42 }
  0x3f   : > { %4192 = vmatprep.mubr.msk.bf16.mxu1 %vm219_vm0, %v436_v43  ;;  %v433_v43 = vld [vmem:[%s4895_s25 + $0x4a] sm:$0xff] }
  0x43   : > { %4365 = vmatmul.mubr.msk.bf16.gmra.mrb[4].mxu0 %vm219_vm0, %v5112_v51 }
  0x44   : > { %4368 = vmatprep.mubr.msk.bf16.mxu0 %vm219_vm0, %v5116_v44 }
  0x46   : > { %4193 = vmatmul.mubr.msk.bf16.vlgmr.msra.gmra.mrb[0].mxu1 %vm219_vm0, %v437_v54  ;;  %v5158_v54 = vld [vmem:[%s4895_s25 + $0x66] sm:$0xff] }
  0x47   : > { %4205 = vmatpush3.bf16.msra.mxu1 %v5021_v59  ;;  %4196 = vmatprep.mubr.msk.bf16.mxu1 %vm219_vm0, %v438_v6  ;;  %v5155_v59 = vld [vmem:[%s4895_s25 + $0x5e] sm:$0xff]  ;;  %v5161_v6 = vpack.c.bf16 %v433_v43, %v432_v13  ;;  %v563_v13 = vld [vmem:[%s4895_s25 + $0xb] sm:$0xff] }
  0x48   : > { %4218 = vmatprep.subr.bf16.mxu1 %v4820_v62  ;;  %v4821_v43 = vld [vmem:[%s5685_s1 + $0x88] sm:$0xff]  }
  0x4b   : > { %4369 = vmatmul.mubr.msk.bf16.gmra.mrb[8].mxu0 %vm219_vm0, %v2097_v39  ;;  %v562_v39 = vld [vmem:[%s4895_s25 + $0x3] sm:$0xff] }
  0x4c   : > { %4374 = vmatprep.mubr.msk.bf16.mxu0 %vm219_vm0, %v5148_v8  ;;  %v574_v19 = vpack.c.bf16 %v563_v13, %v562_v39  ;;  %v5226_v39 = vld [vmem:[%s4895_s25 + $0x5f] sm:$0xff]  ;;  %v5229_v13 = vld [vmem:[%s4895_s25 + $0x67] sm:$0xff] }
  0x4d   : > { %v1269_v57 = vpack.c.bf16 %v5229_v13, %v5226_v39 }
  0x4e   : > { %4197 = vmatmul.mubr.msk.bf16.gmra.mrb[4].mxu1 %vm219_vm0, %v439_v52  ;;  %v5195_v52 = vld [vmem:[%s4895_s25 + $0x3f] sm:$0xff] }
  0x4f   : > { %4200 = vmatprep.mubr.msk.bf16.mxu1 %vm219_vm0, %v5161_v6 }
  0x53   : > { %4375 = vmatmul.mubr.msk.bf16.vlgmr.msra.gmra.mrb[0].mxu0 %vm219_vm0, %v5168_v16 }
  0x54   : > { %4387 = vmatpush3.bf16.msra.mxu0 %v4819_v41  ;;  %4378 = vmatprep.mubr.msk.bf16.mxu0 %vm219_vm0, %v5174_v18  ;;  %v5198_v41 = vld [vmem:[%s4895_s25 + $0x47] sm:$0xff] }
  0x55   : > { %4400 = vmatprep.subr.bf16.mxu0 %v4821_v43  ;;  %v1267_v48 = vpack.c.bf16 %v5198_v41, %v5195_v52 }
  0x56   : > { %4201 = vmatmul.mubr.msk.bf16.gmra.mrb[8].mxu1 %vm219_vm0, %v5181_v0 }
  0x57   : > { %4206 = vmatprep.mubr.msk.bf16.mxu1 %vm219_vm0, %v574_v19  ;;  %v5238_v19 = vld [vmem:[%s4895_s25 + $0x35] sm:$0xff] }
  0x5b   : > { %4379 = vmatmul.mubr.msk.bf16.gmra.mrb[4].mxu0 %vm219_vm0, %v5189_v23 }
  0x5c   : > { %4382 = vmatprep.mubr.msk.bf16.mxu0 %vm219_vm0, %v2234_v46  ;;  %v2369_v46 = vpack.c.bf16 %v5025_v60, %v5238_v19  ;;  %v5408_v60 = vld [vmem:[%s4895_s25 + $0x60] sm:$0xff] }
  0x5e   : > { %4207 = vmatmul.mubr.msk.bf16.vlgmr.msra.gmra.mrb[0].mxu1 %vm219_vm0, %v575_v22  ;;  %v701_v22 = vld [vmem:[%s4895_s25 + $0xc] sm:$0xff] }
  0x5f   : > { %4219 = vmatpush3.bf16.msra.mxu1 %v4820_v62  ;;  %4210 = vmatprep.mubr.msk.bf16.mxu1 %vm219_vm0, %v576_v14  ;;  %v578_v62 = vpack.c.bf16 %v4994_v47, %v4970_v37  ;;  %v2370_v37 = vpack.c.bf16 %v5241_v24, %v5028_v61  ;;  %v700_v47 = vld [vmem:[%s4895_s25 + $0x4] sm:$0xff]  ;;  %v4823_v14 = vld [vmem:[%s5685_s1 + $0x90] sm:$0xff]  }
  0x60   : > { %4232 = vmatprep.subr.bf16.mxu1 %v4822_v20  ;;  %v712_v26 = vpack.c.bf16 %v701_v22, %v700_v47  ;;  %v2778_v61 = vld [vmem:[%s4895_s25 + $0x68] sm:$0xff] }
  0x63   : > { %4383 = vmatmul.mubr.msk.bf16.gmra.mrb[8].mxu0 %vm219_vm0, %v2235_v21  ;;  %v2371_v21 = vpack.c.bf16 %v5062_v12, %v5260_v29 }
  0x64   : > { %4388 = vmatprep.mubr.msk.bf16.mxu0 %vm219_vm0, %v2368_v35  ;;  %v702_v35 = vld [vmem:[%s4895_s25 + $0x14] sm:$0xff] }
  0x66   : > { %4211 = vmatmul.mubr.msk.bf16.gmra.mrb[4].mxu1 %vm219_vm0, %v577_v30  ;;  %v2365_v30 = vld [vmem:[%s4895_s25 + $0x6d] sm:$0xff] }
  0x67   : > { %4214 = vmatprep.mubr.msk.bf16.mxu1 %vm219_vm0, %v578_v62  ;;  %v713_v62 = vpack.c.bf16 %v5032_v63, %v702_v35 }
  0x6b   : > { %4389 = vmatmul.mubr.msk.bf16.vlgmr.msra.gmra.mrb[0].mxu0 %vm219_vm0, %v2369_v46  ;;  %v2366_v46 = vld [vmem:[%s4895_s25 + $0x75] sm:$0xff] }
  0x6c   : > { %4401 = vmatpush3.bf16.msra.mxu0 %v4821_v43  ;;  %4392 = vmatprep.mubr.msk.bf16.mxu0 %vm219_vm0, %v2370_v37  ;;  %v2372_v43 = vpack.c.bf16 %v2365_v30, %v5065_v15  ;;  %v5284_v37 = vld [vmem:[%s4895_s25 + $0x2e] sm:$0xff]  ;;  %v2373_v63 = vpack.c.bf16 %v2367_v33, %v2366_v46 }
  0x6d   : > { %4414 = vmatprep.subr.bf16.mxu0 %v4823_v14  ;;  %v5297_v30 = vld [vmem:[%s4895_s25 + $0x4e] sm:$0xff] }
  0x6e   : > { %4215 = vmatmul.mubr.msk.bf16.gmra.mrb[8].mxu1 %vm219_vm0, %v579_v36  ;;  %v5281_v36 = vld [vmem:[%s4895_s25 + $0x26] sm:$0xff]  ;;  %v5333_v33 = vld [vmem:[%s4895_s25 + $0x2f] sm:$0xff] }
  0x6f   : > { %4220 = vmatprep.mubr.msk.bf16.mxu1 %vm219_vm0, %v712_v26  ;;  %v2506_v47 = vpack.c.bf16 %v5284_v37, %v5281_v36  ;;  %v5294_v26 = vld [vmem:[%s4895_s25 + $0x36] sm:$0xff] }
  0x73   : > { %4393 = vmatmul.mubr.msk.bf16.gmra.mrb[4].mxu0 %vm219_vm0, %v2371_v21  ;;  %v4825_v21 = vld [vmem:[%s5685_s1 + $0x98] sm:$0xff]  }
  0x74   : > { %4396 = vmatprep.mubr.msk.bf16.mxu0 %vm219_vm0, %v2372_v43  ;;  %v850_v43 = vpack.c.bf16 %v702_v35, %v701_v22  ;;  %v2504_v22 = vld [vmem:[%s4895_s25 + $0x76] sm:$0xff] }
  0x75   : > { %v4826_v35 = vld [vmem:[%s5685_s1 + $0x38] sm:$0xff]  }
  0x76   : > { %4221 = vmatmul.mubr.msk.bf16.vlgmr.msra.gmra.mrb[0].mxu1 %vm219_vm0, %v713_v62 }
  0x77   : > { %4233 = vmatpush3.bf16.msra.mxu1 %v4822_v20  ;;  %4224 = vmatprep.mubr.msk.bf16.mxu1 %vm219_vm0, %v5148_v8  ;;  %v2507_v8 = vpack.c.bf16 %v5127_v4, %v5294_v26  ;;  %v2508_v20 = vpack.c.bf16 %v5297_v30, %v5130_v10 }
  0x78   : > { %4246 = vmatprep.subr.bf16.mxu1 %v4824_v34 }
  0x7b   : > { %4397 = vmatmul.mubr.msk.bf16.gmra.mrb[8].mxu0 %vm219_vm0, %v2373_v63 }
  0x7c   : > { %4402 = vmatprep.mubr.msk.bf16.mxu0 %vm219_vm0, %v2506_v47 }
  0x7e   : > { %4225 = vmatmul.mubr.msk.bf16.gmra.mrb[4].mxu1 %vm219_vm0, %v5168_v16  ;;  %v5313_v16 = vld [vmem:[%s4895_s25 + $0x56] sm:$0xff] }
  0x7f   : > { %4228 = vmatprep.mubr.msk.bf16.mxu1 %vm219_vm0, %v5174_v18  ;;  %v2503_v18 = vld [vmem:[%s4895_s25 + $0x6e] sm:$0xff]  ;;  %v2509_v62 = vpack.c.bf16 %v5155_v59, %v5313_v16 }
  0x80   : > { %v2510_v46 = vpack.c.bf16 %v2503_v18, %v5158_v54  ;;  %v4827_v18 = vld [vmem:[%s5685_s1 + $0xa0] sm:$0xff]  }
  0x83   : > { %4403 = vmatmul.mubr.msk.bf16.vlgmr.msra.gmra.mrb[0].mxu0 %vm219_vm0, %v2507_v8  ;;  %v5344_v8 = vld [vmem:[%s4895_s25 + $0x37] sm:$0xff] }
  0x84   : > { %4415 = vmatpush3.bf16.msra.mxu0 %v4823_v14  ;;  %4406 = vmatprep.mubr.msk.bf16.mxu0 %vm219_vm0, %v2508_v20  ;;  %v2505_v14 = vld [vmem:[%s4895_s25 + $0x7e] sm:$0xff]  ;;  %v5347_v20 = vld [vmem:[%s4895_s25 + $0x4f] sm:$0xff] }
  0x85   : > { %4428 = vmatprep.subr.bf16.mxu0 %v4825_v21  ;;  %v2511_v63 = vpack.c.bf16 %v2505_v14, %v2504_v22  ;;  %v978_v22 = vld [vmem:[%s4895_s25 + $0x1d] sm:$0xff] }
  0x86   : > { %4229 = vmatmul.mubr.msk.bf16.gmra.mrb[8].mxu1 %vm219_vm0, %v5189_v23  ;;  %v5330_v23 = vld [vmem:[%s4895_s25 + $0x27] sm:$0xff] }
  0x87   : > { %4234 = vmatprep.mubr.msk.bf16.mxu1 %vm219_vm0, %v850_v43  ;;  %v2644_v47 = vpack.c.bf16 %v5333_v33, %v5330_v23  ;;  %v977_v43 = vld [vmem:[%s4895_s25 + $0x15] sm:$0xff] }
  0x8b   : > { %4407 = vmatmul.mubr.msk.bf16.gmra.mrb[4].mxu0 %vm219_vm0, %v2509_v62  ;;  %v5365_v62 = vld [vmem:[%s4895_s25 + $0x57] sm:$0xff] }
  0x8c   : > { %4410 = vmatprep.mubr.msk.bf16.mxu0 %vm219_vm0, %v2510_v46  ;;  %v2647_v46 = vpack.c.bf16 %v5226_v39, %v5365_v62  ;;  %v4834_v39 = vld [vmem:[%s5685_s1 + $0x58] sm:$0xff]  }
  0x8e   : > { %4235 = vmatmul.mubr.msk.bf16.vlgmr.msra.gmra.mrb[0].mxu1 %vm219_vm0, %v5051_v7  ;;  %v2645_v7 = vpack.c.bf16 %v5195_v52, %v5344_v8  ;;  %v5493_v52 = vld [vmem:[%s4895_s25 + $0x69] sm:$0xff] }
  0x8f   : > { %4247 = vmatpush3.bf16.msra.mxu1 %v4824_v34  ;;  %4238 = vmatprep.mubr.msk.bf16.mxu1 %vm219_vm0, %v5084_v27  ;;  %v2646_v27 = vpack.c.bf16 %v5347_v20, %v5198_v41  ;;  %v976_v34 = vld [vmem:[%s4895_s25 + $0xd] sm:$0xff] }
  0x90   : > { %4260 = vmatprep.subr.bf16.mxu1 %v4826_v35  ;;  %v5496_v41 = vld [vmem:[%s4895_s25 + $0x71] sm:$0xff] }
  0x93   : > { %4411 = vmatmul.mubr.msk.bf16.gmra.mrb[8].mxu0 %vm219_vm0, %v2511_v63  ;;  %v989_v63 = vpack.c.bf16 %v5214_v50, %v978_v22  ;;  %v992_v50 = vpack.c.bf16 %v5260_v29, %v5241_v24  ;;  %v4829_v24 = vld [vmem:[%s5685_s1 + $0xa8] sm:$0xff]   ;;  %v1253_v22 = vld [vmem:[%s4895_s25 + $0x17] sm:$0xff] }
  0x94   : > { %4416 = vmatprep.mubr.msk.bf16.mxu0 %vm219_vm0, %v2644_v47  ;;  %v2643_v47 = vld [vmem:[%s4895_s25 + $0x7f] sm:$0xff] }
  0x96   : > { %4239 = vmatmul.mubr.msk.bf16.gmra.mrb[4].mxu1 %vm219_vm0, %v5091_v38  ;;  %v988_v38 = vpack.c.bf16 %v977_v43, %v976_v34  ;;  %v2785_v34 = vpack.c.bf16 %v5408_v60, %v5089_v28  ;;  %v1116_v43 = vld [vmem:[%s4895_s25 + $0x1e] sm:$0xff]  ;;  %v4830_v28 = vld [vmem:[%s5685_s1 + $0x48] sm:$0xff]  }
  0x97   : > { %4242 = vmatprep.mubr.msk.bf16.mxu1 %vm219_vm0, %v5112_v51  ;;  %v2641_v51 = vld [vmem:[%s4895_s25 + $0x6f] sm:$0xff] }
  0x98   : > { %v2648_v14 = vpack.c.bf16 %v2641_v51, %v5229_v13  ;;  %v1128_v51 = vpack.c.bf16 %v5294_v26, %v5284_v37  ;;  %v1130_v37 = vpack.c.bf16 %v5313_v16, %v5297_v30  ;;  %v5689_v26 = vpack.c.bf16 %v5130_v10, %v5127_v4  ;;  %v1254_v16 = vld [vmem:[%s4895_s25 + $0x1f] sm:$0xff]  ;;  %v3184_v13 = vld [vmem:[%s4895_s25 + $0x32] sm:$0xff] }
  0x99   : > { %v5690_v4 = vpack.c.bf16 %v5158_v54, %v5155_v59  ;;  %v2923_v10 = vpack.c.bf16 %v2778_v61, %v5408_v60  ;;  %v4832_v59 = vld [vmem:[%s5685_s1 + $0x50] sm:$0xff]  }
  0x9b   : > { %4417 = vmatmul.mubr.msk.bf16.vlgmr.msra.gmra.mrb[0].mxu0 %vm219_vm0, %v2645_v7  ;;  %v4828_v7 = vld [vmem:[%s5685_s1 + $0x40] sm:$0xff]  }
  0x9c   : > { %4429 = vmatpush3.bf16.msra.mxu0 %v4825_v21  ;;  %4420 = vmatprep.mubr.msk.bf16.mxu0 %vm219_vm0, %v2646_v27  ;;  %v990_v21 = vpack.c.bf16 %v5238_v19, %v5217_v56  ;;  %v2783_v56 = vpack.c.bf16 %v5054_v9, %v5047_v5  ;;  %v1114_v19 = vld [vmem:[%s4895_s25 + $0xe] sm:$0xff]  ;;  %v5688_v5 = vpack.c.bf16 %v5065_v15, %v5062_v12  ;;  %v2780_v12 = vld [vmem:[%s4895_s25 + $0x78] sm:$0xff]  ;;  %v2781_v15 = vld [vmem:[%s4895_s25 + $0x80] sm:$0xff] }
  0x9d   : > { %4442 = vmatprep.subr.bf16.mxu0 %v4827_v18 }
  0x9e   : > { %4243 = vmatmul.mubr.msk.bf16.gmra.mrb[8].mxu1 %vm219_vm0, %v5116_v44  ;;  %v2642_v44 = vld [vmem:[%s4895_s25 + $0x77] sm:$0xff] }
  0x9f   : > { %4248 = vmatprep.mubr.msk.bf16.mxu1 %vm219_vm0, %v988_v38  ;;  %v2649_v27 = vpack.c.bf16 %v2643_v47, %v2642_v44  ;;  %v1127_v38 = vpack.c.bf16 %v5281_v36, %v1116_v43  ;;  %v2787_v36 = vpack.c.bf16 %v2781_v15, %v2780_v12  ;;  %v1266_v44 = vpack.c.bf16 %v5344_v8, %v5333_v33  ;;  %v2919_v47 = vld [vmem:[%s4895_s25 + $0x88] sm:$0xff]  ;;  %v4833_v33 = vld [vmem:[%s5685_s1 + $0xb8] sm:$0xff]  }
  0xa0   : > { %v2925_v54 = vpack.c.bf16 %v2919_v47, %v2781_v15  ;;  %v3056_v8 = vld [vmem:[%s4895_s25 + $0x81] sm:$0xff]  ;;  %v3329_v15 = vld [vmem:[%s4895_s25 + $0x6b] sm:$0xff] }
  0xa1   : > { %v1672_v47 = vld [vmem:[%s4895_s25 + $0x49] sm:$0xff] }
  0xa3   : > { %4421 = vmatmul.mubr.msk.bf16.gmra.mrb[4].mxu0 %vm219_vm0, %v2647_v46  ;;  %v1252_v46 = vld [vmem:[%s4895_s25 + $0xf] sm:$0xff] }
  0xa4   : > { %4424 = vmatprep.mubr.msk.bf16.mxu0 %vm219_vm0, %v2648_v14  ;;  %v4831_v14 = vld [vmem:[%s5685_s1 + $0xb0] sm:$0xff]   ;;  %v1264_v30 = vpack.c.bf16 %v1253_v22, %v1252_v46  ;;  %v1670_v22 = vld [vmem:[%s4895_s25 + $0x39] sm:$0xff] }
  0xa6   : > { %4249 = vmatmul.mubr.msk.bf16.vlgmr.msra.gmra.mrb[0].mxu1 %vm219_vm0, %v989_v63 }
  0xa7   : > { %4261 = vmatpush3.bf16.msra.mxu1 %v4826_v35  ;;  %4252 = vmatprep.mubr.msk.bf16.mxu1 %vm219_vm0, %v990_v21  ;;  %v1115_v35 = vld [vmem:[%s4895_s25 + $0x16] sm:$0xff]  ;;  %v1265_v21 = vpack.c.bf16 %v5330_v23, %v1254_v16  ;;  %v1268_v23 = vpack.c.bf16 %v5365_v62, %v5347_v20  ;;  %v3057_v20 = vld [vmem:[%s4895_s25 + $0x89] sm:$0xff] }
  0xa8   : > { %4274 = vmatprep.subr.bf16.mxu1 %v4828_v7  ;;  %v1126_v29 = vpack.c.bf16 %v1115_v35, %v1114_v19  ;;  %v5543_v62 = vld [vmem:[%s4895_s25 + $0x72] sm:$0xff]  ;;  %v3323_v35 = vld [vmem:[%s4895_s25 + $0x3b] sm:$0xff] }
  0xa9   : > { %v3322_v19 = vld [vmem:[%s4895_s25 + $0x33] sm:$0xff]  ;;  %v3333_v16 = vld [vmem:[%s4895_s25 + $0x8b] sm:$0xff] }
  0xab   : > { %4425 = vmatmul.mubr.msk.bf16.gmra.mrb[8].mxu0 %vm219_vm0, %v2649_v27 }
  0xac   : > { %4430 = vmatprep.mubr.msk.bf16.mxu0 %vm219_vm0, %v5041_v3 }
  0xae   : > { %4253 = vmatmul.mubr.msk.bf16.gmra.mrb[4].mxu1 %vm219_vm0, %v991_v2  ;;  %v2779_v2 = vld [vmem:[%s4895_s25 + $0x70] sm:$0xff] }
  0xaf   : > { %4256 = vmatprep.mubr.msk.bf16.mxu1 %vm219_vm0, %v992_v50  ;;  %v2924_v63 = vpack.c.bf16 %v2780_v12, %v2779_v2  ;;  %v3194_v50 = vld [vmem:[%s4895_s25 + $0x82] sm:$0xff] }
  0xb0   : > { %v3328_v12 = vld [vmem:[%s4895_s25 + $0x63] sm:$0xff] }
  0xb3   : > { %4431 = vmatmul.mubr.msk.bf16.vlgmr.msra.gmra.mrb[0].mxu0 %vm219_vm0, %v2783_v56  ;;  %v3195_v56 = vld [vmem:[%s4895_s25 + $0x8a] sm:$0xff] }
  0xb4   : > { %4443 = vmatpush3.bf16.msra.mxu0 %v4827_v18  ;;  %4434 = vmatprep.mubr.msk.bf16.mxu0 %vm219_vm0, %v5082_v25  ;;  %v5420_v18 = vpack.c.bf16 %v2779_v2, %v2778_v61  ;;  %v3324_v2 = vld [vmem:[%s4895_s25 + $0x43] sm:$0xff] }
  0xb5   : > { %4456 = vmatprep.subr.bf16.mxu0 %v4829_v24 }
  0xb6   : > { %4257 = vmatmul.mubr.msk.bf16.gmra.mrb[8].mxu1 %vm219_vm0, %v5688_v5  ;;  %v3326_v5 = vld [vmem:[%s4895_s25 + $0x53] sm:$0xff] }
  0xb7   : > { %4262 = vmatprep.mubr.msk.bf16.mxu1 %vm219_vm0, %v1126_v29  ;;  %v1536_v29 = vld [vmem:[%s4895_s25 + $0x58] sm:$0xff] }
  0xb8   : > { %v1544_v61 = vpack.c.bf16 %v5408_v60, %v1536_v29  ;;  %v1666_v60 = vld [vmem:[%s4895_s25 + $0x19] sm:$0xff] }
  0xbb   : > { %4435 = vmatmul.mubr.msk.bf16.gmra.mrb[4].mxu0 %vm219_vm0, %v2785_v34  ;;  %v3327_v34 = vld [vmem:[%s4895_s25 + $0x5b] sm:$0xff] }
  0xbc   : > { %4438 = vmatprep.mubr.msk.bf16.mxu0 %vm219_vm0, %v5420_v18 }
  0xbe   : > { %4263 = vmatmul.mubr.msk.bf16.vlgmr.msra.gmra.mrb[0].mxu1 %vm219_vm0, %v1127_v38  ;;  %v1667_v38 = vld [vmem:[%s4895_s25 + $0x21] sm:$0xff] }
  0xbf   : > { %4275 = vmatpush3.bf16.msra.mxu1 %v4828_v7  ;;  %4266 = vmatprep.mubr.msk.bf16.mxu1 %vm219_vm0, %v1128_v51  ;;  %v3193_v7 = vld [vmem:[%s4895_s25 + $0x7a] sm:$0xff]  ;;  %v1678_v51 = vpack.c.bf16 %v1667_v38, %v1666_v60 }
  0xc0   : > { %4288 = vmatprep.subr.bf16.mxu1 %v4830_v28 }
  0xc3   : > { %4439 = vmatmul.mubr.msk.bf16.gmra.mrb[8].mxu0 %vm219_vm0, %v2787_v36  ;;  %v3337_v36 = vpack.c.bf16 %v3329_v15, %v3328_v12 }
  0xc4   : > { %4444 = vmatprep.mubr.msk.bf16.mxu0 %vm219_vm0, %v5059_v11 }
  0xc6   : > { %4267 = vmatmul.mubr.msk.bf16.gmra.mrb[4].mxu1 %vm219_vm0, %v5689_v26  ;;  %v1669_v26 = vld [vmem:[%s4895_s25 + $0x31] sm:$0xff] }
  0xc7   : > { %4270 = vmatprep.mubr.msk.bf16.mxu1 %vm219_vm0, %v1130_v37  ;;  %v1668_v37 = vld [vmem:[%s4895_s25 + $0x29] sm:$0xff] }
  0xcb   : > { %4445 = vmatmul.mubr.msk.bf16.vlgmr.msra.gmra.mrb[0].mxu0 %vm219_vm0, %v5070_v17 }
  0xcc   : > { %4457 = vmatpush3.bf16.msra.mxu0 %v4829_v24  ;;  %4448 = vmatprep.mubr.msk.bf16.mxu0 %vm219_vm0, %v5099_v42  ;;  %v3201_v24 = vpack.c.bf16 %v3195_v56, %v3194_v50  ;;  %v3470_v56 = vld [vmem:[%s4895_s25 + $0x84] sm:$0xff] }
  0xcd   : > { %4470 = vmatprep.subr.bf16.mxu0 %v4831_v14 }
  0xce   : > { %4271 = vmatmul.mubr.msk.bf16.gmra.mrb[8].mxu1 %vm219_vm0, %v5690_v4 }
  0xcf   : > { %4276 = vmatprep.mubr.msk.bf16.mxu1 %vm219_vm0, %v1264_v30  ;;  %v1679_v30 = vpack.c.bf16 %v1669_v26, %v1668_v37 }
  0xd3   : > { %4449 = vmatmul.mubr.msk.bf16.gmra.mrb[4].mxu0 %vm219_vm0, %v2923_v10 }
  0xd4   : > { %4452 = vmatprep.mubr.msk.bf16.mxu0 %vm219_vm0, %v2924_v63  ;;  %v3461_v63 = vld [vmem:[%s4895_s25 + $0x3c] sm:$0xff] }
  0xd6   : > { %4277 = vmatmul.mubr.msk.bf16.vlgmr.msra.gmra.mrb[0].mxu1 %vm219_vm0, %v1265_v21  ;;  %v4836_v21 = vld [vmem:[%s5685_s1 + $0x60] sm:$0xff]  }
  0xd7   : > { %4289 = vmatpush3.bf16.msra.mxu1 %v4830_v28  ;;  %4280 = vmatprep.mubr.msk.bf16.mxu1 %vm219_vm0, %v1266_v44  ;;  %v3331_v28 = vld [vmem:[%s4895_s25 + $0x7b] sm:$0xff] }
  0xd8   : > { %4302 = vmatprep.subr.bf16.mxu1 %v4832_v59 }
  0xdb   : > { %4453 = vmatmul.mubr.msk.bf16.gmra.mrb[8].mxu0 %vm219_vm0, %v2925_v54 }
  0xdc   : > { %4458 = vmatprep.mubr.msk.bf16.mxu0 %vm219_vm0, %v4953_v31  ;;  %v5490_v31 = vld [vmem:[%s4895_s25 + $0x61] sm:$0xff] }
  0xde   : > { %4281 = vmatmul.mubr.msk.bf16.gmra.mrb[4].mxu1 %vm219_vm0, %v1267_v48  ;;  %v3055_v48 = vld [vmem:[%s4895_s25 + $0x79] sm:$0xff] }
  0xdf   : > { %4284 = vmatprep.mubr.msk.bf16.mxu1 %vm219_vm0, %v1268_v23  ;;  %v1674_v23 = vld [vmem:[%s4895_s25 + $0x59] sm:$0xff] }
  0xe3   : > { %4459 = vmatmul.mubr.msk.bf16.vlgmr.msra.gmra.mrb[0].mxu0 %vm219_vm0, %v4956_v32  ;;  %v3061_v32 = vpack.c.bf16 %v5493_v52, %v5490_v31 }
  0xe4   : > { %4471 = vmatpush3.bf16.msra.mxu0 %v4831_v14  ;;  %4462 = vmatprep.mubr.msk.bf16.mxu0 %vm219_vm0, %v4989_v45  ;;  %v3062_v45 = vpack.c.bf16 %v3055_v48, %v5496_v41  ;;  %v1671_v14 = vld [vmem:[%s4895_s25 + $0x41] sm:$0xff]  ;;  %v1682_v48 = vpack.c.bf16 %v5490_v31, %v1674_v23 }
  0xe5   : > { %4484 = vmatprep.subr.bf16.mxu0 %v4833_v33  ;;  %v1680_v4 = vpack.c.bf16 %v1671_v14, %v1670_v22  ;;  %v1809_v31 = vld [vmem:[%s4895_s25 + $0x42] sm:$0xff] }
  0xe6   : > { %4285 = vmatmul.mubr.msk.bf16.gmra.mrb[8].mxu1 %vm219_vm0, %v1269_v57  ;;  %v3196_v57 = vpack.c.bf16 %v5145_v40, %v3184_v13 }
  0xe7   : > { %4290 = vmatprep.mubr.msk.bf16.mxu1 %vm219_vm0, %v5010_v55  ;;  %v3063_v55 = vpack.c.bf16 %v3057_v20, %v3056_v8  ;;  %v3464_v8 = vld [vmem:[%s4895_s25 + $0x54] sm:$0xff]  ;;  %v3465_v20 = vld [vmem:[%s4895_s25 + $0x5c] sm:$0xff] }
  0xe8   : > { %v3474_v13 = vpack.c.bf16 %v3465_v20, %v3464_v8 }
  0xeb   : > { %4463 = vmatmul.mubr.msk.bf16.gmra.mrb[4].mxu0 %vm219_vm0, %v3061_v32  ;;  %v3462_v32 = vld [vmem:[%s4895_s25 + $0x44] sm:$0xff] }
  0xec   : > { %4466 = vmatprep.mubr.msk.bf16.mxu0 %vm219_vm0, %v3062_v45  ;;  %v3463_v45 = vld [vmem:[%s4895_s25 + $0x4c] sm:$0xff] }
  0xee   : > { %4291 = vmatmul.mubr.msk.bf16.vlgmr.msra.gmra.mrb[0].mxu1 %vm219_vm0, %v5016_v58  ;;  %v1528_v58 = vld [vmem:[%s4895_s25 + $0x18] sm:$0xff] }
  0xef   : > { %4303 = vmatpush3.bf16.msra.mxu1 %v4832_v59  ;;  %4294 = vmatprep.mubr.msk.bf16.mxu1 %vm219_vm0, %v5059_v11  ;;  %v4835_v11 = vld [vmem:[%s5685_s1 + $0xc0] sm:$0xff]   ;;  %v1540_v40 = vpack.c.bf16 %v5007_v53, %v1528_v58  ;;  %v1673_v59 = vld [vmem:[%s4895_s25 + $0x51] sm:$0xff] }
  0xf0   : > { %4316 = vmatprep.subr.bf16.mxu1 %v4834_v39 }
  0xf3   : > { %4467 = vmatmul.mubr.msk.bf16.gmra.mrb[8].mxu0 %vm219_vm0, %v3063_v55  ;;  %v1808_v55 = vld [vmem:[%s4895_s25 + $0x3a] sm:$0xff] }
  0xf4   : > { %4472 = vmatprep.mubr.msk.bf16.mxu0 %vm219_vm0, %v3196_v57  ;;  %v1683_v57 = vpack.c.bf16 %v5496_v41, %v5493_v52  ;;  %v1818_v58 = vpack.c.bf16 %v1809_v31, %v1808_v55  ;;  %v1812_v52 = vld [vmem:[%s4895_s25 + $0x5a] sm:$0xff] }
  0xf6   : > { %4295 = vmatmul.mubr.msk.bf16.gmra.mrb[4].mxu1 %vm219_vm0, %v5070_v17  ;;  %v5537_v17 = vld [vmem:[%s4895_s25 + $0x62] sm:$0xff] }
  0xf7   : > { %4298 = vmatprep.mubr.msk.bf16.mxu1 %vm219_vm0, %v5099_v42  ;;  %v5540_v42 = vld [vmem:[%s4895_s25 + $0x6a] sm:$0xff]  ;;  %v1820_v50 = vpack.c.bf16 %v5537_v17, %v1812_v52 }
  0xf8   : > { %v3199_v53 = vpack.c.bf16 %v5540_v42, %v5537_v17 }
  0xfb   : > { %4473 = vmatmul.mubr.msk.bf16.vlgmr.msra.gmra.mrb[0].mxu0 %vm219_vm0, %v5161_v6  ;;  %v3200_v6 = vpack.c.bf16 %v3193_v7, %v5543_v62  ;;  %v3468_v7 = vld [vmem:[%s4895_s25 + $0x74] sm:$0xff] }
  0xfc   : > { %4485 = vmatpush3.bf16.msra.mxu0 %v4833_v33  ;;  %4476 = vmatprep.mubr.msk.bf16.mxu0 %vm219_vm0, %v5181_v0  ;;  %v1532_v0 = vld [vmem:[%s4895_s25 + $0x38] sm:$0xff]  ;;  %v1681_v33 = vpack.c.bf16 %v1673_v59, %v1672_v47 }
  0xfd   : > { %4498 = vmatprep.subr.bf16.mxu0 %v4835_v11  ;;  %v1542_v27 = vpack.c.bf16 %v5054_v9, %v1532_v0  ;;  %v3334_v9 = vpack.c.bf16 %v3323_v35, %v3322_v19  ;;  %v1811_v0 = vld [vmem:[%s4895_s25 + $0x52] sm:$0xff] }
  0xfe   : > { %4299 = vmatmul.mubr.msk.bf16.gmra.mrb[8].mxu1 %vm219_vm0, %v2923_v10  ;;  %v3332_v10 = vld [vmem:[%s4895_s25 + $0x83] sm:$0xff]  ;;  %v3471_v19 = vld [vmem:[%s4895_s25 + $0x8c] sm:$0xff] }
  0xff   : > { %4304 = vmatprep.mubr.msk.bf16.mxu1 %vm219_vm0, %v1540_v40  ;;  %v3339_v44 = vpack.c.bf16 %v3333_v16, %v3332_v10  ;;  %v3467_v40 = vld [vmem:[%s4895_s25 + $0x6c] sm:$0xff]  ;;  %v3477_v35 = vpack.c.bf16 %v3471_v19, %v3470_v56 }
 0x103   : > { %4477 = vmatmul.mubr.msk.bf16.gmra.mrb[4].mxu0 %vm219_vm0, %v3199_v53 }
 0x104   : > { %4480 = vmatprep.mubr.msk.bf16.mxu0 %vm219_vm0, %v3200_v6  ;;  %v1810_v6 = vld [vmem:[%s4895_s25 + $0x4a] sm:$0xff] }
 0x105   : > { %v1819_v41 = vpack.c.bf16 %v1811_v0, %v1810_v6 }
 0x106   : > { %4305 = vmatmul.mubr.msk.bf16.vlgmr.msra.gmra.mrb[0].mxu1 %vm219_vm0, %v5041_v3  ;;  %v3325_v3 = vld [vmem:[%s4895_s25 + $0x4b] sm:$0xff] }
 0x107   : > { %4317 = vmatpush3.bf16.msra.mxu1 %v4834_v39  ;;  %4308 = vmatprep.mubr.msk.bf16.mxu1 %vm219_vm0, %v1542_v27  ;;  %v3335_v43 = vpack.c.bf16 %v3325_v3, %v3324_v2  ;;  %v3473_v39 = vpack.c.bf16 %v3463_v45, %v3462_v32  ;;  %v3476_v27 = vpack.c.bf16 %v5208_v49, %v3468_v7  ;;  %v5641_v2 = vld [vmem:[%s5686_s2] ss:$0 sm:$0xff] }
 0x108   : > { %4512 = vmatprep.subr.bf16.mxu1 %v4879_v1  ;;  %v3336_v1 = vpack.c.bf16 %v3327_v34, %v3326_v5 }
 0x10b   : > { %4481 = vmatmul.mubr.msk.bf16.gmra.mrb[8].mxu0 %vm219_vm0, %v3201_v24  ;;  %v1821_v24 = vpack.c.bf16 %v5543_v62, %v5540_v42 }
 0x10c   : > { %4486 = vmatprep.mubr.msk.bf16.mxu0 %vm219_vm0, %v3334_v9 }
 0x10e   : > { %4309 = vmatmul.mubr.msk.bf16.gmra.mrb[4].mxu1 %vm219_vm0, %v5082_v25  ;;  %v3330_v25 = vld [vmem:[%s4895_s25 + $0x73] sm:$0xff] }
 0x10f   : > { %4312 = vmatprep.mubr.msk.bf16.mxu1 %vm219_vm0, %v1544_v61  ;;  %v3338_v46 = vpack.c.bf16 %v3331_v28, %v3330_v25 }
 0x113   : > { %4487 = vmatmul.mubr.msk.bf16.vlgmr.msra.gmra.mrb[0].mxu0 %vm219_vm0, %v3335_v43 }
 0x114   : > { %4499 = vmatpush3.bf16.msra.mxu0 %v4835_v11  ;;  %4490 = vmatprep.mubr.msk.bf16.mxu0 %vm219_vm0, %v3336_v1  ;;  %v3466_v11 = vld [vmem:[%s4895_s25 + $0x64] sm:$0xff] }
 0x115   : > { %v3475_v53 = vpack.c.bf16 %v3467_v40, %v3466_v11 }
 0x116   : > { %4313 = vmatmul.mubr.msk.bf16.gmra.mrb[8].mxu1 %vm219_vm0, %v5420_v18  ;;  %v3460_v18 = vld [vmem:[%s4895_s25 + $0x34] sm:$0xff]  ;;  %s3986_s25 = sshll.u32 %s5692_s13, 4 }
 0x117   : > { %4318 = vmatprep.mubr.msk.bf16.mxu1 %vm219_vm0, %v1678_v51  ;;  %v3472_v54 = vpack.c.bf16 %v3461_v63, %v3460_v18  ;;  %s5660_s24 = scalar_lea.vmem %s5687_s3, %s3986_s25 }
 0x11b   : > { %4491 = vmatmul.mubr.msk.bf16.gmra.mrb[4].mxu0 %vm219_vm0, %v3337_v36 }
 0x11c   : > { %4494 = vmatprep.mubr.msk.bf16.mxu0 %vm219_vm0, %v3338_v46 }
 0x11e   : > { %4319 = vmatmul.mubr.msk.bf16.vlgmr.msra.gmra.mrb[0].mxu1 %vm219_vm0, %v1679_v30 }
 0x11f   : > { %4513 = vmatpush3.bf16.msra.mxu1 %v4836_v21  ;;  %4322 = vmatprep.mubr.msk.bf16.mxu1 %vm219_vm0, %v1680_v4 }
 0x123   : > { %4495 = vmatmul.mubr.msk.bf16.gmra.mrb[8].mxu0 %vm219_vm0, %v3339_v44 }
 0x124   : > { %4500 = vmatprep.mubr.msk.bf16.mxu0 %vm219_vm0, %v3472_v54 }
 0x126   : > { %4323 = vmatmul.mubr.msk.bf16.gmra.mrb[4].mxu1 %vm219_vm0, %v1681_v33 }
 0x127   : > { %4326 = vmatprep.mubr.msk.bf16.mxu1 %vm219_vm0, %v1682_v48 }
 0x12b   : > { %4501 = vmatmul.mubr.msk.bf16.vlgmr.msra.gmra.mrb[0].mxu0 %vm219_vm0, %v3473_v39 }
 0x12c   : > { %4504 = vmatprep.mubr.msk.bf16.mxu0 %vm219_vm0, %v3474_v13 }
 0x12e   : > { %4327 = vmatmul.mubr.msk.bf16.gmra.mrb[8].mxu1 %vm219_vm0, %v1683_v57 }
 0x12f   : > { %4336 = vmatprep.mubr.msk.bf16.mxu1 %vm219_vm0, %v1818_v58 }
 0x133   : > { %4505 = vmatmul.mubr.msk.bf16.gmra.mrb[4].mxu0 %vm219_vm0, %v3475_v53 }
 0x134   : > { %4508 = vmatprep.mubr.msk.bf16.mxu0 %vm219_vm0, %v3476_v27 }
 0x136   : > { %4337 = vmatmul.mubr.msk.bf16.vlgmr.msra.gmra.mrb[4].mxu1 %vm219_vm0, %v1819_v41 }
 0x137   : > { %4340 = vmatprep.mubr.msk.bf16.mxu1 %vm219_vm0, %v1820_v50 }
 0x13b   : > { %4509 = vmatmul.mubr.msk.bf16.gmra.mrb[8].mxu0 %vm219_vm0, %v3477_v35 }
 0x13e   : > { %4341 = vmatmul.mubr.msk.bf16.gmra.mrb[8].mxu1 %vm219_vm0, %v1821_v24 }
 0x1f1   : > { %v4320_v49 = vpop.f32.mrb[0].mxu1 }
 0x1f2   : > { %v1745_v9 = vpop.f32.mrb[1].mxu1 }
 0x1f3   : > { %v4321_v29 = vpop.f32.mrb[2].mxu1 }
 0x1f4   : > { %v1748_v17 = vpop.f32.mrb[3].mxu1 }
 0x1fe   : > { %v4502_v61 = vpop.f32.mrb[0].mxu0 }
 0x1ff   : > { %v4514_v3 = vadd.f32 %v4502_v61, %v4320_v49  ;;  %v3539_v5 = vpop.f32.mrb[1].mxu0 }
 0x200   : > { %v4515_v34 = vadd.f32 %v3539_v5, %v1745_v9  ;;  %v4503_v43 = vpop.f32.mrb[2].mxu0 }
 0x201   : > { %v3607_v42 = vadd.f32 %v4514_v3, %v5641_v2  ;;  %v4516_v62 = vadd.f32 %v4503_v43, %v4321_v29  ;;  %v3542_v1 = vpop.f32.mrb[3].mxu0 }
 0x202   : > { %v3605_v60 = vadd.f32 %v4515_v34, %v5641_v2  ;;  %v4517_v38 = vadd.f32 %v3542_v1, %v1748_v17 }
 0x203   : > { %v3619_v51 = vmax.f32 %v3607_v42, 0.0  ;;  %v3608_v12 = vadd.f32 %v4516_v62, %v5641_v2 }
 0x204   : > { %v3617_v15 = vmax.f32 %v3605_v60, 0.0  ;;  %v3606_v25 = vadd.f32 %v4517_v38, %v5641_v2 }
 0x205   : > { %3632 = vst.msk [vmem:[#allocation2 + $0x10] sm:$0xff] %vm3629_vm1, %v3619_v51  ;;  %v3620_v28 = vmax.f32 %v3608_v12, 0.0 }
 0x206   : > { %3630 = vst.msk [vmem:[#allocation2] sm:$0xff] %vm3629_vm1, %v3617_v15  ;;  %v3618_v36 = vmax.f32 %v3606_v25, 0.0  ;;  %v4506_v37 = vpop.f32.mrb[4].mxu0 }
 0x207   : > { %3633 = vst.msk [vmem:[#allocation2 + $0x18] sm:$0xff] %vm3629_vm1, %v3620_v28  ;;  %v3555_v26 = vpop.f32.mrb[5].mxu0 }
 0x208   : > { %3631 = vst.msk [vmem:[#allocation2 + $0x8] sm:$0xff] %vm3629_vm1, %v3618_v36  ;;  %v4507_v46 = vpop.f32.mrb[6].mxu0 }
 0x209   : > { %v3558_v22 = vpop.f32.mrb[7].mxu0  ;;  %v4338_v14 = vpop.f32.mrb[4].mxu1 }
 0x20a   : > { %v4518_v30 = vadd.f32 %v4506_v37, %v4338_v14  ;;  %v1899_v4 = vpop.f32.mrb[5].mxu1 }
 0x20b   : > { %v4519_v10 = vadd.f32 %v3555_v26, %v1899_v4  ;;  %v4339_v16 = vpop.f32.mrb[6].mxu1 }
 0x20c   : > { %v3611_v18 = vadd.f32 %v4518_v30, %v5641_v2  ;;  %v4520_v63 = vadd.f32 %v4507_v46, %v4339_v16  ;;  %v1902_v21 = vpop.f32.mrb[7].mxu1 }
 0x20d   : > { %v3609_v44 = vadd.f32 %v4519_v10, %v5641_v2  ;;  %v4521_v47 = vadd.f32 %v3558_v22, %v1902_v21 }
 0x20e   : > { %v3623_v59 = vmax.f32 %v3611_v18, 0.0  ;;  %v3612_v54 = vadd.f32 %v4520_v63, %v5641_v2  ;;  %v4510_v23 = vpop.f32.mrb[8].mxu0 }
 0x20f   : > { %v3643_v33 = vld [vmem:[#allocation2 + $0x2] ss:$2 sm:$0xf]  ;;  %v3645_v48 = vld [vmem:[#allocation2 + $0x3] ss:$2 sm:$0xf]  ;;  %v3610_v32 = vadd.f32 %v4521_v47, %v5641_v2 }
 0x210   : > { %v3646_v45 = vmax.f32 %v3643_v33, %v3645_v48  ;;  %v3648_v8 = vld [vmem:[#allocation2 + $0xe] ss:$2 sm:$0xf]  ;;  %v3650_v20 = vld [vmem:[#allocation2 + $0xf] ss:$2 sm:$0xf] }
 0x211   : > { %3636 = vst.msk [vmem:[#allocation2 + $0x30] sm:$0xff] %vm3629_vm1, %v3623_v59  ;;  %v3651_v39 = vmax.f32 %v3648_v8, %v3650_v20  ;;  %v3621_v13 = vmax.f32 %v3609_v44, 0.0  ;;  %v3624_v55 = vmax.f32 %v3612_v54, 0.0  ;;  %v3622_v31 = vmax.f32 %v3610_v32, 0.0  ;;  %v3571_v57 = vpop.f32.mrb[9].mxu0  ;;  %v4342_v58 = vpop.f32.mrb[8].mxu1 }
 0x212   : > { %v4511_v11 = vpop.f32.mrb[10].mxu0  ;;  %v4522_v40 = vadd.f32 %v4510_v23, %v4342_v58  ;;  %v1915_v7 = vpop.f32.mrb[9].mxu1 }
 0x213   : > { %v3652_v53 = vmax.f32 %v3646_v45, %v3651_v39  ;;  %3634 = vst.msk [vmem:[#allocation2 + $0x20] sm:$0xff] %vm3629_vm1, %v3621_v13  ;;  %3637 = vst.msk [vmem:[#allocation2 + $0x38] sm:$0xff] %vm3629_vm1, %v3624_v55  ;;  %v3574_v6 = vpop.f32.mrb[11].mxu0  ;;  %v4523_v0 = vadd.f32 %v3571_v57, %v1915_v7  ;;  %v4343_v27 = vpop.f32.mrb[10].mxu1 }
 0x214   : > { %3635 = vst.msk [vmem:[#allocation2 + $0x28] sm:$0xff] %vm3629_vm1, %v3622_v31  ;;  %v3615_v52 = vadd.f32 %v4522_v40, %v5641_v2  ;;  %v4524_v41 = vadd.f32 %v4511_v11, %v4343_v27  ;;  %v1918_v50 = vpop.f32.mrb[11].mxu1 }
 0x215   : > { %3654 = vst.msk [vmem:[%s5660_s24] sm:$0xf] %vm3653_vm2, %v3652_v53  ;;  %v3613_v56 = vadd.f32 %v4523_v0, %v5641_v2  ;;  %v4525_v19 = vadd.f32 %v3574_v6, %v1918_v50 }
 0x216   : > { %v3627_v35 = vmax.f32 %v3615_v52, 0.0  ;;  %v3616_v24 = vadd.f32 %v4524_v41, %v5641_v2 }
 0x217   : > { %v3625_v49 = vmax.f32 %v3613_v56, 0.0  ;;  %v3614_v9 = vadd.f32 %v4525_v19, %v5641_v2 }
 0x218   : > { %3640 = vst.msk [vmem:[#allocation2 + $0x50] sm:$0xff] %vm3629_vm1, %v3627_v35  ;;  %v3628_v29 = vmax.f32 %v3616_v24, 0.0 }
 0x219   : > { %3638 = vst.msk [vmem:[#allocation2 + $0x40] sm:$0xff] %vm3629_vm1, %v3625_v49  ;;  %v3626_v17 = vmax.f32 %v3614_v9, 0.0 }
 0x21a   : > { %v3656_v61 = vld [vmem:[#allocation2 + $0x1a] ss:$2 sm:$0xf]  ;;  %v3658_v3 = vld [vmem:[#allocation2 + $0x1b] ss:$2 sm:$0xf] }
 0x21b   : > { %3641 = vst.msk [vmem:[#allocation2 + $0x58] sm:$0xff] %vm3629_vm1, %v3628_v29  ;;  %3639 = vst.msk [vmem:[#allocation2 + $0x48] sm:$0xff] %vm3629_vm1, %v3626_v17  ;;  %v3661_v5 = vld [vmem:[#allocation2 + $0x26] ss:$2 sm:$0xf]  ;;  %v3659_v43 = vmax.f32 %v3656_v61, %v3658_v3 }
 0x21c   : > { %v3663_v34 = vld [vmem:[#allocation2 + $0x27] ss:$2 sm:$0xf]  ;;  %v3669_v62 = vld [vmem:[#allocation2 + $0x32] ss:$2 sm:$0xf] }
 0x21d   : > { %v3664_v42 = vmax.f32 %v3661_v5, %v3663_v34  ;;  %v3671_v2 = vld [vmem:[#allocation2 + $0x33] ss:$2 sm:$0xf] }
 0x21e   : > { %v3672_v51 = vmax.f32 %v3669_v62, %v3671_v2 }
 0x21f   : > { %v3665_v1 = vmax.f32 %v3659_v43, %v3664_v42 }
 0x220   : > { %v3674_v60 = vld [vmem:[#allocation2 + $0x3e] ss:$2 sm:$0xf]  ;;  %v3676_v38 = vld [vmem:[#allocation2 + $0x3f] ss:$2 sm:$0xf] }
 0x221   : > { %3981 = vst.msk [vmem:[%s5660_s24 + $0x4] sm:$0xf] %vm3653_vm2, %v3665_v1  ;;  %v3677_v12 = vmax.f32 %v3674_v60, %v3676_v38 }
 0x222   : > { %v3687_v15 = vld [vmem:[#allocation2 + $0x56] ss:$2 sm:$0xf]  ;;  %v3689_v25 = vld [vmem:[#allocation2 + $0x57] ss:$2 sm:$0xf] }
 0x223   : > { %v3690_v28 = vmax.f32 %v3687_v15, %v3689_v25  ;;  %v3682_v36 = vld [vmem:[#allocation2 + $0x4a] ss:$2 sm:$0xf]  ;;  %v3684_v37 = vld [vmem:[#allocation2 + $0x4b] ss:$2 sm:$0xf]  ;;  %v3678_v26 = vmax.f32 %v3672_v51, %v3677_v12 }
 0x224   : > { %v3685_v46 = vmax.f32 %v3682_v36, %v3684_v37 }
 0x225   : > { %3982 = vst.msk [vmem:[%s5660_s24 + $0x8] sm:$0xf] %vm3653_vm2, %v3678_v26 }
 0x226   : > { %v3691_v22 = vmax.f32 %v3685_v46, %v3690_v28 }
 0x228   : > { %3983 = vst.msk [vmem:[%s5660_s24 + $0xc] sm:$0xf] %vm3653_vm2, %v3691_v22 }
 0x229 PF: > { %s13_s12 = sadd.s32 1, %s4843_s12  }
 0x22a   : > { %p10_p4 = scmp.ge.s32.totalorder %s13_s12, 4  }
 0x22c   :  { %12 = sbr.rel (!%p10_p4) target bundleno = 1 (0x1), region = 105 }

// kernel: basic_convnet_forward.4
= control target key start
LH: loop header
LB: loop body
LE: loop exit
PB: predicated region body
PF: predicated region fallthrough
CT: control target
= control target key end

     0   :  { %s12473_s12 = smov 0   ;;  %s15308_s0 = inlined_call_operand.vmem [shape: f32[2,404,8], index: 0, kind: input, shape index: {}]   ;;  %s15309_s1 = inlined_call_operand.vmem [shape: bf16[25,8,16], index: 1, kind: input, shape index: {}]   ;;  %s15310_s2 = inlined_call_operand.vmem [shape: f32[1,16], index: 2, kind: input, shape index: {}]   ;;  %s15311_s3 = inlined_call_operand.vmem [shape: f32[2,8,8,16], index: 3, kind: output, shape index: {}]  }
   0x1 LB: > { %s9329_s13 = sadd.s32 4294967295, %s12451_s12   ;;  %p9333_p0 = scmp.ge.s32.totalorder %s12451_s12, 1  ;;  %s12451_s12 = sphi %s12473_s12, %s13_s12  }
   0x2   : > { %p137_p1 = scmp.lt.s32.totalorder %s12451_s12, 3 }
   0x4   : > { %p138_p2 = pnand %p9333_p0, %p137_p1 }
   0x6   : > { %141 = sbr.rel (%p138_p2) target bundleno = 1252 (0x4e4), region = 32 }
   0xd   : > { %v9337_v0 = vld [vmem:[%s15309_s1 + $0x4] sm:$0xf]  ;;  %vm356_vm0 = vcmask 1043456   ;;  %v9588_v1 = vld [vmem:[%s15309_s1 + $0x30] sm:$0xf]  ;;  %p161_p3 = scmp.lt.s32.totalorder %s9329_s13, 1 }
   0xe   : > { %12409 = vmatprep.subr.msk.bf16.mxu1 %vm356_vm0, %v9337_v0  ;;  %12421 = vmatprep.subr.msk.bf16.mxu0 %vm356_vm0, %v9588_v1  ;;  %v358_v2 = vsel %vm356_vm0, %v9337_v0, 0  ;;  %v12491_v3 = vsel %vm356_vm0, %v9588_v1, 0  ;;  %v232_v4 = vld [vmem:[%s15309_s1] sm:$0xf]  ;;  %v9609_v5 = vld [vmem:[%s15309_s1 + $0x34] sm:$0xf] }
   0xf   : > { %15429 = vst [vmem:[#allocation3_spill] sm:$0xff] %v12491_v3  ;;  %10398 = vmatpush3.bf16.msra.mxu1 %v358_v2  ;;  %10902 = vmatpush3.bf16.msra.mxu0 %v12491_v3  ;;  %s15673_s13 = smov (!%p161_p3, %s9329_s13), 1  ;;  %vm295_vm1 = vcmask 64512   ;;  %v614_v15 = vsel %vm356_vm0, %v232_v4, 0  ;;  %v4870_v20 = vsel %vm356_vm0, %v9609_v5, 0  ;;  %vm9130_vm2 = vcmask 130048  }
  0x10   : > { %12410 = vmatprep.subr.msk.bf16.mxu1 %vm356_vm0, %v232_v4  ;;  %12423 = vmatprep.subr.msk.bf16.mxu0 %vm356_vm0, %v9609_v5  ;;  %s12435_s22 = smul.u32 408, %s15673_s13  ;;  %v12548_v26 = vld [vmem:[%s15309_s1 + $0x38] sm:$0xf]  ;;  %v12553_v27 = vld [vmem:[%s15309_s1 + $0x8] sm:$0xf] }
  0x12   : > { %s12508_s25 = scalar_lea.vmem %s15308_s0, %s12435_s22  ;;  %s9871_s22 = sshll.u32 %s15673_s13, 6 }
  0x13   : > { %v233_v6 = vld [vmem:[%s12508_s25 + $0x1] sm:$0xff]  ;;  %v234_v7 = vld [vmem:[%s12508_s25 + $0x9] sm:$0xff]  ;;  %v12516_v10 = vld [vmem:[%s12508_s25 + $0x32] sm:$0xff]  ;;  %s15221_s26 = scalar_lea.vmem %s15311_s3, %s9871_s22 }
  0x14   : > { %v12513_v8 = vld [vmem:[%s12508_s25 + $0x2a] sm:$0xff]  ;;  %v273_v9 = vpack.c.bf16 %v234_v7, %v233_v6  ;;  %v236_v12 = vld [vmem:[%s12508_s25 + $0x19] sm:$0xff]  ;;  %v12527_v17 = vld [vmem:[%s12508_s25 + $0x42] sm:$0xff] }
  0x15   : > { %v235_v11 = vld [vmem:[%s12508_s25 + $0x11] sm:$0xff]  ;;  %v4429_v13 = vpack.c.bf16 %v12516_v10, %v12513_v8  ;;  %v12524_v16 = vld [vmem:[%s12508_s25 + $0x3a] sm:$0xff]  ;;  %v238_v21 = vld [vmem:[%s12508_s25 + $0x29] sm:$0xff] }
  0x16   : > { %v274_v14 = vpack.c.bf16 %v236_v12, %v235_v11  ;;  %v237_v18 = vld [vmem:[%s12508_s25 + $0x21] sm:$0xff]  ;;  %10399 = vmatprep.mubr.msk.bf16.mxu1 %vm295_vm1, %v273_v9  ;;  %v4430_v19 = vpack.c.bf16 %v12527_v17, %v12524_v16  ;;  %v12536_v22 = vld [vmem:[%s12508_s25 + $0x4a] sm:$0xff]  ;;  %v12539_v23 = vld [vmem:[%s12508_s25 + $0x52] sm:$0xff] }
  0x17   : > { %10903 = vmatprep.mubr.msk.bf16.mxu0 %vm295_vm1, %v4429_v13  ;;  %v275_v24 = vpack.c.bf16 %v238_v21, %v237_v18  ;;  %v4431_v25 = vpack.c.bf16 %v12539_v23, %v12536_v22  ;;  %v239_v28 = vld [vmem:[%s12508_s25 + $0x31] sm:$0xff]  ;;  %v240_v29 = vld [vmem:[%s12508_s25 + $0x39] sm:$0xff]  ;;  %v12563_v31 = vld [vmem:[%s12508_s25 + $0x62] sm:$0xff] }
  0x18   : > { %10400 = vmatmul.mubr.msk.bf16.vlgmr.msra.gmra.mrb[0].mxu1 %vm295_vm1, %v274_v14  ;;  %10904 = vmatmul.mubr.msk.bf16.vlgmr.msra.gmra.mrb[0].mxu0 %vm295_vm1, %v4430_v19  ;;  %v12559_v30 = vld [vmem:[%s12508_s25 + $0x5a] sm:$0xff]  ;;  %v242_v33 = vld [vmem:[%s12508_s25 + $0x49] sm:$0xff]  ;;  %v12572_v35 = vld [vmem:[%s12508_s25 + $0x72] sm:$0xff]  ;;  %v276_v36 = vpack.c.bf16 %v240_v29, %v239_v28 }
  0x19   : > { %10440 = vmatpush3.bf16.msra.mxu1 %v614_v15  ;;  %10944 = vmatpush3.bf16.msra.mxu0 %v4870_v20  ;;  %v241_v32 = vld [vmem:[%s12508_s25 + $0x41] sm:$0xff]  ;;  %v12569_v34 = vld [vmem:[%s12508_s25 + $0x6a] sm:$0xff]  ;;  %v4432_v37 = vpack.c.bf16 %v12563_v31, %v12559_v30  ;;  %v244_v41 = vld [vmem:[%s12508_s25 + $0x59] sm:$0xff] }
  0x1a   : > { %10403 = vmatprep.mubr.msk.bf16.mxu1 %vm295_vm1, %v275_v24  ;;  %10907 = vmatprep.mubr.msk.bf16.mxu0 %vm295_vm1, %v4431_v25  ;;  %v277_v38 = vpack.c.bf16 %v242_v33, %v241_v32  ;;  %v4433_v39 = vpack.c.bf16 %v12572_v35, %v12569_v34  ;;  %v243_v40 = vld [vmem:[%s12508_s25 + $0x51] sm:$0xff]  ;;  %v12588_v42 = vld [vmem:[%s12508_s25 + $0x7a] sm:$0xff]  ;;  %v12592_v43 = vld [vmem:[%s12508_s25 + $0x82] sm:$0xff] }
  0x1b   : > { %12424 = vmatprep.subr.msk.bf16.mxu0 %vm356_vm0, %v12548_v26  ;;  %12411 = vmatprep.subr.msk.bf16.mxu1 %vm356_vm0, %v12553_v27  ;;  %v245_v44 = vld [vmem:[%s12508_s25 + $0x61] sm:$0xff]  ;;  %v246_v45 = vld [vmem:[%s12508_s25 + $0x69] sm:$0xff]  ;;  %v12600_v47 = vld [vmem:[%s12508_s25 + $0x92] sm:$0xff]  ;;  %v278_v48 = vpack.c.bf16 %v244_v41, %v243_v40  ;;  %v4434_v49 = vpack.c.bf16 %v12592_v43, %v12588_v42 }
  0x1c   : > { %v12597_v46 = vld [vmem:[%s12508_s25 + $0x8a] sm:$0xff]  ;;  %v279_v50 = vpack.c.bf16 %v246_v45, %v245_v44  ;;  %v248_v53 = vld [vmem:[%s12508_s25 + $0x79] sm:$0xff]  ;;  %v12616_v55 = vld [vmem:[%s12508_s25 + $0xa2] sm:$0xff] }
  0x1d   : > { %v4435_v51 = vpack.c.bf16 %v12600_v47, %v12597_v46  ;;  %v247_v52 = vld [vmem:[%s12508_s25 + $0x71] sm:$0xff]  ;;  %v12612_v54 = vld [vmem:[%s12508_s25 + $0x9a] sm:$0xff]  ;;  %v250_v57 = vld [vmem:[%s12508_s25 + $0x89] sm:$0xff] }
  0x1e   : > { %v249_v56 = vld [vmem:[%s12508_s25 + $0x81] sm:$0xff]  ;;  %v12621_v58 = vld [vmem:[%s12508_s25 + $0xaa] sm:$0xff]  ;;  %v12624_v59 = vld [vmem:[%s12508_s25 + $0xb2] sm:$0xff]  ;;  %v280_v60 = vpack.c.bf16 %v248_v53, %v247_v52  ;;  %v4436_v61 = vpack.c.bf16 %v12616_v55, %v12612_v54 }
  0x1f   : > { %v281_v62 = vpack.c.bf16 %v250_v57, %v249_v56  ;;  %v4437_v63 = vpack.c.bf16 %v12624_v59, %v12621_v58  ;;  %v251_v0 = vld [vmem:[%s12508_s25 + $0x91] sm:$0xff]  ;;  %v252_v1 = vld [vmem:[%s12508_s25 + $0x99] sm:$0xff]  ;;  %v12640_v4 = vld [vmem:[%s12508_s25 + $0xc2] sm:$0xff] }
  0x20   : > { %10404 = vmatmul.mubr.msk.bf16.gmra.mrb[4].mxu1 %vm295_vm1, %v276_v36  ;;  %10908 = vmatmul.mubr.msk.bf16.gmra.mrb[4].mxu0 %vm295_vm1, %v4432_v37  ;;  %v12636_v2 = vld [vmem:[%s12508_s25 + $0xba] sm:$0xff]  ;;  %v254_v6 = vld [vmem:[%s12508_s25 + $0xa9] sm:$0xff]  ;;  %v282_v11 = vpack.c.bf16 %v252_v1, %v251_v0  ;;  %v255_v15 = vld [vmem:[%s12508_s25 + $0xb1] sm:$0xff] }
  0x21   : > { %10407 = vmatprep.mubr.msk.bf16.mxu1 %vm295_vm1, %v277_v38  ;;  %10911 = vmatprep.mubr.msk.bf16.mxu0 %vm295_vm1, %v4433_v39  ;;  %v253_v5 = vld [vmem:[%s12508_s25 + $0xa1] sm:$0xff]  ;;  %v12645_v7 = vld [vmem:[%s12508_s25 + $0x2b] sm:$0xff]  ;;  %v12648_v9 = vld [vmem:[%s12508_s25 + $0x33] sm:$0xff]  ;;  %v4438_v12 = vpack.c.bf16 %v12640_v4, %v12636_v2  ;;  %v5228_v38 = vsel %vm356_vm0, %v12548_v26, 0 }
  0x22   : > { %v283_v13 = vpack.c.bf16 %v254_v6, %v253_v5  ;;  %v4787_v14 = vpack.c.bf16 %v12648_v9, %v12645_v7  ;;  %v256_v18 = vld [vmem:[%s12508_s25 + $0xb9] sm:$0xff]  ;;  %v12664_v20 = vld [vmem:[%s12508_s25 + $0x43] sm:$0xff]  ;;  %v12671_v28 = vld [vmem:[%s12508_s25 + $0x4b] sm:$0xff] }
  0x23   : > { %v12660_v19 = vld [vmem:[%s12508_s25 + $0x3b] sm:$0xff]  ;;  %v258_v24 = vld [vmem:[%s12508_s25 + $0xc9] sm:$0xff]  ;;  %v12674_v29 = vld [vmem:[%s12508_s25 + $0x53] sm:$0xff]  ;;  %v284_v32 = vpack.c.bf16 %v256_v18, %v255_v15 }
  0x24   : > { %v257_v21 = vld [vmem:[%s12508_s25 + $0xc1] sm:$0xff]  ;;  %v4788_v33 = vpack.c.bf16 %v12664_v20, %v12660_v19  ;;  %v4789_v37 = vpack.c.bf16 %v12674_v29, %v12671_v28  ;;  %v12686_v39 = vld [vmem:[%s15309_s1 + $0x3c] sm:$0xf]  ;;  %v259_v40 = vld [vmem:[%s12508_s25 + $0xd1] sm:$0xff] }
  0x25   : > { %v285_v36 = vpack.c.bf16 %v258_v24, %v257_v21  ;;  %v260_v41 = vld [vmem:[%s12508_s25 + $0xd9] sm:$0xff]  ;;  %v12699_v26 = vld [vmem:[%s12508_s25 + $0x63] sm:$0xff]  ;;  %v267_v24 = vld [vmem:[%s12508_s25 + $0x111] sm:$0xff] }
  0x26   : > { %v12693_v44 = vld [vmem:[%s12508_s25 + $0x5b] sm:$0xff]  ;;  %v12709_v52 = vld [vmem:[%s12508_s25 + $0x73] sm:$0xff]  ;;  %v286_v53 = vpack.c.bf16 %v260_v41, %v259_v40  ;;  %v12729_v1 = vld [vmem:[%s12508_s25 + $0x83] sm:$0xff] }
  0x27   : > { %v4790_v56 = vpack.c.bf16 %v12699_v26, %v12693_v44  ;;  %v265_v5 = vld [vmem:[%s12508_s25 + $0x101] sm:$0xff]  ;;  %v266_v6 = vld [vmem:[%s12508_s25 + $0x109] sm:$0xff]  ;;  %v183_v45 = vld [vmem:[%s12508_s25 + $0x58] sm:$0xff] }
  0x28   : > { %10408 = vmatmul.mubr.msk.bf16.gmra.mrb[8].mxu1 %vm295_vm1, %v278_v48  ;;  %10912 = vmatmul.mubr.msk.bf16.gmra.mrb[8].mxu0 %vm295_vm1, %v4434_v49  ;;  %v261_v48 = vld [vmem:[%s12508_s25 + $0xe1] sm:$0xff]  ;;  %v262_v49 = vld [vmem:[%s12508_s25 + $0xe9] sm:$0xff]  ;;  %v289_v18 = vpack.c.bf16 %v266_v6, %v265_v5 }
  0x29   : > { %10411 = vmatprep.mubr.msk.bf16.mxu1 %vm295_vm1, %v279_v50  ;;  %10915 = vmatprep.mubr.msk.bf16.mxu0 %vm295_vm1, %v4435_v51  ;;  %v12706_v51 = vld [vmem:[%s12508_s25 + $0x6b] sm:$0xff]  ;;  %v287_v57 = vpack.c.bf16 %v262_v49, %v261_v48  ;;  %v12767_v49 = vld [vmem:[%s12508_s25 + $0xb3] sm:$0xff]  ;;  %v12779_v5 = vld [vmem:[%s12508_s25 + $0xbb] sm:$0xff] }
  0x2a   : > { %v270_v40 = vld [vmem:[%s12508_s25 + $0x129] sm:$0xff]  ;;  %v12864_v25 = vld [vmem:[%s12508_s25 + $0x11b] sm:$0xff] }
  0x2b   : > { %v12764_v48 = vld [vmem:[%s12508_s25 + $0xab] sm:$0xff]  ;;  %15441 = vst [vmem:[#allocation15_spill] sm:$0xff] %v12864_v25 }
  0x2c   : > { %v182_v50 = vld [vmem:[%s12508_s25 + $0x50] sm:$0xff] }
  0x30   : > { %10412 = vmatmul.mubr.msk.bf16.gmra.mrb[12].mxu1 %vm295_vm1, %v280_v60  ;;  %10916 = vmatmul.mubr.msk.bf16.gmra.mrb[12].mxu0 %vm295_vm1, %v4436_v61  ;;  %v4791_v60 = vpack.c.bf16 %v12709_v52, %v12706_v51  ;;  %v263_v61 = vld [vmem:[%s12508_s25 + $0xf1] sm:$0xff] }
  0x31   : > { %10415 = vmatprep.mubr.msk.bf16.mxu1 %vm295_vm1, %v281_v62  ;;  %10919 = vmatprep.mubr.msk.bf16.mxu0 %vm295_vm1, %v4437_v63  ;;  %v264_v62 = vld [vmem:[%s12508_s25 + $0xf9] sm:$0xff] }
  0x32   : > { %v12723_v63 = vld [vmem:[%s12508_s25 + $0x7b] sm:$0xff] }
  0x33   : > { %v4792_v15 = vpack.c.bf16 %v12729_v1, %v12723_v63 }
  0x38   : > { %10416 = vmatmul.mubr.msk.bf16.gmra.mrb[16].mxu1 %vm295_vm1, %v282_v11  ;;  %10920 = vmatmul.mubr.msk.bf16.gmra.mrb[16].mxu0 %vm295_vm1, %v4438_v12  ;;  %v12736_v12 = vld [vmem:[%s12508_s25 + $0x8b] sm:$0xff]  ;;  %v12837_v11 = vld [vmem:[%s12508_s25 + $0xfb] sm:$0xff] }
  0x39   : > { %10419 = vmatprep.mubr.msk.bf16.mxu1 %vm295_vm1, %v283_v13  ;;  %10945 = vmatprep.mubr.msk.bf16.mxu0 %vm295_vm1, %v4787_v14  ;;  %v12739_v13 = vld [vmem:[%s12508_s25 + $0x93] sm:$0xff]  ;;  %v288_v14 = vpack.c.bf16 %v264_v62, %v263_v61  ;;  %15437 = vst [vmem:[#allocation11_spill] sm:$0xff] %v12837_v11 }
  0x3a   : > { %v4793_v21 = vpack.c.bf16 %v12739_v13, %v12736_v12  ;;  %v271_v61 = vld [vmem:[%s12508_s25 + $0x131] sm:$0xff]  ;;  %v272_v62 = vld [vmem:[%s12508_s25 + $0x139] sm:$0xff] }
  0x40   : > { %10420 = vmatmul.mubr.msk.bf16.gmra.mrb[20].mxu1 %vm295_vm1, %v284_v32  ;;  %10946 = vmatmul.mubr.msk.bf16.vlgmr.msra.gmra.mrb[0].mxu0 %vm295_vm1, %v4788_v33  ;;  %v268_v32 = vld [vmem:[%s12508_s25 + $0x119] sm:$0xff] }
  0x41   : > { %10423 = vmatprep.mubr.msk.bf16.mxu1 %vm295_vm1, %v285_v36  ;;  %10986 = vmatpush3.bf16.msra.mxu0 %v5228_v38  ;;  %v12751_v33 = vld [vmem:[%s12508_s25 + $0x9b] sm:$0xff]  ;;  %v12831_v36 = vld [vmem:[%s15309_s1 + $0xc] sm:$0xf] }
  0x42   : > { %10949 = vmatprep.mubr.msk.bf16.mxu0 %vm295_vm1, %v4789_v37  ;;  %12425 = vmatprep.subr.msk.bf16.mxu0 %vm356_vm0, %v12686_v39  ;;  %v12757_v37 = vld [vmem:[%s12508_s25 + $0xa3] sm:$0xff] }
  0x43   : > { %v269_v38 = vld [vmem:[%s12508_s25 + $0x121] sm:$0xff] }
  0x48   : > { %10424 = vmatmul.mubr.msk.bf16.gmra.mrb[24].mxu1 %vm295_vm1, %v286_v53  ;;  %10950 = vmatmul.mubr.msk.bf16.gmra.mrb[4].mxu0 %vm295_vm1, %v4790_v56  ;;  %v290_v53 = vpack.c.bf16 %v268_v32, %v267_v24  ;;  %v4794_v56 = vpack.c.bf16 %v12757_v37, %v12751_v33  ;;  %v12792_v24 = vld [vmem:[%s12508_s25 + $0xcb] sm:$0xff]  ;;  %v12795_v32 = vld [vmem:[%s12508_s25 + $0xd3] sm:$0xff] }
  0x49   : > { %10427 = vmatprep.mubr.msk.bf16.mxu1 %vm295_vm1, %v287_v57  ;;  %10953 = vmatprep.mubr.msk.bf16.mxu0 %vm295_vm1, %v4791_v60  ;;  %v291_v57 = vpack.c.bf16 %v270_v40, %v269_v38  ;;  %v4795_v60 = vpack.c.bf16 %v12767_v49, %v12764_v48  ;;  %15431 = vst [vmem:[#allocation5_spill] sm:$0xff] %v12792_v24  ;;  %15432 = vst [vmem:[#allocation6_spill] sm:$0xff] %v12795_v32 }
  0x4a   : > { %v292_v38 = vpack.c.bf16 %v272_v62, %v271_v61  ;;  %v12811_v61 = vld [vmem:[%s12508_s25 + $0xe3] sm:$0xff] }
  0x4b   : > { %15434 = vst [vmem:[#allocation8_spill] sm:$0xff] %v12811_v61  ;;  %v176_v62 = vld [vmem:[%s12508_s25 + $0x20] sm:$0xff] }
  0x50   : > { %10428 = vmatmul.mubr.msk.bf16.gmra.mrb[28].mxu1 %vm295_vm1, %v288_v14  ;;  %10954 = vmatmul.mubr.msk.bf16.gmra.mrb[8].mxu0 %vm295_vm1, %v4792_v15  ;;  %v12785_v14 = vld [vmem:[%s12508_s25 + $0xc3] sm:$0xff] }
  0x51   : > { %10431 = vmatprep.mubr.msk.bf16.mxu1 %vm295_vm1, %v289_v18  ;;  %10957 = vmatprep.mubr.msk.bf16.mxu0 %vm295_vm1, %v4793_v21  ;;  %15430 = vst [vmem:[#allocation4_spill] sm:$0xff] %v12785_v14  ;;  %v172_v15 = vld [vmem:[%s12508_s25] sm:$0xff]  ;;  %v173_v18 = vld [vmem:[%s12508_s25 + $0x8] sm:$0xff]  ;;  %v4796_v40 = vpack.c.bf16 %v12785_v14, %v12779_v5  ;;  %v13108_v14 = vld [vmem:[%s15309_s1 + $0x10] sm:$0xf] }
  0x52   : > { %v12808_v21 = vld [vmem:[%s12508_s25 + $0xdb] sm:$0xff] }
  0x53   : > { %15433 = vst [vmem:[#allocation7_spill] sm:$0xff] %v12808_v21 }
  0x58   : > { %10432 = vmatmul.mubr.msk.bf16.gmra.mrb[32].mxu1 %vm295_vm1, %v290_v53  ;;  %10958 = vmatmul.mubr.msk.bf16.gmra.mrb[12].mxu0 %vm295_vm1, %v4794_v56  ;;  %v212_v53 = vpack.c.bf16 %v173_v18, %v172_v15  ;;  %v4797_v56 = vpack.c.bf16 %v12795_v32, %v12792_v24  ;;  %v177_v15 = vld [vmem:[%s12508_s25 + $0x28] sm:$0xff]  ;;  %v811_v32 = vld [vmem:[%s12508_s25 + $0x12] sm:$0xff]  ;;  %v812_v24 = vld [vmem:[%s12508_s25 + $0x1a] sm:$0xff] }
  0x59   : > { %10435 = vmatprep.mubr.msk.bf16.mxu1 %vm295_vm1, %v291_v57  ;;  %10961 = vmatprep.mubr.msk.bf16.mxu0 %vm295_vm1, %v4795_v60  ;;  %v174_v57 = vld [vmem:[%s12508_s25 + $0x10] sm:$0xff]  ;;  %v175_v60 = vld [vmem:[%s12508_s25 + $0x18] sm:$0xff]  ;;  %v214_v6 = vpack.c.bf16 %v177_v15, %v176_v62  ;;  %v180_v62 = vld [vmem:[%s12508_s25 + $0x40] sm:$0xff] }
  0x5a   : > { %v12816_v18 = vld [vmem:[%s12508_s25 + $0xeb] sm:$0xff] }
  0x5b   : > { %15435 = vst [vmem:[#allocation9_spill] sm:$0xff] %v12816_v18  ;;  %v181_v15 = vld [vmem:[%s12508_s25 + $0x48] sm:$0xff] }
  0x60   : > { %10436 = vmatmul.mubr.msk.bf16.gmra.mrb[36].mxu1 %vm295_vm1, %v292_v38  ;;  %10962 = vmatmul.mubr.msk.bf16.gmra.mrb[16].mxu0 %vm295_vm1, %v4796_v40  ;;  %v12819_v38 = vld [vmem:[%s12508_s25 + $0xf3] sm:$0xff]  ;;  %v213_v40 = vpack.c.bf16 %v175_v60, %v174_v57 }
  0x61   : > { %10441 = vmatprep.mubr.msk.bf16.mxu1 %vm295_vm1, %v212_v53  ;;  %10965 = vmatprep.mubr.msk.bf16.mxu0 %vm295_vm1, %v4797_v56  ;;  %15436 = vst [vmem:[#allocation10_spill] sm:$0xff] %v12819_v38  ;;  %v4798_v53 = vpack.c.bf16 %v12811_v61, %v12808_v21  ;;  %v932_v56 = vsel %vm356_vm0, %v12553_v27, 0  ;;  %v4799_v41 = vpack.c.bf16 %v12819_v38, %v12816_v18  ;;  %v178_v57 = vld [vmem:[%s12508_s25 + $0x30] sm:$0xff]  ;;  %v179_v60 = vld [vmem:[%s12508_s25 + $0x38] sm:$0xff]  ;;  %v12842_v27 = vld [vmem:[%s12508_s25 + $0x103] sm:$0xff] }
  0x62   : > { %15438 = vst [vmem:[#allocation12_spill] sm:$0xff] %v12842_v27  ;;  %v206_v38 = vld [vmem:[%s12508_s25 + $0x110] sm:$0xff]  ;;  %v207_v18 = vld [vmem:[%s12508_s25 + $0x118] sm:$0xff] }
  0x63   : > { %v210_v61 = vld [vmem:[%s12508_s25 + $0x130] sm:$0xff]  ;;  %v211_v21 = vld [vmem:[%s12508_s25 + $0x138] sm:$0xff] }
  0x68   : > { %10442 = vmatmul.mubr.msk.bf16.vlgmr.msra.gmra.mrb[0].mxu1 %vm295_vm1, %v213_v40  ;;  %10966 = vmatmul.mubr.msk.bf16.gmra.mrb[20].mxu0 %vm295_vm1, %v4798_v53  ;;  %v12847_v40 = vld [vmem:[%s12508_s25 + $0x10b] sm:$0xff]  ;;  %v12850_v53 = vld [vmem:[%s12508_s25 + $0x113] sm:$0xff] }
  0x69   : > { %10482 = vmatpush3.bf16.msra.mxu1 %v932_v56  ;;  %10445 = vmatprep.mubr.msk.bf16.mxu1 %vm295_vm1, %v214_v6  ;;  %15439 = vst [vmem:[#allocation13_spill] sm:$0xff] %v12847_v40  ;;  %15440 = vst [vmem:[#allocation14_spill] sm:$0xff] %v12850_v53  ;;  %v215_v6 = vpack.c.bf16 %v179_v60, %v178_v57  ;;  %v216_v56 = vpack.c.bf16 %v181_v15, %v180_v62  ;;  %v12868_v57 = vld [vmem:[%s12508_s25 + $0x123] sm:$0xff]  ;;  %v12873_v15 = vld [vmem:[%s12508_s25 + $0x12b] sm:$0xff] }
  0x6a   : > { %10969 = vmatprep.mubr.msk.bf16.mxu0 %vm295_vm1, %v4799_v41  ;;  %12412 = vmatprep.subr.msk.bf16.mxu1 %vm356_vm0, %v12831_v36  ;;  %v4800_v41 = vpack.c.bf16 %v12842_v27, %v12837_v11  ;;  %v4801_v0 = vpack.c.bf16 %v12850_v53, %v12847_v40  ;;  %15442 = vst [vmem:[#allocation16_spill] sm:$0xff] %v12868_v57  ;;  %v184_v60 = vld [vmem:[%s12508_s25 + $0x60] sm:$0xff]  ;;  %v185_v62 = vld [vmem:[%s12508_s25 + $0x68] sm:$0xff]  ;;  %15443 = vst [vmem:[#allocation17_spill] sm:$0xff] %v12873_v15 }
  0x6b   : > { %v218_v3 = vpack.c.bf16 %v185_v62, %v184_v60  ;;  %v186_v53 = vld [vmem:[%s12508_s25 + $0x70] sm:$0xff]  ;;  %v187_v40 = vld [vmem:[%s12508_s25 + $0x78] sm:$0xff]  ;;  %v189_v60 = vld [vmem:[%s12508_s25 + $0x88] sm:$0xff] }
  0x6c   : > { %v12888_v27 = vld [vmem:[%s12508_s25 + $0x13b] sm:$0xff]  ;;  %v4783_v62 = vld [vmem:[%s12508_s25 + $0x14b] sm:$0xff]  ;;  %v4786_v11 = vld [vmem:[%s12508_s25 + $0x163] sm:$0xff] }
  0x6d   : > { %15445 = vst [vmem:[#allocation19_spill] sm:$0xff] %v12888_v27 }
  0x70   : > { %10446 = vmatmul.mubr.msk.bf16.gmra.mrb[4].mxu1 %vm295_vm1, %v215_v6  ;;  %10970 = vmatmul.mubr.msk.bf16.gmra.mrb[24].mxu0 %vm295_vm1, %v4800_v41  ;;  %v12876_v6 = vld [vmem:[%s12508_s25 + $0x133] sm:$0xff]  ;;  %v217_v41 = vpack.c.bf16 %v183_v45, %v182_v50  ;;  %v4782_v45 = vld [vmem:[%s12508_s25 + $0x143] sm:$0xff] }
  0x71   : > { %10449 = vmatprep.mubr.msk.bf16.mxu1 %vm295_vm1, %v216_v56  ;;  %10973 = vmatprep.mubr.msk.bf16.mxu0 %vm295_vm1, %v4801_v0  ;;  %15444 = vst [vmem:[#allocation18_spill] sm:$0xff] %v12876_v6  ;;  %v4802_v56 = vpack.c.bf16 %v12868_v57, %v12864_v25  ;;  %v4803_v0 = vpack.c.bf16 %v12876_v6, %v12873_v15  ;;  %v188_v50 = vld [vmem:[%s12508_s25 + $0x80] sm:$0xff]  ;;  %v191_v57 = vld [vmem:[%s12508_s25 + $0x98] sm:$0xff] }
  0x72   : > { %v220_v6 = vpack.c.bf16 %v189_v60, %v188_v50  ;;  %v4785_v25 = vld [vmem:[%s12508_s25 + $0x15b] sm:$0xff] }
  0x73   : > { %v12911_v50 = vld [vmem:[%s12508_s25 + $0x34] sm:$0xff]  ;;  %v4806_v60 = vpack.c.bf16 %v4786_v11, %v4785_v25  ;;  %v196_v25 = vld [vmem:[%s12508_s25 + $0xc0] sm:$0xff]  ;;  %v197_v11 = vld [vmem:[%s12508_s25 + $0xc8] sm:$0xff] }
  0x74   : > { %15447 = vst [vmem:[#allocation21_spill] sm:$0xff] %v12911_v50 }
  0x78   : > { %10450 = vmatmul.mubr.msk.bf16.gmra.mrb[8].mxu1 %vm295_vm1, %v217_v41  ;;  %10974 = vmatmul.mubr.msk.bf16.gmra.mrb[28].mxu0 %vm295_vm1, %v4802_v56  ;;  %v4784_v41 = vld [vmem:[%s12508_s25 + $0x153] sm:$0xff]  ;;  %v4804_v56 = vpack.c.bf16 %v4782_v45, %v12888_v27 }
  0x79   : > { %10453 = vmatprep.mubr.msk.bf16.mxu1 %vm295_vm1, %v218_v3  ;;  %10977 = vmatprep.mubr.msk.bf16.mxu0 %vm295_vm1, %v4803_v0  ;;  %v219_v3 = vpack.c.bf16 %v187_v40, %v186_v53  ;;  %v4805_v15 = vpack.c.bf16 %v4784_v41, %v4783_v62  ;;  %v190_v0 = vld [vmem:[%s12508_s25 + $0x90] sm:$0xff]  ;;  %v192_v40 = vld [vmem:[%s12508_s25 + $0xa0] sm:$0xff]  ;;  %v193_v53 = vld [vmem:[%s12508_s25 + $0xa8] sm:$0xff] }
  0x7a   : > { %v12908_v45 = vld [vmem:[%s12508_s25 + $0x2c] sm:$0xff]  ;;  %v222_v62 = vpack.c.bf16 %v193_v53, %v192_v40  ;;  %v12933_v40 = vld [vmem:[%s12508_s25 + $0x54] sm:$0xff] }
  0x7b   : > { %15446 = vst [vmem:[#allocation20_spill] sm:$0xff] %v12908_v45  ;;  %v5145_v41 = vpack.c.bf16 %v12911_v50, %v12908_v45  ;;  %15451 = vst [vmem:[#allocation25_spill] sm:$0xff] %v12933_v40  ;;  %v202_v45 = vld [vmem:[%s12508_s25 + $0xf0] sm:$0xff]  ;;  %v203_v27 = vld [vmem:[%s12508_s25 + $0xf8] sm:$0xff] }
  0x80   : > { %10454 = vmatmul.mubr.msk.bf16.gmra.mrb[12].mxu1 %vm295_vm1, %v219_v3  ;;  %10978 = vmatmul.mubr.msk.bf16.gmra.mrb[32].mxu0 %vm295_vm1, %v4804_v56  ;;  %v195_v3 = vld [vmem:[%s12508_s25 + $0xb8] sm:$0xff] }
  0x81   : > { %10457 = vmatprep.mubr.msk.bf16.mxu1 %vm295_vm1, %v220_v6  ;;  %10981 = vmatprep.mubr.msk.bf16.mxu0 %vm295_vm1, %v4805_v15  ;;  %v221_v6 = vpack.c.bf16 %v191_v57, %v190_v0  ;;  %v194_v15 = vld [vmem:[%s12508_s25 + $0xb0] sm:$0xff]  ;;  %v12921_v56 = vld [vmem:[%s12508_s25 + $0x3c] sm:$0xff]  ;;  %v12925_v57 = vld [vmem:[%s12508_s25 + $0x44] sm:$0xff] }
  0x82   : > { %15448 = vst [vmem:[#allocation22_spill] sm:$0xff] %v12921_v56  ;;  %15449 = vst [vmem:[#allocation23_spill] sm:$0xff] %v12925_v57  ;;  %v12930_v0 = vld [vmem:[%s12508_s25 + $0x4c] sm:$0xff]  ;;  %v223_v53 = vpack.c.bf16 %v195_v3, %v194_v15  ;;  %v12949_v15 = vld [vmem:[%s15309_s1 + $0x40] sm:$0xf] }
  0x83   : > { %15450 = vst [vmem:[#allocation24_spill] sm:$0xff] %v12930_v0  ;;  %v198_v3 = vld [vmem:[%s12508_s25 + $0xd0] sm:$0xff] }
  0x88   : > { %10458 = vmatmul.mubr.msk.bf16.gmra.mrb[16].mxu1 %vm295_vm1, %v221_v6  ;;  %10982 = vmatmul.mubr.msk.bf16.gmra.mrb[36].mxu0 %vm295_vm1, %v4806_v60  ;;  %v12937_v6 = vpack.c.bf16 %v12925_v57, %v12921_v56  ;;  %v224_v60 = vpack.c.bf16 %v197_v11, %v196_v25  ;;  %v199_v25 = vld [vmem:[%s12508_s25 + $0xd8] sm:$0xff] }
  0x89   : > { %10461 = vmatprep.mubr.msk.bf16.mxu1 %vm295_vm1, %v222_v62  ;;  %10987 = vmatprep.mubr.msk.bf16.mxu0 %vm295_vm1, %v5145_v41  ;;  %v12941_v62 = vpack.c.bf16 %v12933_v40, %v12930_v0  ;;  %v5586_v41 = vsel %vm356_vm0, %v12686_v39, 0  ;;  %v12957_v11 = vld [vmem:[%s12508_s25 + $0x5c] sm:$0xff]  ;;  %v12962_v39 = vld [vmem:[%s12508_s25 + $0x64] sm:$0xff]  ;;  %v12967_v0 = vld [vmem:[%s12508_s25 + $0x6c] sm:$0xff] }
  0x8a   : > { %15452 = vst [vmem:[#allocation26_spill] sm:$0xff] %v12957_v11  ;;  %15453 = vst [vmem:[#allocation27_spill] sm:$0xff] %v12962_v39  ;;  %v201_v40 = vld [vmem:[%s12508_s25 + $0xe8] sm:$0xff]  ;;  %v12976_v57 = vpack.c.bf16 %v12962_v39, %v12957_v11 }
  0x8b   : > { %15454 = vst [vmem:[#allocation28_spill] sm:$0xff] %v12967_v0 }
  0x90   : > { %10462 = vmatmul.mubr.msk.bf16.gmra.mrb[20].mxu1 %vm295_vm1, %v223_v53  ;;  %10988 = vmatmul.mubr.msk.bf16.vlgmr.msra.gmra.mrb[0].mxu0 %vm295_vm1, %v12937_v6  ;;  %v200_v53 = vld [vmem:[%s12508_s25 + $0xe0] sm:$0xff] }
  0x91   : > { %10465 = vmatprep.mubr.msk.bf16.mxu1 %vm295_vm1, %v224_v60  ;;  %11028 = vmatpush3.bf16.msra.mxu0 %v5586_v41  ;;  %v12970_v60 = vld [vmem:[%s12508_s25 + $0x74] sm:$0xff]  ;;  %v225_v41 = vpack.c.bf16 %v199_v25, %v198_v3  ;;  %v226_v56 = vpack.c.bf16 %v201_v40, %v200_v53  ;;  %v12989_v3 = vld [vmem:[%s12508_s25 + $0x7c] sm:$0xff]  ;;  %v12994_v40 = vld [vmem:[%s12508_s25 + $0x84] sm:$0xff] }
  0x92   : > { %10991 = vmatprep.mubr.msk.bf16.mxu0 %vm295_vm1, %v12941_v62  ;;  %15455 = vst [vmem:[#allocation29_spill] sm:$0xff] %v12970_v60  ;;  %12426 = vmatprep.subr.msk.bf16.mxu0 %vm356_vm0, %v12949_v15  ;;  %v12980_v50 = vpack.c.bf16 %v12970_v60, %v12967_v0  ;;  %15456 = vst [vmem:[#allocation30_spill] sm:$0xff] %v12989_v3  ;;  %v204_v25 = vld [vmem:[%s12508_s25 + $0x100] sm:$0xff]  ;;  %v205_v53 = vld [vmem:[%s12508_s25 + $0x108] sm:$0xff]  ;;  %v227_v60 = vpack.c.bf16 %v203_v27, %v202_v45 }
  0x93   : > { %15457 = vst [vmem:[#allocation31_spill] sm:$0xff] %v12994_v40  ;;  %v13006_v0 = vpack.c.bf16 %v12994_v40, %v12989_v3  ;;  %v228_v39 = vpack.c.bf16 %v205_v53, %v204_v25  ;;  %v13019_v27 = vld [vmem:[%s12508_s25 + $0x9c] sm:$0xff]  ;;  %v13024_v45 = vld [vmem:[%s12508_s25 + $0xa4] sm:$0xff]  ;;  %v13029_v53 = vld [vmem:[%s12508_s25 + $0xac] sm:$0xff] }
  0x94   : > { %15460 = vst [vmem:[#allocation34_spill] sm:$0xff] %v13019_v27  ;;  %15461 = vst [vmem:[#allocation35_spill] sm:$0xff] %v13024_v45  ;;  %v208_v25 = vld [vmem:[%s12508_s25 + $0x120] sm:$0xff] }
  0x95   : > { %15462 = vst [vmem:[#allocation36_spill] sm:$0xff] %v13029_v53 }
  0x98   : > { %10466 = vmatmul.mubr.msk.bf16.gmra.mrb[24].mxu1 %vm295_vm1, %v225_v41  ;;  %10992 = vmatmul.mubr.msk.bf16.gmra.mrb[4].mxu0 %vm295_vm1, %v12976_v57  ;;  %v12999_v41 = vld [vmem:[%s12508_s25 + $0x8c] sm:$0xff] }
  0x99   : > { %10469 = vmatprep.mubr.msk.bf16.mxu1 %vm295_vm1, %v226_v56  ;;  %10995 = vmatprep.mubr.msk.bf16.mxu0 %vm295_vm1, %v12980_v50  ;;  %15458 = vst [vmem:[#allocation32_spill] sm:$0xff] %v12999_v41  ;;  %v13002_v56 = vld [vmem:[%s12508_s25 + $0x94] sm:$0xff] }
  0x9a   : > { %15459 = vst [vmem:[#allocation33_spill] sm:$0xff] %v13002_v56  ;;  %v13010_v11 = vpack.c.bf16 %v13002_v56, %v12999_v41  ;;  %v229_v56 = vpack.c.bf16 %v207_v18, %v206_v38  ;;  %v13036_v41 = vpack.c.bf16 %v13024_v45, %v13019_v27  ;;  %v13049_v18 = vld [vmem:[%s12508_s25 + $0xbc] sm:$0xff]  ;;  %v13054_v38 = vld [vmem:[%s12508_s25 + $0xc4] sm:$0xff] }
  0x9b   : > { %15464 = vst [vmem:[#allocation38_spill] sm:$0xff] %v13049_v18  ;;  %15465 = vst [vmem:[#allocation39_spill] sm:$0xff] %v13054_v38 }
  0xa0   : > { %10470 = vmatmul.mubr.msk.bf16.gmra.mrb[28].mxu1 %vm295_vm1, %v227_v60  ;;  %10996 = vmatmul.mubr.msk.bf16.gmra.mrb[8].mxu0 %vm295_vm1, %v13006_v0  ;;  %v209_v60 = vld [vmem:[%s12508_s25 + $0x128] sm:$0xff] }
  0xa1   : > { %10473 = vmatprep.mubr.msk.bf16.mxu1 %vm295_vm1, %v228_v39  ;;  %10999 = vmatprep.mubr.msk.bf16.mxu0 %vm295_vm1, %v13010_v11  ;;  %v13032_v39 = vld [vmem:[%s12508_s25 + $0xb4] sm:$0xff]  ;;  %v230_v40 = vpack.c.bf16 %v209_v60, %v208_v25  ;;  %v809_v25 = vld [vmem:[%s12508_s25 + $0x2] sm:$0xff]  ;;  %v13059_v60 = vld [vmem:[%s12508_s25 + $0xcc] sm:$0xff] }
  0xa2   : > { %15463 = vst [vmem:[#allocation37_spill] sm:$0xff] %v13032_v39  ;;  %v13040_v3 = vpack.c.bf16 %v13032_v39, %v13029_v53  ;;  %15466 = vst [vmem:[#allocation40_spill] sm:$0xff] %v13059_v60  ;;  %v231_v39 = vpack.c.bf16 %v211_v21, %v210_v61  ;;  %v13066_v53 = vpack.c.bf16 %v13054_v38, %v13049_v18  ;;  %v13081_v21 = vld [vmem:[%s12508_s25 + $0xdc] sm:$0xff]  ;;  %v13084_v61 = vld [vmem:[%s12508_s25 + $0xe4] sm:$0xff] }
  0xa8   : > { %10474 = vmatmul.mubr.msk.bf16.gmra.mrb[32].mxu1 %vm295_vm1, %v229_v56  ;;  %11000 = vmatmul.mubr.msk.bf16.gmra.mrb[12].mxu0 %vm295_vm1, %v13036_v41  ;;  %v810_v56 = vld [vmem:[%s12508_s25 + $0xa] sm:$0xff] }
  0xa9   : > { %10477 = vmatprep.mubr.msk.bf16.mxu1 %vm295_vm1, %v230_v40  ;;  %11003 = vmatprep.mubr.msk.bf16.mxu0 %vm295_vm1, %v13040_v3  ;;  %v13062_v40 = vld [vmem:[%s12508_s25 + $0xd4] sm:$0xff]  ;;  %v849_v45 = vpack.c.bf16 %v810_v56, %v809_v25  ;;  %v813_v25 = vld [vmem:[%s12508_s25 + $0x22] sm:$0xff]  ;;  %v13088_v56 = vld [vmem:[%s12508_s25 + $0xec] sm:$0xff] }
  0xaa   : > { %15467 = vst [vmem:[#allocation41_spill] sm:$0xff] %v13062_v40  ;;  %v13070_v27 = vpack.c.bf16 %v13062_v40, %v13059_v60  ;;  %v850_v40 = vpack.c.bf16 %v812_v24, %v811_v32  ;;  %v1290_v60 = vsel %vm356_vm0, %v12831_v36, 0  ;;  %v851_v38 = vpack.c.bf16 %v12513_v8, %v813_v25  ;;  %v13116_v8 = vld [vmem:[%s12508_s25 + $0xfc] sm:$0xff]  ;;  %v13119_v36 = vld [vmem:[%s12508_s25 + $0x104] sm:$0xff]  ;;  %v13122_v24 = vld [vmem:[%s12508_s25 + $0x10c] sm:$0xff] }
  0xab   : > { %15468 = vst [vmem:[#allocation42_spill] sm:$0xff] %v13122_v24  ;;  %v13125_v32 = vld [vmem:[%s12508_s25 + $0x114] sm:$0xff]  ;;  %v15471_v25 = vpack.c.bf16 %v12536_v22, %v12527_v17  ;;  %v15476_v22 = vpack.c.bf16 %v12559_v30, %v12539_v23 }
  0xac   : > { %15469 = vst [vmem:[#allocation43_spill] sm:$0xff] %v13125_v32  ;;  %v5142_v23 = vld [vmem:[%s12508_s25 + $0x154] sm:$0xff] }
  0xb0   : > { %10478 = vmatmul.mubr.msk.bf16.gmra.mrb[36].mxu1 %vm295_vm1, %v231_v39  ;;  %11004 = vmatmul.mubr.msk.bf16.gmra.mrb[16].mxu0 %vm295_vm1, %v13066_v53  ;;  %v13091_v39 = vld [vmem:[%s12508_s25 + $0xf4] sm:$0xff] }
  0xb1   : > { %10483 = vmatprep.mubr.msk.bf16.mxu1 %vm295_vm1, %v849_v45  ;;  %11007 = vmatprep.mubr.msk.bf16.mxu0 %vm295_vm1, %v13070_v27  ;;  %v13095_v45 = vpack.c.bf16 %v13084_v61, %v13081_v21  ;;  %v13102_v18 = vpack.c.bf16 %v13091_v39, %v13088_v56 }
  0xb8   : > { %10484 = vmatmul.mubr.msk.bf16.vlgmr.msra.gmra.mrb[0].mxu1 %vm295_vm1, %v850_v40  ;;  %11008 = vmatmul.mubr.msk.bf16.gmra.mrb[20].mxu0 %vm295_vm1, %v13095_v45  ;;  %v15470_v40 = vpack.c.bf16 %v12524_v16, %v12516_v10  ;;  %v13156_v10 = vld [vmem:[%s12508_s25 + $0x12c] sm:$0xff]  ;;  %v13159_v16 = vld [vmem:[%s12508_s25 + $0x134] sm:$0xff] }
  0xb9   : > { %10524 = vmatpush3.bf16.msra.mxu1 %v1290_v60  ;;  %10487 = vmatprep.mubr.msk.bf16.mxu1 %vm295_vm1, %v851_v38  ;;  %v13131_v60 = vpack.c.bf16 %v13119_v36, %v13116_v8  ;;  %v13135_v38 = vpack.c.bf16 %v13125_v32, %v13122_v24  ;;  %v13150_v32 = vld [vmem:[%s12508_s25 + $0x11c] sm:$0xff]  ;;  %v13153_v24 = vld [vmem:[%s12508_s25 + $0x124] sm:$0xff]  ;;  %15474 = vst [vmem:[#allocation46_spill] sm:$0xff] %v13156_v10  ;;  %15475 = vst [vmem:[#allocation47_spill] sm:$0xff] %v13159_v16 }
  0xba   : > { %11011 = vmatprep.mubr.msk.bf16.mxu0 %vm295_vm1, %v13102_v18  ;;  %12413 = vmatprep.subr.msk.bf16.mxu1 %vm356_vm0, %v13108_v14  ;;  %15472 = vst [vmem:[#allocation44_spill] sm:$0xff] %v13150_v32  ;;  %15473 = vst [vmem:[#allocation45_spill] sm:$0xff] %v13153_v24  ;;  %v13167_v17 = vpack.c.bf16 %v13159_v16, %v13156_v10  ;;  %v5140_v16 = vld [vmem:[%s12508_s25 + $0x144] sm:$0xff]  ;;  %v5141_v10 = vld [vmem:[%s12508_s25 + $0x14c] sm:$0xff] }
  0xc0   : > { %10488 = vmatmul.mubr.msk.bf16.gmra.mrb[4].mxu1 %vm295_vm1, %v15470_v40  ;;  %11012 = vmatmul.mubr.msk.bf16.gmra.mrb[24].mxu0 %vm295_vm1, %v13131_v60  ;;  %v13163_v40 = vpack.c.bf16 %v13153_v24, %v13150_v32  ;;  %v13182_v24 = vld [vmem:[%s12508_s25 + $0x13c] sm:$0xff]  ;;  %v15478_v32 = vpack.c.bf16 %v12588_v42, %v12572_v35  ;;  %v15480_v35 = vpack.c.bf16 %v12612_v54, %v12600_v47  ;;  %v5944_v47 = vsel %vm356_vm0, %v12949_v15, 0 }
  0xc1   : > { %10491 = vmatprep.mubr.msk.bf16.mxu1 %vm295_vm1, %v15471_v25  ;;  %11015 = vmatprep.mubr.msk.bf16.mxu0 %vm295_vm1, %v13135_v38  ;;  %v15477_v25 = vpack.c.bf16 %v12569_v34, %v12563_v31  ;;  %v13188_v30 = vpack.c.bf16 %v5140_v16, %v13182_v24  ;;  %v15479_v31 = vpack.c.bf16 %v12597_v46, %v12592_v43  ;;  %v5143_v34 = vld [vmem:[%s12508_s25 + $0x15c] sm:$0xff]  ;;  %v834_v43 = vld [vmem:[%s12508_s25 + $0xca] sm:$0xff] }
  0xc2   : > { %v15481_v42 = vpack.c.bf16 %v12621_v58, %v12616_v55  ;;  %v861_v46 = vpack.c.bf16 %v834_v43, %v12640_v4  ;;  %v15482_v54 = vpack.c.bf16 %v12636_v2, %v12624_v59  ;;  %v13231_v55 = vld [vmem:[%s15309_s1 + $0x44] sm:$0xf]  ;;  %v835_v58 = vld [vmem:[%s12508_s25 + $0xd2] sm:$0xff]  ;;  %v836_v4 = vld [vmem:[%s12508_s25 + $0xda] sm:$0xff] }
  0xc3   : > { %v837_v59 = vld [vmem:[%s12508_s25 + $0xe2] sm:$0xff]  ;;  %v838_v2 = vld [vmem:[%s12508_s25 + $0xea] sm:$0xff]  ;;  %v848_v43 = vld [vmem:[%s12508_s25 + $0x13a] sm:$0xff] }
  0xc4   : > { %v863_v15 = vpack.c.bf16 %v838_v2, %v837_v59 }
  0xc8   : > { %10492 = vmatmul.mubr.msk.bf16.gmra.mrb[8].mxu1 %vm295_vm1, %v15476_v22  ;;  %11016 = vmatmul.mubr.msk.bf16.gmra.mrb[28].mxu0 %vm295_vm1, %v13163_v40  ;;  %v13190_v22 = vpack.c.bf16 %v5142_v23, %v5141_v10  ;;  %v5144_v10 = vld [vmem:[%s12508_s25 + $0x164] sm:$0xff] }
  0xc9   : > { %10495 = vmatprep.mubr.msk.bf16.mxu1 %vm295_vm1, %v15477_v25  ;;  %11019 = vmatprep.mubr.msk.bf16.mxu0 %vm295_vm1, %v13167_v17  ;;  %v13206_v16 = vpack.c.bf16 %v5144_v10, %v5143_v34  ;;  %v842_v25 = vld [vmem:[%s12508_s25 + $0x10a] sm:$0xff]  ;;  %v844_v34 = vld [vmem:[%s12508_s25 + $0x11a] sm:$0xff] }
  0xca   : > { %v846_v10 = vld [vmem:[%s12508_s25 + $0x12a] sm:$0xff] }
  0xd0   : > { %10496 = vmatmul.mubr.msk.bf16.gmra.mrb[12].mxu1 %vm295_vm1, %v15478_v32  ;;  %11020 = vmatmul.mubr.msk.bf16.gmra.mrb[32].mxu0 %vm295_vm1, %v13188_v30  ;;  %v841_v32 = vld [vmem:[%s12508_s25 + $0x102] sm:$0xff] }
  0xd1   : > { %10499 = vmatprep.mubr.msk.bf16.mxu1 %vm295_vm1, %v15479_v31  ;;  %11023 = vmatprep.mubr.msk.bf16.mxu0 %vm295_vm1, %v13190_v22  ;;  %v865_v31 = vpack.c.bf16 %v842_v25, %v841_v32  ;;  %v15487_v32 = vld [vmem:[#allocation8_spill] sm:$0xff]  ;;  %v15488_v25 = vld [vmem:[#allocation9_spill] sm:$0xff] }
  0xd8   : > { %10500 = vmatmul.mubr.msk.bf16.gmra.mrb[16].mxu1 %vm295_vm1, %v15480_v35  ;;  %11024 = vmatmul.mubr.msk.bf16.gmra.mrb[36].mxu0 %vm295_vm1, %v13206_v16 }
  0xd9   : > { %10503 = vmatprep.mubr.msk.bf16.mxu1 %vm295_vm1, %v15481_v42  ;;  %11029 = vmatprep.mubr.msk.bf16.mxu0 %vm295_vm1, %v12937_v6  ;;  %v862_v6 = vpack.c.bf16 %v836_v4, %v835_v58  ;;  %v1169_v58 = vld [vmem:[%s12508_s25 + $0x13] sm:$0xff]  ;;  %v1171_v4 = vld [vmem:[%s12508_s25 + $0x23] sm:$0xff] }
  0xda   : > { %v1209_v2 = vpack.c.bf16 %v12645_v7, %v1171_v4  ;;  %v1210_v7 = vpack.c.bf16 %v12660_v19, %v12648_v9  ;;  %v1212_v9 = vpack.c.bf16 %v12693_v44, %v12674_v29  ;;  %v1213_v19 = vpack.c.bf16 %v12706_v51, %v12699_v26  ;;  %v5501_v29 = vld [vmem:[%s12508_s25 + $0x16c] sm:$0xff]  ;;  %v5502_v44 = vld [vmem:[%s12508_s25 + $0x174] sm:$0xff]  ;;  %v13332_v26 = vld [vmem:[%s12508_s25 + $0x3d] sm:$0xff] }
  0xdb   : > { %v13335_v51 = vld [vmem:[%s12508_s25 + $0x45] sm:$0xff]  ;;  %v13435_v4 = vld [vmem:[%s12508_s25 + $0xbd] sm:$0xff] }
  0xe0   : > { %10504 = vmatmul.mubr.msk.bf16.gmra.mrb[20].mxu1 %vm295_vm1, %v15482_v54  ;;  %11030 = vmatmul.mubr.msk.bf16.vlgmr.msra.gmra.mrb[0].mxu0 %vm295_vm1, %v12941_v62  ;;  %v839_v62 = vld [vmem:[%s12508_s25 + $0xf2] sm:$0xff] }
  0xe1   : > { %10507 = vmatprep.mubr.msk.bf16.mxu1 %vm295_vm1, %v861_v46  ;;  %11070 = vmatpush3.bf16.msra.mxu0 %v5944_v47  ;;  %v1168_v46 = vld [vmem:[%s12508_s25 + $0xb] sm:$0xff] }
  0xe2   : > { %11033 = vmatprep.mubr.msk.bf16.mxu0 %vm295_vm1, %v12976_v57  ;;  %12427 = vmatprep.subr.msk.bf16.mxu0 %vm356_vm0, %v13231_v55  ;;  %v840_v57 = vld [vmem:[%s12508_s25 + $0xfa] sm:$0xff] }
  0xe3   : > { %v864_v23 = vpack.c.bf16 %v840_v57, %v839_v62 }
  0xe8   : > { %10508 = vmatmul.mubr.msk.bf16.gmra.mrb[24].mxu1 %vm295_vm1, %v862_v6  ;;  %11034 = vmatmul.mubr.msk.bf16.gmra.mrb[4].mxu0 %vm295_vm1, %v12980_v50  ;;  %v843_v50 = vld [vmem:[%s12508_s25 + $0x112] sm:$0xff] }
  0xe9   : > { %10511 = vmatprep.mubr.msk.bf16.mxu1 %vm295_vm1, %v863_v15  ;;  %11037 = vmatprep.mubr.msk.bf16.mxu0 %vm295_vm1, %v13006_v0  ;;  %v845_v0 = vld [vmem:[%s12508_s25 + $0x122] sm:$0xff]  ;;  %v866_v35 = vpack.c.bf16 %v844_v34, %v843_v50  ;;  %v15485_v6 = vld [vmem:[#allocation6_spill] sm:$0xff]  ;;  %v13405_v50 = vld [vmem:[%s12508_s25 + $0x8d] sm:$0xff] }
  0xea   : > { %v867_v42 = vpack.c.bf16 %v846_v10, %v845_v0  ;;  %v15486_v15 = vld [vmem:[#allocation7_spill] sm:$0xff]  ;;  %v13408_v34 = vld [vmem:[%s12508_s25 + $0x95] sm:$0xff] }
  0xeb   : > { %v1220_v62 = vpack.c.bf16 %v15486_v15, %v15485_v6  ;;  %v13411_v0 = vld [vmem:[%s12508_s25 + $0x9d] sm:$0xff]  ;;  %v13414_v10 = vld [vmem:[%s12508_s25 + $0xa5] sm:$0xff]  ;;  %v13479_v15 = vld [vmem:[%s12508_s25 + $0xed] sm:$0xff] }
  0xec   : > { %v1528_v6 = vld [vmem:[%s12508_s25 + $0x1c] sm:$0xff] }
  0xf0   : > { %10512 = vmatmul.mubr.msk.bf16.gmra.mrb[28].mxu1 %vm295_vm1, %v864_v23  ;;  %11038 = vmatmul.mubr.msk.bf16.gmra.mrb[8].mxu0 %vm295_vm1, %v13010_v11  ;;  %v847_v11 = vld [vmem:[%s12508_s25 + $0x132] sm:$0xff]  ;;  %v1221_v23 = vpack.c.bf16 %v15488_v25, %v15487_v32  ;;  %v13488_v32 = vld [vmem:[%s12508_s25 + $0xfd] sm:$0xff]  ;;  %v13491_v25 = vld [vmem:[%s12508_s25 + $0x105] sm:$0xff] }
  0xf1   : > { %10515 = vmatprep.mubr.msk.bf16.mxu1 %vm295_vm1, %v865_v31  ;;  %11041 = vmatprep.mubr.msk.bf16.mxu0 %vm295_vm1, %v13036_v41  ;;  %v1167_v41 = vld [vmem:[%s12508_s25 + $0x3] sm:$0xff]  ;;  %v868_v47 = vpack.c.bf16 %v848_v43, %v847_v11  ;;  %v5866_v43 = vpack.c.bf16 %v13408_v34, %v13405_v50 }
  0xf2   : > { %v1207_v54 = vpack.c.bf16 %v1168_v46, %v1167_v41  ;;  %v15491_v41 = vld [vmem:[#allocation12_spill] sm:$0xff]  ;;  %v15492_v46 = vld [vmem:[#allocation13_spill] sm:$0xff] }
  0xf8   : > { %10516 = vmatmul.mubr.msk.bf16.gmra.mrb[32].mxu1 %vm295_vm1, %v866_v35  ;;  %11042 = vmatmul.mubr.msk.bf16.gmra.mrb[12].mxu0 %vm295_vm1, %v13040_v3  ;;  %v1170_v3 = vld [vmem:[%s12508_s25 + $0x1b] sm:$0xff] }
  0xf9   : > { %10519 = vmatprep.mubr.msk.bf16.mxu1 %vm295_vm1, %v867_v42  ;;  %11045 = vmatprep.mubr.msk.bf16.mxu0 %vm295_vm1, %v13066_v53  ;;  %v1208_v59 = vpack.c.bf16 %v1170_v3, %v1169_v58  ;;  %v1648_v53 = vsel %vm356_vm0, %v13108_v14, 0  ;;  %v1211_v14 = vpack.c.bf16 %v12671_v28, %v12664_v20  ;;  %v1214_v20 = vpack.c.bf16 %v12723_v63, %v12709_v52  ;;  %v15489_v35 = vld [vmem:[#allocation10_spill] sm:$0xff]  ;;  %v15490_v42 = vld [vmem:[#allocation11_spill] sm:$0xff]  ;;  %v13429_v58 = vld [vmem:[%s12508_s25 + $0xad] sm:$0xff] }
  0xfa   : > { %v1215_v28 = vpack.c.bf16 %v12736_v12, %v12729_v1  ;;  %v1216_v52 = vpack.c.bf16 %v12751_v33, %v12739_v13  ;;  %v5522_v63 = vpack.c.bf16 %v5502_v44, %v5501_v29  ;;  %v1217_v1 = vpack.c.bf16 %v12764_v48, %v12757_v37  ;;  %v13351_v13 = vld [vmem:[%s12508_s25 + $0x55] sm:$0xff]  ;;  %v13354_v33 = vld [vmem:[%s12508_s25 + $0x5d] sm:$0xff]  ;;  %v13357_v37 = vld [vmem:[%s12508_s25 + $0x65] sm:$0xff] }
  0xfb   : > { %v5861_v12 = vpack.c.bf16 %v13335_v51, %v13332_v26  ;;  %v1218_v48 = vpack.c.bf16 %v12779_v5, %v12767_v49  ;;  %v13379_v49 = vld [vmem:[%s12508_s25 + $0x6d] sm:$0xff]  ;;  %v13382_v5 = vld [vmem:[%s12508_s25 + $0x75] sm:$0xff]  ;;  %v1222_v11 = vpack.c.bf16 %v15490_v42, %v15489_v35 }
  0xfc   : > { %v5864_v57 = vpack.c.bf16 %v13382_v5, %v13379_v49  ;;  %v13432_v3 = vld [vmem:[%s12508_s25 + $0xb5] sm:$0xff]  ;;  %v13452_v29 = vld [vmem:[%s12508_s25 + $0xcd] sm:$0xff] }
  0xfd   : > { %v13456_v44 = vld [vmem:[%s12508_s25 + $0xd5] sm:$0xff]  ;;  %v15499_v42 = vld [vmem:[#allocation20_spill] sm:$0xff] }
 0x100   : > { %10520 = vmatmul.mubr.msk.bf16.gmra.mrb[36].mxu1 %vm295_vm1, %v868_v47  ;;  %11046 = vmatmul.mubr.msk.bf16.gmra.mrb[16].mxu0 %vm295_vm1, %v13070_v27  ;;  %v13290_v27 = vld [vmem:[%s15309_s1 + $0x14] sm:$0xf]  ;;  %v1223_v47 = vpack.c.bf16 %v15492_v46, %v15491_v41  ;;  %v13508_v41 = vld [vmem:[%s15309_s1 + $0x18] sm:$0xf] }
 0x101   : > { %10525 = vmatprep.mubr.msk.bf16.mxu1 %vm295_vm1, %v1207_v54  ;;  %11049 = vmatprep.mubr.msk.bf16.mxu0 %vm295_vm1, %v13095_v45  ;;  %v5867_v54 = vpack.c.bf16 %v13414_v10, %v13411_v0  ;;  %v2006_v35 = vsel %vm356_vm0, %v13290_v27, 0  ;;  %v13517_v46 = vld [vmem:[%s12508_s25 + $0x115] sm:$0xff] }
 0x108   : > { %10526 = vmatmul.mubr.msk.bf16.vlgmr.msra.gmra.mrb[0].mxu1 %vm295_vm1, %v1208_v59  ;;  %11050 = vmatmul.mubr.msk.bf16.gmra.mrb[20].mxu0 %vm295_vm1, %v13102_v18  ;;  %v13348_v18 = vld [vmem:[%s12508_s25 + $0x4d] sm:$0xff]  ;;  %v13438_v59 = vld [vmem:[%s12508_s25 + $0xc5] sm:$0xff] }
 0x109   : > { %10566 = vmatpush3.bf16.msra.mxu1 %v1648_v53  ;;  %10529 = vmatprep.mubr.msk.bf16.mxu1 %vm295_vm1, %v1209_v2  ;;  %v5862_v45 = vpack.c.bf16 %v13351_v13, %v13348_v18  ;;  %v15493_v53 = vld [vmem:[#allocation14_spill] sm:$0xff]  ;;  %v15494_v2 = vld [vmem:[#allocation15_spill] sm:$0xff] }
 0x10a   : > { %11053 = vmatprep.mubr.msk.bf16.mxu0 %vm295_vm1, %v13131_v60  ;;  %12414 = vmatprep.subr.msk.bf16.mxu1 %vm356_vm0, %v13290_v27  ;;  %v15483_v60 = vld [vmem:[#allocation4_spill] sm:$0xff] }
 0x10b   : > { %v13514_v27 = vld [vmem:[%s12508_s25 + $0x10d] sm:$0xff] }
 0x110   : > { %10530 = vmatmul.mubr.msk.bf16.gmra.mrb[4].mxu1 %vm295_vm1, %v1210_v7  ;;  %11054 = vmatmul.mubr.msk.bf16.gmra.mrb[24].mxu0 %vm295_vm1, %v13135_v38  ;;  %v15484_v38 = vld [vmem:[#allocation5_spill] sm:$0xff]  ;;  %v1224_v7 = vpack.c.bf16 %v15494_v2, %v15493_v53  ;;  %v15501_v2 = vld [vmem:[#allocation22_spill] sm:$0xff] }
 0x111   : > { %10533 = vmatprep.mubr.msk.bf16.mxu1 %vm295_vm1, %v1211_v14  ;;  %11057 = vmatprep.mubr.msk.bf16.mxu0 %vm295_vm1, %v13163_v40  ;;  %v1219_v40 = vpack.c.bf16 %v15484_v38, %v15483_v60  ;;  %v5868_v14 = vpack.c.bf16 %v13432_v3, %v13429_v58  ;;  %v5870_v38 = vpack.c.bf16 %v13456_v44, %v13452_v29  ;;  %v15500_v53 = vld [vmem:[#allocation21_spill] sm:$0xff] }
 0x118   : > { %10534 = vmatmul.mubr.msk.bf16.gmra.mrb[8].mxu1 %vm295_vm1, %v1212_v9  ;;  %11058 = vmatmul.mubr.msk.bf16.gmra.mrb[28].mxu0 %vm295_vm1, %v13167_v17  ;;  %v5863_v17 = vpack.c.bf16 %v13357_v37, %v13354_v33  ;;  %v15495_v9 = vld [vmem:[#allocation16_spill] sm:$0xff] }
 0x119   : > { %10537 = vmatprep.mubr.msk.bf16.mxu1 %vm295_vm1, %v1213_v19  ;;  %11061 = vmatprep.mubr.msk.bf16.mxu0 %vm295_vm1, %v13188_v30  ;;  %v6302_v30 = vsel %vm356_vm0, %v13231_v55, 0  ;;  %v13388_v55 = vld [vmem:[%s12508_s25 + $0x85] sm:$0xff]  ;;  %v15496_v19 = vld [vmem:[#allocation17_spill] sm:$0xff] }
 0x120   : > { %10538 = vmatmul.mubr.msk.bf16.gmra.mrb[12].mxu1 %vm295_vm1, %v1214_v20  ;;  %11062 = vmatmul.mubr.msk.bf16.gmra.mrb[32].mxu0 %vm295_vm1, %v13190_v22  ;;  %v13373_v22 = vld [vmem:[%s15309_s1 + $0x48] sm:$0xf]  ;;  %v1225_v20 = vpack.c.bf16 %v15496_v19, %v15495_v9  ;;  %v15502_v9 = vld [vmem:[#allocation23_spill] sm:$0xff] }
 0x121   : > { %10541 = vmatprep.mubr.msk.bf16.mxu1 %vm295_vm1, %v1215_v28  ;;  %11065 = vmatprep.mubr.msk.bf16.mxu0 %vm295_vm1, %v13206_v16  ;;  %v13385_v16 = vld [vmem:[%s12508_s25 + $0x7d] sm:$0xff]  ;;  %v5869_v28 = vpack.c.bf16 %v13438_v59, %v13435_v4  ;;  %v15503_v19 = vld [vmem:[#allocation24_spill] sm:$0xff] }
 0x122   : > { %v5865_v31 = vpack.c.bf16 %v13388_v55, %v13385_v16 }
 0x128   : > { %10542 = vmatmul.mubr.msk.bf16.gmra.mrb[16].mxu1 %vm295_vm1, %v1216_v52  ;;  %11066 = vmatmul.mubr.msk.bf16.gmra.mrb[36].mxu0 %vm295_vm1, %v5522_v63  ;;  %v1525_v52 = vld [vmem:[%s12508_s25 + $0x4] sm:$0xff]  ;;  %v1526_v63 = vld [vmem:[%s12508_s25 + $0xc] sm:$0xff] }
 0x129   : > { %10545 = vmatprep.mubr.msk.bf16.mxu1 %vm295_vm1, %v1217_v1  ;;  %11071 = vmatprep.mubr.msk.bf16.mxu0 %vm295_vm1, %v5861_v12  ;;  %v13461_v1 = vld [vmem:[%s12508_s25 + $0xdd] sm:$0xff]  ;;  %v13464_v12 = vld [vmem:[%s12508_s25 + $0xe5] sm:$0xff] }
 0x130   : > { %10546 = vmatmul.mubr.msk.bf16.gmra.mrb[20].mxu1 %vm295_vm1, %v1218_v48  ;;  %11072 = vmatmul.mubr.msk.bf16.vlgmr.msra.gmra.mrb[0].mxu0 %vm295_vm1, %v5862_v45  ;;  %v15497_v48 = vld [vmem:[#allocation18_spill] sm:$0xff]  ;;  %v15498_v45 = vld [vmem:[#allocation19_spill] sm:$0xff] }
 0x131   : > { %10549 = vmatprep.mubr.msk.bf16.mxu1 %vm295_vm1, %v1219_v40  ;;  %11112 = vmatpush3.bf16.msra.mxu0 %v6302_v30  ;;  %v1226_v60 = vpack.c.bf16 %v15498_v45, %v15497_v48  ;;  %v1565_v40 = vpack.c.bf16 %v1526_v63, %v1525_v52  ;;  %v1527_v30 = vld [vmem:[%s12508_s25 + $0x14] sm:$0xff]  ;;  %v13546_v48 = vld [vmem:[%s12508_s25 + $0x13d] sm:$0xff]  ;;  %v13549_v45 = vld [vmem:[%s12508_s25 + $0x145] sm:$0xff] }
 0x132   : > { %11075 = vmatprep.mubr.msk.bf16.mxu0 %vm295_vm1, %v5863_v17  ;;  %12428 = vmatprep.subr.msk.bf16.mxu0 %vm356_vm0, %v13373_v22  ;;  %v5871_v17 = vpack.c.bf16 %v13464_v12, %v13461_v1  ;;  %v13540_v52 = vld [vmem:[%s12508_s25 + $0x12d] sm:$0xff]  ;;  %v13543_v63 = vld [vmem:[%s12508_s25 + $0x135] sm:$0xff] }
 0x138   : > { %10550 = vmatmul.mubr.msk.bf16.gmra.mrb[24].mxu1 %vm295_vm1, %v1220_v62  ;;  %11076 = vmatmul.mubr.msk.bf16.gmra.mrb[4].mxu0 %vm295_vm1, %v5864_v57  ;;  %v13482_v62 = vld [vmem:[%s12508_s25 + $0xf5] sm:$0xff]  ;;  %v13485_v57 = vld [vmem:[%s12508_s25 + $0x24] sm:$0xff] }
 0x139   : > { %10553 = vmatprep.mubr.msk.bf16.mxu1 %vm295_vm1, %v1221_v23  ;;  %11079 = vmatprep.mubr.msk.bf16.mxu0 %vm295_vm1, %v5865_v31  ;;  %v13493_v23 = vpack.c.bf16 %v1528_v6, %v1527_v30  ;;  %v5872_v31 = vpack.c.bf16 %v13482_v62, %v13479_v15  ;;  %v15506_v30 = vld [vmem:[#allocation27_spill] sm:$0xff]  ;;  %v15507_v6 = vld [vmem:[#allocation28_spill] sm:$0xff] }
 0x140   : > { %10554 = vmatmul.mubr.msk.bf16.gmra.mrb[28].mxu1 %vm295_vm1, %v1222_v11  ;;  %11080 = vmatmul.mubr.msk.bf16.gmra.mrb[8].mxu0 %vm295_vm1, %v5866_v43  ;;  %v1567_v11 = vpack.c.bf16 %v15499_v42, %v13485_v57  ;;  %v5873_v43 = vpack.c.bf16 %v13491_v25, %v13488_v32  ;;  %v13564_v42 = vld [vmem:[%s12508_s25 + $0x14d] sm:$0xff] }
 0x141   : > { %10557 = vmatprep.mubr.msk.bf16.mxu1 %vm295_vm1, %v1223_v47  ;;  %11083 = vmatprep.mubr.msk.bf16.mxu0 %vm295_vm1, %v5867_v54  ;;  %v13520_v47 = vld [vmem:[%s12508_s25 + $0x11d] sm:$0xff]  ;;  %v13523_v54 = vld [vmem:[%s12508_s25 + $0x125] sm:$0xff] }
 0x148   : > { %10558 = vmatmul.mubr.msk.bf16.gmra.mrb[32].mxu1 %vm295_vm1, %v1224_v7  ;;  %11084 = vmatmul.mubr.msk.bf16.gmra.mrb[12].mxu0 %vm295_vm1, %v5868_v14  ;;  %v1568_v7 = vpack.c.bf16 %v15501_v2, %v15500_v53  ;;  %v5874_v14 = vpack.c.bf16 %v13517_v46, %v13514_v27  ;;  %v5858_v53 = vld [vmem:[%s12508_s25 + $0x165] sm:$0xff]  ;;  %v15508_v2 = vld [vmem:[#allocation29_spill] sm:$0xff] }
 0x149   : > { %10561 = vmatprep.mubr.msk.bf16.mxu1 %vm295_vm1, %v1225_v20  ;;  %11087 = vmatprep.mubr.msk.bf16.mxu0 %vm295_vm1, %v5869_v28  ;;  %v1569_v20 = vpack.c.bf16 %v15503_v19, %v15502_v9  ;;  %v5875_v28 = vpack.c.bf16 %v13523_v54, %v13520_v47  ;;  %v15510_v19 = vld [vmem:[#allocation31_spill] sm:$0xff] }
 0x150   : > { %10562 = vmatmul.mubr.msk.bf16.gmra.mrb[36].mxu1 %vm295_vm1, %v1226_v60  ;;  %11088 = vmatmul.mubr.msk.bf16.gmra.mrb[16].mxu0 %vm295_vm1, %v5870_v38  ;;  %v15504_v60 = vld [vmem:[#allocation25_spill] sm:$0xff]  ;;  %v15505_v38 = vld [vmem:[#allocation26_spill] sm:$0xff] }
 0x151   : > { %10567 = vmatprep.mubr.msk.bf16.mxu1 %vm295_vm1, %v1565_v40  ;;  %11091 = vmatprep.mubr.msk.bf16.mxu0 %vm295_vm1, %v5871_v17  ;;  %v1570_v40 = vpack.c.bf16 %v15505_v38, %v15504_v60  ;;  %v5876_v17 = vpack.c.bf16 %v13543_v63, %v13540_v52  ;;  %v5859_v38 = vld [vmem:[%s12508_s25 + $0x16d] sm:$0xff] }
 0x158   : > { %10568 = vmatmul.mubr.msk.bf16.vlgmr.msra.gmra.mrb[0].mxu1 %vm295_vm1, %v13493_v23  ;;  %11092 = vmatmul.mubr.msk.bf16.gmra.mrb[20].mxu0 %vm295_vm1, %v5872_v31  ;;  %v1571_v31 = vpack.c.bf16 %v15507_v6, %v15506_v30  ;;  %v13584_v30 = vld [vmem:[%s12508_s25 + $0x46] sm:$0xff]  ;;  %v15512_v6 = vld [vmem:[#allocation33_spill] sm:$0xff] }
 0x159   : > { %10608 = vmatpush3.bf16.msra.mxu1 %v2006_v35  ;;  %10571 = vmatprep.mubr.msk.bf16.mxu1 %vm295_vm1, %v1567_v11  ;;  %v5877_v35 = vpack.c.bf16 %v13549_v45, %v13546_v48  ;;  %v5856_v11 = vld [vmem:[%s12508_s25 + $0x155] sm:$0xff] }
 0x15a   : > { %11095 = vmatprep.mubr.msk.bf16.mxu0 %vm295_vm1, %v5873_v43  ;;  %12415 = vmatprep.subr.msk.bf16.mxu1 %vm356_vm0, %v13508_v41  ;;  %v5857_v43 = vld [vmem:[%s12508_s25 + $0x15d] sm:$0xff]  ;;  %v5878_v9 = vpack.c.bf16 %v5856_v11, %v13564_v42 }
 0x15b   : > { %v5879_v60 = vpack.c.bf16 %v5858_v53, %v5857_v43  ;;  %v15514_v43 = vld [vmem:[#allocation35_spill] sm:$0xff]  ;;  %v15515_v53 = vld [vmem:[#allocation36_spill] sm:$0xff] }
 0x160   : > { %10572 = vmatmul.mubr.msk.bf16.gmra.mrb[4].mxu1 %vm295_vm1, %v1568_v7  ;;  %11096 = vmatmul.mubr.msk.bf16.gmra.mrb[24].mxu0 %vm295_vm1, %v5874_v14  ;;  %v15509_v7 = vld [vmem:[#allocation30_spill] sm:$0xff] }
 0x161   : > { %10575 = vmatprep.mubr.msk.bf16.mxu1 %vm295_vm1, %v1569_v20  ;;  %11099 = vmatprep.mubr.msk.bf16.mxu0 %vm295_vm1, %v5875_v28  ;;  %v1572_v14 = vpack.c.bf16 %v15509_v7, %v15508_v2  ;;  %v15511_v20 = vld [vmem:[#allocation32_spill] sm:$0xff]  ;;  %v1575_v2 = vpack.c.bf16 %v15515_v53, %v15514_v43  ;;  %v6660_v43 = vsel %vm356_vm0, %v13373_v22, 0  ;;  %v13631_v22 = vld [vmem:[%s12508_s25 + $0x76] sm:$0xff] }
 0x162   : > { %v1573_v28 = vpack.c.bf16 %v15511_v20, %v15510_v19  ;;  %v13603_v19 = vld [vmem:[%s12508_s25 + $0x5e] sm:$0xff]  ;;  %v13606_v20 = vld [vmem:[%s12508_s25 + $0x66] sm:$0xff] }
 0x163   : > { %v13622_v53 = vld [vmem:[%s15309_s1 + $0x4c] sm:$0xf] }
 0x168   : > { %10576 = vmatmul.mubr.msk.bf16.gmra.mrb[8].mxu1 %vm295_vm1, %v1570_v40  ;;  %11100 = vmatmul.mubr.msk.bf16.gmra.mrb[28].mxu0 %vm295_vm1, %v5876_v17  ;;  %v5860_v40 = vld [vmem:[%s12508_s25 + $0x175] sm:$0xff]  ;;  %v13581_v17 = vld [vmem:[%s12508_s25 + $0x3e] sm:$0xff] }
 0x169   : > { %10579 = vmatprep.mubr.msk.bf16.mxu1 %vm295_vm1, %v1571_v31  ;;  %11103 = vmatprep.mubr.msk.bf16.mxu0 %vm295_vm1, %v5877_v35  ;;  %v15513_v31 = vld [vmem:[#allocation34_spill] sm:$0xff]  ;;  %v5880_v11 = vpack.c.bf16 %v5860_v40, %v5859_v38  ;;  %v6219_v7 = vpack.c.bf16 %v13584_v30, %v13581_v17 }
 0x16a   : > { %v1574_v35 = vpack.c.bf16 %v15513_v31, %v15512_v6  ;;  %v15518_v6 = vld [vmem:[#allocation39_spill] sm:$0xff]  ;;  %v15519_v31 = vld [vmem:[#allocation40_spill] sm:$0xff] }
 0x170   : > { %10580 = vmatmul.mubr.msk.bf16.gmra.mrb[12].mxu1 %vm295_vm1, %v1572_v14  ;;  %11104 = vmatmul.mubr.msk.bf16.gmra.mrb[32].mxu0 %vm295_vm1, %v5878_v9  ;;  %v13597_v14 = vld [vmem:[%s12508_s25 + $0x4e] sm:$0xff]  ;;  %v13600_v9 = vld [vmem:[%s12508_s25 + $0x56] sm:$0xff] }
 0x171   : > { %10583 = vmatprep.mubr.msk.bf16.mxu1 %vm295_vm1, %v1573_v28  ;;  %11107 = vmatprep.mubr.msk.bf16.mxu0 %vm295_vm1, %v5879_v60  ;;  %v15516_v28 = vld [vmem:[#allocation37_spill] sm:$0xff]  ;;  %v15517_v60 = vld [vmem:[#allocation38_spill] sm:$0xff]  ;;  %v6220_v40 = vpack.c.bf16 %v13600_v9, %v13597_v14 }
 0x172   : > { %v1576_v38 = vpack.c.bf16 %v15517_v60, %v15516_v28  ;;  %v13637_v28 = vld [vmem:[%s12508_s25 + $0x86] sm:$0xff]  ;;  %v15520_v60 = vld [vmem:[#allocation41_spill] sm:$0xff] }
 0x178   : > { %10584 = vmatmul.mubr.msk.bf16.gmra.mrb[16].mxu1 %vm295_vm1, %v1574_v35  ;;  %11108 = vmatmul.mubr.msk.bf16.gmra.mrb[36].mxu0 %vm295_vm1, %v5880_v11  ;;  %v1577_v35 = vpack.c.bf16 %v15519_v31, %v15518_v6  ;;  %v6221_v11 = vpack.c.bf16 %v13606_v20, %v13603_v19  ;;  %v1579_v6 = vpack.c.bf16 %v13088_v56, %v13084_v61  ;;  %v13660_v61 = vld [vmem:[%s12508_s25 + $0x9e] sm:$0xff]  ;;  %v13663_v56 = vld [vmem:[%s12508_s25 + $0xa6] sm:$0xff] }
 0x179   : > { %10587 = vmatprep.mubr.msk.bf16.mxu1 %vm295_vm1, %v1575_v2  ;;  %11113 = vmatprep.mubr.msk.bf16.mxu0 %vm295_vm1, %v6219_v7  ;;  %v13628_v2 = vld [vmem:[%s12508_s25 + $0x6e] sm:$0xff]  ;;  %v13634_v7 = vld [vmem:[%s12508_s25 + $0x7e] sm:$0xff]  ;;  %15522 = vst [vmem:[#allocation5_spill] sm:$0xff] %v13660_v61  ;;  %15523 = vst [vmem:[#allocation6_spill] sm:$0xff] %v13663_v56 }
 0x17a   : > { %v6223_v31 = vpack.c.bf16 %v13637_v28, %v13634_v7 }
 0x180   : > { %10588 = vmatmul.mubr.msk.bf16.gmra.mrb[20].mxu1 %vm295_vm1, %v1576_v38  ;;  %11114 = vmatmul.mubr.msk.bf16.vlgmr.msra.gmra.mrb[0].mxu0 %vm295_vm1, %v6220_v40  ;;  %v1578_v38 = vpack.c.bf16 %v13081_v21, %v15520_v60  ;;  %v6222_v40 = vpack.c.bf16 %v13631_v22, %v13628_v2  ;;  %v13654_v21 = vld [vmem:[%s12508_s25 + $0x8e] sm:$0xff]  ;;  %v15524_v60 = vld [vmem:[#allocation42_spill] sm:$0xff] }
 0x181   : > { %10591 = vmatprep.mubr.msk.bf16.mxu1 %vm295_vm1, %v1577_v35  ;;  %11154 = vmatpush3.bf16.msra.mxu0 %v6660_v43  ;;  %v13657_v35 = vld [vmem:[%s12508_s25 + $0x96] sm:$0xff] }
 0x182   : > { %11117 = vmatprep.mubr.msk.bf16.mxu0 %vm295_vm1, %v6221_v11  ;;  %12429 = vmatprep.subr.msk.bf16.mxu0 %vm356_vm0, %v13622_v53  ;;  %15521 = vst [vmem:[#allocation4_spill] sm:$0xff] %v13657_v35  ;;  %v1580_v11 = vpack.c.bf16 %v13116_v8, %v13091_v39  ;;  %v6224_v43 = vpack.c.bf16 %v13657_v35, %v13654_v21  ;;  %v13678_v39 = vld [vmem:[%s12508_s25 + $0xae] sm:$0xff]  ;;  %v13681_v8 = vld [vmem:[%s12508_s25 + $0xb6] sm:$0xff] }
 0x183   : > { %15525 = vst [vmem:[#allocation7_spill] sm:$0xff] %v13678_v39  ;;  %15526 = vst [vmem:[#allocation8_spill] sm:$0xff] %v13681_v8  ;;  %v6218_v35 = vld [vmem:[%s12508_s25 + $0x176] sm:$0xff] }
 0x188   : > { %10592 = vmatmul.mubr.msk.bf16.gmra.mrb[24].mxu1 %vm295_vm1, %v1578_v38  ;;  %11118 = vmatmul.mubr.msk.bf16.gmra.mrb[4].mxu0 %vm295_vm1, %v6222_v40  ;;  %v1581_v38 = vpack.c.bf16 %v15524_v60, %v13119_v36  ;;  %v6225_v40 = vpack.c.bf16 %v13663_v56, %v13660_v61  ;;  %v13684_v36 = vld [vmem:[%s12508_s25 + $0xbe] sm:$0xff]  ;;  %v15531_v56 = vld [vmem:[#allocation45_spill] sm:$0xff] }
 0x189   : > { %10595 = vmatprep.mubr.msk.bf16.mxu1 %vm295_vm1, %v1579_v6  ;;  %11121 = vmatprep.mubr.msk.bf16.mxu0 %vm295_vm1, %v6223_v31  ;;  %15527 = vst [vmem:[#allocation9_spill] sm:$0xff] %v13684_v36  ;;  %v13687_v6 = vld [vmem:[%s12508_s25 + $0xc6] sm:$0xff] }
 0x18a   : > { %15528 = vst [vmem:[#allocation10_spill] sm:$0xff] %v13687_v6  ;;  %v15529_v31 = vld [vmem:[#allocation43_spill] sm:$0xff] }
 0x190   : > { %10596 = vmatmul.mubr.msk.bf16.gmra.mrb[28].mxu1 %vm295_vm1, %v1580_v11  ;;  %11122 = vmatmul.mubr.msk.bf16.gmra.mrb[8].mxu0 %vm295_vm1, %v6224_v43  ;;  %v15530_v11 = vld [vmem:[#allocation44_spill] sm:$0xff]  ;;  %v6226_v43 = vpack.c.bf16 %v13681_v8, %v13678_v39  ;;  %v13750_v8 = vld [vmem:[%s15309_s1 + $0x1c] sm:$0xf] }
 0x191   : > { %10599 = vmatprep.mubr.msk.bf16.mxu1 %vm295_vm1, %v1581_v38  ;;  %11125 = vmatprep.mubr.msk.bf16.mxu0 %vm295_vm1, %v6225_v40  ;;  %v1582_v60 = vpack.c.bf16 %v15530_v11, %v15529_v31  ;;  %v15532_v38 = vld [vmem:[#allocation46_spill] sm:$0xff]  ;;  %v6227_v40 = vpack.c.bf16 %v13687_v6, %v13684_v36  ;;  %v13702_v31 = vld [vmem:[%s12508_s25 + $0xce] sm:$0xff] }
 0x192   : > { %v1583_v61 = vpack.c.bf16 %v15532_v38, %v15531_v56  ;;  %15533 = vst [vmem:[#allocation11_spill] sm:$0xff] %v13702_v31  ;;  %v13705_v56 = vld [vmem:[%s12508_s25 + $0xd6] sm:$0xff]  ;;  %v13708_v11 = vld [vmem:[%s12508_s25 + $0xde] sm:$0xff]  ;;  %v13711_v38 = vld [vmem:[%s12508_s25 + $0xe6] sm:$0xff] }
 0x193   : > { %15534 = vst [vmem:[#allocation12_spill] sm:$0xff] %v13705_v56  ;;  %15535 = vst [vmem:[#allocation13_spill] sm:$0xff] %v13708_v11  ;;  %v1886_v6 = vld [vmem:[%s12508_s25 + $0x2c] sm:$0xff] }
 0x194   : > { %15536 = vst [vmem:[#allocation14_spill] sm:$0xff] %v13711_v38  ;;  %v13726_v36 = vld [vmem:[%s12508_s25 + $0xee] sm:$0xff] }
 0x195   : > { %15538 = vst [vmem:[#allocation15_spill] sm:$0xff] %v13726_v36  ;;  %v13783_v39 = vld [vmem:[%s12508_s25 + $0x12e] sm:$0xff] }
 0x196   : > { %15546 = vst [vmem:[#allocation23_spill] sm:$0xff] %v13783_v39 }
 0x198   : > { %10600 = vmatmul.mubr.msk.bf16.gmra.mrb[32].mxu1 %vm295_vm1, %v1582_v60  ;;  %11126 = vmatmul.mubr.msk.bf16.gmra.mrb[12].mxu0 %vm295_vm1, %v6226_v43  ;;  %v15537_v60 = vld [vmem:[#allocation47_spill] sm:$0xff] }
 0x199   : > { %10603 = vmatprep.mubr.msk.bf16.mxu1 %vm295_vm1, %v1583_v61  ;;  %11129 = vmatprep.mubr.msk.bf16.mxu0 %vm295_vm1, %v6227_v40  ;;  %v1584_v43 = vpack.c.bf16 %v13182_v24, %v15537_v60  ;;  %v6228_v61 = vpack.c.bf16 %v13705_v56, %v13702_v31  ;;  %v6229_v40 = vpack.c.bf16 %v13711_v38, %v13708_v11  ;;  %v13729_v24 = vld [vmem:[%s12508_s25 + $0xf6] sm:$0xff]  ;;  %v13734_v38 = vld [vmem:[%s12508_s25 + $0xfe] sm:$0xff] }
 0x19a   : > { %15539 = vst [vmem:[#allocation16_spill] sm:$0xff] %v13729_v24  ;;  %v1887_v60 = vld [vmem:[%s12508_s25 + $0x34] sm:$0xff]  ;;  %v1888_v56 = vld [vmem:[%s12508_s25 + $0x3c] sm:$0xff]  ;;  %15540 = vst [vmem:[#allocation17_spill] sm:$0xff] %v13734_v38 }
 0x19b   : > { %v1925_v11 = vpack.c.bf16 %v1888_v56, %v1887_v60  ;;  %v1891_v56 = vld [vmem:[%s12508_s25 + $0x54] sm:$0xff]  ;;  %v1892_v60 = vld [vmem:[%s12508_s25 + $0x5c] sm:$0xff] }
 0x1a0   : > { %10604 = vmatmul.mubr.msk.bf16.gmra.mrb[36].mxu1 %vm295_vm1, %v1584_v43  ;;  %11130 = vmatmul.mubr.msk.bf16.gmra.mrb[16].mxu0 %vm295_vm1, %v6228_v61  ;;  %v13737_v43 = vld [vmem:[%s12508_s25 + $0x106] sm:$0xff]  ;;  %v6230_v61 = vpack.c.bf16 %v13729_v24, %v13726_v36  ;;  %v13756_v24 = vld [vmem:[%s12508_s25 + $0x10e] sm:$0xff] }
 0x1a1   : > { %10609 = vmatprep.mubr.msk.bf16.mxu1 %vm295_vm1, %v13493_v23  ;;  %11133 = vmatprep.mubr.msk.bf16.mxu0 %vm295_vm1, %v6229_v40  ;;  %15541 = vst [vmem:[#allocation18_spill] sm:$0xff] %v13737_v43  ;;  %v1924_v23 = vpack.c.bf16 %v1886_v6, %v13485_v57  ;;  %v2364_v40 = vsel %vm356_vm0, %v13508_v41, 0  ;;  %v6231_v31 = vpack.c.bf16 %v13737_v43, %v13734_v38  ;;  %v1889_v57 = vld [vmem:[%s12508_s25 + $0x44] sm:$0xff]  ;;  %v1890_v6 = vld [vmem:[%s12508_s25 + $0x4c] sm:$0xff]  ;;  %15542 = vst [vmem:[#allocation19_spill] sm:$0xff] %v13756_v24 }
 0x1a2   : > { %v13761_v41 = vld [vmem:[%s12508_s25 + $0x116] sm:$0xff]  ;;  %v1893_v38 = vld [vmem:[%s12508_s25 + $0x64] sm:$0xff]  ;;  %v1894_v36 = vld [vmem:[%s12508_s25 + $0x6c] sm:$0xff] }
 0x1a3   : > { %15543 = vst [vmem:[#allocation20_spill] sm:$0xff] %v13761_v41 }
 0x1a8   : > { %10610 = vmatmul.mubr.msk.bf16.vlgmr.msra.gmra.mrb[0].mxu1 %vm295_vm1, %v1924_v23  ;;  %11134 = vmatmul.mubr.msk.bf16.gmra.mrb[20].mxu0 %vm295_vm1, %v6230_v61  ;;  %v13766_v23 = vld [vmem:[%s12508_s25 + $0x11e] sm:$0xff]  ;;  %v13769_v61 = vld [vmem:[%s12508_s25 + $0x126] sm:$0xff] }
 0x1a9   : > { %10650 = vmatpush3.bf16.msra.mxu1 %v2364_v40  ;;  %10613 = vmatprep.mubr.msk.bf16.mxu1 %vm295_vm1, %v1925_v11  ;;  %15544 = vst [vmem:[#allocation21_spill] sm:$0xff] %v13766_v23  ;;  %15545 = vst [vmem:[#allocation22_spill] sm:$0xff] %v13769_v61  ;;  %v1926_v11 = vpack.c.bf16 %v1890_v6, %v1889_v57  ;;  %v1927_v40 = vpack.c.bf16 %v1892_v60, %v1891_v56  ;;  %v13787_v57 = vld [vmem:[%s12508_s25 + $0x136] sm:$0xff]  ;;  %v13792_v60 = vld [vmem:[%s12508_s25 + $0x13e] sm:$0xff] }
 0x1aa   : > { %11137 = vmatprep.mubr.msk.bf16.mxu0 %vm295_vm1, %v6231_v31  ;;  %12416 = vmatprep.subr.msk.bf16.mxu1 %vm356_vm0, %v13750_v8  ;;  %v6232_v31 = vpack.c.bf16 %v13761_v41, %v13756_v24  ;;  %v6233_v43 = vpack.c.bf16 %v13769_v61, %v13766_v23  ;;  %15547 = vst [vmem:[#allocation24_spill] sm:$0xff] %v13787_v57  ;;  %v1895_v6 = vld [vmem:[%s12508_s25 + $0x74] sm:$0xff]  ;;  %v1896_v56 = vld [vmem:[%s12508_s25 + $0x7c] sm:$0xff]  ;;  %15548 = vst [vmem:[#allocation25_spill] sm:$0xff] %v13792_v60 }
 0x1ab   : > { %v1929_v61 = vpack.c.bf16 %v1896_v56, %v1895_v6  ;;  %v1897_v23 = vld [vmem:[%s12508_s25 + $0x84] sm:$0xff]  ;;  %v1898_v41 = vld [vmem:[%s12508_s25 + $0x8c] sm:$0xff]  ;;  %v1900_v6 = vld [vmem:[%s12508_s25 + $0x9c] sm:$0xff] }
 0x1ac   : > { %v13807_v24 = vld [vmem:[%s12508_s25 + $0x14e] sm:$0xff]  ;;  %v6215_v56 = vld [vmem:[%s12508_s25 + $0x15e] sm:$0xff] }
 0x1b0   : > { %10614 = vmatmul.mubr.msk.bf16.gmra.mrb[4].mxu1 %vm295_vm1, %v1926_v11  ;;  %11138 = vmatmul.mubr.msk.bf16.gmra.mrb[24].mxu0 %vm295_vm1, %v6232_v31  ;;  %v13795_v11 = vld [vmem:[%s12508_s25 + $0x146] sm:$0xff]  ;;  %v1928_v31 = vpack.c.bf16 %v1894_v36, %v1893_v38  ;;  %v6214_v36 = vld [vmem:[%s12508_s25 + $0x156] sm:$0xff] }
 0x1b1   : > { %10617 = vmatprep.mubr.msk.bf16.mxu1 %vm295_vm1, %v1927_v40  ;;  %11141 = vmatprep.mubr.msk.bf16.mxu0 %vm295_vm1, %v6233_v43  ;;  %15549 = vst [vmem:[#allocation26_spill] sm:$0xff] %v13795_v11  ;;  %v6234_v40 = vpack.c.bf16 %v13787_v57, %v13783_v39  ;;  %v6235_v43 = vpack.c.bf16 %v13795_v11, %v13792_v60  ;;  %v1899_v38 = vld [vmem:[%s12508_s25 + $0x94] sm:$0xff]  ;;  %v1902_v57 = vld [vmem:[%s12508_s25 + $0xac] sm:$0xff] }
 0x1b2   : > { %v1931_v11 = vpack.c.bf16 %v1900_v6, %v1899_v38  ;;  %v6217_v39 = vld [vmem:[%s12508_s25 + $0x16e] sm:$0xff] }
 0x1b3   : > { %v13830_v38 = vld [vmem:[%s12508_s25 + $0x47] sm:$0xff]  ;;  %v6238_v6 = vpack.c.bf16 %v6218_v35, %v6217_v39  ;;  %v1907_v35 = vld [vmem:[%s12508_s25 + $0xd4] sm:$0xff]  ;;  %v1908_v39 = vld [vmem:[%s12508_s25 + $0xdc] sm:$0xff] }
 0x1b4   : > { %15551 = vst [vmem:[#allocation28_spill] sm:$0xff] %v13830_v38 }
 0x1b8   : > { %10618 = vmatmul.mubr.msk.bf16.gmra.mrb[8].mxu1 %vm295_vm1, %v1928_v31  ;;  %11142 = vmatmul.mubr.msk.bf16.gmra.mrb[28].mxu0 %vm295_vm1, %v6234_v40  ;;  %v6216_v31 = vld [vmem:[%s12508_s25 + $0x166] sm:$0xff]  ;;  %v6236_v40 = vpack.c.bf16 %v6214_v36, %v13807_v24 }
 0x1b9   : > { %10621 = vmatprep.mubr.msk.bf16.mxu1 %vm295_vm1, %v1929_v61  ;;  %11145 = vmatprep.mubr.msk.bf16.mxu0 %vm295_vm1, %v6235_v43  ;;  %v1930_v61 = vpack.c.bf16 %v1898_v41, %v1897_v23  ;;  %v6237_v60 = vpack.c.bf16 %v6216_v31, %v6215_v56  ;;  %v1901_v43 = vld [vmem:[%s12508_s25 + $0xa4] sm:$0xff]  ;;  %v1903_v41 = vld [vmem:[%s12508_s25 + $0xb4] sm:$0xff]  ;;  %v1904_v23 = vld [vmem:[%s12508_s25 + $0xbc] sm:$0xff] }
 0x1ba   : > { %v13827_v36 = vld [vmem:[%s12508_s25 + $0x3f] sm:$0xff]  ;;  %v1933_v56 = vpack.c.bf16 %v1904_v23, %v1903_v41  ;;  %v13852_v41 = vld [vmem:[%s12508_s25 + $0x67] sm:$0xff] }
 0x1bb   : > { %15550 = vst [vmem:[#allocation27_spill] sm:$0xff] %v13827_v36  ;;  %v6577_v31 = vpack.c.bf16 %v13830_v38, %v13827_v36  ;;  %15555 = vst [vmem:[#allocation32_spill] sm:$0xff] %v13852_v41  ;;  %v13864_v38 = vld [vmem:[%s15309_s1 + $0x50] sm:$0xf] }
 0x1bc   : > { %v13897_v36 = vld [vmem:[%s12508_s25 + $0x8f] sm:$0xff] }
 0x1bd   : > { %15560 = vst [vmem:[#allocation37_spill] sm:$0xff] %v13897_v36 }
 0x1c0   : > { %10622 = vmatmul.mubr.msk.bf16.gmra.mrb[12].mxu1 %vm295_vm1, %v1930_v61  ;;  %11146 = vmatmul.mubr.msk.bf16.gmra.mrb[32].mxu0 %vm295_vm1, %v6236_v40  ;;  %v1906_v61 = vld [vmem:[%s12508_s25 + $0xcc] sm:$0xff] }
 0x1c1   : > { %10625 = vmatprep.mubr.msk.bf16.mxu1 %vm295_vm1, %v1931_v11  ;;  %11149 = vmatprep.mubr.msk.bf16.mxu0 %vm295_vm1, %v6237_v60  ;;  %v1932_v11 = vpack.c.bf16 %v1902_v57, %v1901_v43  ;;  %v1905_v60 = vld [vmem:[%s12508_s25 + $0xc4] sm:$0xff]  ;;  %v13840_v40 = vld [vmem:[%s12508_s25 + $0x4f] sm:$0xff]  ;;  %v13844_v57 = vld [vmem:[%s12508_s25 + $0x57] sm:$0xff] }
 0x1c2   : > { %15552 = vst [vmem:[#allocation29_spill] sm:$0xff] %v13840_v40  ;;  %15553 = vst [vmem:[#allocation30_spill] sm:$0xff] %v13844_v57  ;;  %v13849_v43 = vld [vmem:[%s12508_s25 + $0x5f] sm:$0xff]  ;;  %v1934_v23 = vpack.c.bf16 %v1906_v61, %v1905_v60  ;;  %v1910_v61 = vld [vmem:[%s12508_s25 + $0xec] sm:$0xff] }
 0x1c3   : > { %15554 = vst [vmem:[#allocation31_spill] sm:$0xff] %v13849_v43  ;;  %v1909_v60 = vld [vmem:[%s12508_s25 + $0xe4] sm:$0xff] }
 0x1c8   : > { %10626 = vmatmul.mubr.msk.bf16.gmra.mrb[16].mxu1 %vm295_vm1, %v1932_v11  ;;  %11150 = vmatmul.mubr.msk.bf16.gmra.mrb[36].mxu0 %vm295_vm1, %v6238_v6  ;;  %v6578_v11 = vpack.c.bf16 %v13844_v57, %v13840_v40  ;;  %v1935_v6 = vpack.c.bf16 %v1908_v39, %v1907_v35  ;;  %v13871_v35 = vld [vmem:[%s12508_s25 + $0x6f] sm:$0xff]  ;;  %v1913_v57 = vld [vmem:[%s12508_s25 + $0x104] sm:$0xff] }
 0x1c9   : > { %10629 = vmatprep.mubr.msk.bf16.mxu1 %vm295_vm1, %v1933_v56  ;;  %11155 = vmatprep.mubr.msk.bf16.mxu0 %vm295_vm1, %v6577_v31  ;;  %v6579_v56 = vpack.c.bf16 %v13852_v41, %v13849_v43  ;;  %v7018_v31 = vsel %vm356_vm0, %v13622_v53, 0  ;;  %15556 = vst [vmem:[#allocation33_spill] sm:$0xff] %v13871_v35  ;;  %v13875_v53 = vld [vmem:[%s12508_s25 + $0x77] sm:$0xff]  ;;  %v13880_v41 = vld [vmem:[%s12508_s25 + $0x7f] sm:$0xff]  ;;  %v1914_v40 = vld [vmem:[%s12508_s25 + $0x10c] sm:$0xff] }
 0x1ca   : > { %15557 = vst [vmem:[#allocation34_spill] sm:$0xff] %v13875_v53  ;;  %v1911_v39 = vld [vmem:[%s12508_s25 + $0xf4] sm:$0xff]  ;;  %15558 = vst [vmem:[#allocation35_spill] sm:$0xff] %v13880_v41 }
 0x1d0   : > { %10630 = vmatmul.mubr.msk.bf16.gmra.mrb[20].mxu1 %vm295_vm1, %v1934_v23  ;;  %11156 = vmatmul.mubr.msk.bf16.vlgmr.msra.gmra.mrb[0].mxu0 %vm295_vm1, %v6578_v11  ;;  %v1912_v23 = vld [vmem:[%s12508_s25 + $0xfc] sm:$0xff]  ;;  %v13883_v11 = vld [vmem:[%s12508_s25 + $0x87] sm:$0xff] }
 0x1d1   : > { %10633 = vmatprep.mubr.msk.bf16.mxu1 %vm295_vm1, %v1935_v6  ;;  %11196 = vmatpush3.bf16.msra.mxu0 %v7018_v31  ;;  %15559 = vst [vmem:[#allocation36_spill] sm:$0xff] %v13883_v11  ;;  %v1936_v6 = vpack.c.bf16 %v1910_v61, %v1909_v60  ;;  %v1937_v31 = vpack.c.bf16 %v1912_v23, %v1911_v39  ;;  %v13901_v60 = vld [vmem:[%s12508_s25 + $0x97] sm:$0xff]  ;;  %v13906_v23 = vld [vmem:[%s12508_s25 + $0x9f] sm:$0xff] }
 0x1d2   : > { %11159 = vmatprep.mubr.msk.bf16.mxu0 %vm295_vm1, %v6579_v56  ;;  %12430 = vmatprep.subr.msk.bf16.mxu0 %vm356_vm0, %v13864_v38  ;;  %v6580_v56 = vpack.c.bf16 %v13875_v53, %v13871_v35  ;;  %v6581_v43 = vpack.c.bf16 %v13883_v11, %v13880_v41  ;;  %15561 = vst [vmem:[#allocation38_spill] sm:$0xff] %v13901_v60  ;;  %v1915_v61 = vld [vmem:[%s12508_s25 + $0x114] sm:$0xff]  ;;  %v1916_v39 = vld [vmem:[%s12508_s25 + $0x11c] sm:$0xff]  ;;  %15562 = vst [vmem:[#allocation39_spill] sm:$0xff] %v13906_v23 }
 0x1d3   : > { %v1939_v11 = vpack.c.bf16 %v1916_v39, %v1915_v61  ;;  %v1917_v41 = vld [vmem:[%s12508_s25 + $0x124] sm:$0xff]  ;;  %v1918_v53 = vld [vmem:[%s12508_s25 + $0x12c] sm:$0xff]  ;;  %v1920_v61 = vld [vmem:[%s12508_s25 + $0x13c] sm:$0xff] }
 0x1d4   : > { %v13921_v35 = vld [vmem:[%s12508_s25 + $0xaf] sm:$0xff]  ;;  %v13930_v39 = vld [vmem:[%s12508_s25 + $0xbf] sm:$0xff] }
 0x1d5   : > { %15564 = vst [vmem:[#allocation41_spill] sm:$0xff] %v13921_v35  ;;  %15566 = vst [vmem:[#allocation43_spill] sm:$0xff] %v13930_v39 }
 0x1d8   : > { %10634 = vmatmul.mubr.msk.bf16.gmra.mrb[24].mxu1 %vm295_vm1, %v1936_v6  ;;  %11160 = vmatmul.mubr.msk.bf16.gmra.mrb[4].mxu0 %vm295_vm1, %v6580_v56  ;;  %v13909_v6 = vld [vmem:[%s12508_s25 + $0xa7] sm:$0xff]  ;;  %v1938_v56 = vpack.c.bf16 %v1914_v40, %v1913_v57  ;;  %v13925_v40 = vld [vmem:[%s12508_s25 + $0xb7] sm:$0xff] }
 0x1d9   : > { %10637 = vmatprep.mubr.msk.bf16.mxu1 %vm295_vm1, %v1937_v31  ;;  %11163 = vmatprep.mubr.msk.bf16.mxu0 %vm295_vm1, %v6581_v43  ;;  %15563 = vst [vmem:[#allocation40_spill] sm:$0xff] %v13909_v6  ;;  %v6582_v31 = vpack.c.bf16 %v13901_v60, %v13897_v36  ;;  %v6583_v43 = vpack.c.bf16 %v13909_v6, %v13906_v23  ;;  %15565 = vst [vmem:[#allocation42_spill] sm:$0xff] %v13925_v40  ;;  %v1919_v57 = vld [vmem:[%s12508_s25 + $0x134] sm:$0xff]  ;;  %v1921_v23 = vld [vmem:[%s12508_s25 + $0x144] sm:$0xff] }
 0x1da   : > { %v1941_v6 = vpack.c.bf16 %v1920_v61, %v1919_v57  ;;  %v1922_v60 = vld [vmem:[%s12508_s25 + $0x14c] sm:$0xff]  ;;  %v2242_v57 = vld [vmem:[%s12508_s25 + $0x1d] sm:$0xff] }
 0x1db   : > { %v13945_v36 = vld [vmem:[%s12508_s25 + $0xcf] sm:$0xff]  ;;  %v13954_v61 = vld [vmem:[%s12508_s25 + $0xdf] sm:$0xff] }
 0x1dc   : > { %15568 = vst [vmem:[#allocation45_spill] sm:$0xff] %v13954_v61 }
 0x1e0   : > { %10638 = vmatmul.mubr.msk.bf16.gmra.mrb[28].mxu1 %vm295_vm1, %v1938_v56  ;;  %11164 = vmatmul.mubr.msk.bf16.gmra.mrb[8].mxu0 %vm295_vm1, %v6582_v31  ;;  %v1940_v56 = vpack.c.bf16 %v1918_v53, %v1917_v41  ;;  %v6584_v31 = vpack.c.bf16 %v13925_v40, %v13921_v35  ;;  %v13949_v41 = vld [vmem:[%s12508_s25 + $0xd7] sm:$0xff]  ;;  %v2244_v40 = vld [vmem:[%s12508_s25 + $0x2d] sm:$0xff] }
 0x1e1   : > { %10641 = vmatprep.mubr.msk.bf16.mxu1 %vm295_vm1, %v1939_v11  ;;  %11167 = vmatprep.mubr.msk.bf16.mxu0 %vm295_vm1, %v6583_v43  ;;  %v13933_v11 = vld [vmem:[%s12508_s25 + $0xc7] sm:$0xff]  ;;  %v2241_v53 = vld [vmem:[%s12508_s25 + $0x15] sm:$0xff] }
 0x1e2   : > { %15567 = vst [vmem:[#allocation44_spill] sm:$0xff] %v13933_v11  ;;  %v6585_v43 = vpack.c.bf16 %v13933_v11, %v13930_v39  ;;  %v2281_v11 = vpack.c.bf16 %v2242_v57, %v2241_v53  ;;  %v2243_v39 = vld [vmem:[%s12508_s25 + $0x25] sm:$0xff]  ;;  %v13970_v35 = vld [vmem:[%s12508_s25 + $0xef] sm:$0xff] }
 0x1e3   : > { %v13977_v53 = vld [vmem:[%s12508_s25 + $0xff] sm:$0xff]  ;;  %v13980_v57 = vld [vmem:[%s12508_s25 + $0x107] sm:$0xff] }
 0x1e8   : > { %10642 = vmatmul.mubr.msk.bf16.gmra.mrb[32].mxu1 %vm295_vm1, %v1940_v56  ;;  %11168 = vmatmul.mubr.msk.bf16.gmra.mrb[12].mxu0 %vm295_vm1, %v6584_v31  ;;  %v1942_v56 = vpack.c.bf16 %v1922_v60, %v1921_v23  ;;  %v6586_v31 = vpack.c.bf16 %v13949_v41, %v13945_v36  ;;  %v13973_v60 = vld [vmem:[%s12508_s25 + $0xf7] sm:$0xff] }
 0x1e9   : > { %10645 = vmatprep.mubr.msk.bf16.mxu1 %vm295_vm1, %v1941_v6  ;;  %11171 = vmatprep.mubr.msk.bf16.mxu0 %vm295_vm1, %v6585_v43  ;;  %v13957_v6 = vld [vmem:[%s12508_s25 + $0xe7] sm:$0xff]  ;;  %v2245_v23 = vld [vmem:[%s12508_s25 + $0x35] sm:$0xff] }
 0x1ea   : > { %15569 = vst [vmem:[#allocation46_spill] sm:$0xff] %v13957_v6  ;;  %v6587_v43 = vpack.c.bf16 %v13957_v6, %v13954_v61  ;;  %v6589_v6 = vpack.c.bf16 %v13980_v57, %v13977_v53  ;;  %v13993_v61 = vld [vmem:[%s15309_s1 + $0x20] sm:$0xf] }
 0x1f0   : > { %10646 = vmatmul.mubr.msk.bf16.gmra.mrb[36].mxu1 %vm295_vm1, %v1942_v56  ;;  %11172 = vmatmul.mubr.msk.bf16.gmra.mrb[16].mxu0 %vm295_vm1, %v6586_v31  ;;  %v2282_v56 = vpack.c.bf16 %v2244_v40, %v2243_v39  ;;  %v2722_v31 = vsel %vm356_vm0, %v13750_v8, 0  ;;  %v14002_v8 = vld [vmem:[%s12508_s25 + $0x117] sm:$0xff]  ;;  %v14005_v40 = vld [vmem:[%s12508_s25 + $0x11f] sm:$0xff]  ;;  %v14008_v39 = vld [vmem:[%s12508_s25 + $0x127] sm:$0xff] }
 0x1f1   : > { %10651 = vmatprep.mubr.msk.bf16.mxu1 %vm295_vm1, %v2281_v11  ;;  %11175 = vmatprep.mubr.msk.bf16.mxu0 %vm295_vm1, %v6587_v43  ;;  %v6588_v11 = vpack.c.bf16 %v13973_v60, %v13970_v35  ;;  %v2283_v43 = vpack.c.bf16 %v13332_v26, %v2245_v23  ;;  %v13999_v26 = vld [vmem:[%s12508_s25 + $0x10f] sm:$0xff]  ;;  %v2284_v23 = vpack.c.bf16 %v13348_v18, %v13335_v51  ;;  %v14028_v18 = vld [vmem:[%s12508_s25 + $0x137] sm:$0xff] }
 0x1f2   : > { %v14025_v51 = vld [vmem:[%s12508_s25 + $0x12f] sm:$0xff] }
 0x1f8   : > { %10652 = vmatmul.mubr.msk.bf16.vlgmr.msra.gmra.mrb[0].mxu1 %vm295_vm1, %v2282_v56  ;;  %11176 = vmatmul.mubr.msk.bf16.gmra.mrb[20].mxu0 %vm295_vm1, %v6588_v11  ;;  %v6590_v56 = vpack.c.bf16 %v14002_v8, %v13999_v26  ;;  %v6591_v11 = vpack.c.bf16 %v14008_v39, %v14005_v40 }
 0x1f9   : > { %10692 = vmatpush3.bf16.msra.mxu1 %v2722_v31  ;;  %10655 = vmatprep.mubr.msk.bf16.mxu1 %vm295_vm1, %v2283_v43  ;;  %v2286_v31 = vpack.c.bf16 %v13379_v49, %v13357_v37  ;;  %v6592_v43 = vpack.c.bf16 %v14028_v18, %v14025_v51  ;;  %v14049_v37 = vld [vmem:[%s12508_s25 + $0x14f] sm:$0xff]  ;;  %v6572_v49 = vld [vmem:[%s12508_s25 + $0x157] sm:$0xff] }
 0x1fa   : > { %11179 = vmatprep.mubr.msk.bf16.mxu0 %vm295_vm1, %v6589_v6  ;;  %12417 = vmatprep.subr.msk.bf16.mxu1 %vm356_vm0, %v13993_v61  ;;  %v2285_v6 = vpack.c.bf16 %v13354_v33, %v13351_v13  ;;  %v14031_v13 = vld [vmem:[%s12508_s25 + $0x13f] sm:$0xff]  ;;  %v14034_v33 = vld [vmem:[%s12508_s25 + $0x147] sm:$0xff] }
 0x200   : > { %10656 = vmatmul.mubr.msk.bf16.gmra.mrb[4].mxu1 %vm295_vm1, %v2284_v23  ;;  %11180 = vmatmul.mubr.msk.bf16.gmra.mrb[24].mxu0 %vm295_vm1, %v6590_v56  ;;  %v2287_v23 = vpack.c.bf16 %v13385_v16, %v13382_v5  ;;  %v6593_v56 = vpack.c.bf16 %v14034_v33, %v14031_v13  ;;  %v6574_v5 = vld [vmem:[%s12508_s25 + $0x167] sm:$0xff]  ;;  %v2288_v16 = vpack.c.bf16 %v13405_v50, %v13388_v55  ;;  %v6576_v55 = vld [vmem:[%s12508_s25 + $0x177] sm:$0xff] }
 0x201   : > { %10659 = vmatprep.mubr.msk.bf16.mxu1 %vm295_vm1, %v2285_v6  ;;  %11183 = vmatprep.mubr.msk.bf16.mxu0 %vm295_vm1, %v6591_v11  ;;  %v6573_v6 = vld [vmem:[%s12508_s25 + $0x15f] sm:$0xff]  ;;  %v6594_v11 = vpack.c.bf16 %v6572_v49, %v14049_v37  ;;  %v2291_v49 = vpack.c.bf16 %v13435_v4, %v13432_v3  ;;  %v14091_v3 = vld [vmem:[%s12508_s25 + $0x68] sm:$0xff]  ;;  %v2292_v4 = vpack.c.bf16 %v13452_v29, %v13438_v59  ;;  %v14111_v59 = vld [vmem:[%s15309_s1 + $0x54] sm:$0xf] }
 0x202   : > { %v14066_v50 = vld [vmem:[%s12508_s25 + $0x40] sm:$0xff]  ;;  %v14119_v29 = vld [vmem:[%s12508_s25 + $0x70] sm:$0xff] }
 0x208   : > { %10660 = vmatmul.mubr.msk.bf16.gmra.mrb[8].mxu1 %vm295_vm1, %v2286_v31  ;;  %11184 = vmatmul.mubr.msk.bf16.gmra.mrb[28].mxu0 %vm295_vm1, %v6592_v43  ;;  %v2289_v31 = vpack.c.bf16 %v13411_v0, %v13408_v34  ;;  %v6595_v43 = vpack.c.bf16 %v6574_v5, %v6573_v6  ;;  %v2290_v34 = vpack.c.bf16 %v13429_v58, %v13414_v10  ;;  %v14082_v5 = vld [vmem:[%s12508_s25 + $0x50] sm:$0xff]  ;;  %v14085_v10 = vld [vmem:[%s12508_s25 + $0x58] sm:$0xff]  ;;  %v14088_v58 = vld [vmem:[%s12508_s25 + $0x60] sm:$0xff] }
 0x209   : > { %10663 = vmatprep.mubr.msk.bf16.mxu1 %vm295_vm1, %v2287_v23  ;;  %11187 = vmatprep.mubr.msk.bf16.mxu0 %vm295_vm1, %v6593_v56  ;;  %v6575_v23 = vld [vmem:[%s12508_s25 + $0x16f] sm:$0xff] }
 0x20a   : > { %v14069_v56 = vld [vmem:[%s12508_s25 + $0x48] sm:$0xff]  ;;  %v6596_v0 = vpack.c.bf16 %v6576_v55, %v6575_v23  ;;  %v2294_v23 = vpack.c.bf16 %v13479_v15, %v13464_v12  ;;  %v14151_v12 = vld [vmem:[%s12508_s25 + $0x90] sm:$0xff]  ;;  %v14154_v15 = vld [vmem:[%s12508_s25 + $0x98] sm:$0xff] }
 0x20b   : > { %v6935_v6 = vpack.c.bf16 %v14069_v56, %v14066_v50 }
 0x210   : > { %10664 = vmatmul.mubr.msk.bf16.gmra.mrb[12].mxu1 %vm295_vm1, %v2288_v16  ;;  %11188 = vmatmul.mubr.msk.bf16.gmra.mrb[32].mxu0 %vm295_vm1, %v6594_v11  ;;  %v14097_v16 = vpack.c.bf16 %v14085_v10, %v14082_v5  ;;  %v2293_v11 = vpack.c.bf16 %v13461_v1, %v13456_v44  ;;  %v14122_v44 = vld [vmem:[%s12508_s25 + $0x78] sm:$0xff]  ;;  %v14125_v1 = vld [vmem:[%s12508_s25 + $0x80] sm:$0xff] }
 0x211   : > { %10667 = vmatprep.mubr.msk.bf16.mxu1 %vm295_vm1, %v2289_v31  ;;  %11191 = vmatprep.mubr.msk.bf16.mxu0 %vm295_vm1, %v6595_v43  ;;  %v14103_v31 = vpack.c.bf16 %v14091_v3, %v14088_v58  ;;  %v7376_v43 = vsel %vm356_vm0, %v13864_v38, 0  ;;  %v14128_v38 = vld [vmem:[%s12508_s25 + $0x88] sm:$0xff]  ;;  %v14136_v55 = vpack.c.bf16 %v14122_v44, %v14119_v29 }
 0x218   : > { %10668 = vmatmul.mubr.msk.bf16.gmra.mrb[16].mxu1 %vm295_vm1, %v2290_v34  ;;  %11192 = vmatmul.mubr.msk.bf16.gmra.mrb[36].mxu0 %vm295_vm1, %v6596_v0  ;;  %v2295_v34 = vpack.c.bf16 %v13488_v32, %v13482_v62  ;;  %v14142_v0 = vpack.c.bf16 %v14128_v38, %v14125_v1  ;;  %v14157_v62 = vld [vmem:[%s12508_s25 + $0xa0] sm:$0xff]  ;;  %v14160_v32 = vld [vmem:[%s12508_s25 + $0xa8] sm:$0xff] }
 0x219   : > { %10671 = vmatprep.mubr.msk.bf16.mxu1 %vm295_vm1, %v2291_v49  ;;  %11197 = vmatprep.mubr.msk.bf16.mxu0 %vm295_vm1, %v6935_v6  ;;  %15570 = vst [vmem:[#allocation47_spill] sm:$0xff] %v14157_v62  ;;  %15571 = vst [vmem:[#allocation48_spill] sm:$0xff] %v14160_v32  ;;  %v2296_v49 = vpack.c.bf16 %v13514_v27, %v13491_v25  ;;  %v14166_v6 = vpack.c.bf16 %v14154_v15, %v14151_v12  ;;  %v14181_v25 = vld [vmem:[%s12508_s25 + $0xb0] sm:$0xff]  ;;  %v14184_v27 = vld [vmem:[%s12508_s25 + $0xb8] sm:$0xff] }
 0x21a   : > { %15572 = vst [vmem:[#allocation49_spill] sm:$0xff] %v14181_v25  ;;  %15573 = vst [vmem:[#allocation50_spill] sm:$0xff] %v14184_v27 }
 0x220   : > { %10672 = vmatmul.mubr.msk.bf16.gmra.mrb[20].mxu1 %vm295_vm1, %v2292_v4  ;;  %11198 = vmatmul.mubr.msk.bf16.vlgmr.msra.gmra.mrb[0].mxu0 %vm295_vm1, %v14097_v16  ;;  %v2297_v4 = vpack.c.bf16 %v13520_v47, %v13517_v46  ;;  %v14187_v46 = vld [vmem:[%s12508_s25 + $0xc0] sm:$0xff]  ;;  %v14190_v47 = vld [vmem:[%s12508_s25 + $0xc8] sm:$0xff] }
 0x221   : > { %10675 = vmatprep.mubr.msk.bf16.mxu1 %vm295_vm1, %v2293_v11  ;;  %11238 = vmatpush3.bf16.msra.mxu0 %v7376_v43  ;;  %v14172_v11 = vpack.c.bf16 %v14160_v32, %v14157_v62  ;;  %15574 = vst [vmem:[#allocation51_spill] sm:$0xff] %v14187_v46  ;;  %15575 = vst [vmem:[#allocation52_spill] sm:$0xff] %v14190_v47  ;;  %v2298_v43 = vpack.c.bf16 %v13540_v52, %v13523_v54  ;;  %v14209_v54 = vld [vmem:[%s12508_s25 + $0xd0] sm:$0xff]  ;;  %v14214_v52 = vld [vmem:[%s12508_s25 + $0xd8] sm:$0xff] }
 0x222   : > { %11201 = vmatprep.mubr.msk.bf16.mxu0 %vm295_vm1, %v14103_v31  ;;  %12431 = vmatprep.subr.msk.bf16.mxu0 %vm356_vm0, %v14111_v59  ;;  %15576 = vst [vmem:[#allocation53_spill] sm:$0xff] %v14209_v54  ;;  %15577 = vst [vmem:[#allocation54_spill] sm:$0xff] %v14214_v52  ;;  %v2602_v32 = vld [vmem:[%s12508_s25 + $0x2e] sm:$0xff]  ;;  %v14270_v62 = vld [vmem:[%s15309_s1 + $0x24] sm:$0xf] }
 0x228   : > { %10676 = vmatmul.mubr.msk.bf16.gmra.mrb[24].mxu1 %vm295_vm1, %v2294_v23  ;;  %11202 = vmatmul.mubr.msk.bf16.gmra.mrb[4].mxu0 %vm295_vm1, %v14136_v55  ;;  %v14196_v23 = vpack.c.bf16 %v14184_v27, %v14181_v25  ;;  %v2601_v25 = vld [vmem:[%s12508_s25 + $0x26] sm:$0xff] }
 0x229   : > { %10679 = vmatprep.mubr.msk.bf16.mxu1 %vm295_vm1, %v2295_v34  ;;  %11205 = vmatprep.mubr.msk.bf16.mxu0 %vm295_vm1, %v14142_v0  ;;  %v2299_v34 = vpack.c.bf16 %v13546_v48, %v13543_v63  ;;  %v2599_v63 = vld [vmem:[%s12508_s25 + $0x16] sm:$0xff]  ;;  %v2600_v48 = vld [vmem:[%s12508_s25 + $0x1e] sm:$0xff] }
 0x230   : > { %10680 = vmatmul.mubr.msk.bf16.gmra.mrb[28].mxu1 %vm295_vm1, %v2296_v49  ;;  %11206 = vmatmul.mubr.msk.bf16.gmra.mrb[8].mxu0 %vm295_vm1, %v14166_v6  ;;  %v14202_v49 = vpack.c.bf16 %v14190_v47, %v14187_v46  ;;  %v14228_v47 = vpack.c.bf16 %v14214_v52, %v14209_v54  ;;  %v2639_v46 = vpack.c.bf16 %v2600_v48, %v2599_v63  ;;  %v2603_v63 = vld [vmem:[%s12508_s25 + $0x36] sm:$0xff]  ;;  %v14250_v48 = vld [vmem:[%s12508_s25 + $0x100] sm:$0xff] }
 0x231   : > { %10683 = vmatprep.mubr.msk.bf16.mxu1 %vm295_vm1, %v2297_v4  ;;  %11209 = vmatprep.mubr.msk.bf16.mxu0 %vm295_vm1, %v14172_v11  ;;  %v14219_v4 = vld [vmem:[%s12508_s25 + $0xe0] sm:$0xff]  ;;  %v2641_v52 = vpack.c.bf16 %v13581_v17, %v2603_v63  ;;  %v14278_v17 = vld [vmem:[%s12508_s25 + $0x110] sm:$0xff] }
 0x232   : > { %15578 = vst [vmem:[#allocation55_spill] sm:$0xff] %v14219_v4  ;;  %15581 = vst [vmem:[#allocation58_spill] sm:$0xff] %v14278_v17 }
 0x238   : > { %10684 = vmatmul.mubr.msk.bf16.gmra.mrb[32].mxu1 %vm295_vm1, %v2298_v43  ;;  %11210 = vmatmul.mubr.msk.bf16.gmra.mrb[12].mxu0 %vm295_vm1, %v14196_v23  ;;  %v14222_v43 = vld [vmem:[%s12508_s25 + $0xe8] sm:$0xff] }
 0x239   : > { %10687 = vmatprep.mubr.msk.bf16.mxu1 %vm295_vm1, %v2299_v34  ;;  %11213 = vmatprep.mubr.msk.bf16.mxu0 %vm295_vm1, %v14202_v49  ;;  %15579 = vst [vmem:[#allocation56_spill] sm:$0xff] %v14222_v43  ;;  %v2300_v34 = vpack.c.bf16 %v13564_v42, %v13549_v45  ;;  %v14232_v27 = vpack.c.bf16 %v14222_v43, %v14219_v4  ;;  %v14243_v45 = vld [vmem:[%s12508_s25 + $0xf0] sm:$0xff]  ;;  %v14246_v42 = vld [vmem:[%s12508_s25 + $0xf8] sm:$0xff]  ;;  %v3080_v4 = vsel %vm356_vm0, %v13993_v61, 0 }
 0x23a   : > { %v2640_v43 = vpack.c.bf16 %v2602_v32, %v2601_v25  ;;  %v14281_v61 = vld [vmem:[%s12508_s25 + $0x118] sm:$0xff]  ;;  %v14284_v32 = vld [vmem:[%s12508_s25 + $0x120] sm:$0xff]  ;;  %v14287_v25 = vld [vmem:[%s12508_s25 + $0x128] sm:$0xff] }
 0x23b   : > { %15582 = vst [vmem:[#allocation59_spill] sm:$0xff] %v14281_v61  ;;  %15583 = vst [vmem:[#allocation60_spill] sm:$0xff] %v14284_v32  ;;  %v14301_v63 = vpack.c.bf16 %v14287_v25, %v14284_v32 }
 0x23c   : > { %15584 = vst [vmem:[#allocation61_spill] sm:$0xff] %v14287_v25 }
 0x240   : > { %10688 = vmatmul.mubr.msk.bf16.gmra.mrb[36].mxu1 %vm295_vm1, %v2300_v34  ;;  %11214 = vmatmul.mubr.msk.bf16.gmra.mrb[16].mxu0 %vm295_vm1, %v14228_v47  ;;  %v14253_v34 = vld [vmem:[%s12508_s25 + $0x108] sm:$0xff] }
 0x241   : > { %10693 = vmatprep.mubr.msk.bf16.mxu1 %vm295_vm1, %v2639_v46  ;;  %11217 = vmatprep.mubr.msk.bf16.mxu0 %vm295_vm1, %v14232_v27  ;;  %15580 = vst [vmem:[#allocation57_spill] sm:$0xff] %v14253_v34  ;;  %v14257_v46 = vpack.c.bf16 %v14246_v42, %v14243_v45  ;;  %v14264_v54 = vpack.c.bf16 %v14253_v34, %v14250_v48  ;;  %v15598_v34 = vld [vmem:[#allocation12_spill] sm:$0xff] }
 0x248   : > { %10694 = vmatmul.mubr.msk.bf16.vlgmr.msra.gmra.mrb[0].mxu1 %vm295_vm1, %v2640_v43  ;;  %11218 = vmatmul.mubr.msk.bf16.gmra.mrb[20].mxu0 %vm295_vm1, %v14257_v46  ;;  %v2643_v43 = vpack.c.bf16 %v13603_v19, %v13600_v9  ;;  %v14316_v9 = vld [vmem:[%s12508_s25 + $0x140] sm:$0xff]  ;;  %v14319_v19 = vld [vmem:[%s12508_s25 + $0x148] sm:$0xff] }
 0x249   : > { %10734 = vmatpush3.bf16.msra.mxu1 %v3080_v4  ;;  %10697 = vmatprep.mubr.msk.bf16.mxu1 %vm295_vm1, %v2641_v52  ;;  %v2642_v52 = vpack.c.bf16 %v13597_v14, %v13584_v30  ;;  %v14295_v4 = vpack.c.bf16 %v14281_v61, %v14278_v17  ;;  %v14310_v30 = vld [vmem:[%s12508_s25 + $0x130] sm:$0xff]  ;;  %v14313_v14 = vld [vmem:[%s12508_s25 + $0x138] sm:$0xff]  ;;  %15587 = vst [vmem:[#allocation64_spill] sm:$0xff] %v14316_v9  ;;  %15588 = vst [vmem:[#allocation65_spill] sm:$0xff] %v14319_v19 }
 0x24a   : > { %11221 = vmatprep.mubr.msk.bf16.mxu0 %vm295_vm1, %v14264_v54  ;;  %12418 = vmatprep.subr.msk.bf16.mxu1 %vm356_vm0, %v14270_v62  ;;  %15585 = vst [vmem:[#allocation62_spill] sm:$0xff] %v14310_v30  ;;  %15586 = vst [vmem:[#allocation63_spill] sm:$0xff] %v14313_v14  ;;  %v14325_v25 = vpack.c.bf16 %v14313_v14, %v14310_v30  ;;  %v14331_v32 = vpack.c.bf16 %v14319_v19, %v14316_v9  ;;  %v15590_v9 = vld [vmem:[#allocation4_spill] sm:$0xff]  ;;  %v15591_v14 = vld [vmem:[#allocation5_spill] sm:$0xff] }
 0x24b   : > { %v2646_v19 = vpack.c.bf16 %v13654_v21, %v13637_v28  ;;  %v2647_v30 = vpack.c.bf16 %v15591_v14, %v15590_v9  ;;  %v6934_v28 = vld [vmem:[%s12508_s25 + $0x178] sm:$0xff]  ;;  %v15594_v14 = vld [vmem:[#allocation8_spill] sm:$0xff]  ;;  %v15595_v9 = vld [vmem:[#allocation9_spill] sm:$0xff] }
 0x24c   : > { %v15592_v21 = vld [vmem:[#allocation6_spill] sm:$0xff] }
 0x250   : > { %10698 = vmatmul.mubr.msk.bf16.gmra.mrb[4].mxu1 %vm295_vm1, %v2642_v52  ;;  %11222 = vmatmul.mubr.msk.bf16.gmra.mrb[24].mxu0 %vm295_vm1, %v14295_v4  ;;  %v2644_v52 = vpack.c.bf16 %v13628_v2, %v13606_v20  ;;  %v14340_v20 = vld [vmem:[%s12508_s25 + $0x150] sm:$0xff]  ;;  %v6930_v2 = vld [vmem:[%s12508_s25 + $0x158] sm:$0xff] }
 0x251   : > { %10701 = vmatprep.mubr.msk.bf16.mxu1 %vm295_vm1, %v2643_v43  ;;  %11225 = vmatprep.mubr.msk.bf16.mxu0 %vm295_vm1, %v14301_v63  ;;  %v2645_v43 = vpack.c.bf16 %v13634_v7, %v13631_v22  ;;  %15589 = vst [vmem:[#allocation66_spill] sm:$0xff] %v14340_v20  ;;  %v6931_v22 = vld [vmem:[%s12508_s25 + $0x160] sm:$0xff]  ;;  %v6932_v7 = vld [vmem:[%s12508_s25 + $0x168] sm:$0xff] }
 0x252   : > { %v14352_v61 = vpack.c.bf16 %v6932_v7, %v6931_v22  ;;  %v2649_v22 = vpack.c.bf16 %v15595_v9, %v15594_v14  ;;  %v15603_v14 = vld [vmem:[#allocation17_spill] sm:$0xff] }
 0x258   : > { %10702 = vmatmul.mubr.msk.bf16.gmra.mrb[8].mxu1 %vm295_vm1, %v2644_v52  ;;  %11226 = vmatmul.mubr.msk.bf16.gmra.mrb[28].mxu0 %vm295_vm1, %v14325_v25  ;;  %v14348_v52 = vpack.c.bf16 %v6930_v2, %v14340_v20  ;;  %v15593_v2 = vld [vmem:[#allocation7_spill] sm:$0xff] }
 0x259   : > { %10705 = vmatprep.mubr.msk.bf16.mxu1 %vm295_vm1, %v2645_v43  ;;  %11229 = vmatprep.mubr.msk.bf16.mxu0 %vm295_vm1, %v14331_v32  ;;  %v6933_v43 = vld [vmem:[%s12508_s25 + $0x170] sm:$0xff]  ;;  %v2648_v20 = vpack.c.bf16 %v15593_v2, %v15592_v21  ;;  %v15602_v2 = vld [vmem:[#allocation16_spill] sm:$0xff] }
 0x25a   : > { %v14364_v17 = vpack.c.bf16 %v6934_v28, %v6933_v43  ;;  %v15599_v21 = vld [vmem:[#allocation13_spill] sm:$0xff]  ;;  %v7734_v28 = vsel %vm356_vm0, %v14111_v59, 0  ;;  %v15601_v59 = vld [vmem:[#allocation15_spill] sm:$0xff]  ;;  %v2653_v9 = vpack.c.bf16 %v15603_v14, %v15602_v2 }
 0x25b   : > { %v2651_v43 = vpack.c.bf16 %v15599_v21, %v15598_v34  ;;  %v2959_v14 = vld [vmem:[%s12508_s25 + $0x27] sm:$0xff] }
 0x260   : > { %10706 = vmatmul.mubr.msk.bf16.gmra.mrb[12].mxu1 %vm295_vm1, %v2646_v19  ;;  %11230 = vmatmul.mubr.msk.bf16.gmra.mrb[32].mxu0 %vm295_vm1, %v14348_v52  ;;  %v15597_v19 = vld [vmem:[#allocation11_spill] sm:$0xff] }
 0x261   : > { %10709 = vmatprep.mubr.msk.bf16.mxu1 %vm295_vm1, %v2647_v30  ;;  %11233 = vmatprep.mubr.msk.bf16.mxu0 %vm295_vm1, %v14352_v61  ;;  %v15596_v30 = vld [vmem:[#allocation10_spill] sm:$0xff] }
 0x262   : > { %v2650_v7 = vpack.c.bf16 %v15597_v19, %v15596_v30  ;;  %v15606_v30 = vld [vmem:[#allocation20_spill] sm:$0xff]  ;;  %v15607_v19 = vld [vmem:[#allocation21_spill] sm:$0xff] }
 0x268   : > { %10710 = vmatmul.mubr.msk.bf16.gmra.mrb[16].mxu1 %vm295_vm1, %v2648_v20  ;;  %11234 = vmatmul.mubr.msk.bf16.gmra.mrb[36].mxu0 %vm295_vm1, %v14364_v17  ;;  %v14384_v20 = vld [vmem:[%s15309_s1 + $0x58] sm:$0xf] }
 0x269   : > { %10713 = vmatprep.mubr.msk.bf16.mxu1 %vm295_vm1, %v2649_v22  ;;  %11239 = vmatprep.mubr.msk.bf16.mxu0 %vm295_vm1, %v14097_v16  ;;  %v15600_v16 = vld [vmem:[#allocation14_spill] sm:$0xff] }
 0x26a   : > { %v2652_v34 = vpack.c.bf16 %v15601_v59, %v15600_v16  ;;  %v2958_v59 = vld [vmem:[%s12508_s25 + $0x1f] sm:$0xff] }
 0x270   : > { %10714 = vmatmul.mubr.msk.bf16.gmra.mrb[20].mxu1 %vm295_vm1, %v2650_v7  ;;  %11240 = vmatmul.mubr.msk.bf16.vlgmr.msra.gmra.mrb[0].mxu0 %vm295_vm1, %v14103_v31  ;;  %v15604_v31 = vld [vmem:[#allocation18_spill] sm:$0xff]  ;;  %v2655_v7 = vpack.c.bf16 %v15607_v19, %v15606_v30  ;;  %v15617_v19 = vld [vmem:[#allocation31_spill] sm:$0xff] }
 0x271   : > { %10717 = vmatprep.mubr.msk.bf16.mxu1 %vm295_vm1, %v2651_v43  ;;  %11280 = vmatpush3.bf16.msra.mxu0 %v7734_v28  ;;  %v15610_v43 = vld [vmem:[#allocation24_spill] sm:$0xff]  ;;  %v15611_v28 = vld [vmem:[#allocation25_spill] sm:$0xff]  ;;  %v15616_v30 = vld [vmem:[#allocation30_spill] sm:$0xff] }
 0x272   : > { %11243 = vmatprep.mubr.msk.bf16.mxu0 %vm295_vm1, %v14136_v55  ;;  %12432 = vmatprep.subr.msk.bf16.mxu0 %vm356_vm0, %v14384_v20  ;;  %v15605_v55 = vld [vmem:[#allocation19_spill] sm:$0xff]  ;;  %v2657_v16 = vpack.c.bf16 %v15611_v28, %v15610_v43  ;;  %v15623_v28 = vld [vmem:[#allocation37_spill] sm:$0xff] }
 0x273   : > { %v2654_v22 = vpack.c.bf16 %v15605_v55, %v15604_v31  ;;  %v3438_v31 = vsel %vm356_vm0, %v14270_v62, 0  ;;  %v15613_v55 = vld [vmem:[#allocation27_spill] sm:$0xff]  ;;  %v15614_v62 = vld [vmem:[#allocation28_spill] sm:$0xff] }
 0x278   : > { %10718 = vmatmul.mubr.msk.bf16.gmra.mrb[24].mxu1 %vm295_vm1, %v2652_v34  ;;  %11244 = vmatmul.mubr.msk.bf16.gmra.mrb[4].mxu0 %vm295_vm1, %v14142_v0  ;;  %v15608_v0 = vld [vmem:[#allocation22_spill] sm:$0xff] }
 0x279   : > { %10721 = vmatprep.mubr.msk.bf16.mxu1 %vm295_vm1, %v2653_v9  ;;  %11247 = vmatprep.mubr.msk.bf16.mxu0 %vm295_vm1, %v14166_v6  ;;  %v15609_v6 = vld [vmem:[#allocation23_spill] sm:$0xff]  ;;  %v2961_v9 = vld [vmem:[%s12508_s25 + $0x37] sm:$0xff] }
 0x27a   : > { %v2656_v21 = vpack.c.bf16 %v15609_v6, %v15608_v0  ;;  %v15620_v6 = vld [vmem:[#allocation34_spill] sm:$0xff] }
 0x280   : > { %10722 = vmatmul.mubr.msk.bf16.gmra.mrb[28].mxu1 %vm295_vm1, %v2654_v22  ;;  %11248 = vmatmul.mubr.msk.bf16.gmra.mrb[8].mxu0 %vm295_vm1, %v14172_v11  ;;  %v2957_v11 = vld [vmem:[%s12508_s25 + $0x17] sm:$0xff] }
 0x281   : > { %10725 = vmatprep.mubr.msk.bf16.mxu1 %vm295_vm1, %v2655_v7  ;;  %11251 = vmatprep.mubr.msk.bf16.mxu0 %vm295_vm1, %v14196_v23  ;;  %v15612_v23 = vld [vmem:[#allocation26_spill] sm:$0xff]  ;;  %v2997_v2 = vpack.c.bf16 %v2958_v59, %v2957_v11  ;;  %v3001_v7 = vpack.c.bf16 %v15617_v19, %v15616_v30  ;;  %v15625_v11 = vld [vmem:[#allocation39_spill] sm:$0xff] }
 0x282   : > { %v2658_v34 = vpack.c.bf16 %v13807_v24, %v15612_v23  ;;  %v2999_v24 = vpack.c.bf16 %v15613_v55, %v2961_v9  ;;  %v14485_v23 = vld [vmem:[%s12508_s25 + $0x51] sm:$0xff] }
 0x288   : > { %10726 = vmatmul.mubr.msk.bf16.gmra.mrb[32].mxu1 %vm295_vm1, %v2656_v21  ;;  %11252 = vmatmul.mubr.msk.bf16.gmra.mrb[12].mxu0 %vm295_vm1, %v14202_v49  ;;  %v2960_v49 = vld [vmem:[%s12508_s25 + $0x2f] sm:$0xff]  ;;  %v15621_v21 = vld [vmem:[#allocation35_spill] sm:$0xff] }
 0x289   : > { %10729 = vmatprep.mubr.msk.bf16.mxu1 %vm295_vm1, %v2657_v16  ;;  %11255 = vmatprep.mubr.msk.bf16.mxu0 %vm295_vm1, %v14228_v47  ;;  %v2998_v47 = vpack.c.bf16 %v2960_v49, %v2959_v14  ;;  %v3003_v43 = vpack.c.bf16 %v15621_v21, %v15620_v6  ;;  %v15624_v16 = vld [vmem:[#allocation38_spill] sm:$0xff]  ;;  %v15627_v14 = vld [vmem:[#allocation41_spill] sm:$0xff] }
 0x28a   : > { %v3005_v59 = vpack.c.bf16 %v15625_v11, %v15624_v16  ;;  %v14526_v6 = vld [vmem:[%s15309_s1 + $0x5c] sm:$0xf]  ;;  %v14561_v11 = vld [vmem:[%s12508_s25 + $0xa9] sm:$0xff] }
 0x28b   : > { %v14541_v21 = vld [vmem:[%s12508_s25 + $0x99] sm:$0xff] }
 0x290   : > { %10730 = vmatmul.mubr.msk.bf16.gmra.mrb[36].mxu1 %vm295_vm1, %v2658_v34  ;;  %11256 = vmatmul.mubr.msk.bf16.gmra.mrb[16].mxu0 %vm295_vm1, %v14232_v27  ;;  %v14443_v27 = vld [vmem:[%s15309_s1 + $0x28] sm:$0xf]  ;;  %v14488_v34 = vld [vmem:[%s12508_s25 + $0x59] sm:$0xff] }
 0x291   : > { %10735 = vmatprep.mubr.msk.bf16.mxu1 %vm295_vm1, %v2997_v2  ;;  %11259 = vmatprep.mubr.msk.bf16.mxu0 %vm295_vm1, %v14257_v46  ;;  %v15615_v46 = vld [vmem:[#allocation29_spill] sm:$0xff]  ;;  %v15626_v2 = vld [vmem:[#allocation40_spill] sm:$0xff]  ;;  %v7651_v55 = vpack.c.bf16 %v14488_v34, %v14485_v23 }
 0x292   : > { %v3000_v22 = vpack.c.bf16 %v15615_v46, %v15614_v62  ;;  %v3006_v49 = vpack.c.bf16 %v15627_v14, %v15626_v2  ;;  %v14507_v62 = vld [vmem:[%s12508_s25 + $0x71] sm:$0xff]  ;;  %v14510_v46 = vld [vmem:[%s12508_s25 + $0x79] sm:$0xff]  ;;  %v3014_v14 = vpack.c.bf16 %v14025_v51, %v14008_v39  ;;  %v14609_v39 = vld [vmem:[%s12508_s25 + $0xe9] sm:$0xff] }
 0x293   : > { %v3315_v51 = vld [vmem:[%s12508_s25 + $0x18] sm:$0xff] }
 0x298   : > { %10736 = vmatmul.mubr.msk.bf16.vlgmr.msra.gmra.mrb[0].mxu1 %vm295_vm1, %v2998_v47  ;;  %11260 = vmatmul.mubr.msk.bf16.gmra.mrb[20].mxu0 %vm295_vm1, %v14264_v54  ;;  %v15618_v54 = vld [vmem:[#allocation32_spill] sm:$0xff]  ;;  %v15628_v47 = vld [vmem:[#allocation42_spill] sm:$0xff] }
 0x299   : > { %10776 = vmatpush3.bf16.msra.mxu1 %v3438_v31  ;;  %10739 = vmatprep.mubr.msk.bf16.mxu1 %vm295_vm1, %v2999_v24  ;;  %v14504_v24 = vld [vmem:[%s12508_s25 + $0x69] sm:$0xff] }
 0x29a   : > { %11263 = vmatprep.mubr.msk.bf16.mxu0 %vm295_vm1, %v14295_v4  ;;  %12419 = vmatprep.subr.msk.bf16.mxu1 %vm356_vm0, %v14443_v27  ;;  %v15619_v4 = vld [vmem:[#allocation33_spill] sm:$0xff] }
 0x29b   : > { %v3002_v0 = vpack.c.bf16 %v15619_v4, %v15618_v54  ;;  %v7653_v4 = vpack.c.bf16 %v14510_v46, %v14507_v62 }
 0x2a0   : > { %10740 = vmatmul.mubr.msk.bf16.gmra.mrb[4].mxu1 %vm295_vm1, %v3000_v22  ;;  %11264 = vmatmul.mubr.msk.bf16.gmra.mrb[24].mxu0 %vm295_vm1, %v14301_v63  ;;  %v15622_v63 = vld [vmem:[#allocation36_spill] sm:$0xff] }
 0x2a1   : > { %10743 = vmatprep.mubr.msk.bf16.mxu1 %vm295_vm1, %v3001_v7  ;;  %11267 = vmatprep.mubr.msk.bf16.mxu0 %vm295_vm1, %v14325_v25  ;;  %v3004_v25 = vpack.c.bf16 %v15623_v28, %v15622_v63  ;;  %v15630_v22 = vld [vmem:[#allocation44_spill] sm:$0xff]  ;;  %v15631_v7 = vld [vmem:[#allocation45_spill] sm:$0xff] }
 0x2a2   : > { %v3008_v30 = vpack.c.bf16 %v13945_v36, %v15630_v22  ;;  %v3009_v54 = vpack.c.bf16 %v15631_v7, %v13949_v41  ;;  %v14532_v36 = vld [vmem:[%s12508_s25 + $0x81] sm:$0xff]  ;;  %v14535_v41 = vld [vmem:[%s12508_s25 + $0x89] sm:$0xff] }
 0x2a3   : > { %v7654_v28 = vpack.c.bf16 %v14535_v41, %v14532_v36  ;;  %v3317_v7 = vld [vmem:[%s12508_s25 + $0x28] sm:$0xff] }
 0x2a8   : > { %10744 = vmatmul.mubr.msk.bf16.gmra.mrb[8].mxu1 %vm295_vm1, %v3002_v0  ;;  %11268 = vmatmul.mubr.msk.bf16.gmra.mrb[28].mxu0 %vm295_vm1, %v14331_v32  ;;  %v7291_v32 = vld [vmem:[%s12508_s25 + $0x180] sm:$0xff]  ;;  %v8092_v0 = vsel %vm356_vm0, %v14384_v20, 0  ;;  %v14538_v20 = vld [vmem:[%s12508_s25 + $0x91] sm:$0xff] }
 0x2a9   : > { %10747 = vmatprep.mubr.msk.bf16.mxu1 %vm295_vm1, %v3003_v43  ;;  %11271 = vmatprep.mubr.msk.bf16.mxu0 %vm295_vm1, %v14348_v52  ;;  %v7292_v52 = vld [vmem:[%s12508_s25 + $0x188] sm:$0xff]  ;;  %v15632_v43 = vld [vmem:[#allocation46_spill] sm:$0xff]  ;;  %v7655_v16 = vpack.c.bf16 %v14541_v21, %v14538_v20 }
 0x2aa   : > { %v7312_v9 = vpack.c.bf16 %v7292_v52, %v7291_v32  ;;  %v3010_v63 = vpack.c.bf16 %v13970_v35, %v15632_v43  ;;  %v14558_v35 = vld [vmem:[%s12508_s25 + $0xa1] sm:$0xff]  ;;  %v3013_v52 = vpack.c.bf16 %v14005_v40, %v14002_v8  ;;  %v14588_v8 = vld [vmem:[%s12508_s25 + $0xd1] sm:$0xff]  ;;  %v14591_v40 = vld [vmem:[%s12508_s25 + $0xd9] sm:$0xff] }
 0x2ab   : > { %v7656_v32 = vpack.c.bf16 %v14561_v11, %v14558_v35  ;;  %v14644_v43 = vld [vmem:[%s12508_s25 + $0x119] sm:$0xff] }
 0x2b0   : > { %10748 = vmatmul.mubr.msk.bf16.gmra.mrb[12].mxu1 %vm295_vm1, %v3004_v25  ;;  %11272 = vmatmul.mubr.msk.bf16.gmra.mrb[32].mxu0 %vm295_vm1, %v14352_v61  ;;  %v15629_v61 = vld [vmem:[#allocation43_spill] sm:$0xff]  ;;  %v3011_v25 = vpack.c.bf16 %v13977_v53, %v13973_v60  ;;  %v14564_v60 = vld [vmem:[%s12508_s25 + $0xb1] sm:$0xff] }
 0x2b1   : > { %10751 = vmatprep.mubr.msk.bf16.mxu1 %vm295_vm1, %v3005_v59  ;;  %11275 = vmatprep.mubr.msk.bf16.mxu0 %vm295_vm1, %v14364_v17  ;;  %v3007_v31 = vpack.c.bf16 %v15629_v61, %v15628_v47  ;;  %v14501_v17 = vld [vmem:[%s12508_s25 + $0x61] sm:$0xff]  ;;  %v14567_v53 = vld [vmem:[%s12508_s25 + $0xb9] sm:$0xff]  ;;  %v3012_v59 = vpack.c.bf16 %v13999_v26, %v13980_v57  ;;  %v14585_v26 = vld [vmem:[%s12508_s25 + $0xc9] sm:$0xff]  ;;  %v7659_v47 = vpack.c.bf16 %v14591_v40, %v14588_v8 }
 0x2b2   : > { %v7652_v19 = vpack.c.bf16 %v14504_v24, %v14501_v17  ;;  %v7657_v2 = vpack.c.bf16 %v14567_v53, %v14564_v60  ;;  %v14582_v57 = vld [vmem:[%s12508_s25 + $0xc1] sm:$0xff] }
 0x2b3   : > { %v14605_v61 = vld [vmem:[%s12508_s25 + $0xe1] sm:$0xff] }
 0x2b4   : > { %v7660_v22 = vpack.c.bf16 %v14609_v39, %v14605_v61 }
 0x2b8   : > { %10752 = vmatmul.mubr.msk.bf16.gmra.mrb[16].mxu1 %vm295_vm1, %v3006_v49  ;;  %11276 = vmatmul.mubr.msk.bf16.gmra.mrb[36].mxu0 %vm295_vm1, %v7312_v9  ;;  %v7658_v49 = vpack.c.bf16 %v14585_v26, %v14582_v57  ;;  %v3015_v9 = vpack.c.bf16 %v14031_v13, %v14028_v18  ;;  %v3316_v18 = vld [vmem:[%s12508_s25 + $0x20] sm:$0xff]  ;;  %v14614_v13 = vld [vmem:[%s12508_s25 + $0xf1] sm:$0xff] }
 0x2b9   : > { %10755 = vmatprep.mubr.msk.bf16.mxu1 %vm295_vm1, %v3007_v31  ;;  %11281 = vmatprep.mubr.msk.bf16.mxu0 %vm295_vm1, %v7651_v55  ;;  %v14617_v31 = vld [vmem:[%s12508_s25 + $0xf9] sm:$0xff]  ;;  %v3016_v55 = vpack.c.bf16 %v14049_v37, %v14034_v33  ;;  %v14635_v33 = vld [vmem:[%s12508_s25 + $0x109] sm:$0xff] }
 0x2ba   : > { %v14638_v37 = vld [vmem:[%s12508_s25 + $0x38] sm:$0xff] }
 0x2c0   : > { %10756 = vmatmul.mubr.msk.bf16.gmra.mrb[20].mxu1 %vm295_vm1, %v3008_v30  ;;  %11282 = vmatmul.mubr.msk.bf16.vlgmr.msra.gmra.mrb[0].mxu0 %vm295_vm1, %v7652_v19  ;;  %v3355_v30 = vpack.c.bf16 %v3316_v18, %v3315_v51  ;;  %v7661_v19 = vpack.c.bf16 %v14617_v31, %v14614_v13  ;;  %v3360_v51 = vpack.c.bf16 %v14119_v29, %v14091_v3  ;;  %v14717_v3 = vld [vmem:[%s12508_s25 + $0x161] sm:$0xff]  ;;  %v7646_v29 = vld [vmem:[%s12508_s25 + $0x169] sm:$0xff] }
 0x2c1   : > { %10759 = vmatprep.mubr.msk.bf16.mxu1 %vm295_vm1, %v3009_v54  ;;  %11322 = vmatpush3.bf16.msra.mxu0 %v8092_v0  ;;  %v3318_v54 = vld [vmem:[%s12508_s25 + $0x30] sm:$0xff] }
 0x2c2   : > { %11285 = vmatprep.mubr.msk.bf16.mxu0 %vm295_vm1, %v7653_v4  ;;  %12433 = vmatprep.subr.msk.bf16.mxu0 %vm356_vm0, %v14526_v6  ;;  %v14632_v4 = vld [vmem:[%s12508_s25 + $0x101] sm:$0xff]  ;;  %v14641_v0 = vld [vmem:[%s12508_s25 + $0x111] sm:$0xff] }
 0x2c8   : > { %10760 = vmatmul.mubr.msk.bf16.gmra.mrb[24].mxu1 %vm295_vm1, %v3010_v63  ;;  %11286 = vmatmul.mubr.msk.bf16.gmra.mrb[4].mxu0 %vm295_vm1, %v7654_v28  ;;  %v14646_v63 = vpack.c.bf16 %v3318_v54, %v3317_v7  ;;  %v7662_v28 = vpack.c.bf16 %v14635_v33, %v14632_v4  ;;  %v15633_v7 = vld [vmem:[#allocation47_spill] sm:$0xff] }
 0x2c9   : > { %10763 = vmatprep.mubr.msk.bf16.mxu1 %vm295_vm1, %v3011_v25  ;;  %11289 = vmatprep.mubr.msk.bf16.mxu0 %vm295_vm1, %v7655_v16  ;;  %v3796_v25 = vsel %vm356_vm0, %v14443_v27, 0  ;;  %v3357_v16 = vpack.c.bf16 %v14066_v50, %v14638_v37  ;;  %v14667_v50 = vld [vmem:[%s12508_s25 + $0x121] sm:$0xff]  ;;  %v14670_v27 = vld [vmem:[%s12508_s25 + $0x129] sm:$0xff]  ;;  %v3363_v54 = vpack.c.bf16 %v15633_v7, %v14154_v15 }
 0x2d0   : > { %10764 = vmatmul.mubr.msk.bf16.gmra.mrb[28].mxu1 %vm295_vm1, %v3012_v59  ;;  %11290 = vmatmul.mubr.msk.bf16.gmra.mrb[8].mxu0 %vm295_vm1, %v7656_v32  ;;  %v7663_v59 = vpack.c.bf16 %v14644_v43, %v14641_v0  ;;  %v14661_v32 = vld [vmem:[%s15309_s1 + $0x2c] sm:$0xf] }
 0x2d1   : > { %10767 = vmatprep.mubr.msk.bf16.mxu1 %vm295_vm1, %v3013_v52  ;;  %11293 = vmatprep.mubr.msk.bf16.mxu0 %vm295_vm1, %v7657_v2  ;;  %v14673_v52 = vld [vmem:[%s12508_s25 + $0x131] sm:$0xff]  ;;  %v14676_v2 = vld [vmem:[%s12508_s25 + $0x139] sm:$0xff] }
 0x2d8   : > { %10768 = vmatmul.mubr.msk.bf16.gmra.mrb[32].mxu1 %vm295_vm1, %v3014_v14  ;;  %11294 = vmatmul.mubr.msk.bf16.gmra.mrb[12].mxu0 %vm295_vm1, %v7658_v49  ;;  %v3358_v14 = vpack.c.bf16 %v14082_v5, %v14069_v56  ;;  %v7664_v49 = vpack.c.bf16 %v14670_v27, %v14667_v50  ;;  %v14693_v56 = vld [vmem:[%s12508_s25 + $0x141] sm:$0xff]  ;;  %v14696_v5 = vld [vmem:[%s12508_s25 + $0x149] sm:$0xff] }
 0x2d9   : > { %10771 = vmatprep.mubr.msk.bf16.mxu1 %vm295_vm1, %v3015_v9  ;;  %11297 = vmatprep.mubr.msk.bf16.mxu0 %vm295_vm1, %v7659_v47  ;;  %v3359_v9 = vpack.c.bf16 %v14088_v58, %v14085_v10  ;;  %v7665_v47 = vpack.c.bf16 %v14676_v2, %v14673_v52  ;;  %v14699_v10 = vld [vmem:[%s12508_s25 + $0x151] sm:$0xff]  ;;  %v14702_v58 = vld [vmem:[%s12508_s25 + $0x159] sm:$0xff]  ;;  %v7666_v18 = vpack.c.bf16 %v14696_v5, %v14693_v56 }
 0x2e0   : > { %10772 = vmatmul.mubr.msk.bf16.gmra.mrb[36].mxu1 %vm295_vm1, %v3016_v55  ;;  %11298 = vmatmul.mubr.msk.bf16.gmra.mrb[16].mxu0 %vm295_vm1, %v7660_v22  ;;  %v3361_v55 = vpack.c.bf16 %v14125_v1, %v14122_v44  ;;  %v7667_v22 = vpack.c.bf16 %v14702_v58, %v14699_v10  ;;  %v7648_v44 = vld [vmem:[%s12508_s25 + $0x179] sm:$0xff]  ;;  %v3362_v1 = vpack.c.bf16 %v14151_v12, %v14128_v38  ;;  %v7650_v38 = vld [vmem:[%s12508_s25 + $0x189] sm:$0xff] }
 0x2e1   : > { %10777 = vmatprep.mubr.msk.bf16.mxu1 %vm295_vm1, %v3355_v30  ;;  %11301 = vmatprep.mubr.msk.bf16.mxu0 %vm295_vm1, %v7661_v19  ;;  %v7647_v30 = vld [vmem:[%s12508_s25 + $0x171] sm:$0xff]  ;;  %v7668_v19 = vpack.c.bf16 %v7646_v29, %v14717_v3 }
 0x2e2   : > { %v7969_v12 = vld [vmem:[%s12508_s25 + $0x52] sm:$0xff] }
 0x2e3   : > { %v7973_v29 = vld [vmem:[%s12508_s25 + $0x72] sm:$0xff] }
 0x2e8   : > { %10778 = vmatmul.mubr.msk.bf16.vlgmr.msra.gmra.mrb[0].mxu1 %vm295_vm1, %v14646_v63  ;;  %11302 = vmatmul.mubr.msk.bf16.gmra.mrb[20].mxu0 %vm295_vm1, %v7662_v28  ;;  %v7669_v28 = vpack.c.bf16 %v7648_v44, %v7647_v30  ;;  %v7974_v30 = vld [vmem:[%s12508_s25 + $0x7a] sm:$0xff]  ;;  %v15638_v44 = vld [vmem:[#allocation52_spill] sm:$0xff] }
 0x2e9   : > { %10818 = vmatpush3.bf16.msra.mxu1 %v3796_v25  ;;  %10781 = vmatprep.mubr.msk.bf16.mxu1 %vm295_vm1, %v3357_v16  ;;  %v7649_v25 = vld [vmem:[%s12508_s25 + $0x181] sm:$0xff] }
 0x2ea   : > { %11305 = vmatprep.mubr.msk.bf16.mxu0 %vm295_vm1, %v7663_v59  ;;  %12420 = vmatprep.subr.msk.bf16.mxu1 %vm356_vm0, %v14661_v32  ;;  %v7970_v16 = vld [vmem:[%s12508_s25 + $0x5a] sm:$0xff]  ;;  %v15634_v59 = vld [vmem:[#allocation48_spill] sm:$0xff] }
 0x2f0   : > { %10782 = vmatmul.mubr.msk.bf16.gmra.mrb[4].mxu1 %vm295_vm1, %v3358_v14  ;;  %11306 = vmatmul.mubr.msk.bf16.gmra.mrb[24].mxu0 %vm295_vm1, %v7664_v49  ;;  %v15635_v14 = vld [vmem:[#allocation49_spill] sm:$0xff]  ;;  %v7670_v49 = vpack.c.bf16 %v7650_v38, %v7649_v25  ;;  %v8011_v38 = vpack.c.bf16 %v7974_v30, %v7973_v29  ;;  %v7982_v29 = vld [vmem:[%s12508_s25 + $0xba] sm:$0xff] }
 0x2f1   : > { %10785 = vmatprep.mubr.msk.bf16.mxu1 %vm295_vm1, %v3359_v9  ;;  %11309 = vmatprep.mubr.msk.bf16.mxu0 %vm295_vm1, %v7665_v47  ;;  %v3364_v15 = vpack.c.bf16 %v15635_v14, %v15634_v59  ;;  %v15636_v9 = vld [vmem:[#allocation50_spill] sm:$0xff]  ;;  %v15637_v47 = vld [vmem:[#allocation51_spill] sm:$0xff]  ;;  %v15643_v30 = vld [vmem:[#allocation57_spill] sm:$0xff] }
 0x2f2   : > { %v7975_v59 = vld [vmem:[%s12508_s25 + $0x82] sm:$0xff]  ;;  %v7977_v14 = vld [vmem:[%s12508_s25 + $0x92] sm:$0xff] }
 0x2f8   : > { %10786 = vmatmul.mubr.msk.bf16.gmra.mrb[8].mxu1 %vm295_vm1, %v3360_v51  ;;  %11310 = vmatmul.mubr.msk.bf16.gmra.mrb[28].mxu0 %vm295_vm1, %v7666_v18  ;;  %v3365_v51 = vpack.c.bf16 %v15637_v47, %v15636_v9  ;;  %v8009_v18 = vpack.c.bf16 %v7970_v16, %v7969_v12  ;;  %v8450_v12 = vsel %vm356_vm0, %v14526_v6, 0  ;;  %v14757_v16 = vld [vmem:[%s15309_s1 + $0x60] sm:$0xf]  ;;  %v7976_v6 = vld [vmem:[%s12508_s25 + $0x8a] sm:$0xff] }
 0x2f9   : > { %10789 = vmatprep.mubr.msk.bf16.mxu1 %vm295_vm1, %v3361_v55  ;;  %11313 = vmatprep.mubr.msk.bf16.mxu0 %vm295_vm1, %v7667_v22  ;;  %v7971_v55 = vld [vmem:[%s12508_s25 + $0x62] sm:$0xff]  ;;  %v7972_v22 = vld [vmem:[%s12508_s25 + $0x6a] sm:$0xff]  ;;  %v8012_v47 = vpack.c.bf16 %v7976_v6, %v7975_v59  ;;  %v15648_v6 = vld [vmem:[#allocation62_spill] sm:$0xff] }
 0x2fa   : > { %v8010_v7 = vpack.c.bf16 %v7972_v22, %v7971_v55  ;;  %v7979_v55 = vld [vmem:[%s12508_s25 + $0xa2] sm:$0xff]  ;;  %v7980_v22 = vld [vmem:[%s12508_s25 + $0xaa] sm:$0xff] }
 0x2fb   : > { %v15647_v59 = vld [vmem:[#allocation61_spill] sm:$0xff] }
 0x300   : > { %10790 = vmatmul.mubr.msk.bf16.gmra.mrb[12].mxu1 %vm295_vm1, %v3362_v1  ;;  %11314 = vmatmul.mubr.msk.bf16.gmra.mrb[32].mxu0 %vm295_vm1, %v7668_v19  ;;  %v15639_v1 = vld [vmem:[#allocation53_spill] sm:$0xff] }
 0x301   : > { %10793 = vmatprep.mubr.msk.bf16.mxu1 %vm295_vm1, %v3363_v54  ;;  %11317 = vmatprep.mubr.msk.bf16.mxu0 %vm295_vm1, %v7669_v28  ;;  %v3366_v19 = vpack.c.bf16 %v15639_v1, %v15638_v44  ;;  %v15640_v54 = vld [vmem:[#allocation54_spill] sm:$0xff]  ;;  %v15641_v28 = vld [vmem:[#allocation55_spill] sm:$0xff] }
 0x302   : > { %v3367_v25 = vpack.c.bf16 %v15641_v28, %v15640_v54  ;;  %v15644_v44 = vld [vmem:[#allocation58_spill] sm:$0xff]  ;;  %v15645_v1 = vld [vmem:[#allocation59_spill] sm:$0xff] }
 0x303   : > { %v7983_v28 = vld [vmem:[%s12508_s25 + $0xc2] sm:$0xff] }
 0x308   : > { %10794 = vmatmul.mubr.msk.bf16.gmra.mrb[16].mxu1 %vm295_vm1, %v3364_v15  ;;  %11318 = vmatmul.mubr.msk.bf16.gmra.mrb[36].mxu0 %vm295_vm1, %v7670_v49  ;;  %v7978_v15 = vld [vmem:[%s12508_s25 + $0x9a] sm:$0xff]  ;;  %v15642_v49 = vld [vmem:[#allocation56_spill] sm:$0xff] }
 0x309   : > { %10797 = vmatprep.mubr.msk.bf16.mxu1 %vm295_vm1, %v3365_v51  ;;  %11323 = vmatprep.mubr.msk.bf16.mxu0 %vm295_vm1, %v8009_v18  ;;  %v3368_v9 = vpack.c.bf16 %v14243_v45, %v15642_v49  ;;  %v3369_v51 = vpack.c.bf16 %v14250_v48, %v14246_v42  ;;  %v8013_v18 = vpack.c.bf16 %v7978_v15, %v7977_v14  ;;  %v7981_v45 = vld [vmem:[%s12508_s25 + $0xb2] sm:$0xff]  ;;  %v15649_v49 = vld [vmem:[#allocation63_spill] sm:$0xff] }
 0x30a   : > { %v3370_v42 = vpack.c.bf16 %v15644_v44, %v15643_v30  ;;  %v8014_v48 = vpack.c.bf16 %v7980_v22, %v7979_v55  ;;  %v8015_v54 = vpack.c.bf16 %v7982_v29, %v7981_v45  ;;  %v3372_v14 = vpack.c.bf16 %v15648_v6, %v15647_v59  ;;  %v14813_v55 = vld [vmem:[%s12508_s25 + $0xea] sm:$0xff]  ;;  %v14816_v22 = vld [vmem:[%s12508_s25 + $0xf2] sm:$0xff]  ;;  %v14819_v45 = vld [vmem:[%s12508_s25 + $0xfa] sm:$0xff] }
 0x30b   : > { %v15651_v29 = vld [vmem:[#allocation65_spill] sm:$0xff]  ;;  %v15652_v30 = vld [vmem:[#allocation66_spill] sm:$0xff] }
 0x30c   : > { %v3374_v44 = vpack.c.bf16 %v15652_v30, %v15651_v29  ;;  %v14842_v59 = vld [vmem:[%s12508_s25 + $0x112] sm:$0xff]  ;;  %v14845_v6 = vld [vmem:[%s12508_s25 + $0x11a] sm:$0xff]  ;;  %v3681_v29 = vld [vmem:[%s12508_s25 + $0x68] sm:$0xff] }
 0x30d   : > { %v3682_v30 = vld [vmem:[%s12508_s25 + $0x70] sm:$0xff] }
 0x310   : > { %10798 = vmatmul.mubr.msk.bf16.gmra.mrb[20].mxu1 %vm295_vm1, %v3366_v19  ;;  %11324 = vmatmul.mubr.msk.bf16.vlgmr.msra.gmra.mrb[0].mxu0 %vm295_vm1, %v8010_v7  ;;  %v15646_v19 = vld [vmem:[#allocation60_spill] sm:$0xff] }
 0x311   : > { %10801 = vmatprep.mubr.msk.bf16.mxu1 %vm295_vm1, %v3367_v25  ;;  %11364 = vmatpush3.bf16.msra.mxu0 %v8450_v12  ;;  %v3371_v7 = vpack.c.bf16 %v15646_v19, %v15645_v1  ;;  %v14790_v25 = vld [vmem:[%s12508_s25 + $0xca] sm:$0xff]  ;;  %v14796_v12 = vld [vmem:[%s12508_s25 + $0xda] sm:$0xff]  ;;  %v14834_v19 = vld [vmem:[%s12508_s25 + $0x102] sm:$0xff] }
 0x312   : > { %11327 = vmatprep.mubr.msk.bf16.mxu0 %vm295_vm1, %v8011_v38  ;;  %12434 = vmatprep.subr.msk.bf16.mxu0 %vm356_vm0, %v14757_v16  ;;  %v14793_v38 = vld [vmem:[%s12508_s25 + $0xd2] sm:$0xff]  ;;  %v8016_v15 = vpack.c.bf16 %v14790_v25, %v7983_v28  ;;  %v3676_v1 = vld [vmem:[%s12508_s25 + $0x40] sm:$0xff] }
 0x313   : > { %v3678_v28 = vld [vmem:[%s12508_s25 + $0x50] sm:$0xff] }
 0x318   : > { %10802 = vmatmul.mubr.msk.bf16.gmra.mrb[24].mxu1 %vm295_vm1, %v3368_v9  ;;  %11328 = vmatmul.mubr.msk.bf16.gmra.mrb[4].mxu0 %vm295_vm1, %v8012_v47  ;;  %v15650_v9 = vld [vmem:[#allocation64_spill] sm:$0xff] }
 0x319   : > { %10805 = vmatprep.mubr.msk.bf16.mxu1 %vm295_vm1, %v3369_v51  ;;  %11331 = vmatprep.mubr.msk.bf16.mxu0 %vm295_vm1, %v8013_v18  ;;  %v3373_v47 = vpack.c.bf16 %v15650_v9, %v15649_v49  ;;  %v8017_v51 = vpack.c.bf16 %v14796_v12, %v14793_v38  ;;  %v14810_v18 = vld [vmem:[%s12508_s25 + $0xe2] sm:$0xff]  ;;  %v8021_v9 = vpack.c.bf16 %v14845_v6, %v14842_v59 }
 0x320   : > { %10806 = vmatmul.mubr.msk.bf16.gmra.mrb[28].mxu1 %vm295_vm1, %v3370_v42  ;;  %11332 = vmatmul.mubr.msk.bf16.gmra.mrb[8].mxu0 %vm295_vm1, %v8014_v48  ;;  %v8018_v42 = vpack.c.bf16 %v14813_v55, %v14810_v18  ;;  %v8019_v48 = vpack.c.bf16 %v14819_v45, %v14816_v22 }
 0x321   : > { %10809 = vmatprep.mubr.msk.bf16.mxu1 %vm295_vm1, %v3371_v7  ;;  %11335 = vmatprep.mubr.msk.bf16.mxu0 %vm295_vm1, %v8015_v54  ;;  %v14837_v7 = vld [vmem:[%s12508_s25 + $0x10a] sm:$0xff] }
 0x322   : > { %v3677_v54 = vld [vmem:[%s12508_s25 + $0x48] sm:$0xff] }
 0x323   : > { %v3715_v49 = vpack.c.bf16 %v3678_v28, %v3677_v54  ;;  %v3717_v28 = vpack.c.bf16 %v3682_v30, %v3681_v29  ;;  %v14897_v29 = vld [vmem:[%s12508_s25 + $0x152] sm:$0xff]  ;;  %v14900_v30 = vld [vmem:[%s12508_s25 + $0x15a] sm:$0xff] }
 0x324   : > { %15659 = vst [vmem:[#allocation10_spill] sm:$0xff] %v14897_v29  ;;  %15660 = vst [vmem:[#allocation11_spill] sm:$0xff] %v14900_v30 }
 0x328   : > { %10810 = vmatmul.mubr.msk.bf16.gmra.mrb[32].mxu1 %vm295_vm1, %v3372_v14  ;;  %11336 = vmatmul.mubr.msk.bf16.gmra.mrb[12].mxu0 %vm295_vm1, %v8016_v15  ;;  %v8020_v14 = vpack.c.bf16 %v14837_v7, %v14834_v19  ;;  %v4154_v15 = vsel %vm356_vm0, %v14661_v32, 0  ;;  %v14864_v32 = vld [vmem:[%s12508_s25 + $0x12a] sm:$0xff] }
 0x329   : > { %10813 = vmatprep.mubr.msk.bf16.mxu1 %vm295_vm1, %v3373_v47  ;;  %11339 = vmatprep.mubr.msk.bf16.mxu0 %vm295_vm1, %v8017_v51  ;;  %v3679_v47 = vld [vmem:[%s12508_s25 + $0x58] sm:$0xff]  ;;  %v3680_v51 = vld [vmem:[%s12508_s25 + $0x60] sm:$0xff]  ;;  %15654 = vst [vmem:[#allocation5_spill] sm:$0xff] %v14864_v32 }
 0x330   : > { %10814 = vmatmul.mubr.msk.bf16.gmra.mrb[36].mxu1 %vm295_vm1, %v3374_v44  ;;  %11340 = vmatmul.mubr.msk.bf16.gmra.mrb[16].mxu0 %vm295_vm1, %v8018_v42  ;;  %v14869_v44 = vld [vmem:[%s12508_s25 + $0x132] sm:$0xff]  ;;  %v14872_v42 = vld [vmem:[%s12508_s25 + $0x13a] sm:$0xff] }
 0x331   : > { %10819 = vmatprep.mubr.msk.bf16.mxu1 %vm295_vm1, %v14646_v63  ;;  %11343 = vmatprep.mubr.msk.bf16.mxu0 %vm295_vm1, %v8019_v48  ;;  %v3714_v63 = vpack.c.bf16 %v3676_v1, %v14638_v37  ;;  %v14859_v37 = vld [vmem:[%s12508_s25 + $0x122] sm:$0xff]  ;;  %15655 = vst [vmem:[#allocation6_spill] sm:$0xff] %v14869_v44  ;;  %15656 = vst [vmem:[#allocation7_spill] sm:$0xff] %v14872_v42  ;;  %v12444_v48 = vld [vmem:[%s15309_s1 + $0x30] sm:$0xf]  ;;  %v3716_v1 = vpack.c.bf16 %v3680_v51, %v3679_v47 }
 0x332   : > { %15653 = vst [vmem:[#allocation4_spill] sm:$0xff] %v14859_v37  ;;  %v8022_v54 = vpack.c.bf16 %v14864_v32, %v14859_v37  ;;  %v3685_v47 = vld [vmem:[%s12508_s25 + $0x88] sm:$0xff]  ;;  %v3686_v51 = vld [vmem:[%s12508_s25 + $0x90] sm:$0xff] }
 0x333   : > { %v8008_v32 = vld [vmem:[%s12508_s25 + $0x18a] sm:$0xff] }
 0x334   : > { %v3697_v37 = vld [vmem:[%s12508_s25 + $0xe8] sm:$0xff] }
 0x338   : > { %10820 = vmatmul.mubr.msk.bf16.vlgmr.msra.gmra.mrb[0].mxu1 %vm295_vm1, %v3714_v63  ;;  %11344 = vmatmul.mubr.msk.bf16.gmra.mrb[20].mxu0 %vm295_vm1, %v8020_v14  ;;  %v8023_v63 = vpack.c.bf16 %v14872_v42, %v14869_v44  ;;  %v3683_v14 = vld [vmem:[%s12508_s25 + $0x78] sm:$0xff]  ;;  %v3688_v42 = vld [vmem:[%s12508_s25 + $0xa0] sm:$0xff] }
 0x339   : > { %10860 = vmatpush3.bf16.msra.mxu1 %v4154_v15  ;;  %10823 = vmatprep.mubr.msk.bf16.mxu1 %vm295_vm1, %v3715_v49  ;;  %v3684_v15 = vld [vmem:[%s12508_s25 + $0x80] sm:$0xff] }
 0x33a   : > { %11347 = vmatprep.mubr.msk.bf16.mxu0 %vm295_vm1, %v8021_v9  ;;  %12422 = vmatprep.subr.msk.bf16.mxu1 %vm356_vm0, %v12444_v48  ;;  %v14888_v49 = vld [vmem:[%s12508_s25 + $0x142] sm:$0xff]  ;;  %v14892_v9 = vld [vmem:[%s12508_s25 + $0x14a] sm:$0xff]  ;;  %v3718_v48 = vpack.c.bf16 %v3684_v15, %v3683_v14 }
 0x33b   : > { %15657 = vst [vmem:[#allocation8_spill] sm:$0xff] %v14888_v49  ;;  %15658 = vst [vmem:[#allocation9_spill] sm:$0xff] %v14892_v9  ;;  %v14912_v44 = vld [vmem:[%s12508_s25 + $0x162] sm:$0xff]  ;;  %v8004_v14 = vld [vmem:[%s12508_s25 + $0x16a] sm:$0xff] }
 0x33c   : > { %15661 = vst [vmem:[#allocation12_spill] sm:$0xff] %v14912_v44  ;;  %v3689_v15 = vld [vmem:[%s12508_s25 + $0xa8] sm:$0xff] }
 0x340   : > { %10824 = vmatmul.mubr.msk.bf16.gmra.mrb[4].mxu1 %vm295_vm1, %v3716_v1  ;;  %11348 = vmatmul.mubr.msk.bf16.gmra.mrb[24].mxu0 %vm295_vm1, %v8022_v54  ;;  %v8024_v1 = vpack.c.bf16 %v14892_v9, %v14888_v49  ;;  %v3719_v54 = vpack.c.bf16 %v3686_v51, %v3685_v47  ;;  %v3690_v47 = vld [vmem:[%s12508_s25 + $0xb0] sm:$0xff]  ;;  %v3692_v9 = vld [vmem:[%s12508_s25 + $0xc0] sm:$0xff] }
 0x341   : > { %10827 = vmatprep.mubr.msk.bf16.mxu1 %vm295_vm1, %v3717_v28  ;;  %11351 = vmatprep.mubr.msk.bf16.mxu0 %vm295_vm1, %v8023_v63  ;;  %v8025_v28 = vpack.c.bf16 %v14900_v30, %v14897_v29  ;;  %v3687_v63 = vld [vmem:[%s12508_s25 + $0x98] sm:$0xff]  ;;  %v3721_v30 = vpack.c.bf16 %v3690_v47, %v3689_v15  ;;  %v8007_v49 = vld [vmem:[%s12508_s25 + $0x182] sm:$0xff] }
 0x342   : > { %v8005_v51 = vld [vmem:[%s12508_s25 + $0x172] sm:$0xff]  ;;  %v8328_v15 = vld [vmem:[%s12508_s25 + $0x5b] sm:$0xff] }
 0x348   : > { %10828 = vmatmul.mubr.msk.bf16.gmra.mrb[8].mxu1 %vm295_vm1, %v3718_v48  ;;  %11352 = vmatmul.mubr.msk.bf16.gmra.mrb[28].mxu0 %vm295_vm1, %v8024_v1  ;;  %v8006_v48 = vld [vmem:[%s12508_s25 + $0x17a] sm:$0xff]  ;;  %v3720_v1 = vpack.c.bf16 %v3688_v42, %v3687_v63  ;;  %v3693_v42 = vld [vmem:[%s12508_s25 + $0xc8] sm:$0xff]  ;;  %v3694_v63 = vld [vmem:[%s12508_s25 + $0xd0] sm:$0xff] }
 0x349   : > { %10831 = vmatprep.mubr.msk.bf16.mxu1 %vm295_vm1, %v3719_v54  ;;  %11355 = vmatprep.mubr.msk.bf16.mxu0 %vm295_vm1, %v8025_v28  ;;  %v8026_v54 = vpack.c.bf16 %v8004_v14, %v14912_v44  ;;  %v8027_v29 = vpack.c.bf16 %v8006_v48, %v8005_v51  ;;  %v3691_v28 = vld [vmem:[%s12508_s25 + $0xb8] sm:$0xff]  ;;  %v3723_v51 = vpack.c.bf16 %v3694_v63, %v3693_v42  ;;  %v8330_v44 = vld [vmem:[%s12508_s25 + $0x6b] sm:$0xff] }
 0x34a   : > { %v8327_v14 = vld [vmem:[%s12508_s25 + $0x53] sm:$0xff]  ;;  %v3722_v47 = vpack.c.bf16 %v3692_v9, %v3691_v28 }
 0x34b   : > { %v8367_v48 = vpack.c.bf16 %v8328_v15, %v8327_v14  ;;  %v3698_v9 = vld [vmem:[%s12508_s25 + $0xf0] sm:$0xff]  ;;  %v8808_v15 = vsel %vm356_vm0, %v14757_v16, 0 }
 0x34c   : > { %v3725_v63 = vpack.c.bf16 %v3698_v9, %v3697_v37  ;;  %v8334_v37 = vld [vmem:[%s12508_s25 + $0x8b] sm:$0xff] }
 0x34d   : > { %v3702_v16 = vld [vmem:[%s12508_s25 + $0x110] sm:$0xff] }
 0x350   : > { %10832 = vmatmul.mubr.msk.bf16.gmra.mrb[12].mxu1 %vm295_vm1, %v3720_v1  ;;  %11356 = vmatmul.mubr.msk.bf16.gmra.mrb[32].mxu0 %vm295_vm1, %v8026_v54  ;;  %v3696_v1 = vld [vmem:[%s12508_s25 + $0xe0] sm:$0xff] }
 0x351   : > { %10835 = vmatprep.mubr.msk.bf16.mxu1 %vm295_vm1, %v3721_v30  ;;  %11359 = vmatprep.mubr.msk.bf16.mxu0 %vm295_vm1, %v8027_v29  ;;  %v8028_v30 = vpack.c.bf16 %v8008_v32, %v8007_v49  ;;  %v3695_v29 = vld [vmem:[%s12508_s25 + $0xd8] sm:$0xff]  ;;  %v8329_v54 = vld [vmem:[%s12508_s25 + $0x63] sm:$0xff] }
 0x352   : > { %v8331_v32 = vld [vmem:[%s12508_s25 + $0x73] sm:$0xff]  ;;  %v8332_v49 = vld [vmem:[%s12508_s25 + $0x7b] sm:$0xff]  ;;  %v3724_v28 = vpack.c.bf16 %v3696_v1, %v3695_v29  ;;  %v8368_v42 = vpack.c.bf16 %v8330_v44, %v8329_v54  ;;  %v3701_v44 = vld [vmem:[%s12508_s25 + $0x108] sm:$0xff] }
 0x353   : > { %v8369_v14 = vpack.c.bf16 %v8332_v49, %v8331_v32  ;;  %v8336_v29 = vld [vmem:[%s12508_s25 + $0x9b] sm:$0xff]  ;;  %v3727_v9 = vpack.c.bf16 %v3702_v16, %v3701_v44 }
 0x354   : > { %v3703_v49 = vld [vmem:[%s12508_s25 + $0x118] sm:$0xff] }
 0x358   : > { %10836 = vmatmul.mubr.msk.bf16.gmra.mrb[16].mxu1 %vm295_vm1, %v3722_v47  ;;  %11360 = vmatmul.mubr.msk.bf16.gmra.mrb[36].mxu0 %vm295_vm1, %v8028_v30  ;;  %v3699_v47 = vld [vmem:[%s12508_s25 + $0xf8] sm:$0xff]  ;;  %v3700_v30 = vld [vmem:[%s12508_s25 + $0x100] sm:$0xff] }
 0x359   : > { %10839 = vmatprep.mubr.msk.bf16.mxu1 %vm295_vm1, %v3723_v51  ;;  %11365 = vmatprep.mubr.msk.bf16.mxu0 %vm295_vm1, %v8367_v48  ;;  %v8333_v51 = vld [vmem:[%s12508_s25 + $0x83] sm:$0xff]  ;;  %v8335_v48 = vld [vmem:[%s12508_s25 + $0x93] sm:$0xff]  ;;  %v3726_v1 = vpack.c.bf16 %v3700_v30, %v3699_v47  ;;  %v8340_v30 = vld [vmem:[%s12508_s25 + $0xbb] sm:$0xff] }
 0x35a   : > { %v8370_v54 = vpack.c.bf16 %v8334_v37, %v8333_v51  ;;  %v8371_v32 = vpack.c.bf16 %v8336_v29, %v8335_v48  ;;  %v8339_v47 = vld [vmem:[%s12508_s25 + $0xb3] sm:$0xff]  ;;  %v3708_v29 = vld [vmem:[%s12508_s25 + $0x140] sm:$0xff] }
 0x35b   : > { %v8373_v16 = vpack.c.bf16 %v8340_v30, %v8339_v47  ;;  %v3707_v48 = vld [vmem:[%s12508_s25 + $0x138] sm:$0xff]  ;;  %v3712_v30 = vld [vmem:[%s12508_s25 + $0x160] sm:$0xff] }
 0x35c   : > { %v3711_v47 = vld [vmem:[%s12508_s25 + $0x158] sm:$0xff] }
 0x360   : > { %10840 = vmatmul.mubr.msk.bf16.gmra.mrb[20].mxu1 %vm295_vm1, %v3724_v28  ;;  %11366 = vmatmul.mubr.msk.bf16.vlgmr.msra.gmra.mrb[0].mxu0 %vm295_vm1, %v8368_v42  ;;  %v3704_v28 = vld [vmem:[%s12508_s25 + $0x120] sm:$0xff] }
 0x361   : > { %10843 = vmatprep.mubr.msk.bf16.mxu1 %vm295_vm1, %v3725_v63  ;;  %11406 = vmatpush3.bf16.msra.mxu0 %v8808_v15  ;;  %v8337_v42 = vld [vmem:[%s12508_s25 + $0xa3] sm:$0xff]  ;;  %v8338_v63 = vld [vmem:[%s12508_s25 + $0xab] sm:$0xff]  ;;  %v3728_v51 = vpack.c.bf16 %v3704_v28, %v3703_v49  ;;  %v8343_v49 = vld [vmem:[%s12508_s25 + $0xd3] sm:$0xff] }
 0x362   : > { %11369 = vmatprep.mubr.msk.bf16.mxu0 %vm295_vm1, %v8369_v14  ;;  %v3705_v14 = vld [vmem:[%s12508_s25 + $0x128] sm:$0xff]  ;;  %v3706_v15 = vld [vmem:[%s12508_s25 + $0x130] sm:$0xff]  ;;  %v8372_v37 = vpack.c.bf16 %v8338_v63, %v8337_v42  ;;  %v8344_v28 = vld [vmem:[%s12508_s25 + $0xdb] sm:$0xff]  ;;  %v3730_v42 = vpack.c.bf16 %v3708_v29, %v3707_v48 }
 0x363   : > { %v3729_v44 = vpack.c.bf16 %v3706_v15, %v3705_v14  ;;  %v8375_v15 = vpack.c.bf16 %v8344_v28, %v8343_v49  ;;  %v8347_v48 = vld [vmem:[%s12508_s25 + $0xf3] sm:$0xff]  ;;  %v8348_v29 = vld [vmem:[%s12508_s25 + $0xfb] sm:$0xff] }
 0x364   : > { %v4033_v49 = vld [vmem:[%s12508_s25 + $0x39] sm:$0xff]  ;;  %v4034_v28 = vld [vmem:[%s12508_s25 + $0x41] sm:$0xff] }
 0x368   : > { %10844 = vmatmul.mubr.msk.bf16.gmra.mrb[24].mxu1 %vm295_vm1, %v3726_v1  ;;  %11370 = vmatmul.mubr.msk.bf16.gmra.mrb[4].mxu0 %vm295_vm1, %v8370_v54  ;;  %v8341_v1 = vld [vmem:[%s12508_s25 + $0xc3] sm:$0xff]  ;;  %v8342_v54 = vld [vmem:[%s12508_s25 + $0xcb] sm:$0xff] }
 0x369   : > { %10847 = vmatprep.mubr.msk.bf16.mxu1 %vm295_vm1, %v3727_v9  ;;  %11373 = vmatprep.mubr.msk.bf16.mxu0 %vm295_vm1, %v8371_v32  ;;  %v3709_v9 = vld [vmem:[%s12508_s25 + $0x148] sm:$0xff]  ;;  %v3710_v32 = vld [vmem:[%s12508_s25 + $0x150] sm:$0xff]  ;;  %v8374_v63 = vpack.c.bf16 %v8342_v54, %v8341_v1  ;;  %v3732_v1 = vpack.c.bf16 %v3712_v30, %v3711_v47  ;;  %v8352_v47 = vld [vmem:[%s12508_s25 + $0x11b] sm:$0xff]  ;;  %v4072_v30 = vpack.c.bf16 %v4034_v28, %v4033_v49 }
 0x36a   : > { %v3731_v14 = vpack.c.bf16 %v3710_v32, %v3709_v9  ;;  %v8377_v32 = vpack.c.bf16 %v8348_v29, %v8347_v48  ;;  %v8353_v48 = vld [vmem:[%s12508_s25 + $0x123] sm:$0xff]  ;;  %v8354_v29 = vld [vmem:[%s12508_s25 + $0x12b] sm:$0xff] }
 0x36b   : > { %v8357_v28 = vld [vmem:[%s12508_s25 + $0x143] sm:$0xff] }
 0x370   : > { %10848 = vmatmul.mubr.msk.bf16.gmra.mrb[28].mxu1 %vm295_vm1, %v3728_v51  ;;  %11374 = vmatmul.mubr.msk.bf16.gmra.mrb[8].mxu0 %vm295_vm1, %v8372_v37  ;;  %v8345_v51 = vld [vmem:[%s12508_s25 + $0xe3] sm:$0xff]  ;;  %v8346_v37 = vld [vmem:[%s12508_s25 + $0xeb] sm:$0xff] }
 0x371   : > { %10851 = vmatprep.mubr.msk.bf16.mxu1 %vm295_vm1, %v3729_v44  ;;  %11377 = vmatprep.mubr.msk.bf16.mxu0 %vm295_vm1, %v8373_v16  ;;  %v4031_v44 = vld [vmem:[%s12508_s25 + $0x29] sm:$0xff]  ;;  %v4032_v16 = vld [vmem:[%s12508_s25 + $0x31] sm:$0xff]  ;;  %v8376_v54 = vpack.c.bf16 %v8346_v37, %v8345_v51 }
 0x372   : > { %v4071_v9 = vpack.c.bf16 %v4032_v16, %v4031_v44  ;;  %v15662_v16 = vld [vmem:[#allocation3_spill] sm:$0xff] }
 0x378   : > { %10852 = vmatmul.mubr.msk.bf16.gmra.mrb[32].mxu1 %vm295_vm1, %v3730_v42  ;;  %11378 = vmatmul.mubr.msk.bf16.gmra.mrb[12].mxu0 %vm295_vm1, %v8374_v63  ;;  %v8349_v42 = vld [vmem:[%s12508_s25 + $0x103] sm:$0xff]  ;;  %v8350_v63 = vld [vmem:[%s12508_s25 + $0x10b] sm:$0xff] }
 0x379   : > { %10855 = vmatprep.mubr.msk.bf16.mxu1 %vm295_vm1, %v3731_v14  ;;  %11381 = vmatprep.mubr.msk.bf16.mxu0 %vm295_vm1, %v8375_v15  ;;  %v4035_v14 = vld [vmem:[%s12508_s25 + $0x49] sm:$0xff]  ;;  %v8351_v15 = vld [vmem:[%s12508_s25 + $0x113] sm:$0xff]  ;;  %v8378_v51 = vpack.c.bf16 %v8350_v63, %v8349_v42  ;;  %v4077_v63 = vpack.c.bf16 %v14538_v20, %v14535_v41  ;;  %v4078_v41 = vpack.c.bf16 %v14558_v35, %v14541_v21  ;;  %v8686_v35 = vld [vmem:[%s12508_s25 + $0x5c] sm:$0xff] }
 0x37a   : > { %v4073_v37 = vpack.c.bf16 %v14485_v23, %v4035_v14  ;;  %v8379_v44 = vpack.c.bf16 %v8352_v47, %v8351_v15  ;;  %v4074_v23 = vpack.c.bf16 %v14501_v17, %v14488_v34  ;;  %v8358_v42 = vld [vmem:[%s12508_s25 + $0x14b] sm:$0xff]  ;;  %v8359_v34 = vld [vmem:[%s12508_s25 + $0x153] sm:$0xff]  ;;  %v8360_v17 = vld [vmem:[%s12508_s25 + $0x15b] sm:$0xff] }
 0x37b   : > { %v8383_v14 = vpack.c.bf16 %v8360_v17, %v8359_v34  ;;  %v8361_v15 = vld [vmem:[%s12508_s25 + $0x163] sm:$0xff]  ;;  %v8362_v47 = vld [vmem:[%s12508_s25 + $0x16b] sm:$0xff]  ;;  %v8685_v21 = vld [vmem:[%s12508_s25 + $0x54] sm:$0xff]  ;;  %v4087_v17 = vpack.c.bf16 %v14673_v52, %v14670_v27  ;;  %v4088_v27 = vpack.c.bf16 %v14693_v56, %v14676_v2 }
 0x37c   : > { %v8384_v20 = vpack.c.bf16 %v8362_v47, %v8361_v15  ;;  %v8696_v34 = vld [vmem:[%s12508_s25 + $0xac] sm:$0xff]  ;;  %v8703_v47 = vld [vmem:[%s12508_s25 + $0xe4] sm:$0xff]  ;;  %v8705_v2 = vld [vmem:[%s12508_s25 + $0xf4] sm:$0xff] }
 0x37d   : > { %v8706_v56 = vld [vmem:[%s12508_s25 + $0xfc] sm:$0xff] }
 0x380   : > { %10856 = vmatmul.mubr.msk.bf16.gmra.mrb[36].mxu1 %vm295_vm1, %v3732_v1  ;;  %11382 = vmatmul.mubr.msk.bf16.gmra.mrb[16].mxu0 %vm295_vm1, %v8376_v54  ;;  %v8355_v1 = vld [vmem:[%s12508_s25 + $0x133] sm:$0xff]  ;;  %v8356_v54 = vld [vmem:[%s12508_s25 + $0x13b] sm:$0xff] }
 0x381   : > { %10861 = vmatprep.mubr.msk.bf16.mxu1 %vm295_vm1, %v4071_v9  ;;  %11385 = vmatprep.mubr.msk.bf16.mxu0 %vm295_vm1, %v8377_v32  ;;  %v8380_v9 = vpack.c.bf16 %v8354_v29, %v8353_v48  ;;  %v4075_v32 = vpack.c.bf16 %v14507_v62, %v14504_v24  ;;  %v8381_v49 = vpack.c.bf16 %v8356_v54, %v8355_v1  ;;  %v8687_v29 = vld [vmem:[%s12508_s25 + $0x64] sm:$0xff]  ;;  %v8688_v1 = vld [vmem:[%s12508_s25 + $0x6c] sm:$0xff] }
 0x382   : > { %v4076_v24 = vpack.c.bf16 %v14532_v36, %v14510_v46  ;;  %v8382_v62 = vpack.c.bf16 %v8358_v42, %v8357_v28  ;;  %v8363_v46 = vld [vmem:[%s12508_s25 + $0x173] sm:$0xff]  ;;  %v8364_v36 = vld [vmem:[%s12508_s25 + $0x17b] sm:$0xff]  ;;  %v8725_v48 = vpack.c.bf16 %v8686_v35, %v8685_v21  ;;  %v4083_v54 = vpack.c.bf16 %v14614_v13, %v14609_v39  ;;  %v8695_v42 = vld [vmem:[%s12508_s25 + $0xa4] sm:$0xff] }
 0x383   : > { %v4084_v39 = vpack.c.bf16 %v14632_v4, %v14617_v31  ;;  %v8697_v31 = vld [vmem:[%s12508_s25 + $0xb4] sm:$0xff]  ;;  %v8698_v4 = vld [vmem:[%s12508_s25 + $0xbc] sm:$0xff]  ;;  %v8712_v21 = vld [vmem:[%s12508_s25 + $0x12c] sm:$0xff]  ;;  %v4443_v35 = vpack.c.bf16 %v14842_v59, %v14837_v7 }
 0x388   : > { %10862 = vmatmul.mubr.msk.bf16.vlgmr.msra.gmra.mrb[0].mxu1 %vm295_vm1, %v4072_v30  ;;  %11386 = vmatmul.mubr.msk.bf16.gmra.mrb[20].mxu0 %vm295_vm1, %v8378_v51  ;;  %v4079_v30 = vpack.c.bf16 %v14564_v60, %v14561_v11  ;;  %v8385_v51 = vpack.c.bf16 %v8364_v36, %v8363_v46  ;;  %v4080_v11 = vpack.c.bf16 %v14582_v57, %v14567_v53  ;;  %v8689_v53 = vld [vmem:[%s12508_s25 + $0x74] sm:$0xff]  ;;  %v8690_v57 = vld [vmem:[%s12508_s25 + $0x7c] sm:$0xff]  ;;  %v8704_v46 = vld [vmem:[%s12508_s25 + $0xec] sm:$0xff] }
 0x389   : > { %11448 = vmatpush3.bf16.msra.mxu1 %v15662_v16  ;;  %10865 = vmatprep.mubr.msk.bf16.mxu1 %vm295_vm1, %v4073_v37  ;;  %v8365_v37 = vld [vmem:[%s12508_s25 + $0x183] sm:$0xff]  ;;  %v4081_v16 = vpack.c.bf16 %v14588_v8, %v14585_v26  ;;  %v4082_v26 = vpack.c.bf16 %v14605_v61, %v14591_v40  ;;  %v8726_v8 = vpack.c.bf16 %v8688_v1, %v8687_v29  ;;  %v8693_v40 = vld [vmem:[%s12508_s25 + $0x94] sm:$0xff] }
 0x38a   : > { %11389 = vmatprep.mubr.msk.bf16.mxu0 %vm295_vm1, %v8379_v44  ;;  %v8366_v44 = vld [vmem:[%s12508_s25 + $0x18b] sm:$0xff]  ;;  %v8694_v61 = vld [vmem:[%s12508_s25 + $0x9c] sm:$0xff]  ;;  %v4439_v36 = vpack.c.bf16 %v14793_v38, %v14790_v25  ;;  %v4440_v25 = vpack.c.bf16 %v14810_v18, %v14796_v12  ;;  %v8713_v12 = vld [vmem:[%s12508_s25 + $0x134] sm:$0xff] }
 0x38b   : > { %v8386_v60 = vpack.c.bf16 %v8366_v44, %v8365_v37  ;;  %v8729_v28 = vpack.c.bf16 %v8694_v61, %v8693_v40  ;;  %v8711_v44 = vld [vmem:[%s12508_s25 + $0x124] sm:$0xff]  ;;  %v8714_v18 = vld [vmem:[%s12508_s25 + $0x13c] sm:$0xff]  ;;  %v15664_v29 = vld [vmem:[#allocation5_spill] sm:$0xff] }
 0x38c   : > { %v15665_v1 = vld [vmem:[#allocation6_spill] sm:$0xff]  ;;  %v15668_v61 = vld [vmem:[#allocation9_spill] sm:$0xff] }
 0x390   : > { %10866 = vmatmul.mubr.msk.bf16.gmra.mrb[4].mxu1 %vm295_vm1, %v4074_v23  ;;  %11390 = vmatmul.mubr.msk.bf16.gmra.mrb[24].mxu0 %vm295_vm1, %v8380_v9  ;;  %v8727_v23 = vpack.c.bf16 %v8690_v57, %v8689_v53  ;;  %v8691_v9 = vld [vmem:[%s12508_s25 + $0x84] sm:$0xff]  ;;  %v4445_v53 = vpack.c.bf16 %v15665_v1, %v15664_v29 }
 0x391   : > { %10869 = vmatprep.mubr.msk.bf16.mxu1 %vm295_vm1, %v4075_v32  ;;  %11393 = vmatprep.mubr.msk.bf16.mxu0 %vm295_vm1, %v8381_v49  ;;  %v8692_v32 = vld [vmem:[%s12508_s25 + $0x8c] sm:$0xff]  ;;  %v4085_v49 = vpack.c.bf16 %v14641_v0, %v14635_v33  ;;  %v4086_v33 = vpack.c.bf16 %v14667_v50, %v14644_v43  ;;  %v8730_v0 = vpack.c.bf16 %v8696_v34, %v8695_v42  ;;  %v8701_v43 = vld [vmem:[%s12508_s25 + $0xd4] sm:$0xff]  ;;  %v8702_v50 = vld [vmem:[%s12508_s25 + $0xdc] sm:$0xff] }
 0x392   : > { %v8728_v13 = vpack.c.bf16 %v8692_v32, %v8691_v9  ;;  %v8733_v15 = vpack.c.bf16 %v8702_v50, %v8701_v43  ;;  %v15667_v9 = vld [vmem:[#allocation8_spill] sm:$0xff]  ;;  %v15670_v34 = vld [vmem:[#allocation11_spill] sm:$0xff] }
 0x393   : > { %v8724_v42 = vld [vmem:[%s12508_s25 + $0x18c] sm:$0xff] }
 0x398   : > { %10870 = vmatmul.mubr.msk.bf16.gmra.mrb[8].mxu1 %vm295_vm1, %v4076_v24  ;;  %11394 = vmatmul.mubr.msk.bf16.gmra.mrb[28].mxu0 %vm295_vm1, %v8382_v62  ;;  %v8731_v24 = vpack.c.bf16 %v8698_v4, %v8697_v31  ;;  %v8699_v62 = vld [vmem:[%s12508_s25 + $0xc4] sm:$0xff] }
 0x399   : > { %10873 = vmatprep.mubr.msk.bf16.mxu1 %vm295_vm1, %v4077_v63  ;;  %11397 = vmatprep.mubr.msk.bf16.mxu0 %vm295_vm1, %v8383_v14  ;;  %v8700_v63 = vld [vmem:[%s12508_s25 + $0xcc] sm:$0xff]  ;;  %v4089_v14 = vpack.c.bf16 %v14699_v10, %v14696_v5  ;;  %v4090_v5 = vpack.c.bf16 %v14717_v3, %v14702_v58  ;;  %v8734_v10 = vpack.c.bf16 %v8704_v46, %v8703_v47  ;;  %v8709_v58 = vld [vmem:[%s12508_s25 + $0x114] sm:$0xff]  ;;  %v8710_v3 = vld [vmem:[%s12508_s25 + $0x11c] sm:$0xff] }
 0x39a   : > { %v8732_v52 = vpack.c.bf16 %v8700_v63, %v8699_v62  ;;  %v8737_v37 = vpack.c.bf16 %v8710_v3, %v8709_v58  ;;  %v15671_v31 = vld [vmem:[#allocation12_spill] sm:$0xff]  ;;  %v15193_v58 = vld [vmem:[%s15310_s2] ss:$0 sm:$0xff] }
 0x39b   : > { %v4448_v4 = vpack.c.bf16 %v15671_v31, %v15670_v34 }
 0x3a0   : > { %10874 = vmatmul.mubr.msk.bf16.gmra.mrb[12].mxu1 %vm295_vm1, %v4078_v41  ;;  %11398 = vmatmul.mubr.msk.bf16.gmra.mrb[32].mxu0 %vm295_vm1, %v8384_v20  ;;  %v8735_v41 = vpack.c.bf16 %v8706_v56, %v8705_v2  ;;  %v8707_v20 = vld [vmem:[%s12508_s25 + $0x104] sm:$0xff] }
 0x3a1   : > { %10877 = vmatprep.mubr.msk.bf16.mxu1 %vm295_vm1, %v4079_v30  ;;  %11401 = vmatprep.mubr.msk.bf16.mxu0 %vm295_vm1, %v8385_v51  ;;  %v8708_v30 = vld [vmem:[%s12508_s25 + $0x10c] sm:$0xff]  ;;  %v4441_v51 = vpack.c.bf16 %v14816_v22, %v14813_v55  ;;  %v4442_v55 = vpack.c.bf16 %v14834_v19, %v14819_v45  ;;  %v8738_v22 = vpack.c.bf16 %v8712_v21, %v8711_v44  ;;  %v8717_v45 = vld [vmem:[%s12508_s25 + $0x154] sm:$0xff]  ;;  %v8718_v19 = vld [vmem:[%s12508_s25 + $0x15c] sm:$0xff] }
 0x3a2   : > { %v8736_v38 = vpack.c.bf16 %v8708_v30, %v8707_v20  ;;  %v8741_v57 = vpack.c.bf16 %v8718_v19, %v8717_v45 }
 0x3a8   : > { %10878 = vmatmul.mubr.msk.bf16.gmra.mrb[16].mxu1 %vm295_vm1, %v4080_v11  ;;  %11402 = vmatmul.mubr.msk.bf16.gmra.mrb[36].mxu0 %vm295_vm1, %v8386_v60  ;;  %v8739_v11 = vpack.c.bf16 %v8714_v18, %v8713_v12  ;;  %v8715_v60 = vld [vmem:[%s12508_s25 + $0x144] sm:$0xff] }
 0x3a9   : > { %10881 = vmatprep.mubr.msk.bf16.mxu1 %vm295_vm1, %v4081_v16  ;;  %11407 = vmatprep.mubr.msk.bf16.mxu0 %vm295_vm1, %v8725_v48  ;;  %v8716_v16 = vld [vmem:[%s12508_s25 + $0x14c] sm:$0xff] }
 0x3aa   : > { %v15663_v48 = vld [vmem:[#allocation4_spill] sm:$0xff]  ;;  %v8740_v59 = vpack.c.bf16 %v8716_v16, %v8715_v60 }
 0x3ab   : > { %v4444_v7 = vpack.c.bf16 %v15663_v48, %v14845_v6  ;;  %v15666_v6 = vld [vmem:[#allocation7_spill] sm:$0xff] }
 0x3ac   : > { %v4446_v32 = vpack.c.bf16 %v15667_v9, %v15666_v6 }
 0x3b0   : > { %10882 = vmatmul.mubr.msk.bf16.gmra.mrb[20].mxu1 %vm295_vm1, %v4082_v26  ;;  %11408 = vmatmul.mubr.msk.bf16.vlgmr.msra.gmra.mrb[0].mxu0 %vm295_vm1, %v8726_v8  ;;  %v8719_v26 = vld [vmem:[%s12508_s25 + $0x164] sm:$0xff]  ;;  %v8720_v8 = vld [vmem:[%s12508_s25 + $0x16c] sm:$0xff] }
 0x3b1   : > { %10885 = vmatprep.mubr.msk.bf16.mxu1 %vm295_vm1, %v4083_v54  ;;  %11411 = vmatprep.mubr.msk.bf16.mxu0 %vm295_vm1, %v8727_v23  ;;  %v8721_v54 = vld [vmem:[%s12508_s25 + $0x174] sm:$0xff]  ;;  %v8722_v23 = vld [vmem:[%s12508_s25 + $0x17c] sm:$0xff]  ;;  %v8742_v40 = vpack.c.bf16 %v8720_v8, %v8719_v26 }
 0x3b8   : > { %10886 = vmatmul.mubr.msk.bf16.gmra.mrb[24].mxu1 %vm295_vm1, %v4084_v39  ;;  %11412 = vmatmul.mubr.msk.bf16.gmra.mrb[4].mxu0 %vm295_vm1, %v8728_v13  ;;  %v15669_v39 = vld [vmem:[#allocation10_spill] sm:$0xff] }
 0x3b9   : > { %10889 = vmatprep.mubr.msk.bf16.mxu1 %vm295_vm1, %v4085_v49  ;;  %11415 = vmatprep.mubr.msk.bf16.mxu0 %vm295_vm1, %v8729_v28  ;;  %v4447_v13 = vpack.c.bf16 %v15669_v39, %v15668_v61  ;;  %v8743_v49 = vpack.c.bf16 %v8722_v23, %v8721_v54  ;;  %v8723_v28 = vld [vmem:[%s12508_s25 + $0x184] sm:$0xff] }
 0x3c0   : > { %10890 = vmatmul.mubr.msk.bf16.gmra.mrb[28].mxu1 %vm295_vm1, %v4086_v33  ;;  %11416 = vmatmul.mubr.msk.bf16.gmra.mrb[8].mxu0 %vm295_vm1, %v8730_v0  ;;  %v8744_v33 = vpack.c.bf16 %v8724_v42, %v8723_v28 }
 0x3c1   : > { %10893 = vmatprep.mubr.msk.bf16.mxu1 %vm295_vm1, %v4087_v17  ;;  %11419 = vmatprep.mubr.msk.bf16.mxu0 %vm295_vm1, %v8731_v24 }
 0x3c8   : > { %10894 = vmatmul.mubr.msk.bf16.gmra.mrb[32].mxu1 %vm295_vm1, %v4088_v27  ;;  %11420 = vmatmul.mubr.msk.bf16.gmra.mrb[12].mxu0 %vm295_vm1, %v8732_v52 }
 0x3c9   : > { %10897 = vmatprep.mubr.msk.bf16.mxu1 %vm295_vm1, %v4089_v14  ;;  %11423 = vmatprep.mubr.msk.bf16.mxu0 %vm295_vm1, %v8733_v15 }
 0x3d0   : > { %10898 = vmatmul.mubr.msk.bf16.gmra.mrb[36].mxu1 %vm295_vm1, %v4090_v5  ;;  %11424 = vmatmul.mubr.msk.bf16.gmra.mrb[16].mxu0 %vm295_vm1, %v8734_v10 }
 0x3d1   : > { %10923 = vmatprep.mubr.msk.bf16.mxu1 %vm295_vm1, %v4439_v36  ;;  %11427 = vmatprep.mubr.msk.bf16.mxu0 %vm295_vm1, %v8735_v41 }
 0x3d8   : > { %10924 = vmatmul.mubr.msk.bf16.vlgmr.msra.gmra.mrb[20].mxu1 %vm295_vm1, %v4440_v25  ;;  %11428 = vmatmul.mubr.msk.bf16.gmra.mrb[20].mxu0 %vm295_vm1, %v8736_v38 }
 0x3d9   : > { %10927 = vmatprep.mubr.msk.bf16.mxu1 %vm295_vm1, %v4441_v51  ;;  %11431 = vmatprep.mubr.msk.bf16.mxu0 %vm295_vm1, %v8737_v37 }
 0x3e0   : > { %10928 = vmatmul.mubr.msk.bf16.gmra.mrb[24].mxu1 %vm295_vm1, %v4442_v55  ;;  %11432 = vmatmul.mubr.msk.bf16.gmra.mrb[24].mxu0 %vm295_vm1, %v8738_v22 }
 0x3e1   : > { %10931 = vmatprep.mubr.msk.bf16.mxu1 %vm295_vm1, %v4443_v35  ;;  %11435 = vmatprep.mubr.msk.bf16.mxu0 %vm295_vm1, %v8739_v11 }
 0x3e8   : > { %10932 = vmatmul.mubr.msk.bf16.gmra.mrb[28].mxu1 %vm295_vm1, %v4444_v7  ;;  %11436 = vmatmul.mubr.msk.bf16.gmra.mrb[28].mxu0 %vm295_vm1, %v8740_v59 }
 0x3e9   : > { %10935 = vmatprep.mubr.msk.bf16.mxu1 %vm295_vm1, %v4445_v53  ;;  %11439 = vmatprep.mubr.msk.bf16.mxu0 %vm295_vm1, %v8741_v57 }
 0x3f0   : > { %10936 = vmatmul.mubr.msk.bf16.gmra.mrb[32].mxu1 %vm295_vm1, %v4446_v32  ;;  %11440 = vmatmul.mubr.msk.bf16.gmra.mrb[32].mxu0 %vm295_vm1, %v8742_v40 }
 0x3f1   : > { %10939 = vmatprep.mubr.msk.bf16.mxu1 %vm295_vm1, %v4447_v13  ;;  %11443 = vmatprep.mubr.msk.bf16.mxu0 %vm295_vm1, %v8743_v49 }
 0x3f8   : > { %10940 = vmatmul.mubr.msk.bf16.gmra.mrb[36].mxu1 %vm295_vm1, %v4448_v4  ;;  %11444 = vmatmul.mubr.msk.bf16.gmra.mrb[36].mxu0 %vm295_vm1, %v8744_v33 }
 0x45b   : > { %v10863_v0 = vpop.f32.mrb[0].mxu1 }
 0x45c   : > { %v4190_v17 = vpop.f32.mrb[1].mxu1 }
 0x45d   : > { %v10864_v24 = vpop.f32.mrb[2].mxu1 }
 0x45e   : > { %v4193_v62 = vpop.f32.mrb[3].mxu1 }
 0x463   : > { %v10867_v63 = vpop.f32.mrb[4].mxu1 }
 0x464   : > { %v4206_v43 = vpop.f32.mrb[5].mxu1 }
 0x465   : > { %v10868_v50 = vpop.f32.mrb[6].mxu1 }
 0x466   : > { %v4209_v27 = vpop.f32.mrb[7].mxu1 }
 0x46b   : > { %v10871_v52 = vpop.f32.mrb[8].mxu1 }
 0x46c   : > { %v4222_v14 = vpop.f32.mrb[9].mxu1 }
 0x46d   : > { %v10872_v15 = vpop.f32.mrb[10].mxu1 }
 0x46e   : > { %v4225_v47 = vpop.f32.mrb[11].mxu1 }
 0x473   : > { %v15174_v46 = vpop.f32.mrb[12].mxu1 }
 0x474   : > { %v15176_v2 = vpop.f32.mrb[13].mxu1 }
 0x475   : > { %v15178_v56 = vpop.f32.mrb[14].mxu1 }
 0x476   : > { %v15180_v5 = vpop.f32.mrb[15].mxu1 }
 0x47b   : > { %v15182_v10 = vpop.f32.mrb[16].mxu1 }
 0x47c   : > { %v15184_v36 = vpop.f32.mrb[17].mxu1 }
 0x47d   : > { %v15186_v41 = vpop.f32.mrb[18].mxu1 }
 0x47e   : > { %v15188_v20 = vpop.f32.mrb[19].mxu1 }
 0x483   : > { %v11409_v30 = vpop.f32.mrb[0].mxu0 }
 0x484   : > { %v11449_v3 = vadd.f32 %v11409_v30, %v10863_v0  ;;  %v8844_v25 = vpop.f32.mrb[1].mxu0 }
 0x485   : > { %v11450_v38 = vadd.f32 %v8844_v25, %v4190_v17  ;;  %v11410_v51 = vpop.f32.mrb[2].mxu0 }
 0x486   : > { %v9052_v37 = vadd.f32 %v11449_v3, %v15193_v58  ;;  %v11451_v44 = vadd.f32 %v11410_v51, %v10864_v24  ;;  %v8847_v21 = vpop.f32.mrb[3].mxu0 }
 0x487   : > { %v9050_v12 = vadd.f32 %v11450_v38, %v15193_v58  ;;  %v11452_v18 = vadd.f32 %v8847_v21, %v4193_v62 }
 0x488   : > { %v9092_v55 = vmax.f32 %v9052_v37, 0.0  ;;  %v9053_v22 = vadd.f32 %v11451_v44, %v15193_v58 }
 0x489   : > { %v9090_v35 = vmax.f32 %v9050_v12, 0.0  ;;  %v9051_v11 = vadd.f32 %v11452_v18, %v15193_v58 }
 0x48a   : > { %9133 = vst.msk [vmem:[#allocation2 + $0x10] sm:$0xff] %vm9130_vm2, %v9092_v55  ;;  %v9093_v60 = vmax.f32 %v9053_v22, 0.0 }
 0x48b   : > { %9131 = vst.msk [vmem:[#allocation2] sm:$0xff] %vm9130_vm2, %v9090_v35  ;;  %v9091_v16 = vmax.f32 %v9051_v11, 0.0  ;;  %v11413_v45 = vpop.f32.mrb[4].mxu0 }
 0x48c   : > { %9134 = vst.msk [vmem:[#allocation2 + $0x18] sm:$0xff] %vm9130_vm2, %v9093_v60  ;;  %v11453_v19 = vadd.f32 %v11413_v45, %v10867_v63  ;;  %v8860_v48 = vpop.f32.mrb[5].mxu0 }
 0x48d   : > { %9132 = vst.msk [vmem:[#allocation2 + $0x8] sm:$0xff] %vm9130_vm2, %v9091_v16  ;;  %v11454_v7 = vadd.f32 %v8860_v48, %v4206_v43  ;;  %v11414_v59 = vpop.f32.mrb[6].mxu0 }
 0x48e   : > { %v9056_v29 = vadd.f32 %v11453_v19, %v15193_v58  ;;  %v11455_v1 = vadd.f32 %v11414_v59, %v10868_v50  ;;  %v8863_v53 = vpop.f32.mrb[7].mxu0 }
 0x48f   : > { %v9054_v57 = vadd.f32 %v11454_v7, %v15193_v58  ;;  %v11456_v26 = vadd.f32 %v8863_v53, %v4209_v27 }
 0x490   : > { %v9096_v8 = vmax.f32 %v9056_v29, 0.0  ;;  %v9057_v54 = vadd.f32 %v11455_v1, %v15193_v58 }
 0x491   : > { %v9094_v23 = vmax.f32 %v9054_v57, 0.0  ;;  %v9055_v6 = vadd.f32 %v11456_v26, %v15193_v58 }
 0x492   : > { %9137 = vst.msk [vmem:[#allocation2 + $0x30] sm:$0xff] %vm9130_vm2, %v9096_v8  ;;  %v9097_v9 = vmax.f32 %v9057_v54, 0.0 }
 0x493   : > { %9135 = vst.msk [vmem:[#allocation2 + $0x20] sm:$0xff] %vm9130_vm2, %v9094_v23  ;;  %v9095_v32 = vmax.f32 %v9055_v6, 0.0  ;;  %v11417_v40 = vpop.f32.mrb[8].mxu0 }
 0x494   : > { %9138 = vst.msk [vmem:[#allocation2 + $0x38] sm:$0xff] %vm9130_vm2, %v9097_v9  ;;  %v11457_v61 = vadd.f32 %v11417_v40, %v10871_v52  ;;  %v8876_v39 = vpop.f32.mrb[9].mxu0  ;;  %v9172_v33 = vld [vmem:[#allocation2 + $0x2] ss:$2 sm:$0xff]  ;;  %v9174_v0 = vld [vmem:[#allocation2 + $0x3] ss:$2 sm:$0xff] }
 0x495   : > { %9136 = vst.msk [vmem:[#allocation2 + $0x28] sm:$0xff] %vm9130_vm2, %v9095_v32  ;;  %v11458_v13 = vadd.f32 %v8876_v39, %v4222_v14  ;;  %v11418_v49 = vpop.f32.mrb[10].mxu0  ;;  %v9175_v52 = vmax.f32 %v9172_v33, %v9174_v0 }
 0x496   : > { %v9060_v28 = vadd.f32 %v11457_v61, %v15193_v58  ;;  %v11459_v42 = vadd.f32 %v11418_v49, %v10872_v15  ;;  %v8879_v34 = vpop.f32.mrb[11].mxu0 }
 0x497   : > { %v9058_v31 = vadd.f32 %v11458_v13, %v15193_v58  ;;  %v11460_v4 = vadd.f32 %v8879_v34, %v4225_v47 }
 0x498   : > { %v9100_v17 = vmax.f32 %v9060_v28, 0.0  ;;  %v9061_v24 = vadd.f32 %v11459_v42, %v15193_v58 }
 0x499   : > { %v9098_v62 = vmax.f32 %v9058_v31, 0.0  ;;  %v9059_v63 = vadd.f32 %v11460_v4, %v15193_v58 }
 0x49a   : > { %v9177_v43 = vld [vmem:[#allocation2 + $0x16] ss:$2 sm:$0xff]  ;;  %v9179_v50 = vld [vmem:[#allocation2 + $0x17] ss:$2 sm:$0xff]  ;;  %9141 = vst.msk [vmem:[#allocation2 + $0x50] sm:$0xff] %vm9130_vm2, %v9100_v17  ;;  %v9101_v27 = vmax.f32 %v9061_v24, 0.0 }
 0x49b   : > { %v9180_v14 = vmax.f32 %v9177_v43, %v9179_v50  ;;  %9139 = vst.msk [vmem:[#allocation2 + $0x40] sm:$0xff] %vm9130_vm2, %v9098_v62  ;;  %v9099_v15 = vmax.f32 %v9059_v63, 0.0  ;;  %v11421_v47 = vpop.f32.mrb[12].mxu0 }
 0x49c   : > { %9142 = vst.msk [vmem:[#allocation2 + $0x58] sm:$0xff] %vm9130_vm2, %v9101_v27  ;;  %v11461_v30 = vadd.f32 %v11421_v47, %v15174_v46  ;;  %v8892_v3 = vpop.f32.mrb[13].mxu0  ;;  %v9184_v11 = vld [vmem:[#allocation2 + $0x2a] ss:$2 sm:$0xff] }
 0x49d   : > { %v9181_v25 = vmax.f32 %v9175_v52, %v9180_v14  ;;  %9140 = vst.msk [vmem:[#allocation2 + $0x48] sm:$0xff] %vm9130_vm2, %v9099_v15  ;;  %v11462_v38 = vadd.f32 %v8892_v3, %v15176_v2  ;;  %v11422_v51 = vpop.f32.mrb[14].mxu0  ;;  %v9186_v2 = vld [vmem:[#allocation2 + $0x2b] ss:$2 sm:$0xff] }
 0x49e   : > { %v9064_v37 = vadd.f32 %v11461_v30, %v15193_v58  ;;  %v11463_v44 = vadd.f32 %v11422_v51, %v15178_v56  ;;  %v8895_v21 = vpop.f32.mrb[15].mxu0  ;;  %v9187_v7 = vmax.f32 %v9184_v11, %v9186_v2 }
 0x49f   : > { %9182 = vst.msk [vmem:[%s15221_s26] sm:$0xff] %vm9130_vm2, %v9181_v25  ;;  %v9062_v12 = vadd.f32 %v11462_v38, %v15193_v58  ;;  %v11464_v18 = vadd.f32 %v8895_v21, %v15180_v5 }
 0x4a0   : > { %v9104_v55 = vmax.f32 %v9064_v37, 0.0  ;;  %v9065_v46 = vadd.f32 %v11463_v44, %v15193_v58 }
 0x4a1   : > { %v9102_v22 = vmax.f32 %v9062_v12, 0.0  ;;  %v9063_v35 = vadd.f32 %v11464_v18, %v15193_v58 }
 0x4a2   : > { %9145 = vst.msk [vmem:[#allocation2 + $0x70] sm:$0xff] %vm9130_vm2, %v9104_v55  ;;  %v9105_v60 = vmax.f32 %v9065_v46, 0.0 }
 0x4a3   : > { %9143 = vst.msk [vmem:[#allocation2 + $0x60] sm:$0xff] %vm9130_vm2, %v9102_v22  ;;  %v9103_v56 = vmax.f32 %v9063_v35, 0.0  ;;  %v11425_v16 = vpop.f32.mrb[16].mxu0 }
 0x4a4   : > { %v9189_v45 = vld [vmem:[#allocation2 + $0x3e] ss:$2 sm:$0xff]  ;;  %v9191_v19 = vld [vmem:[#allocation2 + $0x3f] ss:$2 sm:$0xff]  ;;  %9146 = vst.msk [vmem:[#allocation2 + $0x78] sm:$0xff] %vm9130_vm2, %v9105_v60  ;;  %v11465_v5 = vadd.f32 %v11425_v16, %v15182_v10  ;;  %v8908_v48 = vpop.f32.mrb[17].mxu0 }
 0x4a5   : > { %v9192_v59 = vmax.f32 %v9189_v45, %v9191_v19  ;;  %9144 = vst.msk [vmem:[#allocation2 + $0x68] sm:$0xff] %vm9130_vm2, %v9103_v56  ;;  %v11466_v29 = vadd.f32 %v8908_v48, %v15184_v36  ;;  %v11426_v1 = vpop.f32.mrb[18].mxu0 }
 0x4a6   : > { %v9068_v53 = vadd.f32 %v11465_v5, %v15193_v58  ;;  %v11467_v57 = vadd.f32 %v11426_v1, %v15186_v41  ;;  %v8911_v26 = vpop.f32.mrb[19].mxu0 }
 0x4a7   : > { %v9193_v8 = vmax.f32 %v9187_v7, %v9192_v59  ;;  %v9066_v54 = vadd.f32 %v11466_v29, %v15193_v58  ;;  %v11468_v23 = vadd.f32 %v8911_v26, %v15188_v20 }
 0x4a8   : > { %v9108_v6 = vmax.f32 %v9068_v53, 0.0  ;;  %v9069_v10 = vadd.f32 %v11467_v57, %v15193_v58 }
 0x4a9   : > { %9862 = vst.msk [vmem:[%s15221_s26 + $0x8] sm:$0xff] %vm9130_vm2, %v9193_v8  ;;  %v9106_v9 = vmax.f32 %v9066_v54, 0.0  ;;  %v9067_v32 = vadd.f32 %v11468_v23, %v15193_v58 }
 0x4aa   : > { %v9197_v36 = vld [vmem:[#allocation2 + $0x52] ss:$2 sm:$0xff]  ;;  %v9199_v40 = vld [vmem:[#allocation2 + $0x53] ss:$2 sm:$0xff]  ;;  %9149 = vst.msk [vmem:[#allocation2 + $0x90] sm:$0xff] %vm9130_vm2, %v9108_v6  ;;  %v9109_v61 = vmax.f32 %v9069_v10, 0.0 }
 0x4ab   : > { %v10925_v41 = vpop.f32.mrb[20].mxu1  ;;  %9147 = vst.msk [vmem:[#allocation2 + $0x80] sm:$0xff] %vm9130_vm2, %v9106_v9  ;;  %v9107_v39 = vmax.f32 %v9067_v32, 0.0  ;;  %v11429_v13 = vpop.f32.mrb[20].mxu0  ;;  %v9200_v4 = vmax.f32 %v9197_v36, %v9199_v40 }
 0x4ac   : > { %v4628_v49 = vpop.f32.mrb[21].mxu1  ;;  %v9202_v20 = vld [vmem:[#allocation2 + $0x66] ss:$2 sm:$0xff]  ;;  %v9204_v28 = vld [vmem:[#allocation2 + $0x67] ss:$2 sm:$0xff]  ;;  %9150 = vst.msk [vmem:[#allocation2 + $0x98] sm:$0xff] %vm9130_vm2, %v9109_v61  ;;  %v11469_v42 = vadd.f32 %v11429_v13, %v10925_v41 }
 0x4ad   : > { %v8924_v34 = vpop.f32.mrb[21].mxu0  ;;  %v10926_v31 = vpop.f32.mrb[22].mxu1  ;;  %v9205_v33 = vmax.f32 %v9202_v20, %v9204_v28  ;;  %9148 = vst.msk [vmem:[#allocation2 + $0x88] sm:$0xff] %vm9130_vm2, %v9107_v39 }
 0x4ae   : > { %v11470_v0 = vadd.f32 %v8924_v34, %v4628_v49  ;;  %v11430_v17 = vpop.f32.mrb[22].mxu0  ;;  %v4631_v24 = vpop.f32.mrb[23].mxu1  ;;  %v9072_v62 = vadd.f32 %v11469_v42, %v15193_v58 }
 0x4af   : > { %v11471_v63 = vadd.f32 %v11430_v17, %v10926_v31  ;;  %v8927_v43 = vpop.f32.mrb[23].mxu0  ;;  %v9206_v50 = vmax.f32 %v9200_v4, %v9205_v33 }
 0x4b0   : > { %v9070_v27 = vadd.f32 %v11470_v0, %v15193_v58  ;;  %v11472_v52 = vadd.f32 %v8927_v43, %v4631_v24  ;;  %v9112_v14 = vmax.f32 %v9072_v62, 0.0 }
 0x4b1   : > { %v9073_v15 = vadd.f32 %v11471_v63, %v15193_v58  ;;  %9863 = vst.msk [vmem:[%s15221_s26 + $0x10] sm:$0xff] %vm9130_vm2, %v9206_v50 }
 0x4b2   : > { %v9110_v47 = vmax.f32 %v9070_v27, 0.0  ;;  %v9071_v30 = vadd.f32 %v11472_v52, %v15193_v58  ;;  %9153 = vst.msk [vmem:[#allocation2 + $0xb0] sm:$0xff] %vm9130_vm2, %v9112_v14 }
 0x4b3   : > { %v9113_v3 = vmax.f32 %v9073_v15, 0.0  ;;  %v10929_v25 = vpop.f32.mrb[24].mxu1  ;;  %v11433_v51 = vpop.f32.mrb[24].mxu0 }
 0x4b4   : > { %9151 = vst.msk [vmem:[#allocation2 + $0xa0] sm:$0xff] %vm9130_vm2, %v9110_v47  ;;  %v9111_v38 = vmax.f32 %v9071_v30, 0.0  ;;  %v4644_v37 = vpop.f32.mrb[25].mxu1  ;;  %v9210_v44 = vld [vmem:[#allocation2 + $0x7a] ss:$2 sm:$0xff]  ;;  %v11473_v18 = vadd.f32 %v11433_v51, %v10929_v25  ;;  %v8940_v22 = vpop.f32.mrb[25].mxu0 }
 0x4b5   : > { %v9212_v21 = vld [vmem:[#allocation2 + $0x7b] ss:$2 sm:$0xff]  ;;  %v9215_v12 = vld [vmem:[#allocation2 + $0x8e] ss:$2 sm:$0xff]  ;;  %9154 = vst.msk [vmem:[#allocation2 + $0xb8] sm:$0xff] %vm9130_vm2, %v9113_v3  ;;  %v10930_v35 = vpop.f32.mrb[26].mxu1  ;;  %v11474_v60 = vadd.f32 %v8940_v22, %v4644_v37 }
 0x4b6   : > { %v9213_v55 = vmax.f32 %v9210_v44, %v9212_v21  ;;  %v9217_v46 = vld [vmem:[#allocation2 + $0x8f] ss:$2 sm:$0xff]  ;;  %9152 = vst.msk [vmem:[#allocation2 + $0xa8] sm:$0xff] %vm9130_vm2, %v9111_v38  ;;  %v9076_v2 = vadd.f32 %v11473_v18, %v15193_v58  ;;  %v11434_v56 = vpop.f32.mrb[26].mxu0  ;;  %v4647_v16 = vpop.f32.mrb[27].mxu1 }
 0x4b7   : > { %v9218_v11 = vmax.f32 %v9215_v12, %v9217_v46  ;;  %v11475_v45 = vadd.f32 %v11434_v56, %v10930_v35  ;;  %v8943_v19 = vpop.f32.mrb[27].mxu0  ;;  %v9074_v7 = vadd.f32 %v11474_v60, %v15193_v58 }
 0x4b8   : > { %v9116_v48 = vmax.f32 %v9076_v2, 0.0  ;;  %v11476_v59 = vadd.f32 %v8943_v19, %v4647_v16 }
 0x4b9   : > { %v9219_v5 = vmax.f32 %v9213_v55, %v9218_v11  ;;  %v9077_v29 = vadd.f32 %v11475_v45, %v15193_v58  ;;  %v9114_v1 = vmax.f32 %v9074_v7, 0.0 }
 0x4ba   : > { %9157 = vst.msk [vmem:[#allocation2 + $0xd0] sm:$0xff] %vm9130_vm2, %v9116_v48  ;;  %v9075_v53 = vadd.f32 %v11476_v59, %v15193_v58 }
 0x4bb   : > { %9864 = vst.msk [vmem:[%s15221_s26 + $0x18] sm:$0xff] %vm9130_vm2, %v9219_v5  ;;  %v10933_v57 = vpop.f32.mrb[28].mxu1  ;;  %v9117_v26 = vmax.f32 %v9077_v29, 0.0  ;;  %v11437_v8 = vpop.f32.mrb[28].mxu0  ;;  %9155 = vst.msk [vmem:[#allocation2 + $0xc0] sm:$0xff] %vm9130_vm2, %v9114_v1 }
 0x4bc   : > { %v4660_v54 = vpop.f32.mrb[29].mxu1  ;;  %v9115_v23 = vmax.f32 %v9075_v53, 0.0  ;;  %v11477_v6 = vadd.f32 %v11437_v8, %v10933_v57  ;;  %v8956_v10 = vpop.f32.mrb[29].mxu0 }
 0x4bd   : > { %9158 = vst.msk [vmem:[#allocation2 + $0xd8] sm:$0xff] %vm9130_vm2, %v9117_v26  ;;  %v11478_v9 = vadd.f32 %v8956_v10, %v4660_v54  ;;  %v10934_v32 = vpop.f32.mrb[30].mxu1  ;;  %v11438_v36 = vpop.f32.mrb[30].mxu0  ;;  %v9223_v42 = vld [vmem:[#allocation2 + $0xa2] ss:$2 sm:$0xff] }
 0x4be   : > { %9156 = vst.msk [vmem:[#allocation2 + $0xc8] sm:$0xff] %vm9130_vm2, %v9115_v23  ;;  %v9080_v40 = vadd.f32 %v11477_v6, %v15193_v58  ;;  %v11479_v61 = vadd.f32 %v11438_v36, %v10934_v32  ;;  %v4663_v41 = vpop.f32.mrb[31].mxu1  ;;  %v8959_v39 = vpop.f32.mrb[31].mxu0  ;;  %v9225_v34 = vld [vmem:[#allocation2 + $0xa3] ss:$2 sm:$0xff] }
 0x4bf   : > { %v9078_v13 = vadd.f32 %v11478_v9, %v15193_v58  ;;  %v11480_v49 = vadd.f32 %v8959_v39, %v4663_v41  ;;  %v9226_v43 = vmax.f32 %v9223_v42, %v9225_v34 }
 0x4c0   : > { %v9120_v20 = vmax.f32 %v9080_v40, 0.0  ;;  %v9081_v28 = vadd.f32 %v11479_v61, %v15193_v58 }
 0x4c1   : > { %v9118_v31 = vmax.f32 %v9078_v13, 0.0  ;;  %v9079_v4 = vadd.f32 %v11480_v49, %v15193_v58 }
 0x4c2   : > { %9161 = vst.msk [vmem:[#allocation2 + $0xf0] sm:$0xff] %vm9130_vm2, %v9120_v20  ;;  %v9121_v33 = vmax.f32 %v9081_v28, 0.0  ;;  %v9228_v17 = vld [vmem:[#allocation2 + $0xb6] ss:$2 sm:$0xff]  ;;  %v9230_v24 = vld [vmem:[#allocation2 + $0xb7] ss:$2 sm:$0xff] }
 0x4c3   : > { %v10937_v0 = vpop.f32.mrb[32].mxu1  ;;  %9159 = vst.msk [vmem:[#allocation2 + $0xe0] sm:$0xff] %vm9130_vm2, %v9118_v31  ;;  %v9119_v62 = vmax.f32 %v9079_v4, 0.0  ;;  %v11441_v63 = vpop.f32.mrb[32].mxu0  ;;  %v9231_v50 = vmax.f32 %v9228_v17, %v9230_v24 }
 0x4c4   : > { %9162 = vst.msk [vmem:[#allocation2 + $0xf8] sm:$0xff] %vm9130_vm2, %v9121_v33  ;;  %v11481_v27 = vadd.f32 %v11441_v63, %v10937_v0  ;;  %v4676_v52 = vpop.f32.mrb[33].mxu1  ;;  %v8972_v14 = vpop.f32.mrb[33].mxu0 }
 0x4c5   : > { %9160 = vst.msk [vmem:[#allocation2 + $0xe8] sm:$0xff] %vm9130_vm2, %v9119_v62  ;;  %v11482_v15 = vadd.f32 %v8972_v14, %v4676_v52  ;;  %v10938_v47 = vpop.f32.mrb[34].mxu1  ;;  %v11442_v30 = vpop.f32.mrb[34].mxu0  ;;  %v9232_v3 = vmax.f32 %v9226_v43, %v9231_v50  ;;  %v9236_v22 = vld [vmem:[#allocation2 + $0xca] ss:$2 sm:$0xff] }
 0x4c6   : > { %v9084_v25 = vadd.f32 %v11481_v27, %v15193_v58  ;;  %v11483_v38 = vadd.f32 %v11442_v30, %v10938_v47  ;;  %v4679_v51 = vpop.f32.mrb[35].mxu1  ;;  %v8975_v37 = vpop.f32.mrb[35].mxu0  ;;  %v9238_v35 = vld [vmem:[#allocation2 + $0xcb] ss:$2 sm:$0xff] }
 0x4c7   : > { %v9082_v44 = vadd.f32 %v11482_v15, %v15193_v58  ;;  %v11484_v21 = vadd.f32 %v8975_v37, %v4679_v51  ;;  %9865 = vst.msk [vmem:[%s15221_s26 + $0x20] sm:$0xff] %vm9130_vm2, %v9232_v3  ;;  %v9239_v59 = vmax.f32 %v9236_v22, %v9238_v35 }
 0x4c8   : > { %v9124_v12 = vmax.f32 %v9084_v25, 0.0  ;;  %v9085_v18 = vadd.f32 %v11483_v38, %v15193_v58 }
 0x4c9   : > { %v9122_v55 = vmax.f32 %v9082_v44, 0.0  ;;  %v9083_v46 = vadd.f32 %v11484_v21, %v15193_v58 }
 0x4ca   : > { %9165 = vst.msk [vmem:[#allocation2 + $0x110] sm:$0xff] %vm9130_vm2, %v9124_v12  ;;  %v9125_v11 = vmax.f32 %v9085_v18, 0.0 }
 0x4cb   : > { %v10941_v2 = vpop.f32.mrb[36].mxu1  ;;  %9163 = vst.msk [vmem:[#allocation2 + $0x100] sm:$0xff] %vm9130_vm2, %v9122_v55  ;;  %v9123_v60 = vmax.f32 %v9083_v46, 0.0  ;;  %v11445_v56 = vpop.f32.mrb[36].mxu0 }
 0x4cc   : > { %v4692_v16 = vpop.f32.mrb[37].mxu1  ;;  %v9241_v45 = vld [vmem:[#allocation2 + $0xde] ss:$2 sm:$0xff]  ;;  %v9243_v19 = vld [vmem:[#allocation2 + $0xdf] ss:$2 sm:$0xff]  ;;  %9166 = vst.msk [vmem:[#allocation2 + $0x118] sm:$0xff] %vm9130_vm2, %v9125_v11  ;;  %v11485_v5 = vadd.f32 %v11445_v56, %v10941_v2 }
 0x4cd   : > { %v8988_v48 = vpop.f32.mrb[37].mxu0  ;;  %v10942_v7 = vpop.f32.mrb[38].mxu1  ;;  %v9244_v29 = vmax.f32 %v9241_v45, %v9243_v19  ;;  %9164 = vst.msk [vmem:[#allocation2 + $0x108] sm:$0xff] %vm9130_vm2, %v9123_v60 }
 0x4ce   : > { %v11486_v1 = vadd.f32 %v8988_v48, %v4692_v16  ;;  %v11446_v53 = vpop.f32.mrb[38].mxu0  ;;  %v4695_v57 = vpop.f32.mrb[39].mxu1  ;;  %v9088_v26 = vadd.f32 %v11485_v5, %v15193_v58 }
 0x4cf   : > { %v11487_v8 = vadd.f32 %v11446_v53, %v10942_v7  ;;  %v8991_v54 = vpop.f32.mrb[39].mxu0  ;;  %v9245_v23 = vmax.f32 %v9239_v59, %v9244_v29 }
 0x4d0   : > { %v9086_v6 = vadd.f32 %v11486_v1, %v15193_v58  ;;  %v11488_v10 = vadd.f32 %v8991_v54, %v4695_v57  ;;  %v9128_v9 = vmax.f32 %v9088_v26, 0.0 }
 0x4d1   : > { %v9089_v32 = vadd.f32 %v11487_v8, %v15193_v58  ;;  %9866 = vst.msk [vmem:[%s15221_s26 + $0x28] sm:$0xff] %vm9130_vm2, %v9245_v23 }
 0x4d2   : > { %v9126_v36 = vmax.f32 %v9086_v6, 0.0  ;;  %v9087_v40 = vadd.f32 %v11488_v10, %v15193_v58  ;;  %v9249_v61 = vld [vmem:[#allocation2 + $0xf2] ss:$2 sm:$0xff]  ;;  %v9251_v41 = vld [vmem:[#allocation2 + $0xf3] ss:$2 sm:$0xff]  ;;  %9169 = vst.msk [vmem:[#allocation2 + $0x130] sm:$0xff] %vm9130_vm2, %v9128_v9 }
 0x4d3   : > { %v9129_v39 = vmax.f32 %v9089_v32, 0.0  ;;  %v9252_v28 = vmax.f32 %v9249_v61, %v9251_v41 }
 0x4d4   : > { %9167 = vst.msk [vmem:[#allocation2 + $0x120] sm:$0xff] %vm9130_vm2, %v9126_v36  ;;  %v9127_v13 = vmax.f32 %v9087_v40, 0.0  ;;  %v9254_v49 = vld [vmem:[#allocation2 + $0x106] ss:$2 sm:$0xff]  ;;  %v9256_v20 = vld [vmem:[#allocation2 + $0x107] ss:$2 sm:$0xff] }
 0x4d5   : > { %9170 = vst.msk [vmem:[#allocation2 + $0x138] sm:$0xff] %vm9130_vm2, %v9129_v39  ;;  %v9257_v42 = vmax.f32 %v9254_v49, %v9256_v20 }
 0x4d6   : > { %9168 = vst.msk [vmem:[#allocation2 + $0x128] sm:$0xff] %vm9130_vm2, %v9127_v13 }
 0x4d7   : > { %v9258_v34 = vmax.f32 %v9252_v28, %v9257_v42 }
 0x4d9   : > { %9867 = vst.msk [vmem:[%s15221_s26 + $0x30] sm:$0xff] %vm9130_vm2, %v9258_v34 }
 0x4dd   : > { %v9262_v58 = vld [vmem:[#allocation2 + $0x11a] ss:$2 sm:$0xff]  ;;  %v9264_v31 = vld [vmem:[#allocation2 + $0x11b] ss:$2 sm:$0xff] }
 0x4de   : > { %v9267_v4 = vld [vmem:[#allocation2 + $0x12e] ss:$2 sm:$0xff]  ;;  %v9265_v33 = vmax.f32 %v9262_v58, %v9264_v31  ;;  %v9269_v0 = vld [vmem:[#allocation2 + $0x12f] ss:$2 sm:$0xff] }
 0x4df   : > { %v9270_v17 = vmax.f32 %v9267_v4, %v9269_v0 }
 0x4e1   : > { %v9271_v24 = vmax.f32 %v9265_v33, %v9270_v17 }
 0x4e3   : > { %9868 = vst.msk [vmem:[%s15221_s26 + $0x38] sm:$0xff] %vm9130_vm2, %v9271_v24 }
 0x4e4 PF: > { %s13_s12 = sadd.s32 1, %s12451_s12  }
 0x4e5   : > { %p10_p4 = scmp.ge.s32.totalorder %s13_s12, 4  }
 0x4e7   :  { %12 = sbr.rel (!%p10_p4) target bundleno = 1 (0x1), region = 125 }

</bundles_post_ra>
